<compile_context>
chip_gen: v7x
topology: tpu7x:2x2x1
jax: 0.10.0
libtpu: 0.0.40
codegen_flags: <defaults>
</compile_context>

<pallas_src>
import functools

import jax
import jax.numpy as jnp
from jax.experimental import pallas as pl
from jax.experimental.pallas import tpu as pltpu


def _fused_kernel(xm_ref, xh_ref, ym_ref, yh_ref, w1p_ref, w2_ref, bt_ref,
                  scale_ref, shift_ref, o_ref, cp_ref, xps_ref, acc_ref):
    """One (batch, row-tile) step of ConvT(4,s2,p1) + concat + Conv3x3 + BN + ReLU.

      xm_ref  : (TH, W+2, F)        f32   main rows of 2-row/1-col padded x
      xh_ref  : (4, W+2, F)         f32   4 overlapping halo rows below the tile
      ym_ref  : (2, 2, TH, W, Cy)   f32   parity-split, row-padded skip tensor
      yh_ref  : (2, 2, 2, W, Cy)    f32   2 halo rows of the same
      w1p_ref : (4, 4F, F)          bf16  per-phase tap-stacked ConvT weights
      w2_ref  : (9, C, F)           bf16  per-tap 3x3 conv weights
      bt/scale/shift : (1, F)       f32
      o_ref   : (2, TH, W, 2F)      f32   output; col parity folded into lanes
      cp_ref  : (2, 2, TH+2, W+1, C) bf16 scratch: parity-split cat + conv halo
      xps_ref : (TH+4, W+2, F)      f32   scratch: assembled x row window
      acc_ref : (TH*W, F)           f32   scratch: conv2 accumulator
    """
    TH = ym_ref.shape[2]
    W = ym_ref.shape[3]
    F = xm_ref.shape[2]
    C = cp_ref.shape[-1]
    Wp1 = cp_ref.shape[3]                      # W + 1
    ti = pl.program_id(1)
    n_tiles = pl.num_programs(1)

    # -- assemble the overlapping (TH+4)-row input window from main + halo ----
    xps_ref[0:TH] = xm_ref[...]
    xps_ref[TH:TH + 4] = xh_ref[...]

    # -- zero only the 1-column conv halo of the cat planes (interior is fully
    #    overwritten every step; no full-scratch clear) ------------------------
    for u in range(2):
        cp_ref[u, 0, :, W:W + 1, :] = jnp.zeros((TH + 2, 1, C), cp_ref.dtype)
        cp_ref[u, 1, :, 0:1, :] = jnp.zeros((TH + 2, 1, C), cp_ref.dtype)

    # -- ConvTranspose2d as 4 sub-pixel phases, fused with the channel concat.
    #    Each phase computes TH+2 rows (tile + 1 conv-halo row above/below). ---
    for s in range(2):
        for t in range(2):
            taps = [xps_ref[s + di:s + di + TH + 2, t + dj:t + dj + W, :]
                    .astype(jnp.bfloat16)
                    for di in range(2) for dj in range(2)]
            cols = jnp.concatenate(taps, axis=-1).reshape((TH + 2) * W, 4 * F)
            up = jnp.dot(cols, w1p_ref[2 * s + t],
                         preferred_element_type=jnp.float32) + bt_ref[...]
            up = up.reshape(TH + 2, W, F).astype(jnp.bfloat16)
            yblk = jnp.concatenate([ym_ref[s, t], yh_ref[s, t]],
                                   axis=0).astype(jnp.bfloat16)
            cp_ref[s, t, :, t:t + W, :] = jnp.concatenate([up, yblk], axis=-1)

    # -- rows outside the image must read as zero for the 3x3 "same" conv -----
    @pl.when(ti == 0)
    def _():
        for v in range(2):
            cp_ref[1, v, 0:1, :, :] = jnp.zeros((1, Wp1, C), cp_ref.dtype)

    @pl.when(ti == n_tiles - 1)
    def _():
        for v in range(2):
            cp_ref[0, v, TH + 1:TH + 2, :, :] = jnp.zeros((1, Wp1, C),
                                                          cp_ref.dtype)

    # -- Conv2d(C, F, 3, pad=1) + folded BN + ReLU: per-tap accumulation ------
    for s in range(2):
        for t in range(2):
            first = True
            for kh in range(3):
                for kw in range(3):
                    m = s + kh - 1
                    n = t + kw - 1
                    u, da = m % 2, m // 2
                    v, db = n % 2, n // 2
                    lhs = cp_ref[u, v, da + 1:da + 1 + TH,
                                 db + v:db + v + W, :].reshape(TH * W, C)
                    contrib = jnp.dot(lhs, w2_ref[3 * kh + kw],
                                      preferred_element_type=jnp.float32)
                    if first:
                        acc_ref[...] = contrib
                        first = False
                    else:
                        acc_ref[...] += contrib
            outv = jnp.maximum(
                acc_ref[...] * scale_ref[...] + shift_ref[...], 0.0)
            # lane-dense output: column parity t lives in lanes [t*F, (t+1)*F)
            o_ref[s, :, :, t * F:(t + 1) * F] = outv.reshape(TH, W, F)


@functools.partial(jax.jit, static_argnames=("row_tile",))
def upsample_n_concat_1(x, y, params, row_tile=None):
    """x: (B, F, H, W) NCHW;  y: (B, 128-F, 2H, 2W) NCHW;  returns NCHW."""
    wt, bt, wc, bc, gamma, beta, rmean, rvar = params
    B, F, H, W = x.shape
    Cy = y.shape[1]
    C = F + Cy                                   # 128 for this module

    if row_tile is None:
        row_tile = next((th for th in (16, 8, 4) if H % th == 0), H)
    TH = row_tile
    assert H % TH == 0 and TH % 4 == 0, (H, TH)  # TODO(synk): generic H via padding
    n_tiles = H // TH

    # ---- boundary layout plumbing (NCHW module boundary) ---------------------
    xpad2 = jnp.pad(jnp.transpose(x, (0, 2, 3, 1)),
                    ((0, 0), (2, 2), (1, 1), (0, 0)))          # (B, H+4, W+2, F)
    y_p = jnp.transpose(
        jnp.transpose(y, (0, 2, 3, 1)).reshape(B, H, 2, W, 2, Cy),
        (0, 2, 4, 1, 3, 5))                                    # (B, 2, 2, H, W, Cy)
    y_pp = jnp.pad(y_p, ((0, 0), (0, 0), (0, 0), (1, 1), (0, 0), (0, 0)))

    # ---- weight prep / BN fold (eval-mode running stats) ----------------------
    # ConvTranspose2d weight (Cin,Cout,kh,kw) -> fwd-conv weight (kh,kw,Cin,Cout)
    # with spatial flip; split into 4 sub-pixel phases and tap-stack.
    w1 = jnp.transpose(wt[:, :, ::-1, ::-1], (2, 3, 0, 1))      # (4,4,F,F)
    w1p = jnp.stack([w1[s::2, t::2].reshape(4 * F, F)
                     for s in range(2) for t in range(2)],
                    axis=0).astype(jnp.bfloat16)                # (4,4F,F)
    w2t = jnp.transpose(wc, (2, 3, 1, 0)).reshape(9, C, F).astype(jnp.bfloat16)
    # TODO(synk): BatchNorm folded with running stats (eval mode); training-mode
    #             batch statistics are not computed in-kernel.
    eps = 1e-5
    scale = gamma / jnp.sqrt(rvar + eps)
    shift = beta + (bc - rmean) * scale
    bt2 = bt[None, :].astype(jnp.float32)
    scale2 = scale[None, :].astype(jnp.float32)
    shift2 = shift[None, :].astype(jnp.float32)

    out_ph = pl.pallas_call(
        _fused_kernel,
        out_shape=jax.ShapeDtypeStruct((B, n_tiles, 2, TH, W, 2 * F),
                                       jnp.float32),
        grid=(B, n_tiles),
        in_specs=[
            # padded x: main TH rows + 4 overlapping halo rows (same array)
            pl.BlockSpec((None, TH, W + 2, F), lambda b, i: (b, i, 0, 0)),
            pl.BlockSpec((None, 4, W + 2, F),
                         lambda b, i: (b, (i + 1) * (TH // 4), 0, 0)),
            # parity-split, row-padded y: main TH rows + 2 halo rows
            pl.BlockSpec((None, 2, 2, TH, W, Cy),
                         lambda b, i: (b, 0, 0, i, 0, 0)),
            pl.BlockSpec((None, 2, 2, 2, W, Cy),
                         lambda b, i: (b, 0, 0, (i + 1) * (TH // 2), 0, 0)),
            pl.BlockSpec((4, 4 * F, F), lambda b, i: (0, 0, 0)),
            pl.BlockSpec((9, C, F), lambda b, i: (0, 0, 0)),
            pl.BlockSpec((1, F), lambda b, i: (0, 0)),
            pl.BlockSpec((1, F), lambda b, i: (0, 0)),
            pl.BlockSpec((1, F), lambda b, i: (0, 0)),
        ],
        out_specs=pl.BlockSpec((None, None, 2, TH, W, 2 * F),
                               lambda b, i: (b, i, 0, 0, 0, 0)),
        scratch_shapes=[
            pltpu.VMEM((2, 2, TH + 2, W + 1, C), jnp.bfloat16),  # cat planes+halo
            pltpu.VMEM((TH + 4, W + 2, F), jnp.float32),         # x row window
            pltpu.VMEM((TH * W, F), jnp.float32),                # conv2 accumulator
        ],
        compiler_params=pltpu.CompilerParams(
            dimension_semantics=("parallel", "parallel"),
            vmem_limit_bytes=32 * 1024 * 1024),
    )(xpad2, xpad2, y_pp, y_pp, w1p, w2t, bt2, scale2, shift2)

    # parity-split, row-tiled layout -> NCHW
    out = out_ph.reshape(B, n_tiles, 2, TH, W, 2, F)
    out = jnp.transpose(out, (0, 6, 1, 3, 2, 4, 5)).reshape(B, F, 2 * H, 2 * W)
    return out


def _reference(x, y, params):
    """Pure-JAX f32 reference (eval-mode BN), NCHW."""
    wt, bt, wc, bc, gamma, beta, rmean, rvar = params
    w1 = jnp.transpose(wt[:, :, ::-1, ::-1], (1, 0, 2, 3))        # OIHW
    up = jax.lax.conv_general_dilated(
        x, w1, window_strides=(1, 1), padding=((2, 2), (2, 2)),
        lhs_dilation=(2, 2), dimension_numbers=("NCHW", "OIHW", "NCHW"),
        precision=jax.lax.Precision.HIGHEST) + bt[None, :, None, None]
    cat = jnp.concatenate([up, y], axis=1)
    conv = jax.lax.conv_general_dilated(
        cat, wc, window_strides=(1, 1), padding=((1, 1), (1, 1)),
        dimension_numbers=("NCHW", "OIHW", "NCHW"),
        precision=jax.lax.Precision.HIGHEST) + bc[None, :, None, None]
    inv = (gamma / jnp.sqrt(rvar + 1e-5))[None, :, None, None]
    bn = (conv - rmean[None, :, None, None]) * inv + beta[None, :, None, None]
    return jnp.maximum(bn, 0.0)


if __name__ == "__main__":
    key = jax.random.PRNGKey(0)
    ks = jax.random.split(key, 10)

    F_, B, H, W = 64, 2, 8, 8          # 64 + 64 skip channels = 128 for the conv
    x = jax.random.normal(ks[0], (B, F_, H, W), jnp.float32)
    y = jax.random.normal(ks[1], (B, 128 - F_, 2 * H, 2 * W), jnp.float32)

    # deterministic synthetic parameters (PyTorch-shaped)
    wt = 0.05 * jax.random.normal(ks[2], (F_, F_, 4, 4), jnp.float32)   # ConvT: (in,out,kh,kw)
    bt = 0.05 * jax.random.normal(ks[3], (F_,), jnp.float32)
    wc = 0.05 * jax.random.normal(ks[4], (F_, 128, 3, 3), jnp.float32)  # Conv:  (out,in,kh,kw)
    bc = 0.05 * jax.random.normal(ks[5], (F_,), jnp.float32)
    gamma = 1.0 + 0.1 * jax.random.normal(ks[6], (F_,), jnp.float32)
    beta = 0.1 * jax.random.normal(ks[7], (F_,), jnp.float32)
    rmean = 0.1 * jax.random.normal(ks[8], (F_,), jnp.float32)
    rvar = 0.9 + 0.1 * jnp.abs(jax.random.normal(ks[9], (F_,), jnp.float32))
    params = (wt, bt, wc, bc, gamma, beta, rmean, rvar)

    # row_tile=4 -> 2 row tiles per image: exercises the halo / boundary paths.
    out = jax.block_until_ready(upsample_n_concat_1(x, y, params, row_tile=4))
    assert out.shape == (B, F_, 2 * H, 2 * W), out.shape
    assert bool(jnp.all(jnp.isfinite(out)))
    assert bool(jnp.all(out >= 0.0))   # ReLU output

    ref = jax.block_until_ready(_reference(x, y, params))
    max_err = float(jnp.max(jnp.abs(out - ref)))
    assert max_err < 0.2, f"max abs error vs reference: {max_err}"

    print("KERNEL_OK")
</pallas_src>

<mosaic_0001>
module attributes {stable_mosaic.version = 11 : i64} {
  func.func @_fused_kernel(%arg0: i32, %arg1: i32, %arg2: memref<1x4x10x64xf32, #tpu.memory_space<vmem>>, %arg3: memref<1x4x10x64xf32, #tpu.memory_space<vmem>>, %arg4: memref<1x2x2x4x8x64xf32, #tpu.memory_space<vmem>>, %arg5: memref<1x2x2x2x8x64xf32, #tpu.memory_space<vmem>>, %arg6: memref<4x256x64xbf16, #tpu.memory_space<vmem>>, %arg7: memref<9x128x64xbf16, #tpu.memory_space<vmem>>, %arg8: memref<1x64xf32, #tpu.memory_space<vmem>>, %arg9: memref<1x64xf32, #tpu.memory_space<vmem>>, %arg10: memref<1x64xf32, #tpu.memory_space<vmem>>, %arg11: memref<1x1x2x4x8x128xf32, #tpu.memory_space<vmem>>, %arg12: memref<2x2x6x9x128xbf16, #tpu.memory_space<vmem>>, %arg13: memref<8x10x64xf32, #tpu.memory_space<vmem>>, %arg14: memref<32x64xf32, #tpu.memory_space<vmem>>) attributes {dimension_semantics = [#tpu.dimension_semantics<parallel>, #tpu.dimension_semantics<parallel>], iteration_bounds = array<i64: 2, 2>, scalar_prefetch = 0 : i64, scratch_operands = 3 : i64, tpu.core_type = #tpu.core_type<tc>, window_params = [{transform_indices = @transform_0, window_bounds = array<i64: 1, 4, 10, 64>}, {transform_indices = @transform_1, window_bounds = array<i64: 1, 4, 10, 64>}, {transform_indices = @transform_2, window_bounds = array<i64: 1, 2, 2, 4, 8, 64>}, {transform_indices = @transform_3, window_bounds = array<i64: 1, 2, 2, 2, 8, 64>}, {pipeline_mode = #tpu.pipeline_mode<synchronous>, transform_indices = @transform_4, window_bounds = array<i64: 4, 256, 64>}, {pipeline_mode = #tpu.pipeline_mode<synchronous>, transform_indices = @transform_5, window_bounds = array<i64: 9, 128, 64>}, {pipeline_mode = #tpu.pipeline_mode<synchronous>, transform_indices = @transform_6, window_bounds = array<i64: 1, 64>}, {pipeline_mode = #tpu.pipeline_mode<synchronous>, transform_indices = @transform_7, window_bounds = array<i64: 1, 64>}, {pipeline_mode = #tpu.pipeline_mode<synchronous>, transform_indices = @transform_8, window_bounds = array<i64: 1, 64>}, {transform_indices = @transform_9, window_bounds = array<i64: 1, 1, 2, 4, 8, 128>}]} {
    %c0 = arith.constant 0 : index
    %c0_0 = arith.constant 0 : index
    %c0_1 = arith.constant 0 : index
    %c0_2 = arith.constant 0 : index
    %0 = vector.load %arg2[%c0, %c0_0, %c0_1, %c0_2] : memref<1x4x10x64xf32, #tpu.memory_space<vmem>>, vector<1x4x10x64xf32>
    %1 = vector.shape_cast %0 : vector<1x4x10x64xf32> to vector<4x10x64xf32>
    %c0_3 = arith.constant 0 : index
    %c0_4 = arith.constant 0 : index
    %c0_5 = arith.constant 0 : index
    %2 = vector.load %arg13[%c0_3, %c0_4, %c0_5] : memref<8x10x64xf32, #tpu.memory_space<vmem>>, vector<4x10x64xf32>
    tpu.vector_store %arg13[%c0_3, %c0_4, %c0_5], %1 {strides = array<i32>} : memref<8x10x64xf32, #tpu.memory_space<vmem>>, vector<4x10x64xf32>,
    %c0_6 = arith.constant 0 : index
    %c0_7 = arith.constant 0 : index
    %c0_8 = arith.constant 0 : index
    %c0_9 = arith.constant 0 : index
    %3 = vector.load %arg3[%c0_6, %c0_7, %c0_8, %c0_9] : memref<1x4x10x64xf32, #tpu.memory_space<vmem>>, vector<1x4x10x64xf32>
    %4 = vector.shape_cast %3 : vector<1x4x10x64xf32> to vector<4x10x64xf32>
    %c4 = arith.constant 4 : index
    %c0_10 = arith.constant 0 : index
    %c0_11 = arith.constant 0 : index
    %5 = vector.load %arg13[%c4, %c0_10, %c0_11] : memref<8x10x64xf32, #tpu.memory_space<vmem>>, vector<4x10x64xf32>
    tpu.vector_store %arg13[%c4, %c0_10, %c0_11], %4 {strides = array<i32>} : memref<8x10x64xf32, #tpu.memory_space<vmem>>, vector<4x10x64xf32>,
    %cst = arith.constant 0.000000e+00 : bf16
    %6 = vector.broadcast %cst : bf16 to vector<6x1x128xbf16>
    %c0_12 = arith.constant 0 : index
    %c0_13 = arith.constant 0 : index
    %c0_14 = arith.constant 0 : index
    %c8 = arith.constant 8 : index
    %c0_15 = arith.constant 0 : index
    %7 = vector.load %arg12[%c0_12, %c0_13, %c0_14, %c8, %c0_15] : memref<2x2x6x9x128xbf16, #tpu.memory_space<vmem>>, vector<1x1x6x1x128xbf16>
    %8 = vector.shape_cast %7 : vector<1x1x6x1x128xbf16> to vector<6x1x128xbf16>
    %9 = vector.shape_cast %6 : vector<6x1x128xbf16> to vector<1x1x6x1x128xbf16>
    tpu.vector_store %arg12[%c0_12, %c0_13, %c0_14, %c8, %c0_15], %9 {strides = array<i32>} : memref<2x2x6x9x128xbf16, #tpu.memory_space<vmem>>, vector<1x1x6x1x128xbf16>,
    %cst_16 = arith.constant 0.000000e+00 : bf16
    %10 = vector.broadcast %cst_16 : bf16 to vector<6x1x128xbf16>
    %c0_17 = arith.constant 0 : index
    %c1 = arith.constant 1 : index
    %c0_18 = arith.constant 0 : index
    %c0_19 = arith.constant 0 : index
    %c0_20 = arith.constant 0 : index
    %11 = vector.load %arg12[%c0_17, %c1, %c0_18, %c0_19, %c0_20] : memref<2x2x6x9x128xbf16, #tpu.memory_space<vmem>>, vector<1x1x6x1x128xbf16>
    %12 = vector.shape_cast %11 : vector<1x1x6x1x128xbf16> to vector<6x1x128xbf16>
    %13 = vector.shape_cast %10 : vector<6x1x128xbf16> to vector<1x1x6x1x128xbf16>
    tpu.vector_store %arg12[%c0_17, %c1, %c0_18, %c0_19, %c0_20], %13 {strides = array<i32>} : memref<2x2x6x9x128xbf16, #tpu.memory_space<vmem>>, vector<1x1x6x1x128xbf16>,
    %cst_21 = arith.constant 0.000000e+00 : bf16
    %14 = vector.broadcast %cst_21 : bf16 to vector<6x1x128xbf16>
    %c1_22 = arith.constant 1 : index
    %c0_23 = arith.constant 0 : index
    %c0_24 = arith.constant 0 : index
    %c8_25 = arith.constant 8 : index
    %c0_26 = arith.constant 0 : index
    %15 = vector.load %arg12[%c1_22, %c0_23, %c0_24, %c8_25, %c0_26] : memref<2x2x6x9x128xbf16, #tpu.memory_space<vmem>>, vector<1x1x6x1x128xbf16>
    %16 = vector.shape_cast %15 : vector<1x1x6x1x128xbf16> to vector<6x1x128xbf16>
    %17 = vector.shape_cast %14 : vector<6x1x128xbf16> to vector<1x1x6x1x128xbf16>
    tpu.vector_store %arg12[%c1_22, %c0_23, %c0_24, %c8_25, %c0_26], %17 {strides = array<i32>} : memref<2x2x6x9x128xbf16, #tpu.memory_space<vmem>>, vector<1x1x6x1x128xbf16>,
    %cst_27 = arith.constant 0.000000e+00 : bf16
    %18 = vector.broadcast %cst_27 : bf16 to vector<6x1x128xbf16>
    %c1_28 = arith.constant 1 : index
    %c1_29 = arith.constant 1 : index
    %c0_30 = arith.constant 0 : index
    %c0_31 = arith.constant 0 : index
    %c0_32 = arith.constant 0 : index
    %19 = vector.load %arg12[%c1_28, %c1_29, %c0_30, %c0_31, %c0_32] : memref<2x2x6x9x128xbf16, #tpu.memory_space<vmem>>, vector<1x1x6x1x128xbf16>
    %20 = vector.shape_cast %19 : vector<1x1x6x1x128xbf16> to vector<6x1x128xbf16>
    %21 = vector.shape_cast %18 : vector<6x1x128xbf16> to vector<1x1x6x1x128xbf16>
    tpu.vector_store %arg12[%c1_28, %c1_29, %c0_30, %c0_31, %c0_32], %21 {strides = array<i32>} : memref<2x2x6x9x128xbf16, #tpu.memory_space<vmem>>, vector<1x1x6x1x128xbf16>,
    %c0_33 = arith.constant 0 : index
    %c0_34 = arith.constant 0 : index
    %c0_35 = arith.constant 0 : index
    %22 = vector.load %arg13[%c0_33, %c0_34, %c0_35] : memref<8x10x64xf32, #tpu.memory_space<vmem>>, vector<6x8x64xf32>
    %23 = arith.truncf %22 : vector<6x8x64xf32> to vector<6x8x64xbf16>
    %c0_36 = arith.constant 0 : index
    %c1_37 = arith.constant 1 : index
    %c0_38 = arith.constant 0 : index
    %24 = vector.load %arg13[%c0_36, %c1_37, %c0_38] : memref<8x10x64xf32, #tpu.memory_space<vmem>>, vector<6x8x64xf32>
    %25 = arith.truncf %24 : vector<6x8x64xf32> to vector<6x8x64xbf16>
    %c1_39 = arith.constant 1 : index
    %c0_40 = arith.constant 0 : index
    %c0_41 = arith.constant 0 : index
    %26 = vector.load %arg13[%c1_39, %c0_40, %c0_41] : memref<8x10x64xf32, #tpu.memory_space<vmem>>, vector<6x8x64xf32>
    %27 = arith.truncf %26 : vector<6x8x64xf32> to vector<6x8x64xbf16>
    %c1_42 = arith.constant 1 : index
    %c1_43 = arith.constant 1 : index
    %c0_44 = arith.constant 0 : index
    %28 = vector.load %arg13[%c1_42, %c1_43, %c0_44] : memref<8x10x64xf32, #tpu.memory_space<vmem>>, vector<6x8x64xf32>
    %29 = arith.truncf %28 : vector<6x8x64xf32> to vector<6x8x64xbf16>
    %30 = tpu.concatenate %23, %25, %27, %29 in 2 : vector<6x8x64xbf16>, vector<6x8x64xbf16>, vector<6x8x64xbf16>, vector<6x8x64xbf16> -> vector<6x8x256xbf16>
    %31 = vector.shape_cast %30 : vector<6x8x256xbf16> to vector<48x256xbf16>
    %c0_45 = arith.constant 0 : index
    %c0_46 = arith.constant 0 : index
    %c0_47 = arith.constant 0 : index
    %32 = vector.load %arg6[%c0_45, %c0_46, %c0_47] : memref<4x256x64xbf16, #tpu.memory_space<vmem>>, vector<1x256x64xbf16>
    %33 = vector.shape_cast %32 : vector<1x256x64xbf16> to vector<256x64xbf16>
    %cst_48 = arith.constant dense<0.000000e+00> : vector<48x64xf32>
    %34 = tpu.matmul %31, %33, %cst_48 {dimension_numbers = #tpu.dot_dimension_numbers<[1], [0], [0], [1], [0, 0, 1, 1], [], []>} : vector<48x256xbf16>, vector<256x64xbf16>, vector<48x64xf32> -> vector<48x64xf32>
    %c0_49 = arith.constant 0 : index
    %c0_50 = arith.constant 0 : index
    %35 = vector.load %arg8[%c0_49, %c0_50] : memref<1x64xf32, #tpu.memory_space<vmem>>, vector<1x64xf32>
    %36 = vector.broadcast %35 : vector<1x64xf32> to vector<48x64xf32>
    %37 = arith.addf %34, %36 : vector<48x64xf32>
    %38 = vector.shape_cast %37 : vector<48x64xf32> to vector<6x8x64xf32>
    %39 = arith.truncf %38 : vector<6x8x64xf32> to vector<6x8x64xbf16>
    %c0_51 = arith.constant 0 : index
    %c0_52 = arith.constant 0 : index
    %c0_53 = arith.constant 0 : index
    %c0_54 = arith.constant 0 : index
    %c0_55 = arith.constant 0 : index
    %c0_56 = arith.constant 0 : index
    %40 = vector.load %arg4[%c0_51, %c0_52, %c0_53, %c0_54, %c0_55, %c0_56] : memref<1x2x2x4x8x64xf32, #tpu.memory_space<vmem>>, vector<1x1x1x4x8x64xf32>
    %41 = vector.shape_cast %40 : vector<1x1x1x4x8x64xf32> to vector<4x8x64xf32>
    %c0_57 = arith.constant 0 : index
    %c0_58 = arith.constant 0 : index
    %c0_59 = arith.constant 0 : index
    %c0_60 = arith.constant 0 : index
    %c0_61 = arith.constant 0 : index
    %c0_62 = arith.constant 0 : index
    %42 = vector.load %arg5[%c0_57, %c0_58, %c0_59, %c0_60, %c0_61, %c0_62] : memref<1x2x2x2x8x64xf32, #tpu.memory_space<vmem>>, vector<1x1x1x2x8x64xf32>
    %43 = vector.shape_cast %42 : vector<1x1x1x2x8x64xf32> to vector<2x8x64xf32>
    %44 = tpu.concatenate %41, %43 in 0 : vector<4x8x64xf32>, vector<2x8x64xf32> -> vector<6x8x64xf32>
    %45 = arith.truncf %44 : vector<6x8x64xf32> to vector<6x8x64xbf16>
    %46 = tpu.concatenate %39, %45 in 2 : vector<6x8x64xbf16>, vector<6x8x64xbf16> -> vector<6x8x128xbf16>
    %c0_63 = arith.constant 0 : index
    %c0_64 = arith.constant 0 : index
    %c0_65 = arith.constant 0 : index
    %c0_66 = arith.constant 0 : index
    %c0_67 = arith.constant 0 : index
    %47 = vector.load %arg12[%c0_63, %c0_64, %c0_65, %c0_66, %c0_67] : memref<2x2x6x9x128xbf16, #tpu.memory_space<vmem>>, vector<1x1x6x8x128xbf16>
    %48 = vector.shape_cast %47 : vector<1x1x6x8x128xbf16> to vector<6x8x128xbf16>
    %49 = vector.shape_cast %46 : vector<6x8x128xbf16> to vector<1x1x6x8x128xbf16>
    tpu.vector_store %arg12[%c0_63, %c0_64, %c0_65, %c0_66, %c0_67], %49 {strides = array<i32>} : memref<2x2x6x9x128xbf16, #tpu.memory_space<vmem>>, vector<1x1x6x8x128xbf16>,
    %c0_68 = arith.constant 0 : index
    %c1_69 = arith.constant 1 : index
    %c0_70 = arith.constant 0 : index
    %50 = vector.load %arg13[%c0_68, %c1_69, %c0_70] : memref<8x10x64xf32, #tpu.memory_space<vmem>>, vector<6x8x64xf32>
    %51 = arith.truncf %50 : vector<6x8x64xf32> to vector<6x8x64xbf16>
    %c0_71 = arith.constant 0 : index
    %c2 = arith.constant 2 : index
    %c0_72 = arith.constant 0 : index
    %52 = vector.load %arg13[%c0_71, %c2, %c0_72] : memref<8x10x64xf32, #tpu.memory_space<vmem>>, vector<6x8x64xf32>
    %53 = arith.truncf %52 : vector<6x8x64xf32> to vector<6x8x64xbf16>
    %c1_73 = arith.constant 1 : index
    %c1_74 = arith.constant 1 : index
    %c0_75 = arith.constant 0 : index
    %54 = vector.load %arg13[%c1_73, %c1_74, %c0_75] : memref<8x10x64xf32, #tpu.memory_space<vmem>>, vector<6x8x64xf32>
    %55 = arith.truncf %54 : vector<6x8x64xf32> to vector<6x8x64xbf16>
    %c1_76 = arith.constant 1 : index
    %c2_77 = arith.constant 2 : index
    %c0_78 = arith.constant 0 : index
    %56 = vector.load %arg13[%c1_76, %c2_77, %c0_78] : memref<8x10x64xf32, #tpu.memory_space<vmem>>, vector<6x8x64xf32>
    %57 = arith.truncf %56 : vector<6x8x64xf32> to vector<6x8x64xbf16>
    %58 = tpu.concatenate %51, %53, %55, %57 in 2 : vector<6x8x64xbf16>, vector<6x8x64xbf16>, vector<6x8x64xbf16>, vector<6x8x64xbf16> -> vector<6x8x256xbf16>
    %59 = vector.shape_cast %58 : vector<6x8x256xbf16> to vector<48x256xbf16>
    %c1_79 = arith.constant 1 : index
    %c0_80 = arith.constant 0 : index
    %c0_81 = arith.constant 0 : index
    %60 = vector.load %arg6[%c1_79, %c0_80, %c0_81] : memref<4x256x64xbf16, #tpu.memory_space<vmem>>, vector<1x256x64xbf16>
    %61 = vector.shape_cast %60 : vector<1x256x64xbf16> to vector<256x64xbf16>
    %cst_82 = arith.constant dense<0.000000e+00> : vector<48x64xf32>
    %62 = tpu.matmul %59, %61, %cst_82 {dimension_numbers = #tpu.dot_dimension_numbers<[1], [0], [0], [1], [0, 0, 1, 1], [], []>} : vector<48x256xbf16>, vector<256x64xbf16>, vector<48x64xf32> -> vector<48x64xf32>
    %c0_83 = arith.constant 0 : index
    %c0_84 = arith.constant 0 : index
    %63 = vector.load %arg8[%c0_83, %c0_84] : memref<1x64xf32, #tpu.memory_space<vmem>>, vector<1x64xf32>
    %64 = vector.broadcast %63 : vector<1x64xf32> to vector<48x64xf32>
    %65 = arith.addf %62, %64 : vector<48x64xf32>
    %66 = vector.shape_cast %65 : vector<48x64xf32> to vector<6x8x64xf32>
    %67 = arith.truncf %66 : vector<6x8x64xf32> to vector<6x8x64xbf16>
    %c0_85 = arith.constant 0 : index
    %c0_86 = arith.constant 0 : index
    %c1_87 = arith.constant 1 : index
    %c0_88 = arith.constant 0 : index
    %c0_89 = arith.constant 0 : index
    %c0_90 = arith.constant 0 : index
    %68 = vector.load %arg4[%c0_85, %c0_86, %c1_87, %c0_88, %c0_89, %c0_90] : memref<1x2x2x4x8x64xf32, #tpu.memory_space<vmem>>, vector<1x1x1x4x8x64xf32>
    %69 = vector.shape_cast %68 : vector<1x1x1x4x8x64xf32> to vector<4x8x64xf32>
    %c0_91 = arith.constant 0 : index
    %c0_92 = arith.constant 0 : index
    %c1_93 = arith.constant 1 : index
    %c0_94 = arith.constant 0 : index
    %c0_95 = arith.constant 0 : index
    %c0_96 = arith.constant 0 : index
    %70 = vector.load %arg5[%c0_91, %c0_92, %c1_93, %c0_94, %c0_95, %c0_96] : memref<1x2x2x2x8x64xf32, #tpu.memory_space<vmem>>, vector<1x1x1x2x8x64xf32>
    %71 = vector.shape_cast %70 : vector<1x1x1x2x8x64xf32> to vector<2x8x64xf32>
    %72 = tpu.concatenate %69, %71 in 0 : vector<4x8x64xf32>, vector<2x8x64xf32> -> vector<6x8x64xf32>
    %73 = arith.truncf %72 : vector<6x8x64xf32> to vector<6x8x64xbf16>
    %74 = tpu.concatenate %67, %73 in 2 : vector<6x8x64xbf16>, vector<6x8x64xbf16> -> vector<6x8x128xbf16>
    %c0_97 = arith.constant 0 : index
    %c1_98 = arith.constant 1 : index
    %c0_99 = arith.constant 0 : index
    %c1_100 = arith.constant 1 : index
    %c0_101 = arith.constant 0 : index
    %75 = vector.load %arg12[%c0_97, %c1_98, %c0_99, %c1_100, %c0_101] : memref<2x2x6x9x128xbf16, #tpu.memory_space<vmem>>, vector<1x1x6x8x128xbf16>
    %76 = vector.shape_cast %75 : vector<1x1x6x8x128xbf16> to vector<6x8x128xbf16>
    %77 = vector.shape_cast %74 : vector<6x8x128xbf16> to vector<1x1x6x8x128xbf16>
    tpu.vector_store %arg12[%c0_97, %c1_98, %c0_99, %c1_100, %c0_101], %77 {strides = array<i32>} : memref<2x2x6x9x128xbf16, #tpu.memory_space<vmem>>, vector<1x1x6x8x128xbf16>,
    %c1_102 = arith.constant 1 : index
    %c0_103 = arith.constant 0 : index
    %c0_104 = arith.constant 0 : index
    %78 = vector.load %arg13[%c1_102, %c0_103, %c0_104] : memref<8x10x64xf32, #tpu.memory_space<vmem>>, vector<6x8x64xf32>
    %79 = arith.truncf %78 : vector<6x8x64xf32> to vector<6x8x64xbf16>
    %c1_105 = arith.constant 1 : index
    %c1_106 = arith.constant 1 : index
    %c0_107 = arith.constant 0 : index
    %80 = vector.load %arg13[%c1_105, %c1_106, %c0_107] : memref<8x10x64xf32, #tpu.memory_space<vmem>>, vector<6x8x64xf32>
    %81 = arith.truncf %80 : vector<6x8x64xf32> to vector<6x8x64xbf16>
    %c2_108 = arith.constant 2 : index
    %c0_109 = arith.constant 0 : index
    %c0_110 = arith.constant 0 : index
    %82 = vector.load %arg13[%c2_108, %c0_109, %c0_110] : memref<8x10x64xf32, #tpu.memory_space<vmem>>, vector<6x8x64xf32>
    %83 = arith.truncf %82 : vector<6x8x64xf32> to vector<6x8x64xbf16>
    %c2_111 = arith.constant 2 : index
    %c1_112 = arith.constant 1 : index
    %c0_113 = arith.constant 0 : index
    %84 = vector.load %arg13[%c2_111, %c1_112, %c0_113] : memref<8x10x64xf32, #tpu.memory_space<vmem>>, vector<6x8x64xf32>
    %85 = arith.truncf %84 : vector<6x8x64xf32> to vector<6x8x64xbf16>
    %86 = tpu.concatenate %79, %81, %83, %85 in 2 : vector<6x8x64xbf16>, vector<6x8x64xbf16>, vector<6x8x64xbf16>, vector<6x8x64xbf16> -> vector<6x8x256xbf16>
    %87 = vector.shape_cast %86 : vector<6x8x256xbf16> to vector<48x256xbf16>
    %c2_114 = arith.constant 2 : index
    %c0_115 = arith.constant 0 : index
    %c0_116 = arith.constant 0 : index
    %88 = vector.load %arg6[%c2_114, %c0_115, %c0_116] : memref<4x256x64xbf16, #tpu.memory_space<vmem>>, vector<1x256x64xbf16>
    %89 = vector.shape_cast %88 : vector<1x256x64xbf16> to vector<256x64xbf16>
    %cst_117 = arith.constant dense<0.000000e+00> : vector<48x64xf32>
    %90 = tpu.matmul %87, %89, %cst_117 {dimension_numbers = #tpu.dot_dimension_numbers<[1], [0], [0], [1], [0, 0, 1, 1], [], []>} : vector<48x256xbf16>, vector<256x64xbf16>, vector<48x64xf32> -> vector<48x64xf32>
    %c0_118 = arith.constant 0 : index
    %c0_119 = arith.constant 0 : index
    %91 = vector.load %arg8[%c0_118, %c0_119] : memref<1x64xf32, #tpu.memory_space<vmem>>, vector<1x64xf32>
    %92 = vector.broadcast %91 : vector<1x64xf32> to vector<48x64xf32>
    %93 = arith.addf %90, %92 : vector<48x64xf32>
    %94 = vector.shape_cast %93 : vector<48x64xf32> to vector<6x8x64xf32>
    %95 = arith.truncf %94 : vector<6x8x64xf32> to vector<6x8x64xbf16>
    %c0_120 = arith.constant 0 : index
    %c1_121 = arith.constant 1 : index
    %c0_122 = arith.constant 0 : index
    %c0_123 = arith.constant 0 : index
    %c0_124 = arith.constant 0 : index
    %c0_125 = arith.constant 0 : index
    %96 = vector.load %arg4[%c0_120, %c1_121, %c0_122, %c0_123, %c0_124, %c0_125] : memref<1x2x2x4x8x64xf32, #tpu.memory_space<vmem>>, vector<1x1x1x4x8x64xf32>
    %97 = vector.shape_cast %96 : vector<1x1x1x4x8x64xf32> to vector<4x8x64xf32>
    %c0_126 = arith.constant 0 : index
    %c1_127 = arith.constant 1 : index
    %c0_128 = arith.constant 0 : index
    %c0_129 = arith.constant 0 : index
    %c0_130 = arith.constant 0 : index
    %c0_131 = arith.constant 0 : index
    %98 = vector.load %arg5[%c0_126, %c1_127, %c0_128, %c0_129, %c0_130, %c0_131] : memref<1x2x2x2x8x64xf32, #tpu.memory_space<vmem>>, vector<1x1x1x2x8x64xf32>
    %99 = vector.shape_cast %98 : vector<1x1x1x2x8x64xf32> to vector<2x8x64xf32>
    %100 = tpu.concatenate %97, %99 in 0 : vector<4x8x64xf32>, vector<2x8x64xf32> -> vector<6x8x64xf32>
    %101 = arith.truncf %100 : vector<6x8x64xf32> to vector<6x8x64xbf16>
    %102 = tpu.concatenate %95, %101 in 2 : vector<6x8x64xbf16>, vector<6x8x64xbf16> -> vector<6x8x128xbf16>
    %c1_132 = arith.constant 1 : index
    %c0_133 = arith.constant 0 : index
    %c0_134 = arith.constant 0 : index
    %c0_135 = arith.constant 0 : index
    %c0_136 = arith.constant 0 : index
    %103 = vector.load %arg12[%c1_132, %c0_133, %c0_134, %c0_135, %c0_136] : memref<2x2x6x9x128xbf16, #tpu.memory_space<vmem>>, vector<1x1x6x8x128xbf16>
    %104 = vector.shape_cast %103 : vector<1x1x6x8x128xbf16> to vector<6x8x128xbf16>
    %105 = vector.shape_cast %102 : vector<6x8x128xbf16> to vector<1x1x6x8x128xbf16>
    tpu.vector_store %arg12[%c1_132, %c0_133, %c0_134, %c0_135, %c0_136], %105 {strides = array<i32>} : memref<2x2x6x9x128xbf16, #tpu.memory_space<vmem>>, vector<1x1x6x8x128xbf16>,
    %c1_137 = arith.constant 1 : index
    %c1_138 = arith.constant 1 : index
    %c0_139 = arith.constant 0 : index
    %106 = vector.load %arg13[%c1_137, %c1_138, %c0_139] : memref<8x10x64xf32, #tpu.memory_space<vmem>>, vector<6x8x64xf32>
    %107 = arith.truncf %106 : vector<6x8x64xf32> to vector<6x8x64xbf16>
    %c1_140 = arith.constant 1 : index
    %c2_141 = arith.constant 2 : index
    %c0_142 = arith.constant 0 : index
    %108 = vector.load %arg13[%c1_140, %c2_141, %c0_142] : memref<8x10x64xf32, #tpu.memory_space<vmem>>, vector<6x8x64xf32>
    %109 = arith.truncf %108 : vector<6x8x64xf32> to vector<6x8x64xbf16>
    %c2_143 = arith.constant 2 : index
    %c1_144 = arith.constant 1 : index
    %c0_145 = arith.constant 0 : index
    %110 = vector.load %arg13[%c2_143, %c1_144, %c0_145] : memref<8x10x64xf32, #tpu.memory_space<vmem>>, vector<6x8x64xf32>
    %111 = arith.truncf %110 : vector<6x8x64xf32> to vector<6x8x64xbf16>
    %c2_146 = arith.constant 2 : index
    %c2_147 = arith.constant 2 : index
    %c0_148 = arith.constant 0 : index
    %112 = vector.load %arg13[%c2_146, %c2_147, %c0_148] : memref<8x10x64xf32, #tpu.memory_space<vmem>>, vector<6x8x64xf32>
    %113 = arith.truncf %112 : vector<6x8x64xf32> to vector<6x8x64xbf16>
    %114 = tpu.concatenate %107, %109, %111, %113 in 2 : vector<6x8x64xbf16>, vector<6x8x64xbf16>, vector<6x8x64xbf16>, vector<6x8x64xbf16> -> vector<6x8x256xbf16>
    %115 = vector.shape_cast %114 : vector<6x8x256xbf16> to vector<48x256xbf16>
    %c3 = arith.constant 3 : index
    %c0_149 = arith.constant 0 : index
    %c0_150 = arith.constant 0 : index
    %116 = vector.load %arg6[%c3, %c0_149, %c0_150] : memref<4x256x64xbf16, #tpu.memory_space<vmem>>, vector<1x256x64xbf16>
    %117 = vector.shape_cast %116 : vector<1x256x64xbf16> to vector<256x64xbf16>
    %cst_151 = arith.constant dense<0.000000e+00> : vector<48x64xf32>
    %118 = tpu.matmul %115, %117, %cst_151 {dimension_numbers = #tpu.dot_dimension_numbers<[1], [0], [0], [1], [0, 0, 1, 1], [], []>} : vector<48x256xbf16>, vector<256x64xbf16>, vector<48x64xf32> -> vector<48x64xf32>
    %c0_152 = arith.constant 0 : index
    %c0_153 = arith.constant 0 : index
    %119 = vector.load %arg8[%c0_152, %c0_153] : memref<1x64xf32, #tpu.memory_space<vmem>>, vector<1x64xf32>
    %120 = vector.broadcast %119 : vector<1x64xf32> to vector<48x64xf32>
    %121 = arith.addf %118, %120 : vector<48x64xf32>
    %122 = vector.shape_cast %121 : vector<48x64xf32> to vector<6x8x64xf32>
    %123 = arith.truncf %122 : vector<6x8x64xf32> to vector<6x8x64xbf16>
    %c0_154 = arith.constant 0 : index
    %c1_155 = arith.constant 1 : index
    %c1_156 = arith.constant 1 : index
    %c0_157 = arith.constant 0 : index
    %c0_158 = arith.constant 0 : index
    %c0_159 = arith.constant 0 : index
    %124 = vector.load %arg4[%c0_154, %c1_155, %c1_156, %c0_157, %c0_158, %c0_159] : memref<1x2x2x4x8x64xf32, #tpu.memory_space<vmem>>, vector<1x1x1x4x8x64xf32>
    %125 = vector.shape_cast %124 : vector<1x1x1x4x8x64xf32> to vector<4x8x64xf32>
    %c0_160 = arith.constant 0 : index
    %c1_161 = arith.constant 1 : index
    %c1_162 = arith.constant 1 : index
    %c0_163 = arith.constant 0 : index
    %c0_164 = arith.constant 0 : index
    %c0_165 = arith.constant 0 : index
    %126 = vector.load %arg5[%c0_160, %c1_161, %c1_162, %c0_163, %c0_164, %c0_165] : memref<1x2x2x2x8x64xf32, #tpu.memory_space<vmem>>, vector<1x1x1x2x8x64xf32>
    %127 = vector.shape_cast %126 : vector<1x1x1x2x8x64xf32> to vector<2x8x64xf32>
    %128 = tpu.concatenate %125, %127 in 0 : vector<4x8x64xf32>, vector<2x8x64xf32> -> vector<6x8x64xf32>
    %129 = arith.truncf %128 : vector<6x8x64xf32> to vector<6x8x64xbf16>
    %130 = tpu.concatenate %123, %129 in 2 : vector<6x8x64xbf16>, vector<6x8x64xbf16> -> vector<6x8x128xbf16>
    %c1_166 = arith.constant 1 : index
    %c1_167 = arith.constant 1 : index
    %c0_168 = arith.constant 0 : index
    %c1_169 = arith.constant 1 : index
    %c0_170 = arith.constant 0 : index
    %131 = vector.load %arg12[%c1_166, %c1_167, %c0_168, %c1_169, %c0_170] : memref<2x2x6x9x128xbf16, #tpu.memory_space<vmem>>, vector<1x1x6x8x128xbf16>
    %132 = vector.shape_cast %131 : vector<1x1x6x8x128xbf16> to vector<6x8x128xbf16>
    %133 = vector.shape_cast %130 : vector<6x8x128xbf16> to vector<1x1x6x8x128xbf16>
    tpu.vector_store %arg12[%c1_166, %c1_167, %c0_168, %c1_169, %c0_170], %133 {strides = array<i32>} : memref<2x2x6x9x128xbf16, #tpu.memory_space<vmem>>, vector<1x1x6x8x128xbf16>,
    %c0_i32 = arith.constant 0 : i32
    %134 = arith.cmpi eq, %arg1, %c0_i32 : i32
    %135 = arith.extui %134 : i1 to i32
    %c0_i32_171 = arith.constant 0 : i32
    %136 = arith.cmpi ne, %135, %c0_i32_171 : i32
    scf.if %136 {
      %cst_681 = arith.constant 0.000000e+00 : bf16
      %508 = vector.broadcast %cst_681 : bf16 to vector<1x9x128xbf16>
      %c1_682 = arith.constant 1 : index
      %c0_683 = arith.constant 0 : index
      %c0_684 = arith.constant 0 : index
      %c0_685 = arith.constant 0 : index
      %c0_686 = arith.constant 0 : index
      %509 = vector.load %arg12[%c1_682, %c0_683, %c0_684, %c0_685, %c0_686] : memref<2x2x6x9x128xbf16, #tpu.memory_space<vmem>>, vector<1x1x1x9x128xbf16>
      %510 = vector.shape_cast %509 : vector<1x1x1x9x128xbf16> to vector<1x9x128xbf16>
      %511 = vector.shape_cast %508 : vector<1x9x128xbf16> to vector<1x1x1x9x128xbf16>
      tpu.vector_store %arg12[%c1_682, %c0_683, %c0_684, %c0_685, %c0_686], %511 {strides = array<i32>} : memref<2x2x6x9x128xbf16, #tpu.memory_space<vmem>>, vector<1x1x1x9x128xbf16>,
      %cst_687 = arith.constant 0.000000e+00 : bf16
      %512 = vector.broadcast %cst_687 : bf16 to vector<1x9x128xbf16>
      %c1_688 = arith.constant 1 : index
      %c1_689 = arith.constant 1 : index
      %c0_690 = arith.constant 0 : index
      %c0_691 = arith.constant 0 : index
      %c0_692 = arith.constant 0 : index
      %513 = vector.load %arg12[%c1_688, %c1_689, %c0_690, %c0_691, %c0_692] : memref<2x2x6x9x128xbf16, #tpu.memory_space<vmem>>, vector<1x1x1x9x128xbf16>
      %514 = vector.shape_cast %513 : vector<1x1x1x9x128xbf16> to vector<1x9x128xbf16>
      %515 = vector.shape_cast %512 : vector<1x9x128xbf16> to vector<1x1x1x9x128xbf16>
      tpu.vector_store %arg12[%c1_688, %c1_689, %c0_690, %c0_691, %c0_692], %515 {strides = array<i32>} : memref<2x2x6x9x128xbf16, #tpu.memory_space<vmem>>, vector<1x1x1x9x128xbf16>,
    } else {
    }
    %c1_i32 = arith.constant 1 : i32
    %137 = arith.cmpi eq, %arg1, %c1_i32 : i32
    %138 = arith.extui %137 : i1 to i32
    %c0_i32_172 = arith.constant 0 : i32
    %139 = arith.cmpi ne, %138, %c0_i32_172 : i32
    scf.if %139 {
      %cst_681 = arith.constant 0.000000e+00 : bf16
      %508 = vector.broadcast %cst_681 : bf16 to vector<1x9x128xbf16>
      %c0_682 = arith.constant 0 : index
      %c0_683 = arith.constant 0 : index
      %c5_684 = arith.constant 5 : index
      %c0_685 = arith.constant 0 : index
      %c0_686 = arith.constant 0 : index
      %509 = vector.load %arg12[%c0_682, %c0_683, %c5_684, %c0_685, %c0_686] : memref<2x2x6x9x128xbf16, #tpu.memory_space<vmem>>, vector<1x1x1x9x128xbf16>
      %510 = vector.shape_cast %509 : vector<1x1x1x9x128xbf16> to vector<1x9x128xbf16>
      %511 = vector.shape_cast %508 : vector<1x9x128xbf16> to vector<1x1x1x9x128xbf16>
      tpu.vector_store %arg12[%c0_682, %c0_683, %c5_684, %c0_685, %c0_686], %511 {strides = array<i32>} : memref<2x2x6x9x128xbf16, #tpu.memory_space<vmem>>, vector<1x1x1x9x128xbf16>,
      %cst_687 = arith.constant 0.000000e+00 : bf16
      %512 = vector.broadcast %cst_687 : bf16 to vector<1x9x128xbf16>
      %c0_688 = arith.constant 0 : index
      %c1_689 = arith.constant 1 : index
      %c5_690 = arith.constant 5 : index
      %c0_691 = arith.constant 0 : index
      %c0_692 = arith.constant 0 : index
      %513 = vector.load %arg12[%c0_688, %c1_689, %c5_690, %c0_691, %c0_692] : memref<2x2x6x9x128xbf16, #tpu.memory_space<vmem>>, vector<1x1x1x9x128xbf16>
      %514 = vector.shape_cast %513 : vector<1x1x1x9x128xbf16> to vector<1x9x128xbf16>
      %515 = vector.shape_cast %512 : vector<1x9x128xbf16> to vector<1x1x1x9x128xbf16>
      tpu.vector_store %arg12[%c0_688, %c1_689, %c5_690, %c0_691, %c0_692], %515 {strides = array<i32>} : memref<2x2x6x9x128xbf16, #tpu.memory_space<vmem>>, vector<1x1x1x9x128xbf16>,
    } else {
    }
    %c1_173 = arith.constant 1 : index
    %c1_174 = arith.constant 1 : index
    %c0_175 = arith.constant 0 : index
    %c0_176 = arith.constant 0 : index
    %c0_177 = arith.constant 0 : index
    %140 = vector.load %arg12[%c1_173, %c1_174, %c0_175, %c0_176, %c0_177] : memref<2x2x6x9x128xbf16, #tpu.memory_space<vmem>>, vector<1x1x4x8x128xbf16>
    %141 = vector.shape_cast %140 : vector<1x1x4x8x128xbf16> to vector<4x8x128xbf16>
    %142 = vector.shape_cast %141 : vector<4x8x128xbf16> to vector<32x128xbf16>
    %c0_178 = arith.constant 0 : index
    %c0_179 = arith.constant 0 : index
    %c0_180 = arith.constant 0 : index
    %143 = vector.load %arg7[%c0_178, %c0_179, %c0_180] : memref<9x128x64xbf16, #tpu.memory_space<vmem>>, vector<1x128x64xbf16>
    %144 = vector.shape_cast %143 : vector<1x128x64xbf16> to vector<128x64xbf16>
    %cst_181 = arith.constant dense<0.000000e+00> : vector<32x64xf32>
    %145 = tpu.matmul %142, %144, %cst_181 {dimension_numbers = #tpu.dot_dimension_numbers<[1], [0], [0], [1], [0, 0, 1, 1], [], []>} : vector<32x128xbf16>, vector<128x64xbf16>, vector<32x64xf32> -> vector<32x64xf32>
    %c0_182 = arith.constant 0 : index
    %c0_183 = arith.constant 0 : index
    %146 = vector.load %arg14[%c0_182, %c0_183] : memref<32x64xf32, #tpu.memory_space<vmem>>, vector<32x64xf32>
    tpu.vector_store %arg14[%c0_182, %c0_183], %145 {strides = array<i32>} : memref<32x64xf32, #tpu.memory_space<vmem>>, vector<32x64xf32>,
    %c1_184 = arith.constant 1 : index
    %c0_185 = arith.constant 0 : index
    %c0_186 = arith.constant 0 : index
    %c0_187 = arith.constant 0 : index
    %c0_188 = arith.constant 0 : index
    %147 = vector.load %arg12[%c1_184, %c0_185, %c0_186, %c0_187, %c0_188] : memref<2x2x6x9x128xbf16, #tpu.memory_space<vmem>>, vector<1x1x4x8x128xbf16>
    %148 = vector.shape_cast %147 : vector<1x1x4x8x128xbf16> to vector<4x8x128xbf16>
    %149 = vector.shape_cast %148 : vector<4x8x128xbf16> to vector<32x128xbf16>
    %c1_189 = arith.constant 1 : index
    %c0_190 = arith.constant 0 : index
    %c0_191 = arith.constant 0 : index
    %150 = vector.load %arg7[%c1_189, %c0_190, %c0_191] : memref<9x128x64xbf16, #tpu.memory_space<vmem>>, vector<1x128x64xbf16>
    %151 = vector.shape_cast %150 : vector<1x128x64xbf16> to vector<128x64xbf16>
    %cst_192 = arith.constant dense<0.000000e+00> : vector<32x64xf32>
    %152 = tpu.matmul %149, %151, %cst_192 {dimension_numbers = #tpu.dot_dimension_numbers<[1], [0], [0], [1], [0, 0, 1, 1], [], []>} : vector<32x128xbf16>, vector<128x64xbf16>, vector<32x64xf32> -> vector<32x64xf32>
    %c0_193 = arith.constant 0 : index
    %c0_194 = arith.constant 0 : index
    %153 = vector.load %arg14[%c0_193, %c0_194] : memref<32x64xf32, #tpu.memory_space<vmem>>, vector<32x64xf32>
    %154 = arith.addf %153, %152 : vector<32x64xf32>
    %c0_195 = arith.constant 0 : index
    %c0_196 = arith.constant 0 : index
    %155 = vector.load %arg14[%c0_195, %c0_196] : memref<32x64xf32, #tpu.memory_space<vmem>>, vector<32x64xf32>
    tpu.vector_store %arg14[%c0_195, %c0_196], %154 {strides = array<i32>} : memref<32x64xf32, #tpu.memory_space<vmem>>, vector<32x64xf32>,
    %c1_197 = arith.constant 1 : index
    %c1_198 = arith.constant 1 : index
    %c0_199 = arith.constant 0 : index
    %c1_200 = arith.constant 1 : index
    %c0_201 = arith.constant 0 : index
    %156 = vector.load %arg12[%c1_197, %c1_198, %c0_199, %c1_200, %c0_201] : memref<2x2x6x9x128xbf16, #tpu.memory_space<vmem>>, vector<1x1x4x8x128xbf16>
    %157 = vector.shape_cast %156 : vector<1x1x4x8x128xbf16> to vector<4x8x128xbf16>
    %158 = vector.shape_cast %157 : vector<4x8x128xbf16> to vector<32x128xbf16>
    %c2_202 = arith.constant 2 : index
    %c0_203 = arith.constant 0 : index
    %c0_204 = arith.constant 0 : index
    %159 = vector.load %arg7[%c2_202, %c0_203, %c0_204] : memref<9x128x64xbf16, #tpu.memory_space<vmem>>, vector<1x128x64xbf16>
    %160 = vector.shape_cast %159 : vector<1x128x64xbf16> to vector<128x64xbf16>
    %cst_205 = arith.constant dense<0.000000e+00> : vector<32x64xf32>
    %161 = tpu.matmul %158, %160, %cst_205 {dimension_numbers = #tpu.dot_dimension_numbers<[1], [0], [0], [1], [0, 0, 1, 1], [], []>} : vector<32x128xbf16>, vector<128x64xbf16>, vector<32x64xf32> -> vector<32x64xf32>
    %c0_206 = arith.constant 0 : index
    %c0_207 = arith.constant 0 : index
    %162 = vector.load %arg14[%c0_206, %c0_207] : memref<32x64xf32, #tpu.memory_space<vmem>>, vector<32x64xf32>
    %163 = arith.addf %162, %161 : vector<32x64xf32>
    %c0_208 = arith.constant 0 : index
    %c0_209 = arith.constant 0 : index
    %164 = vector.load %arg14[%c0_208, %c0_209] : memref<32x64xf32, #tpu.memory_space<vmem>>, vector<32x64xf32>
    tpu.vector_store %arg14[%c0_208, %c0_209], %163 {strides = array<i32>} : memref<32x64xf32, #tpu.memory_space<vmem>>, vector<32x64xf32>,
    %c0_210 = arith.constant 0 : index
    %c1_211 = arith.constant 1 : index
    %c1_212 = arith.constant 1 : index
    %c0_213 = arith.constant 0 : index
    %c0_214 = arith.constant 0 : index
    %165 = vector.load %arg12[%c0_210, %c1_211, %c1_212, %c0_213, %c0_214] : memref<2x2x6x9x128xbf16, #tpu.memory_space<vmem>>, vector<1x1x4x8x128xbf16>
    %166 = vector.shape_cast %165 : vector<1x1x4x8x128xbf16> to vector<4x8x128xbf16>
    %167 = vector.shape_cast %166 : vector<4x8x128xbf16> to vector<32x128xbf16>
    %c3_215 = arith.constant 3 : index
    %c0_216 = arith.constant 0 : index
    %c0_217 = arith.constant 0 : index
    %168 = vector.load %arg7[%c3_215, %c0_216, %c0_217] : memref<9x128x64xbf16, #tpu.memory_space<vmem>>, vector<1x128x64xbf16>
    %169 = vector.shape_cast %168 : vector<1x128x64xbf16> to vector<128x64xbf16>
    %cst_218 = arith.constant dense<0.000000e+00> : vector<32x64xf32>
    %170 = tpu.matmul %167, %169, %cst_218 {dimension_numbers = #tpu.dot_dimension_numbers<[1], [0], [0], [1], [0, 0, 1, 1], [], []>} : vector<32x128xbf16>, vector<128x64xbf16>, vector<32x64xf32> -> vector<32x64xf32>
    %c0_219 = arith.constant 0 : index
    %c0_220 = arith.constant 0 : index
    %171 = vector.load %arg14[%c0_219, %c0_220] : memref<32x64xf32, #tpu.memory_space<vmem>>, vector<32x64xf32>
    %172 = arith.addf %171, %170 : vector<32x64xf32>
    %c0_221 = arith.constant 0 : index
    %c0_222 = arith.constant 0 : index
    %173 = vector.load %arg14[%c0_221, %c0_222] : memref<32x64xf32, #tpu.memory_space<vmem>>, vector<32x64xf32>
    tpu.vector_store %arg14[%c0_221, %c0_222], %172 {strides = array<i32>} : memref<32x64xf32, #tpu.memory_space<vmem>>, vector<32x64xf32>,
    %c0_223 = arith.constant 0 : index
    %c0_224 = arith.constant 0 : index
    %c1_225 = arith.constant 1 : index
    %c0_226 = arith.constant 0 : index
    %c0_227 = arith.constant 0 : index
    %174 = vector.load %arg12[%c0_223, %c0_224, %c1_225, %c0_226, %c0_227] : memref<2x2x6x9x128xbf16, #tpu.memory_space<vmem>>, vector<1x1x4x8x128xbf16>
    %175 = vector.shape_cast %174 : vector<1x1x4x8x128xbf16> to vector<4x8x128xbf16>
    %176 = vector.shape_cast %175 : vector<4x8x128xbf16> to vector<32x128xbf16>
    %c4_228 = arith.constant 4 : index
    %c0_229 = arith.constant 0 : index
    %c0_230 = arith.constant 0 : index
    %177 = vector.load %arg7[%c4_228, %c0_229, %c0_230] : memref<9x128x64xbf16, #tpu.memory_space<vmem>>, vector<1x128x64xbf16>
    %178 = vector.shape_cast %177 : vector<1x128x64xbf16> to vector<128x64xbf16>
    %cst_231 = arith.constant dense<0.000000e+00> : vector<32x64xf32>
    %179 = tpu.matmul %176, %178, %cst_231 {dimension_numbers = #tpu.dot_dimension_numbers<[1], [0], [0], [1], [0, 0, 1, 1], [], []>} : vector<32x128xbf16>, vector<128x64xbf16>, vector<32x64xf32> -> vector<32x64xf32>
    %c0_232 = arith.constant 0 : index
    %c0_233 = arith.constant 0 : index
    %180 = vector.load %arg14[%c0_232, %c0_233] : memref<32x64xf32, #tpu.memory_space<vmem>>, vector<32x64xf32>
    %181 = arith.addf %180, %179 : vector<32x64xf32>
    %c0_234 = arith.constant 0 : index
    %c0_235 = arith.constant 0 : index
    %182 = vector.load %arg14[%c0_234, %c0_235] : memref<32x64xf32, #tpu.memory_space<vmem>>, vector<32x64xf32>
    tpu.vector_store %arg14[%c0_234, %c0_235], %181 {strides = array<i32>} : memref<32x64xf32, #tpu.memory_space<vmem>>, vector<32x64xf32>,
    %c0_236 = arith.constant 0 : index
    %c1_237 = arith.constant 1 : index
    %c1_238 = arith.constant 1 : index
    %c1_239 = arith.constant 1 : index
    %c0_240 = arith.constant 0 : index
    %183 = vector.load %arg12[%c0_236, %c1_237, %c1_238, %c1_239, %c0_240] : memref<2x2x6x9x128xbf16, #tpu.memory_space<vmem>>, vector<1x1x4x8x128xbf16>
    %184 = vector.shape_cast %183 : vector<1x1x4x8x128xbf16> to vector<4x8x128xbf16>
    %185 = vector.shape_cast %184 : vector<4x8x128xbf16> to vector<32x128xbf16>
    %c5 = arith.constant 5 : index
    %c0_241 = arith.constant 0 : index
    %c0_242 = arith.constant 0 : index
    %186 = vector.load %arg7[%c5, %c0_241, %c0_242] : memref<9x128x64xbf16, #tpu.memory_space<vmem>>, vector<1x128x64xbf16>
    %187 = vector.shape_cast %186 : vector<1x128x64xbf16> to vector<128x64xbf16>
    %cst_243 = arith.constant dense<0.000000e+00> : vector<32x64xf32>
    %188 = tpu.matmul %185, %187, %cst_243 {dimension_numbers = #tpu.dot_dimension_numbers<[1], [0], [0], [1], [0, 0, 1, 1], [], []>} : vector<32x128xbf16>, vector<128x64xbf16>, vector<32x64xf32> -> vector<32x64xf32>
    %c0_244 = arith.constant 0 : index
    %c0_245 = arith.constant 0 : index
    %189 = vector.load %arg14[%c0_244, %c0_245] : memref<32x64xf32, #tpu.memory_space<vmem>>, vector<32x64xf32>
    %190 = arith.addf %189, %188 : vector<32x64xf32>
    %c0_246 = arith.constant 0 : index
    %c0_247 = arith.constant 0 : index
    %191 = vector.load %arg14[%c0_246, %c0_247] : memref<32x64xf32, #tpu.memory_space<vmem>>, vector<32x64xf32>
    tpu.vector_store %arg14[%c0_246, %c0_247], %190 {strides = array<i32>} : memref<32x64xf32, #tpu.memory_space<vmem>>, vector<32x64xf32>,
    %c1_248 = arith.constant 1 : index
    %c1_249 = arith.constant 1 : index
    %c1_250 = arith.constant 1 : index
    %c0_251 = arith.constant 0 : index
    %c0_252 = arith.constant 0 : index
    %192 = vector.load %arg12[%c1_248, %c1_249, %c1_250, %c0_251, %c0_252] : memref<2x2x6x9x128xbf16, #tpu.memory_space<vmem>>, vector<1x1x4x8x128xbf16>
    %193 = vector.shape_cast %192 : vector<1x1x4x8x128xbf16> to vector<4x8x128xbf16>
    %194 = vector.shape_cast %193 : vector<4x8x128xbf16> to vector<32x128xbf16>
    %c6 = arith.constant 6 : index
    %c0_253 = arith.constant 0 : index
    %c0_254 = arith.constant 0 : index
    %195 = vector.load %arg7[%c6, %c0_253, %c0_254] : memref<9x128x64xbf16, #tpu.memory_space<vmem>>, vector<1x128x64xbf16>
    %196 = vector.shape_cast %195 : vector<1x128x64xbf16> to vector<128x64xbf16>
    %cst_255 = arith.constant dense<0.000000e+00> : vector<32x64xf32>
    %197 = tpu.matmul %194, %196, %cst_255 {dimension_numbers = #tpu.dot_dimension_numbers<[1], [0], [0], [1], [0, 0, 1, 1], [], []>} : vector<32x128xbf16>, vector<128x64xbf16>, vector<32x64xf32> -> vector<32x64xf32>
    %c0_256 = arith.constant 0 : index
    %c0_257 = arith.constant 0 : index
    %198 = vector.load %arg14[%c0_256, %c0_257] : memref<32x64xf32, #tpu.memory_space<vmem>>, vector<32x64xf32>
    %199 = arith.addf %198, %197 : vector<32x64xf32>
    %c0_258 = arith.constant 0 : index
    %c0_259 = arith.constant 0 : index
    %200 = vector.load %arg14[%c0_258, %c0_259] : memref<32x64xf32, #tpu.memory_space<vmem>>, vector<32x64xf32>
    tpu.vector_store %arg14[%c0_258, %c0_259], %199 {strides = array<i32>} : memref<32x64xf32, #tpu.memory_space<vmem>>, vector<32x64xf32>,
    %c1_260 = arith.constant 1 : index
    %c0_261 = arith.constant 0 : index
    %c1_262 = arith.constant 1 : index
    %c0_263 = arith.constant 0 : index
    %c0_264 = arith.constant 0 : index
    %201 = vector.load %arg12[%c1_260, %c0_261, %c1_262, %c0_263, %c0_264] : memref<2x2x6x9x128xbf16, #tpu.memory_space<vmem>>, vector<1x1x4x8x128xbf16>
    %202 = vector.shape_cast %201 : vector<1x1x4x8x128xbf16> to vector<4x8x128xbf16>
    %203 = vector.shape_cast %202 : vector<4x8x128xbf16> to vector<32x128xbf16>
    %c7 = arith.constant 7 : index
    %c0_265 = arith.constant 0 : index
    %c0_266 = arith.constant 0 : index
    %204 = vector.load %arg7[%c7, %c0_265, %c0_266] : memref<9x128x64xbf16, #tpu.memory_space<vmem>>, vector<1x128x64xbf16>
    %205 = vector.shape_cast %204 : vector<1x128x64xbf16> to vector<128x64xbf16>
    %cst_267 = arith.constant dense<0.000000e+00> : vector<32x64xf32>
    %206 = tpu.matmul %203, %205, %cst_267 {dimension_numbers = #tpu.dot_dimension_numbers<[1], [0], [0], [1], [0, 0, 1, 1], [], []>} : vector<32x128xbf16>, vector<128x64xbf16>, vector<32x64xf32> -> vector<32x64xf32>
    %c0_268 = arith.constant 0 : index
    %c0_269 = arith.constant 0 : index
    %207 = vector.load %arg14[%c0_268, %c0_269] : memref<32x64xf32, #tpu.memory_space<vmem>>, vector<32x64xf32>
    %208 = arith.addf %207, %206 : vector<32x64xf32>
    %c0_270 = arith.constant 0 : index
    %c0_271 = arith.constant 0 : index
    %209 = vector.load %arg14[%c0_270, %c0_271] : memref<32x64xf32, #tpu.memory_space<vmem>>, vector<32x64xf32>
    tpu.vector_store %arg14[%c0_270, %c0_271], %208 {strides = array<i32>} : memref<32x64xf32, #tpu.memory_space<vmem>>, vector<32x64xf32>,
    %c1_272 = arith.constant 1 : index
    %c1_273 = arith.constant 1 : index
    %c1_274 = arith.constant 1 : index
    %c1_275 = arith.constant 1 : index
    %c0_276 = arith.constant 0 : index
    %210 = vector.load %arg12[%c1_272, %c1_273, %c1_274, %c1_275, %c0_276] : memref<2x2x6x9x128xbf16, #tpu.memory_space<vmem>>, vector<1x1x4x8x128xbf16>
    %211 = vector.shape_cast %210 : vector<1x1x4x8x128xbf16> to vector<4x8x128xbf16>
    %212 = vector.shape_cast %211 : vector<4x8x128xbf16> to vector<32x128xbf16>
    %c8_277 = arith.constant 8 : index
    %c0_278 = arith.constant 0 : index
    %c0_279 = arith.constant 0 : index
    %213 = vector.load %arg7[%c8_277, %c0_278, %c0_279] : memref<9x128x64xbf16, #tpu.memory_space<vmem>>, vector<1x128x64xbf16>
    %214 = vector.shape_cast %213 : vector<1x128x64xbf16> to vector<128x64xbf16>
    %cst_280 = arith.constant dense<0.000000e+00> : vector<32x64xf32>
    %215 = tpu.matmul %212, %214, %cst_280 {dimension_numbers = #tpu.dot_dimension_numbers<[1], [0], [0], [1], [0, 0, 1, 1], [], []>} : vector<32x128xbf16>, vector<128x64xbf16>, vector<32x64xf32> -> vector<32x64xf32>
    %c0_281 = arith.constant 0 : index
    %c0_282 = arith.constant 0 : index
    %216 = vector.load %arg14[%c0_281, %c0_282] : memref<32x64xf32, #tpu.memory_space<vmem>>, vector<32x64xf32>
    %217 = arith.addf %216, %215 : vector<32x64xf32>
    %c0_283 = arith.constant 0 : index
    %c0_284 = arith.constant 0 : index
    %218 = vector.load %arg14[%c0_283, %c0_284] : memref<32x64xf32, #tpu.memory_space<vmem>>, vector<32x64xf32>
    tpu.vector_store %arg14[%c0_283, %c0_284], %217 {strides = array<i32>} : memref<32x64xf32, #tpu.memory_space<vmem>>, vector<32x64xf32>,
    %c0_285 = arith.constant 0 : index
    %c0_286 = arith.constant 0 : index
    %219 = vector.load %arg14[%c0_285, %c0_286] : memref<32x64xf32, #tpu.memory_space<vmem>>, vector<32x64xf32>
    %c0_287 = arith.constant 0 : index
    %c0_288 = arith.constant 0 : index
    %220 = vector.load %arg9[%c0_287, %c0_288] : memref<1x64xf32, #tpu.memory_space<vmem>>, vector<1x64xf32>
    %221 = vector.broadcast %220 : vector<1x64xf32> to vector<32x64xf32>
    %222 = arith.mulf %219, %221 : vector<32x64xf32>
    %c0_289 = arith.constant 0 : index
    %c0_290 = arith.constant 0 : index
    %223 = vector.load %arg10[%c0_289, %c0_290] : memref<1x64xf32, #tpu.memory_space<vmem>>, vector<1x64xf32>
    %224 = vector.broadcast %223 : vector<1x64xf32> to vector<32x64xf32>
    %225 = arith.addf %222, %224 : vector<32x64xf32>
    %cst_291 = arith.constant 0.000000e+00 : f32
    %226 = vector.broadcast %cst_291 : f32 to vector<32x64xf32>
    %227 = arith.maximumf %225, %226 : vector<32x64xf32>
    %228 = vector.shape_cast %227 : vector<32x64xf32> to vector<4x8x64xf32>
    %c0_292 = arith.constant 0 : index
    %c0_293 = arith.constant 0 : index
    %c0_294 = arith.constant 0 : index
    %c0_295 = arith.constant 0 : index
    %c0_296 = arith.constant 0 : index
    %c0_297 = arith.constant 0 : index
    %229 = vector.load %arg11[%c0_292, %c0_293, %c0_294, %c0_295, %c0_296, %c0_297] : memref<1x1x2x4x8x128xf32, #tpu.memory_space<vmem>>, vector<1x1x1x4x8x64xf32>
    %230 = vector.shape_cast %229 : vector<1x1x1x4x8x64xf32> to vector<4x8x64xf32>
    %231 = vector.shape_cast %228 : vector<4x8x64xf32> to vector<1x1x1x4x8x64xf32>
    tpu.vector_store %arg11[%c0_292, %c0_293, %c0_294, %c0_295, %c0_296, %c0_297], %231 {strides = array<i32>} : memref<1x1x2x4x8x128xf32, #tpu.memory_space<vmem>>, vector<1x1x1x4x8x64xf32>,
    %c1_298 = arith.constant 1 : index
    %c0_299 = arith.constant 0 : index
    %c0_300 = arith.constant 0 : index
    %c0_301 = arith.constant 0 : index
    %c0_302 = arith.constant 0 : index
    %232 = vector.load %arg12[%c1_298, %c0_299, %c0_300, %c0_301, %c0_302] : memref<2x2x6x9x128xbf16, #tpu.memory_space<vmem>>, vector<1x1x4x8x128xbf16>
    %233 = vector.shape_cast %232 : vector<1x1x4x8x128xbf16> to vector<4x8x128xbf16>
    %234 = vector.shape_cast %233 : vector<4x8x128xbf16> to vector<32x128xbf16>
    %c0_303 = arith.constant 0 : index
    %c0_304 = arith.constant 0 : index
    %c0_305 = arith.constant 0 : index
    %235 = vector.load %arg7[%c0_303, %c0_304, %c0_305] : memref<9x128x64xbf16, #tpu.memory_space<vmem>>, vector<1x128x64xbf16>
    %236 = vector.shape_cast %235 : vector<1x128x64xbf16> to vector<128x64xbf16>
    %cst_306 = arith.constant dense<0.000000e+00> : vector<32x64xf32>
    %237 = tpu.matmul %234, %236, %cst_306 {dimension_numbers = #tpu.dot_dimension_numbers<[1], [0], [0], [1], [0, 0, 1, 1], [], []>} : vector<32x128xbf16>, vector<128x64xbf16>, vector<32x64xf32> -> vector<32x64xf32>
    %c0_307 = arith.constant 0 : index
    %c0_308 = arith.constant 0 : index
    %238 = vector.load %arg14[%c0_307, %c0_308] : memref<32x64xf32, #tpu.memory_space<vmem>>, vector<32x64xf32>
    tpu.vector_store %arg14[%c0_307, %c0_308], %237 {strides = array<i32>} : memref<32x64xf32, #tpu.memory_space<vmem>>, vector<32x64xf32>,
    %c1_309 = arith.constant 1 : index
    %c1_310 = arith.constant 1 : index
    %c0_311 = arith.constant 0 : index
    %c1_312 = arith.constant 1 : index
    %c0_313 = arith.constant 0 : index
    %239 = vector.load %arg12[%c1_309, %c1_310, %c0_311, %c1_312, %c0_313] : memref<2x2x6x9x128xbf16, #tpu.memory_space<vmem>>, vector<1x1x4x8x128xbf16>
    %240 = vector.shape_cast %239 : vector<1x1x4x8x128xbf16> to vector<4x8x128xbf16>
    %241 = vector.shape_cast %240 : vector<4x8x128xbf16> to vector<32x128xbf16>
    %c1_314 = arith.constant 1 : index
    %c0_315 = arith.constant 0 : index
    %c0_316 = arith.constant 0 : index
    %242 = vector.load %arg7[%c1_314, %c0_315, %c0_316] : memref<9x128x64xbf16, #tpu.memory_space<vmem>>, vector<1x128x64xbf16>
    %243 = vector.shape_cast %242 : vector<1x128x64xbf16> to vector<128x64xbf16>
    %cst_317 = arith.constant dense<0.000000e+00> : vector<32x64xf32>
    %244 = tpu.matmul %241, %243, %cst_317 {dimension_numbers = #tpu.dot_dimension_numbers<[1], [0], [0], [1], [0, 0, 1, 1], [], []>} : vector<32x128xbf16>, vector<128x64xbf16>, vector<32x64xf32> -> vector<32x64xf32>
    %c0_318 = arith.constant 0 : index
    %c0_319 = arith.constant 0 : index
    %245 = vector.load %arg14[%c0_318, %c0_319] : memref<32x64xf32, #tpu.memory_space<vmem>>, vector<32x64xf32>
    %246 = arith.addf %245, %244 : vector<32x64xf32>
    %c0_320 = arith.constant 0 : index
    %c0_321 = arith.constant 0 : index
    %247 = vector.load %arg14[%c0_320, %c0_321] : memref<32x64xf32, #tpu.memory_space<vmem>>, vector<32x64xf32>
    tpu.vector_store %arg14[%c0_320, %c0_321], %246 {strides = array<i32>} : memref<32x64xf32, #tpu.memory_space<vmem>>, vector<32x64xf32>,
    %c1_322 = arith.constant 1 : index
    %c0_323 = arith.constant 0 : index
    %c0_324 = arith.constant 0 : index
    %c1_325 = arith.constant 1 : index
    %c0_326 = arith.constant 0 : index
    %248 = vector.load %arg12[%c1_322, %c0_323, %c0_324, %c1_325, %c0_326] : memref<2x2x6x9x128xbf16, #tpu.memory_space<vmem>>, vector<1x1x4x8x128xbf16>
    %249 = vector.shape_cast %248 : vector<1x1x4x8x128xbf16> to vector<4x8x128xbf16>
    %250 = vector.shape_cast %249 : vector<4x8x128xbf16> to vector<32x128xbf16>
    %c2_327 = arith.constant 2 : index
    %c0_328 = arith.constant 0 : index
    %c0_329 = arith.constant 0 : index
    %251 = vector.load %arg7[%c2_327, %c0_328, %c0_329] : memref<9x128x64xbf16, #tpu.memory_space<vmem>>, vector<1x128x64xbf16>
    %252 = vector.shape_cast %251 : vector<1x128x64xbf16> to vector<128x64xbf16>
    %cst_330 = arith.constant dense<0.000000e+00> : vector<32x64xf32>
    %253 = tpu.matmul %250, %252, %cst_330 {dimension_numbers = #tpu.dot_dimension_numbers<[1], [0], [0], [1], [0, 0, 1, 1], [], []>} : vector<32x128xbf16>, vector<128x64xbf16>, vector<32x64xf32> -> vector<32x64xf32>
    %c0_331 = arith.constant 0 : index
    %c0_332 = arith.constant 0 : index
    %254 = vector.load %arg14[%c0_331, %c0_332] : memref<32x64xf32, #tpu.memory_space<vmem>>, vector<32x64xf32>
    %255 = arith.addf %254, %253 : vector<32x64xf32>
    %c0_333 = arith.constant 0 : index
    %c0_334 = arith.constant 0 : index
    %256 = vector.load %arg14[%c0_333, %c0_334] : memref<32x64xf32, #tpu.memory_space<vmem>>, vector<32x64xf32>
    tpu.vector_store %arg14[%c0_333, %c0_334], %255 {strides = array<i32>} : memref<32x64xf32, #tpu.memory_space<vmem>>, vector<32x64xf32>,
    %c0_335 = arith.constant 0 : index
    %c0_336 = arith.constant 0 : index
    %c1_337 = arith.constant 1 : index
    %c0_338 = arith.constant 0 : index
    %c0_339 = arith.constant 0 : index
    %257 = vector.load %arg12[%c0_335, %c0_336, %c1_337, %c0_338, %c0_339] : memref<2x2x6x9x128xbf16, #tpu.memory_space<vmem>>, vector<1x1x4x8x128xbf16>
    %258 = vector.shape_cast %257 : vector<1x1x4x8x128xbf16> to vector<4x8x128xbf16>
    %259 = vector.shape_cast %258 : vector<4x8x128xbf16> to vector<32x128xbf16>
    %c3_340 = arith.constant 3 : index
    %c0_341 = arith.constant 0 : index
    %c0_342 = arith.constant 0 : index
    %260 = vector.load %arg7[%c3_340, %c0_341, %c0_342] : memref<9x128x64xbf16, #tpu.memory_space<vmem>>, vector<1x128x64xbf16>
    %261 = vector.shape_cast %260 : vector<1x128x64xbf16> to vector<128x64xbf16>
    %cst_343 = arith.constant dense<0.000000e+00> : vector<32x64xf32>
    %262 = tpu.matmul %259, %261, %cst_343 {dimension_numbers = #tpu.dot_dimension_numbers<[1], [0], [0], [1], [0, 0, 1, 1], [], []>} : vector<32x128xbf16>, vector<128x64xbf16>, vector<32x64xf32> -> vector<32x64xf32>
    %c0_344 = arith.constant 0 : index
    %c0_345 = arith.constant 0 : index
    %263 = vector.load %arg14[%c0_344, %c0_345] : memref<32x64xf32, #tpu.memory_space<vmem>>, vector<32x64xf32>
    %264 = arith.addf %263, %262 : vector<32x64xf32>
    %c0_346 = arith.constant 0 : index
    %c0_347 = arith.constant 0 : index
    %265 = vector.load %arg14[%c0_346, %c0_347] : memref<32x64xf32, #tpu.memory_space<vmem>>, vector<32x64xf32>
    tpu.vector_store %arg14[%c0_346, %c0_347], %264 {strides = array<i32>} : memref<32x64xf32, #tpu.memory_space<vmem>>, vector<32x64xf32>,
    %c0_348 = arith.constant 0 : index
    %c1_349 = arith.constant 1 : index
    %c1_350 = arith.constant 1 : index
    %c1_351 = arith.constant 1 : index
    %c0_352 = arith.constant 0 : index
    %266 = vector.load %arg12[%c0_348, %c1_349, %c1_350, %c1_351, %c0_352] : memref<2x2x6x9x128xbf16, #tpu.memory_space<vmem>>, vector<1x1x4x8x128xbf16>
    %267 = vector.shape_cast %266 : vector<1x1x4x8x128xbf16> to vector<4x8x128xbf16>
    %268 = vector.shape_cast %267 : vector<4x8x128xbf16> to vector<32x128xbf16>
    %c4_353 = arith.constant 4 : index
    %c0_354 = arith.constant 0 : index
    %c0_355 = arith.constant 0 : index
    %269 = vector.load %arg7[%c4_353, %c0_354, %c0_355] : memref<9x128x64xbf16, #tpu.memory_space<vmem>>, vector<1x128x64xbf16>
    %270 = vector.shape_cast %269 : vector<1x128x64xbf16> to vector<128x64xbf16>
    %cst_356 = arith.constant dense<0.000000e+00> : vector<32x64xf32>
    %271 = tpu.matmul %268, %270, %cst_356 {dimension_numbers = #tpu.dot_dimension_numbers<[1], [0], [0], [1], [0, 0, 1, 1], [], []>} : vector<32x128xbf16>, vector<128x64xbf16>, vector<32x64xf32> -> vector<32x64xf32>
    %c0_357 = arith.constant 0 : index
    %c0_358 = arith.constant 0 : index
    %272 = vector.load %arg14[%c0_357, %c0_358] : memref<32x64xf32, #tpu.memory_space<vmem>>, vector<32x64xf32>
    %273 = arith.addf %272, %271 : vector<32x64xf32>
    %c0_359 = arith.constant 0 : index
    %c0_360 = arith.constant 0 : index
    %274 = vector.load %arg14[%c0_359, %c0_360] : memref<32x64xf32, #tpu.memory_space<vmem>>, vector<32x64xf32>
    tpu.vector_store %arg14[%c0_359, %c0_360], %273 {strides = array<i32>} : memref<32x64xf32, #tpu.memory_space<vmem>>, vector<32x64xf32>,
    %c0_361 = arith.constant 0 : index
    %c0_362 = arith.constant 0 : index
    %c1_363 = arith.constant 1 : index
    %c1_364 = arith.constant 1 : index
    %c0_365 = arith.constant 0 : index
    %275 = vector.load %arg12[%c0_361, %c0_362, %c1_363, %c1_364, %c0_365] : memref<2x2x6x9x128xbf16, #tpu.memory_space<vmem>>, vector<1x1x4x8x128xbf16>
    %276 = vector.shape_cast %275 : vector<1x1x4x8x128xbf16> to vector<4x8x128xbf16>
    %277 = vector.shape_cast %276 : vector<4x8x128xbf16> to vector<32x128xbf16>
    %c5_366 = arith.constant 5 : index
    %c0_367 = arith.constant 0 : index
    %c0_368 = arith.constant 0 : index
    %278 = vector.load %arg7[%c5_366, %c0_367, %c0_368] : memref<9x128x64xbf16, #tpu.memory_space<vmem>>, vector<1x128x64xbf16>
    %279 = vector.shape_cast %278 : vector<1x128x64xbf16> to vector<128x64xbf16>
    %cst_369 = arith.constant dense<0.000000e+00> : vector<32x64xf32>
    %280 = tpu.matmul %277, %279, %cst_369 {dimension_numbers = #tpu.dot_dimension_numbers<[1], [0], [0], [1], [0, 0, 1, 1], [], []>} : vector<32x128xbf16>, vector<128x64xbf16>, vector<32x64xf32> -> vector<32x64xf32>
    %c0_370 = arith.constant 0 : index
    %c0_371 = arith.constant 0 : index
    %281 = vector.load %arg14[%c0_370, %c0_371] : memref<32x64xf32, #tpu.memory_space<vmem>>, vector<32x64xf32>
    %282 = arith.addf %281, %280 : vector<32x64xf32>
    %c0_372 = arith.constant 0 : index
    %c0_373 = arith.constant 0 : index
    %283 = vector.load %arg14[%c0_372, %c0_373] : memref<32x64xf32, #tpu.memory_space<vmem>>, vector<32x64xf32>
    tpu.vector_store %arg14[%c0_372, %c0_373], %282 {strides = array<i32>} : memref<32x64xf32, #tpu.memory_space<vmem>>, vector<32x64xf32>,
    %c1_374 = arith.constant 1 : index
    %c0_375 = arith.constant 0 : index
    %c1_376 = arith.constant 1 : index
    %c0_377 = arith.constant 0 : index
    %c0_378 = arith.constant 0 : index
    %284 = vector.load %arg12[%c1_374, %c0_375, %c1_376, %c0_377, %c0_378] : memref<2x2x6x9x128xbf16, #tpu.memory_space<vmem>>, vector<1x1x4x8x128xbf16>
    %285 = vector.shape_cast %284 : vector<1x1x4x8x128xbf16> to vector<4x8x128xbf16>
    %286 = vector.shape_cast %285 : vector<4x8x128xbf16> to vector<32x128xbf16>
    %c6_379 = arith.constant 6 : index
    %c0_380 = arith.constant 0 : index
    %c0_381 = arith.constant 0 : index
    %287 = vector.load %arg7[%c6_379, %c0_380, %c0_381] : memref<9x128x64xbf16, #tpu.memory_space<vmem>>, vector<1x128x64xbf16>
    %288 = vector.shape_cast %287 : vector<1x128x64xbf16> to vector<128x64xbf16>
    %cst_382 = arith.constant dense<0.000000e+00> : vector<32x64xf32>
    %289 = tpu.matmul %286, %288, %cst_382 {dimension_numbers = #tpu.dot_dimension_numbers<[1], [0], [0], [1], [0, 0, 1, 1], [], []>} : vector<32x128xbf16>, vector<128x64xbf16>, vector<32x64xf32> -> vector<32x64xf32>
    %c0_383 = arith.constant 0 : index
    %c0_384 = arith.constant 0 : index
    %290 = vector.load %arg14[%c0_383, %c0_384] : memref<32x64xf32, #tpu.memory_space<vmem>>, vector<32x64xf32>
    %291 = arith.addf %290, %289 : vector<32x64xf32>
    %c0_385 = arith.constant 0 : index
    %c0_386 = arith.constant 0 : index
    %292 = vector.load %arg14[%c0_385, %c0_386] : memref<32x64xf32, #tpu.memory_space<vmem>>, vector<32x64xf32>
    tpu.vector_store %arg14[%c0_385, %c0_386], %291 {strides = array<i32>} : memref<32x64xf32, #tpu.memory_space<vmem>>, vector<32x64xf32>,
    %c1_387 = arith.constant 1 : index
    %c1_388 = arith.constant 1 : index
    %c1_389 = arith.constant 1 : index
    %c1_390 = arith.constant 1 : index
    %c0_391 = arith.constant 0 : index
    %293 = vector.load %arg12[%c1_387, %c1_388, %c1_389, %c1_390, %c0_391] : memref<2x2x6x9x128xbf16, #tpu.memory_space<vmem>>, vector<1x1x4x8x128xbf16>
    %294 = vector.shape_cast %293 : vector<1x1x4x8x128xbf16> to vector<4x8x128xbf16>
    %295 = vector.shape_cast %294 : vector<4x8x128xbf16> to vector<32x128xbf16>
    %c7_392 = arith.constant 7 : index
    %c0_393 = arith.constant 0 : index
    %c0_394 = arith.constant 0 : index
    %296 = vector.load %arg7[%c7_392, %c0_393, %c0_394] : memref<9x128x64xbf16, #tpu.memory_space<vmem>>, vector<1x128x64xbf16>
    %297 = vector.shape_cast %296 : vector<1x128x64xbf16> to vector<128x64xbf16>
    %cst_395 = arith.constant dense<0.000000e+00> : vector<32x64xf32>
    %298 = tpu.matmul %295, %297, %cst_395 {dimension_numbers = #tpu.dot_dimension_numbers<[1], [0], [0], [1], [0, 0, 1, 1], [], []>} : vector<32x128xbf16>, vector<128x64xbf16>, vector<32x64xf32> -> vector<32x64xf32>
    %c0_396 = arith.constant 0 : index
    %c0_397 = arith.constant 0 : index
    %299 = vector.load %arg14[%c0_396, %c0_397] : memref<32x64xf32, #tpu.memory_space<vmem>>, vector<32x64xf32>
    %300 = arith.addf %299, %298 : vector<32x64xf32>
    %c0_398 = arith.constant 0 : index
    %c0_399 = arith.constant 0 : index
    %301 = vector.load %arg14[%c0_398, %c0_399] : memref<32x64xf32, #tpu.memory_space<vmem>>, vector<32x64xf32>
    tpu.vector_store %arg14[%c0_398, %c0_399], %300 {strides = array<i32>} : memref<32x64xf32, #tpu.memory_space<vmem>>, vector<32x64xf32>,
    %c1_400 = arith.constant 1 : index
    %c0_401 = arith.constant 0 : index
    %c1_402 = arith.constant 1 : index
    %c1_403 = arith.constant 1 : index
    %c0_404 = arith.constant 0 : index
    %302 = vector.load %arg12[%c1_400, %c0_401, %c1_402, %c1_403, %c0_404] : memref<2x2x6x9x128xbf16, #tpu.memory_space<vmem>>, vector<1x1x4x8x128xbf16>
    %303 = vector.shape_cast %302 : vector<1x1x4x8x128xbf16> to vector<4x8x128xbf16>
    %304 = vector.shape_cast %303 : vector<4x8x128xbf16> to vector<32x128xbf16>
    %c8_405 = arith.constant 8 : index
    %c0_406 = arith.constant 0 : index
    %c0_407 = arith.constant 0 : index
    %305 = vector.load %arg7[%c8_405, %c0_406, %c0_407] : memref<9x128x64xbf16, #tpu.memory_space<vmem>>, vector<1x128x64xbf16>
    %306 = vector.shape_cast %305 : vector<1x128x64xbf16> to vector<128x64xbf16>
    %cst_408 = arith.constant dense<0.000000e+00> : vector<32x64xf32>
    %307 = tpu.matmul %304, %306, %cst_408 {dimension_numbers = #tpu.dot_dimension_numbers<[1], [0], [0], [1], [0, 0, 1, 1], [], []>} : vector<32x128xbf16>, vector<128x64xbf16>, vector<32x64xf32> -> vector<32x64xf32>
    %c0_409 = arith.constant 0 : index
    %c0_410 = arith.constant 0 : index
    %308 = vector.load %arg14[%c0_409, %c0_410] : memref<32x64xf32, #tpu.memory_space<vmem>>, vector<32x64xf32>
    %309 = arith.addf %308, %307 : vector<32x64xf32>
    %c0_411 = arith.constant 0 : index
    %c0_412 = arith.constant 0 : index
    %310 = vector.load %arg14[%c0_411, %c0_412] : memref<32x64xf32, #tpu.memory_space<vmem>>, vector<32x64xf32>
    tpu.vector_store %arg14[%c0_411, %c0_412], %309 {strides = array<i32>} : memref<32x64xf32, #tpu.memory_space<vmem>>, vector<32x64xf32>,
    %c0_413 = arith.constant 0 : index
    %c0_414 = arith.constant 0 : index
    %311 = vector.load %arg14[%c0_413, %c0_414] : memref<32x64xf32, #tpu.memory_space<vmem>>, vector<32x64xf32>
    %c0_415 = arith.constant 0 : index
    %c0_416 = arith.constant 0 : index
    %312 = vector.load %arg9[%c0_415, %c0_416] : memref<1x64xf32, #tpu.memory_space<vmem>>, vector<1x64xf32>
    %313 = vector.broadcast %312 : vector<1x64xf32> to vector<32x64xf32>
    %314 = arith.mulf %311, %313 : vector<32x64xf32>
    %c0_417 = arith.constant 0 : index
    %c0_418 = arith.constant 0 : index
    %315 = vector.load %arg10[%c0_417, %c0_418] : memref<1x64xf32, #tpu.memory_space<vmem>>, vector<1x64xf32>
    %316 = vector.broadcast %315 : vector<1x64xf32> to vector<32x64xf32>
    %317 = arith.addf %314, %316 : vector<32x64xf32>
    %cst_419 = arith.constant 0.000000e+00 : f32
    %318 = vector.broadcast %cst_419 : f32 to vector<32x64xf32>
    %319 = arith.maximumf %317, %318 : vector<32x64xf32>
    %320 = vector.shape_cast %319 : vector<32x64xf32> to vector<4x8x64xf32>
    %c0_420 = arith.constant 0 : index
    %c0_421 = arith.constant 0 : index
    %c0_422 = arith.constant 0 : index
    %c0_423 = arith.constant 0 : index
    %c0_424 = arith.constant 0 : index
    %c64 = arith.constant 64 : index
    %321 = vector.load %arg11[%c0_420, %c0_421, %c0_422, %c0_423, %c0_424, %c64] : memref<1x1x2x4x8x128xf32, #tpu.memory_space<vmem>>, vector<1x1x1x4x8x64xf32>
    %322 = vector.shape_cast %321 : vector<1x1x1x4x8x64xf32> to vector<4x8x64xf32>
    %323 = vector.shape_cast %320 : vector<4x8x64xf32> to vector<1x1x1x4x8x64xf32>
    tpu.vector_store %arg11[%c0_420, %c0_421, %c0_422, %c0_423, %c0_424, %c64], %323 {strides = array<i32>} : memref<1x1x2x4x8x128xf32, #tpu.memory_space<vmem>>, vector<1x1x1x4x8x64xf32>,
    %c0_425 = arith.constant 0 : index
    %c1_426 = arith.constant 1 : index
    %c1_427 = arith.constant 1 : index
    %c0_428 = arith.constant 0 : index
    %c0_429 = arith.constant 0 : index
    %324 = vector.load %arg12[%c0_425, %c1_426, %c1_427, %c0_428, %c0_429] : memref<2x2x6x9x128xbf16, #tpu.memory_space<vmem>>, vector<1x1x4x8x128xbf16>
    %325 = vector.shape_cast %324 : vector<1x1x4x8x128xbf16> to vector<4x8x128xbf16>
    %326 = vector.shape_cast %325 : vector<4x8x128xbf16> to vector<32x128xbf16>
    %c0_430 = arith.constant 0 : index
    %c0_431 = arith.constant 0 : index
    %c0_432 = arith.constant 0 : index
    %327 = vector.load %arg7[%c0_430, %c0_431, %c0_432] : memref<9x128x64xbf16, #tpu.memory_space<vmem>>, vector<1x128x64xbf16>
    %328 = vector.shape_cast %327 : vector<1x128x64xbf16> to vector<128x64xbf16>
    %cst_433 = arith.constant dense<0.000000e+00> : vector<32x64xf32>
    %329 = tpu.matmul %326, %328, %cst_433 {dimension_numbers = #tpu.dot_dimension_numbers<[1], [0], [0], [1], [0, 0, 1, 1], [], []>} : vector<32x128xbf16>, vector<128x64xbf16>, vector<32x64xf32> -> vector<32x64xf32>
    %c0_434 = arith.constant 0 : index
    %c0_435 = arith.constant 0 : index
    %330 = vector.load %arg14[%c0_434, %c0_435] : memref<32x64xf32, #tpu.memory_space<vmem>>, vector<32x64xf32>
    tpu.vector_store %arg14[%c0_434, %c0_435], %329 {strides = array<i32>} : memref<32x64xf32, #tpu.memory_space<vmem>>, vector<32x64xf32>,
    %c0_436 = arith.constant 0 : index
    %c0_437 = arith.constant 0 : index
    %c1_438 = arith.constant 1 : index
    %c0_439 = arith.constant 0 : index
    %c0_440 = arith.constant 0 : index
    %331 = vector.load %arg12[%c0_436, %c0_437, %c1_438, %c0_439, %c0_440] : memref<2x2x6x9x128xbf16, #tpu.memory_space<vmem>>, vector<1x1x4x8x128xbf16>
    %332 = vector.shape_cast %331 : vector<1x1x4x8x128xbf16> to vector<4x8x128xbf16>
    %333 = vector.shape_cast %332 : vector<4x8x128xbf16> to vector<32x128xbf16>
    %c1_441 = arith.constant 1 : index
    %c0_442 = arith.constant 0 : index
    %c0_443 = arith.constant 0 : index
    %334 = vector.load %arg7[%c1_441, %c0_442, %c0_443] : memref<9x128x64xbf16, #tpu.memory_space<vmem>>, vector<1x128x64xbf16>
    %335 = vector.shape_cast %334 : vector<1x128x64xbf16> to vector<128x64xbf16>
    %cst_444 = arith.constant dense<0.000000e+00> : vector<32x64xf32>
    %336 = tpu.matmul %333, %335, %cst_444 {dimension_numbers = #tpu.dot_dimension_numbers<[1], [0], [0], [1], [0, 0, 1, 1], [], []>} : vector<32x128xbf16>, vector<128x64xbf16>, vector<32x64xf32> -> vector<32x64xf32>
    %c0_445 = arith.constant 0 : index
    %c0_446 = arith.constant 0 : index
    %337 = vector.load %arg14[%c0_445, %c0_446] : memref<32x64xf32, #tpu.memory_space<vmem>>, vector<32x64xf32>
    %338 = arith.addf %337, %336 : vector<32x64xf32>
    %c0_447 = arith.constant 0 : index
    %c0_448 = arith.constant 0 : index
    %339 = vector.load %arg14[%c0_447, %c0_448] : memref<32x64xf32, #tpu.memory_space<vmem>>, vector<32x64xf32>
    tpu.vector_store %arg14[%c0_447, %c0_448], %338 {strides = array<i32>} : memref<32x64xf32, #tpu.memory_space<vmem>>, vector<32x64xf32>,
    %c0_449 = arith.constant 0 : index
    %c1_450 = arith.constant 1 : index
    %c1_451 = arith.constant 1 : index
    %c1_452 = arith.constant 1 : index
    %c0_453 = arith.constant 0 : index
    %340 = vector.load %arg12[%c0_449, %c1_450, %c1_451, %c1_452, %c0_453] : memref<2x2x6x9x128xbf16, #tpu.memory_space<vmem>>, vector<1x1x4x8x128xbf16>
    %341 = vector.shape_cast %340 : vector<1x1x4x8x128xbf16> to vector<4x8x128xbf16>
    %342 = vector.shape_cast %341 : vector<4x8x128xbf16> to vector<32x128xbf16>
    %c2_454 = arith.constant 2 : index
    %c0_455 = arith.constant 0 : index
    %c0_456 = arith.constant 0 : index
    %343 = vector.load %arg7[%c2_454, %c0_455, %c0_456] : memref<9x128x64xbf16, #tpu.memory_space<vmem>>, vector<1x128x64xbf16>
    %344 = vector.shape_cast %343 : vector<1x128x64xbf16> to vector<128x64xbf16>
    %cst_457 = arith.constant dense<0.000000e+00> : vector<32x64xf32>
    %345 = tpu.matmul %342, %344, %cst_457 {dimension_numbers = #tpu.dot_dimension_numbers<[1], [0], [0], [1], [0, 0, 1, 1], [], []>} : vector<32x128xbf16>, vector<128x64xbf16>, vector<32x64xf32> -> vector<32x64xf32>
    %c0_458 = arith.constant 0 : index
    %c0_459 = arith.constant 0 : index
    %346 = vector.load %arg14[%c0_458, %c0_459] : memref<32x64xf32, #tpu.memory_space<vmem>>, vector<32x64xf32>
    %347 = arith.addf %346, %345 : vector<32x64xf32>
    %c0_460 = arith.constant 0 : index
    %c0_461 = arith.constant 0 : index
    %348 = vector.load %arg14[%c0_460, %c0_461] : memref<32x64xf32, #tpu.memory_space<vmem>>, vector<32x64xf32>
    tpu.vector_store %arg14[%c0_460, %c0_461], %347 {strides = array<i32>} : memref<32x64xf32, #tpu.memory_space<vmem>>, vector<32x64xf32>,
    %c1_462 = arith.constant 1 : index
    %c1_463 = arith.constant 1 : index
    %c1_464 = arith.constant 1 : index
    %c0_465 = arith.constant 0 : index
    %c0_466 = arith.constant 0 : index
    %349 = vector.load %arg12[%c1_462, %c1_463, %c1_464, %c0_465, %c0_466] : memref<2x2x6x9x128xbf16, #tpu.memory_space<vmem>>, vector<1x1x4x8x128xbf16>
    %350 = vector.shape_cast %349 : vector<1x1x4x8x128xbf16> to vector<4x8x128xbf16>
    %351 = vector.shape_cast %350 : vector<4x8x128xbf16> to vector<32x128xbf16>
    %c3_467 = arith.constant 3 : index
    %c0_468 = arith.constant 0 : index
    %c0_469 = arith.constant 0 : index
    %352 = vector.load %arg7[%c3_467, %c0_468, %c0_469] : memref<9x128x64xbf16, #tpu.memory_space<vmem>>, vector<1x128x64xbf16>
    %353 = vector.shape_cast %352 : vector<1x128x64xbf16> to vector<128x64xbf16>
    %cst_470 = arith.constant dense<0.000000e+00> : vector<32x64xf32>
    %354 = tpu.matmul %351, %353, %cst_470 {dimension_numbers = #tpu.dot_dimension_numbers<[1], [0], [0], [1], [0, 0, 1, 1], [], []>} : vector<32x128xbf16>, vector<128x64xbf16>, vector<32x64xf32> -> vector<32x64xf32>
    %c0_471 = arith.constant 0 : index
    %c0_472 = arith.constant 0 : index
    %355 = vector.load %arg14[%c0_471, %c0_472] : memref<32x64xf32, #tpu.memory_space<vmem>>, vector<32x64xf32>
    %356 = arith.addf %355, %354 : vector<32x64xf32>
    %c0_473 = arith.constant 0 : index
    %c0_474 = arith.constant 0 : index
    %357 = vector.load %arg14[%c0_473, %c0_474] : memref<32x64xf32, #tpu.memory_space<vmem>>, vector<32x64xf32>
    tpu.vector_store %arg14[%c0_473, %c0_474], %356 {strides = array<i32>} : memref<32x64xf32, #tpu.memory_space<vmem>>, vector<32x64xf32>,
    %c1_475 = arith.constant 1 : index
    %c0_476 = arith.constant 0 : index
    %c1_477 = arith.constant 1 : index
    %c0_478 = arith.constant 0 : index
    %c0_479 = arith.constant 0 : index
    %358 = vector.load %arg12[%c1_475, %c0_476, %c1_477, %c0_478, %c0_479] : memref<2x2x6x9x128xbf16, #tpu.memory_space<vmem>>, vector<1x1x4x8x128xbf16>
    %359 = vector.shape_cast %358 : vector<1x1x4x8x128xbf16> to vector<4x8x128xbf16>
    %360 = vector.shape_cast %359 : vector<4x8x128xbf16> to vector<32x128xbf16>
    %c4_480 = arith.constant 4 : index
    %c0_481 = arith.constant 0 : index
    %c0_482 = arith.constant 0 : index
    %361 = vector.load %arg7[%c4_480, %c0_481, %c0_482] : memref<9x128x64xbf16, #tpu.memory_space<vmem>>, vector<1x128x64xbf16>
    %362 = vector.shape_cast %361 : vector<1x128x64xbf16> to vector<128x64xbf16>
    %cst_483 = arith.constant dense<0.000000e+00> : vector<32x64xf32>
    %363 = tpu.matmul %360, %362, %cst_483 {dimension_numbers = #tpu.dot_dimension_numbers<[1], [0], [0], [1], [0, 0, 1, 1], [], []>} : vector<32x128xbf16>, vector<128x64xbf16>, vector<32x64xf32> -> vector<32x64xf32>
    %c0_484 = arith.constant 0 : index
    %c0_485 = arith.constant 0 : index
    %364 = vector.load %arg14[%c0_484, %c0_485] : memref<32x64xf32, #tpu.memory_space<vmem>>, vector<32x64xf32>
    %365 = arith.addf %364, %363 : vector<32x64xf32>
    %c0_486 = arith.constant 0 : index
    %c0_487 = arith.constant 0 : index
    %366 = vector.load %arg14[%c0_486, %c0_487] : memref<32x64xf32, #tpu.memory_space<vmem>>, vector<32x64xf32>
    tpu.vector_store %arg14[%c0_486, %c0_487], %365 {strides = array<i32>} : memref<32x64xf32, #tpu.memory_space<vmem>>, vector<32x64xf32>,
    %c1_488 = arith.constant 1 : index
    %c1_489 = arith.constant 1 : index
    %c1_490 = arith.constant 1 : index
    %c1_491 = arith.constant 1 : index
    %c0_492 = arith.constant 0 : index
    %367 = vector.load %arg12[%c1_488, %c1_489, %c1_490, %c1_491, %c0_492] : memref<2x2x6x9x128xbf16, #tpu.memory_space<vmem>>, vector<1x1x4x8x128xbf16>
    %368 = vector.shape_cast %367 : vector<1x1x4x8x128xbf16> to vector<4x8x128xbf16>
    %369 = vector.shape_cast %368 : vector<4x8x128xbf16> to vector<32x128xbf16>
    %c5_493 = arith.constant 5 : index
    %c0_494 = arith.constant 0 : index
    %c0_495 = arith.constant 0 : index
    %370 = vector.load %arg7[%c5_493, %c0_494, %c0_495] : memref<9x128x64xbf16, #tpu.memory_space<vmem>>, vector<1x128x64xbf16>
    %371 = vector.shape_cast %370 : vector<1x128x64xbf16> to vector<128x64xbf16>
    %cst_496 = arith.constant dense<0.000000e+00> : vector<32x64xf32>
    %372 = tpu.matmul %369, %371, %cst_496 {dimension_numbers = #tpu.dot_dimension_numbers<[1], [0], [0], [1], [0, 0, 1, 1], [], []>} : vector<32x128xbf16>, vector<128x64xbf16>, vector<32x64xf32> -> vector<32x64xf32>
    %c0_497 = arith.constant 0 : index
    %c0_498 = arith.constant 0 : index
    %373 = vector.load %arg14[%c0_497, %c0_498] : memref<32x64xf32, #tpu.memory_space<vmem>>, vector<32x64xf32>
    %374 = arith.addf %373, %372 : vector<32x64xf32>
    %c0_499 = arith.constant 0 : index
    %c0_500 = arith.constant 0 : index
    %375 = vector.load %arg14[%c0_499, %c0_500] : memref<32x64xf32, #tpu.memory_space<vmem>>, vector<32x64xf32>
    tpu.vector_store %arg14[%c0_499, %c0_500], %374 {strides = array<i32>} : memref<32x64xf32, #tpu.memory_space<vmem>>, vector<32x64xf32>,
    %c0_501 = arith.constant 0 : index
    %c1_502 = arith.constant 1 : index
    %c2_503 = arith.constant 2 : index
    %c0_504 = arith.constant 0 : index
    %c0_505 = arith.constant 0 : index
    %376 = vector.load %arg12[%c0_501, %c1_502, %c2_503, %c0_504, %c0_505] : memref<2x2x6x9x128xbf16, #tpu.memory_space<vmem>>, vector<1x1x4x8x128xbf16>
    %377 = vector.shape_cast %376 : vector<1x1x4x8x128xbf16> to vector<4x8x128xbf16>
    %378 = vector.shape_cast %377 : vector<4x8x128xbf16> to vector<32x128xbf16>
    %c6_506 = arith.constant 6 : index
    %c0_507 = arith.constant 0 : index
    %c0_508 = arith.constant 0 : index
    %379 = vector.load %arg7[%c6_506, %c0_507, %c0_508] : memref<9x128x64xbf16, #tpu.memory_space<vmem>>, vector<1x128x64xbf16>
    %380 = vector.shape_cast %379 : vector<1x128x64xbf16> to vector<128x64xbf16>
    %cst_509 = arith.constant dense<0.000000e+00> : vector<32x64xf32>
    %381 = tpu.matmul %378, %380, %cst_509 {dimension_numbers = #tpu.dot_dimension_numbers<[1], [0], [0], [1], [0, 0, 1, 1], [], []>} : vector<32x128xbf16>, vector<128x64xbf16>, vector<32x64xf32> -> vector<32x64xf32>
    %c0_510 = arith.constant 0 : index
    %c0_511 = arith.constant 0 : index
    %382 = vector.load %arg14[%c0_510, %c0_511] : memref<32x64xf32, #tpu.memory_space<vmem>>, vector<32x64xf32>
    %383 = arith.addf %382, %381 : vector<32x64xf32>
    %c0_512 = arith.constant 0 : index
    %c0_513 = arith.constant 0 : index
    %384 = vector.load %arg14[%c0_512, %c0_513] : memref<32x64xf32, #tpu.memory_space<vmem>>, vector<32x64xf32>
    tpu.vector_store %arg14[%c0_512, %c0_513], %383 {strides = array<i32>} : memref<32x64xf32, #tpu.memory_space<vmem>>, vector<32x64xf32>,
    %c0_514 = arith.constant 0 : index
    %c0_515 = arith.constant 0 : index
    %c2_516 = arith.constant 2 : index
    %c0_517 = arith.constant 0 : index
    %c0_518 = arith.constant 0 : index
    %385 = vector.load %arg12[%c0_514, %c0_515, %c2_516, %c0_517, %c0_518] : memref<2x2x6x9x128xbf16, #tpu.memory_space<vmem>>, vector<1x1x4x8x128xbf16>
    %386 = vector.shape_cast %385 : vector<1x1x4x8x128xbf16> to vector<4x8x128xbf16>
    %387 = vector.shape_cast %386 : vector<4x8x128xbf16> to vector<32x128xbf16>
    %c7_519 = arith.constant 7 : index
    %c0_520 = arith.constant 0 : index
    %c0_521 = arith.constant 0 : index
    %388 = vector.load %arg7[%c7_519, %c0_520, %c0_521] : memref<9x128x64xbf16, #tpu.memory_space<vmem>>, vector<1x128x64xbf16>
    %389 = vector.shape_cast %388 : vector<1x128x64xbf16> to vector<128x64xbf16>
    %cst_522 = arith.constant dense<0.000000e+00> : vector<32x64xf32>
    %390 = tpu.matmul %387, %389, %cst_522 {dimension_numbers = #tpu.dot_dimension_numbers<[1], [0], [0], [1], [0, 0, 1, 1], [], []>} : vector<32x128xbf16>, vector<128x64xbf16>, vector<32x64xf32> -> vector<32x64xf32>
    %c0_523 = arith.constant 0 : index
    %c0_524 = arith.constant 0 : index
    %391 = vector.load %arg14[%c0_523, %c0_524] : memref<32x64xf32, #tpu.memory_space<vmem>>, vector<32x64xf32>
    %392 = arith.addf %391, %390 : vector<32x64xf32>
    %c0_525 = arith.constant 0 : index
    %c0_526 = arith.constant 0 : index
    %393 = vector.load %arg14[%c0_525, %c0_526] : memref<32x64xf32, #tpu.memory_space<vmem>>, vector<32x64xf32>
    tpu.vector_store %arg14[%c0_525, %c0_526], %392 {strides = array<i32>} : memref<32x64xf32, #tpu.memory_space<vmem>>, vector<32x64xf32>,
    %c0_527 = arith.constant 0 : index
    %c1_528 = arith.constant 1 : index
    %c2_529 = arith.constant 2 : index
    %c1_530 = arith.constant 1 : index
    %c0_531 = arith.constant 0 : index
    %394 = vector.load %arg12[%c0_527, %c1_528, %c2_529, %c1_530, %c0_531] : memref<2x2x6x9x128xbf16, #tpu.memory_space<vmem>>, vector<1x1x4x8x128xbf16>
    %395 = vector.shape_cast %394 : vector<1x1x4x8x128xbf16> to vector<4x8x128xbf16>
    %396 = vector.shape_cast %395 : vector<4x8x128xbf16> to vector<32x128xbf16>
    %c8_532 = arith.constant 8 : index
    %c0_533 = arith.constant 0 : index
    %c0_534 = arith.constant 0 : index
    %397 = vector.load %arg7[%c8_532, %c0_533, %c0_534] : memref<9x128x64xbf16, #tpu.memory_space<vmem>>, vector<1x128x64xbf16>
    %398 = vector.shape_cast %397 : vector<1x128x64xbf16> to vector<128x64xbf16>
    %cst_535 = arith.constant dense<0.000000e+00> : vector<32x64xf32>
    %399 = tpu.matmul %396, %398, %cst_535 {dimension_numbers = #tpu.dot_dimension_numbers<[1], [0], [0], [1], [0, 0, 1, 1], [], []>} : vector<32x128xbf16>, vector<128x64xbf16>, vector<32x64xf32> -> vector<32x64xf32>
    %c0_536 = arith.constant 0 : index
    %c0_537 = arith.constant 0 : index
    %400 = vector.load %arg14[%c0_536, %c0_537] : memref<32x64xf32, #tpu.memory_space<vmem>>, vector<32x64xf32>
    %401 = arith.addf %400, %399 : vector<32x64xf32>
    %c0_538 = arith.constant 0 : index
    %c0_539 = arith.constant 0 : index
    %402 = vector.load %arg14[%c0_538, %c0_539] : memref<32x64xf32, #tpu.memory_space<vmem>>, vector<32x64xf32>
    tpu.vector_store %arg14[%c0_538, %c0_539], %401 {strides = array<i32>} : memref<32x64xf32, #tpu.memory_space<vmem>>, vector<32x64xf32>,
    %c0_540 = arith.constant 0 : index
    %c0_541 = arith.constant 0 : index
    %403 = vector.load %arg14[%c0_540, %c0_541] : memref<32x64xf32, #tpu.memory_space<vmem>>, vector<32x64xf32>
    %c0_542 = arith.constant 0 : index
    %c0_543 = arith.constant 0 : index
    %404 = vector.load %arg9[%c0_542, %c0_543] : memref<1x64xf32, #tpu.memory_space<vmem>>, vector<1x64xf32>
    %405 = vector.broadcast %404 : vector<1x64xf32> to vector<32x64xf32>
    %406 = arith.mulf %403, %405 : vector<32x64xf32>
    %c0_544 = arith.constant 0 : index
    %c0_545 = arith.constant 0 : index
    %407 = vector.load %arg10[%c0_544, %c0_545] : memref<1x64xf32, #tpu.memory_space<vmem>>, vector<1x64xf32>
    %408 = vector.broadcast %407 : vector<1x64xf32> to vector<32x64xf32>
    %409 = arith.addf %406, %408 : vector<32x64xf32>
    %cst_546 = arith.constant 0.000000e+00 : f32
    %410 = vector.broadcast %cst_546 : f32 to vector<32x64xf32>
    %411 = arith.maximumf %409, %410 : vector<32x64xf32>
    %412 = vector.shape_cast %411 : vector<32x64xf32> to vector<4x8x64xf32>
    %c0_547 = arith.constant 0 : index
    %c0_548 = arith.constant 0 : index
    %c1_549 = arith.constant 1 : index
    %c0_550 = arith.constant 0 : index
    %c0_551 = arith.constant 0 : index
    %c0_552 = arith.constant 0 : index
    %413 = vector.load %arg11[%c0_547, %c0_548, %c1_549, %c0_550, %c0_551, %c0_552] : memref<1x1x2x4x8x128xf32, #tpu.memory_space<vmem>>, vector<1x1x1x4x8x64xf32>
    %414 = vector.shape_cast %413 : vector<1x1x1x4x8x64xf32> to vector<4x8x64xf32>
    %415 = vector.shape_cast %412 : vector<4x8x64xf32> to vector<1x1x1x4x8x64xf32>
    tpu.vector_store %arg11[%c0_547, %c0_548, %c1_549, %c0_550, %c0_551, %c0_552], %415 {strides = array<i32>} : memref<1x1x2x4x8x128xf32, #tpu.memory_space<vmem>>, vector<1x1x1x4x8x64xf32>,
    %c0_553 = arith.constant 0 : index
    %c0_554 = arith.constant 0 : index
    %c1_555 = arith.constant 1 : index
    %c0_556 = arith.constant 0 : index
    %c0_557 = arith.constant 0 : index
    %416 = vector.load %arg12[%c0_553, %c0_554, %c1_555, %c0_556, %c0_557] : memref<2x2x6x9x128xbf16, #tpu.memory_space<vmem>>, vector<1x1x4x8x128xbf16>
    %417 = vector.shape_cast %416 : vector<1x1x4x8x128xbf16> to vector<4x8x128xbf16>
    %418 = vector.shape_cast %417 : vector<4x8x128xbf16> to vector<32x128xbf16>
    %c0_558 = arith.constant 0 : index
    %c0_559 = arith.constant 0 : index
    %c0_560 = arith.constant 0 : index
    %419 = vector.load %arg7[%c0_558, %c0_559, %c0_560] : memref<9x128x64xbf16, #tpu.memory_space<vmem>>, vector<1x128x64xbf16>
    %420 = vector.shape_cast %419 : vector<1x128x64xbf16> to vector<128x64xbf16>
    %cst_561 = arith.constant dense<0.000000e+00> : vector<32x64xf32>
    %421 = tpu.matmul %418, %420, %cst_561 {dimension_numbers = #tpu.dot_dimension_numbers<[1], [0], [0], [1], [0, 0, 1, 1], [], []>} : vector<32x128xbf16>, vector<128x64xbf16>, vector<32x64xf32> -> vector<32x64xf32>
    %c0_562 = arith.constant 0 : index
    %c0_563 = arith.constant 0 : index
    %422 = vector.load %arg14[%c0_562, %c0_563] : memref<32x64xf32, #tpu.memory_space<vmem>>, vector<32x64xf32>
    tpu.vector_store %arg14[%c0_562, %c0_563], %421 {strides = array<i32>} : memref<32x64xf32, #tpu.memory_space<vmem>>, vector<32x64xf32>,
    %c0_564 = arith.constant 0 : index
    %c1_565 = arith.constant 1 : index
    %c1_566 = arith.constant 1 : index
    %c1_567 = arith.constant 1 : index
    %c0_568 = arith.constant 0 : index
    %423 = vector.load %arg12[%c0_564, %c1_565, %c1_566, %c1_567, %c0_568] : memref<2x2x6x9x128xbf16, #tpu.memory_space<vmem>>, vector<1x1x4x8x128xbf16>
    %424 = vector.shape_cast %423 : vector<1x1x4x8x128xbf16> to vector<4x8x128xbf16>
    %425 = vector.shape_cast %424 : vector<4x8x128xbf16> to vector<32x128xbf16>
    %c1_569 = arith.constant 1 : index
    %c0_570 = arith.constant 0 : index
    %c0_571 = arith.constant 0 : index
    %426 = vector.load %arg7[%c1_569, %c0_570, %c0_571] : memref<9x128x64xbf16, #tpu.memory_space<vmem>>, vector<1x128x64xbf16>
    %427 = vector.shape_cast %426 : vector<1x128x64xbf16> to vector<128x64xbf16>
    %cst_572 = arith.constant dense<0.000000e+00> : vector<32x64xf32>
    %428 = tpu.matmul %425, %427, %cst_572 {dimension_numbers = #tpu.dot_dimension_numbers<[1], [0], [0], [1], [0, 0, 1, 1], [], []>} : vector<32x128xbf16>, vector<128x64xbf16>, vector<32x64xf32> -> vector<32x64xf32>
    %c0_573 = arith.constant 0 : index
    %c0_574 = arith.constant 0 : index
    %429 = vector.load %arg14[%c0_573, %c0_574] : memref<32x64xf32, #tpu.memory_space<vmem>>, vector<32x64xf32>
    %430 = arith.addf %429, %428 : vector<32x64xf32>
    %c0_575 = arith.constant 0 : index
    %c0_576 = arith.constant 0 : index
    %431 = vector.load %arg14[%c0_575, %c0_576] : memref<32x64xf32, #tpu.memory_space<vmem>>, vector<32x64xf32>
    tpu.vector_store %arg14[%c0_575, %c0_576], %430 {strides = array<i32>} : memref<32x64xf32, #tpu.memory_space<vmem>>, vector<32x64xf32>,
    %c0_577 = arith.constant 0 : index
    %c0_578 = arith.constant 0 : index
    %c1_579 = arith.constant 1 : index
    %c1_580 = arith.constant 1 : index
    %c0_581 = arith.constant 0 : index
    %432 = vector.load %arg12[%c0_577, %c0_578, %c1_579, %c1_580, %c0_581] : memref<2x2x6x9x128xbf16, #tpu.memory_space<vmem>>, vector<1x1x4x8x128xbf16>
    %433 = vector.shape_cast %432 : vector<1x1x4x8x128xbf16> to vector<4x8x128xbf16>
    %434 = vector.shape_cast %433 : vector<4x8x128xbf16> to vector<32x128xbf16>
    %c2_582 = arith.constant 2 : index
    %c0_583 = arith.constant 0 : index
    %c0_584 = arith.constant 0 : index
    %435 = vector.load %arg7[%c2_582, %c0_583, %c0_584] : memref<9x128x64xbf16, #tpu.memory_space<vmem>>, vector<1x128x64xbf16>
    %436 = vector.shape_cast %435 : vector<1x128x64xbf16> to vector<128x64xbf16>
    %cst_585 = arith.constant dense<0.000000e+00> : vector<32x64xf32>
    %437 = tpu.matmul %434, %436, %cst_585 {dimension_numbers = #tpu.dot_dimension_numbers<[1], [0], [0], [1], [0, 0, 1, 1], [], []>} : vector<32x128xbf16>, vector<128x64xbf16>, vector<32x64xf32> -> vector<32x64xf32>
    %c0_586 = arith.constant 0 : index
    %c0_587 = arith.constant 0 : index
    %438 = vector.load %arg14[%c0_586, %c0_587] : memref<32x64xf32, #tpu.memory_space<vmem>>, vector<32x64xf32>
    %439 = arith.addf %438, %437 : vector<32x64xf32>
    %c0_588 = arith.constant 0 : index
    %c0_589 = arith.constant 0 : index
    %440 = vector.load %arg14[%c0_588, %c0_589] : memref<32x64xf32, #tpu.memory_space<vmem>>, vector<32x64xf32>
    tpu.vector_store %arg14[%c0_588, %c0_589], %439 {strides = array<i32>} : memref<32x64xf32, #tpu.memory_space<vmem>>, vector<32x64xf32>,
    %c1_590 = arith.constant 1 : index
    %c0_591 = arith.constant 0 : index
    %c1_592 = arith.constant 1 : index
    %c0_593 = arith.constant 0 : index
    %c0_594 = arith.constant 0 : index
    %441 = vector.load %arg12[%c1_590, %c0_591, %c1_592, %c0_593, %c0_594] : memref<2x2x6x9x128xbf16, #tpu.memory_space<vmem>>, vector<1x1x4x8x128xbf16>
    %442 = vector.shape_cast %441 : vector<1x1x4x8x128xbf16> to vector<4x8x128xbf16>
    %443 = vector.shape_cast %442 : vector<4x8x128xbf16> to vector<32x128xbf16>
    %c3_595 = arith.constant 3 : index
    %c0_596 = arith.constant 0 : index
    %c0_597 = arith.constant 0 : index
    %444 = vector.load %arg7[%c3_595, %c0_596, %c0_597] : memref<9x128x64xbf16, #tpu.memory_space<vmem>>, vector<1x128x64xbf16>
    %445 = vector.shape_cast %444 : vector<1x128x64xbf16> to vector<128x64xbf16>
    %cst_598 = arith.constant dense<0.000000e+00> : vector<32x64xf32>
    %446 = tpu.matmul %443, %445, %cst_598 {dimension_numbers = #tpu.dot_dimension_numbers<[1], [0], [0], [1], [0, 0, 1, 1], [], []>} : vector<32x128xbf16>, vector<128x64xbf16>, vector<32x64xf32> -> vector<32x64xf32>
    %c0_599 = arith.constant 0 : index
    %c0_600 = arith.constant 0 : index
    %447 = vector.load %arg14[%c0_599, %c0_600] : memref<32x64xf32, #tpu.memory_space<vmem>>, vector<32x64xf32>
    %448 = arith.addf %447, %446 : vector<32x64xf32>
    %c0_601 = arith.constant 0 : index
    %c0_602 = arith.constant 0 : index
    %449 = vector.load %arg14[%c0_601, %c0_602] : memref<32x64xf32, #tpu.memory_space<vmem>>, vector<32x64xf32>
    tpu.vector_store %arg14[%c0_601, %c0_602], %448 {strides = array<i32>} : memref<32x64xf32, #tpu.memory_space<vmem>>, vector<32x64xf32>,
    %c1_603 = arith.constant 1 : index
    %c1_604 = arith.constant 1 : index
    %c1_605 = arith.constant 1 : index
    %c1_606 = arith.constant 1 : index
    %c0_607 = arith.constant 0 : index
    %450 = vector.load %arg12[%c1_603, %c1_604, %c1_605, %c1_606, %c0_607] : memref<2x2x6x9x128xbf16, #tpu.memory_space<vmem>>, vector<1x1x4x8x128xbf16>
    %451 = vector.shape_cast %450 : vector<1x1x4x8x128xbf16> to vector<4x8x128xbf16>
    %452 = vector.shape_cast %451 : vector<4x8x128xbf16> to vector<32x128xbf16>
    %c4_608 = arith.constant 4 : index
    %c0_609 = arith.constant 0 : index
    %c0_610 = arith.constant 0 : index
    %453 = vector.load %arg7[%c4_608, %c0_609, %c0_610] : memref<9x128x64xbf16, #tpu.memory_space<vmem>>, vector<1x128x64xbf16>
    %454 = vector.shape_cast %453 : vector<1x128x64xbf16> to vector<128x64xbf16>
    %cst_611 = arith.constant dense<0.000000e+00> : vector<32x64xf32>
    %455 = tpu.matmul %452, %454, %cst_611 {dimension_numbers = #tpu.dot_dimension_numbers<[1], [0], [0], [1], [0, 0, 1, 1], [], []>} : vector<32x128xbf16>, vector<128x64xbf16>, vector<32x64xf32> -> vector<32x64xf32>
    %c0_612 = arith.constant 0 : index
    %c0_613 = arith.constant 0 : index
    %456 = vector.load %arg14[%c0_612, %c0_613] : memref<32x64xf32, #tpu.memory_space<vmem>>, vector<32x64xf32>
    %457 = arith.addf %456, %455 : vector<32x64xf32>
    %c0_614 = arith.constant 0 : index
    %c0_615 = arith.constant 0 : index
    %458 = vector.load %arg14[%c0_614, %c0_615] : memref<32x64xf32, #tpu.memory_space<vmem>>, vector<32x64xf32>
    tpu.vector_store %arg14[%c0_614, %c0_615], %457 {strides = array<i32>} : memref<32x64xf32, #tpu.memory_space<vmem>>, vector<32x64xf32>,
    %c1_616 = arith.constant 1 : index
    %c0_617 = arith.constant 0 : index
    %c1_618 = arith.constant 1 : index
    %c1_619 = arith.constant 1 : index
    %c0_620 = arith.constant 0 : index
    %459 = vector.load %arg12[%c1_616, %c0_617, %c1_618, %c1_619, %c0_620] : memref<2x2x6x9x128xbf16, #tpu.memory_space<vmem>>, vector<1x1x4x8x128xbf16>
    %460 = vector.shape_cast %459 : vector<1x1x4x8x128xbf16> to vector<4x8x128xbf16>
    %461 = vector.shape_cast %460 : vector<4x8x128xbf16> to vector<32x128xbf16>
    %c5_621 = arith.constant 5 : index
    %c0_622 = arith.constant 0 : index
    %c0_623 = arith.constant 0 : index
    %462 = vector.load %arg7[%c5_621, %c0_622, %c0_623] : memref<9x128x64xbf16, #tpu.memory_space<vmem>>, vector<1x128x64xbf16>
    %463 = vector.shape_cast %462 : vector<1x128x64xbf16> to vector<128x64xbf16>
    %cst_624 = arith.constant dense<0.000000e+00> : vector<32x64xf32>
    %464 = tpu.matmul %461, %463, %cst_624 {dimension_numbers = #tpu.dot_dimension_numbers<[1], [0], [0], [1], [0, 0, 1, 1], [], []>} : vector<32x128xbf16>, vector<128x64xbf16>, vector<32x64xf32> -> vector<32x64xf32>
    %c0_625 = arith.constant 0 : index
    %c0_626 = arith.constant 0 : index
    %465 = vector.load %arg14[%c0_625, %c0_626] : memref<32x64xf32, #tpu.memory_space<vmem>>, vector<32x64xf32>
    %466 = arith.addf %465, %464 : vector<32x64xf32>
    %c0_627 = arith.constant 0 : index
    %c0_628 = arith.constant 0 : index
    %467 = vector.load %arg14[%c0_627, %c0_628] : memref<32x64xf32, #tpu.memory_space<vmem>>, vector<32x64xf32>
    tpu.vector_store %arg14[%c0_627, %c0_628], %466 {strides = array<i32>} : memref<32x64xf32, #tpu.memory_space<vmem>>, vector<32x64xf32>,
    %c0_629 = arith.constant 0 : index
    %c0_630 = arith.constant 0 : index
    %c2_631 = arith.constant 2 : index
    %c0_632 = arith.constant 0 : index
    %c0_633 = arith.constant 0 : index
    %468 = vector.load %arg12[%c0_629, %c0_630, %c2_631, %c0_632, %c0_633] : memref<2x2x6x9x128xbf16, #tpu.memory_space<vmem>>, vector<1x1x4x8x128xbf16>
    %469 = vector.shape_cast %468 : vector<1x1x4x8x128xbf16> to vector<4x8x128xbf16>
    %470 = vector.shape_cast %469 : vector<4x8x128xbf16> to vector<32x128xbf16>
    %c6_634 = arith.constant 6 : index
    %c0_635 = arith.constant 0 : index
    %c0_636 = arith.constant 0 : index
    %471 = vector.load %arg7[%c6_634, %c0_635, %c0_636] : memref<9x128x64xbf16, #tpu.memory_space<vmem>>, vector<1x128x64xbf16>
    %472 = vector.shape_cast %471 : vector<1x128x64xbf16> to vector<128x64xbf16>
    %cst_637 = arith.constant dense<0.000000e+00> : vector<32x64xf32>
    %473 = tpu.matmul %470, %472, %cst_637 {dimension_numbers = #tpu.dot_dimension_numbers<[1], [0], [0], [1], [0, 0, 1, 1], [], []>} : vector<32x128xbf16>, vector<128x64xbf16>, vector<32x64xf32> -> vector<32x64xf32>
    %c0_638 = arith.constant 0 : index
    %c0_639 = arith.constant 0 : index
    %474 = vector.load %arg14[%c0_638, %c0_639] : memref<32x64xf32, #tpu.memory_space<vmem>>, vector<32x64xf32>
    %475 = arith.addf %474, %473 : vector<32x64xf32>
    %c0_640 = arith.constant 0 : index
    %c0_641 = arith.constant 0 : index
    %476 = vector.load %arg14[%c0_640, %c0_641] : memref<32x64xf32, #tpu.memory_space<vmem>>, vector<32x64xf32>
    tpu.vector_store %arg14[%c0_640, %c0_641], %475 {strides = array<i32>} : memref<32x64xf32, #tpu.memory_space<vmem>>, vector<32x64xf32>,
    %c0_642 = arith.constant 0 : index
    %c1_643 = arith.constant 1 : index
    %c2_644 = arith.constant 2 : index
    %c1_645 = arith.constant 1 : index
    %c0_646 = arith.constant 0 : index
    %477 = vector.load %arg12[%c0_642, %c1_643, %c2_644, %c1_645, %c0_646] : memref<2x2x6x9x128xbf16, #tpu.memory_space<vmem>>, vector<1x1x4x8x128xbf16>
    %478 = vector.shape_cast %477 : vector<1x1x4x8x128xbf16> to vector<4x8x128xbf16>
    %479 = vector.shape_cast %478 : vector<4x8x128xbf16> to vector<32x128xbf16>
    %c7_647 = arith.constant 7 : index
    %c0_648 = arith.constant 0 : index
    %c0_649 = arith.constant 0 : index
    %480 = vector.load %arg7[%c7_647, %c0_648, %c0_649] : memref<9x128x64xbf16, #tpu.memory_space<vmem>>, vector<1x128x64xbf16>
    %481 = vector.shape_cast %480 : vector<1x128x64xbf16> to vector<128x64xbf16>
    %cst_650 = arith.constant dense<0.000000e+00> : vector<32x64xf32>
    %482 = tpu.matmul %479, %481, %cst_650 {dimension_numbers = #tpu.dot_dimension_numbers<[1], [0], [0], [1], [0, 0, 1, 1], [], []>} : vector<32x128xbf16>, vector<128x64xbf16>, vector<32x64xf32> -> vector<32x64xf32>
    %c0_651 = arith.constant 0 : index
    %c0_652 = arith.constant 0 : index
    %483 = vector.load %arg14[%c0_651, %c0_652] : memref<32x64xf32, #tpu.memory_space<vmem>>, vector<32x64xf32>
    %484 = arith.addf %483, %482 : vector<32x64xf32>
    %c0_653 = arith.constant 0 : index
    %c0_654 = arith.constant 0 : index
    %485 = vector.load %arg14[%c0_653, %c0_654] : memref<32x64xf32, #tpu.memory_space<vmem>>, vector<32x64xf32>
    tpu.vector_store %arg14[%c0_653, %c0_654], %484 {strides = array<i32>} : memref<32x64xf32, #tpu.memory_space<vmem>>, vector<32x64xf32>,
    %c0_655 = arith.constant 0 : index
    %c0_656 = arith.constant 0 : index
    %c2_657 = arith.constant 2 : index
    %c1_658 = arith.constant 1 : index
    %c0_659 = arith.constant 0 : index
    %486 = vector.load %arg12[%c0_655, %c0_656, %c2_657, %c1_658, %c0_659] : memref<2x2x6x9x128xbf16, #tpu.memory_space<vmem>>, vector<1x1x4x8x128xbf16>
    %487 = vector.shape_cast %486 : vector<1x1x4x8x128xbf16> to vector<4x8x128xbf16>
    %488 = vector.shape_cast %487 : vector<4x8x128xbf16> to vector<32x128xbf16>
    %c8_660 = arith.constant 8 : index
    %c0_661 = arith.constant 0 : index
    %c0_662 = arith.constant 0 : index
    %489 = vector.load %arg7[%c8_660, %c0_661, %c0_662] : memref<9x128x64xbf16, #tpu.memory_space<vmem>>, vector<1x128x64xbf16>
    %490 = vector.shape_cast %489 : vector<1x128x64xbf16> to vector<128x64xbf16>
    %cst_663 = arith.constant dense<0.000000e+00> : vector<32x64xf32>
    %491 = tpu.matmul %488, %490, %cst_663 {dimension_numbers = #tpu.dot_dimension_numbers<[1], [0], [0], [1], [0, 0, 1, 1], [], []>} : vector<32x128xbf16>, vector<128x64xbf16>, vector<32x64xf32> -> vector<32x64xf32>
    %c0_664 = arith.constant 0 : index
    %c0_665 = arith.constant 0 : index
    %492 = vector.load %arg14[%c0_664, %c0_665] : memref<32x64xf32, #tpu.memory_space<vmem>>, vector<32x64xf32>
    %493 = arith.addf %492, %491 : vector<32x64xf32>
    %c0_666 = arith.constant 0 : index
    %c0_667 = arith.constant 0 : index
    %494 = vector.load %arg14[%c0_666, %c0_667] : memref<32x64xf32, #tpu.memory_space<vmem>>, vector<32x64xf32>
    tpu.vector_store %arg14[%c0_666, %c0_667], %493 {strides = array<i32>} : memref<32x64xf32, #tpu.memory_space<vmem>>, vector<32x64xf32>,
    %c0_668 = arith.constant 0 : index
    %c0_669 = arith.constant 0 : index
    %495 = vector.load %arg14[%c0_668, %c0_669] : memref<32x64xf32, #tpu.memory_space<vmem>>, vector<32x64xf32>
    %c0_670 = arith.constant 0 : index
    %c0_671 = arith.constant 0 : index
    %496 = vector.load %arg9[%c0_670, %c0_671] : memref<1x64xf32, #tpu.memory_space<vmem>>, vector<1x64xf32>
    %497 = vector.broadcast %496 : vector<1x64xf32> to vector<32x64xf32>
    %498 = arith.mulf %495, %497 : vector<32x64xf32>
    %c0_672 = arith.constant 0 : index
    %c0_673 = arith.constant 0 : index
    %499 = vector.load %arg10[%c0_672, %c0_673] : memref<1x64xf32, #tpu.memory_space<vmem>>, vector<1x64xf32>
    %500 = vector.broadcast %499 : vector<1x64xf32> to vector<32x64xf32>
    %501 = arith.addf %498, %500 : vector<32x64xf32>
    %cst_674 = arith.constant 0.000000e+00 : f32
    %502 = vector.broadcast %cst_674 : f32 to vector<32x64xf32>
    %503 = arith.maximumf %501, %502 : vector<32x64xf32>
    %504 = vector.shape_cast %503 : vector<32x64xf32> to vector<4x8x64xf32>
    %c0_675 = arith.constant 0 : index
    %c0_676 = arith.constant 0 : index
    %c1_677 = arith.constant 1 : index
    %c0_678 = arith.constant 0 : index
    %c0_679 = arith.constant 0 : index
    %c64_680 = arith.constant 64 : index
    %505 = vector.load %arg11[%c0_675, %c0_676, %c1_677, %c0_678, %c0_679, %c64_680] : memref<1x1x2x4x8x128xf32, #tpu.memory_space<vmem>>, vector<1x1x1x4x8x64xf32>
    %506 = vector.shape_cast %505 : vector<1x1x1x4x8x64xf32> to vector<4x8x64xf32>
    %507 = vector.shape_cast %504 : vector<4x8x64xf32> to vector<1x1x1x4x8x64xf32>
    tpu.vector_store %arg11[%c0_675, %c0_676, %c1_677, %c0_678, %c0_679, %c64_680], %507 {strides = array<i32>} : memref<1x1x2x4x8x128xf32, #tpu.memory_space<vmem>>, vector<1x1x1x4x8x64xf32>,
    return
  }
  func.func @transform_0(%arg0: i32, %arg1: i32) -> (i32, i32, i32, i32) {
    %c0_i32 = arith.constant 0 : i32
    %c0_i32_0 = arith.constant 0 : i32
    %c0_i32_1 = arith.constant 0 : i32
    return %arg0, %arg1, %c0_i32, %c0_i32_0 : i32, i32, i32, i32
  }
  func.func @transform_1(%arg0: i32, %arg1: i32) -> (i32, i32, i32, i32) {
    %c1_i32 = arith.constant 1 : i32
    %0 = arith.addi %arg1, %c1_i32 : i32
    %c1_i32_0 = arith.constant 1 : i32
    %1 = arith.muli %0, %c1_i32_0 : i32
    %c0_i32 = arith.constant 0 : i32
    %c0_i32_1 = arith.constant 0 : i32
    %c0_i32_2 = arith.constant 0 : i32
    return %arg0, %1, %c0_i32, %c0_i32_1 : i32, i32, i32, i32
  }
  func.func @transform_2(%arg0: i32, %arg1: i32) -> (i32, i32, i32, i32, i32, i32) {
    %c0_i32 = arith.constant 0 : i32
    %c0_i32_0 = arith.constant 0 : i32
    %c0_i32_1 = arith.constant 0 : i32
    %c0_i32_2 = arith.constant 0 : i32
    %c0_i32_3 = arith.constant 0 : i32
    return %arg0, %c0_i32, %c0_i32_0, %arg1, %c0_i32_1, %c0_i32_2 : i32, i32, i32, i32, i32, i32
  }
  func.func @transform_3(%arg0: i32, %arg1: i32) -> (i32, i32, i32, i32, i32, i32) {
    %c1_i32 = arith.constant 1 : i32
    %0 = arith.addi %arg1, %c1_i32 : i32
    %c2_i32 = arith.constant 2 : i32
    %1 = arith.muli %0, %c2_i32 : i32
    %c0_i32 = arith.constant 0 : i32
    %c0_i32_0 = arith.constant 0 : i32
    %c0_i32_1 = arith.constant 0 : i32
    %c0_i32_2 = arith.constant 0 : i32
    %c0_i32_3 = arith.constant 0 : i32
    return %arg0, %c0_i32, %c0_i32_0, %1, %c0_i32_1, %c0_i32_2 : i32, i32, i32, i32, i32, i32
  }
  func.func @transform_4(%arg0: i32, %arg1: i32) -> (i32, i32, i32) {
    %c0_i32 = arith.constant 0 : i32
    %c0_i32_0 = arith.constant 0 : i32
    %c0_i32_1 = arith.constant 0 : i32
    %c0_i32_2 = arith.constant 0 : i32
    return %c0_i32, %c0_i32_0, %c0_i32_1 : i32, i32, i32
  }
  func.func @transform_5(%arg0: i32, %arg1: i32) -> (i32, i32, i32) {
    %c0_i32 = arith.constant 0 : i32
    %c0_i32_0 = arith.constant 0 : i32
    %c0_i32_1 = arith.constant 0 : i32
    %c0_i32_2 = arith.constant 0 : i32
    return %c0_i32, %c0_i32_0, %c0_i32_1 : i32, i32, i32
  }
  func.func @transform_6(%arg0: i32, %arg1: i32) -> (i32, i32) {
    %c0_i32 = arith.constant 0 : i32
    %c0_i32_0 = arith.constant 0 : i32
    %c0_i32_1 = arith.constant 0 : i32
    return %c0_i32, %c0_i32_0 : i32, i32
  }
  func.func @transform_7(%arg0: i32, %arg1: i32) -> (i32, i32) {
    %c0_i32 = arith.constant 0 : i32
    %c0_i32_0 = arith.constant 0 : i32
    %c0_i32_1 = arith.constant 0 : i32
    return %c0_i32, %c0_i32_0 : i32, i32
  }
  func.func @transform_8(%arg0: i32, %arg1: i32) -> (i32, i32) {
    %c0_i32 = arith.constant 0 : i32
    %c0_i32_0 = arith.constant 0 : i32
    %c0_i32_1 = arith.constant 0 : i32
    return %c0_i32, %c0_i32_0 : i32, i32
  }
  func.func @transform_9(%arg0: i32, %arg1: i32) -> (i32, i32, i32, i32, i32, i32) {
    %c0_i32 = arith.constant 0 : i32
    %c0_i32_0 = arith.constant 0 : i32
    %c0_i32_1 = arith.constant 0 : i32
    %c0_i32_2 = arith.constant 0 : i32
    %c0_i32_3 = arith.constant 0 : i32
    return %arg0, %arg1, %c0_i32, %c0_i32_0, %c0_i32_1, %c0_i32_2 : i32, i32, i32, i32, i32, i32
  }
}

</mosaic_0001>

<bundles_post_ra>
// kernel: upsample_n_concat_1.1
= control target key start
LH: loop header
LB: loop body
LE: loop exit
PB: predicated region body
PF: predicated region fallthrough
CT: control target
= control target key end

     0   :  { %s14475_s0 = inlined_call_operand.vmem [shape: f32[2,12,10,64], index: 0, kind: input, shape index: {}, may-alias: {0,1}]   ;;  %s14476_s1 = inlined_call_operand.vmem [shape: f32[2,12,10,64], index: 1, kind: input, shape index: {}, may-alias: {0,1}]   ;;  %s14477_s2 = inlined_call_operand.vmem [shape: f32[2,2,2,10,8,64], index: 2, kind: input, shape index: {}, may-alias: {2,3}]   ;;  %s14478_s3 = inlined_call_operand.vmem [shape: f32[2,2,2,10,8,64], index: 3, kind: input, shape index: {}, may-alias: {2,3}]   ;;  %s14479_s4 = inlined_call_operand.vmem [shape: bf16[4,256,64], index: 4, kind: input, shape index: {}]   ;;  %s14480_s5 = inlined_call_operand.vmem [shape: bf16[9,128,64], index: 5, kind: input, shape index: {}]   ;;  %s14481_s6 = inlined_call_operand.vmem [shape: f32[1,64], index: 6, kind: input, shape index: {}]   ;;  %s14482_s7 = inlined_call_operand.vmem [shape: f32[1,64], index: 7, kind: input, shape index: {}]   ;;  %s14483_s8 = inlined_call_operand.vmem [shape: f32[1,64], index: 8, kind: input, shape index: {}]   ;;  %s14484_s9 = inlined_call_operand.vmem [shape: f32[2,2,2,4,8,128], index: 9, kind: output, shape index: {}]  }
   0x1   :  { %14491 = sst [smem:[#allocation11_spill]] %s14477_s2 }
   0x2   :  { %14492 = sst [smem:[#allocation12_spill]] %s14480_s5 }
   0x3   :  { %14493 = sst [smem:[#allocation13_spill]] %s14481_s6 }
   0x4   :  { %14494 = sst [smem:[#allocation14_spill]] %s14482_s7 }
   0x5   :  { %14495 = sst [smem:[#allocation15_spill]] %s14483_s8 }
   0x6   :  { %s12272_s30 = smov 0   ;;  %s12274_s10 = smov 0  }
   0x7   :  { %s12276_s11 = smov 0   ;;  %s12278_s12 = smov 0  }
   0x8   :  { %s12280_s13 = smov 0   ;;  %s12282_s14 = smov 0  }
   0x9   :  { %s12284_s15 = smov 0   ;;  %s12286_s16 = smov 0  }
   0xa   :  { %s12288_s17 = smov 0  }
   0xb LB: > { %14496 = sst [smem:[#allocation7_spill]] %s12181_s12  ;;  %s28_s18 = sadd.s32 1, %s12193_s15  ;;  %s12201_s17 = sphi %s12288_s17, %s19_s17   ;;  %s12197_s16 = sphi %s12286_s16, %s14528_s16   ;;  %s12193_s15 = sphi %s12284_s15, %s14527_s15   ;;  %s12189_s14 = sphi %s12282_s14, %s14526_s14   ;;  %s12185_s13 = sphi %s12280_s13, %s14525_s13   ;;  %s12181_s12 = sphi %s12278_s12, %s14520_s12   ;;  %s12177_s11 = sphi %s12276_s11, %s14519_s11   ;;  %s12173_s10 = sphi %s12274_s10, %s14524_s10   ;;  %s12169_s30 = sphi %s12272_s30, %s14523_s30  }
   0xc   : > { %s31_s19 = sadd.s32 1, %s12197_s16  ;;  %p29_p0 = scmp.ge.s32.totalorder %s28_s18, 2 }
   0xd   : > { %s98_s20 = sadd.s32 1, %s12181_s12  ;;  %p105_p1 = scmp.ne.s32.totalorder %s12181_s12, %s12177_s11 }
   0xe   : > { %p106_p2 = scmp.eq.s32.totalorder %s12201_s17, 0  ;;  %s14530_s18 = smov (%p29_p0, %s28_s18), 0 }
   0xf   : > { %14497 = sst [smem:[#allocation8_spill]] %s14530_s18  ;;  %s14532_s19 = smov (!%p29_p0, %s31_s19), %s12197_s16 }
  0x10   : > { %s94_s21 = ssub.s32 %s12193_s15, %s14530_s18  ;;  %p12330_p3 = por %p106_p2, %p105_p1 }
  0x11   : > { %p33_p4 = scmp.ge.s32.totalorder %s14532_s19, 2  ;;  %s10340_s23 = sshll.u32 %s12193_s15, 1 }
  0x12   : > { %s10341_s24 = sadd.s32 2, %s10340_s23  ;;  %s10342_s25 = sshll.u32 %s14530_s18, 1 }
  0x13   : > { %s14534_s19 = smov (%p33_p4, %s14532_s19), 0  ;;  %s10343_s26 = sadd.s32 2, %s10342_s25 }
  0x14   : > { %14499 = sst [smem:[#allocation9_spill]] %s14534_s19  ;;  %s130_s27 = sadd.s32 1, %s12173_s10 }
  0x15   : > { %s93_s28 = ssub.s32 %s12197_s16, %s14534_s19  ;;  %s126_s29 = ssub.s32 %s10341_s24, %s10343_s26 }
  0x16   : > { %s95_s8 = sor.u32 %s94_s21, %s93_s28  ;;  %s127_s7 = sor.u32 %s126_s29, %s93_s28 }
  0x17   : > { %p96_p5 = scmp.eq.s32.totalorder %s95_s8, 0  ;;  %p128_p6 = scmp.eq.s32.totalorder %s127_s7, 0 }
  0x18   : > { %p137_p7 = scmp.ne.s32.totalorder %s12173_s10, %s12169_s30  ;;  %p9191_p9 = scmp.ge.s32.totalorder %s12201_s17, 4 }
  0x19   : > { %s12344_s5 = scalar_select %p96_p5, %s12181_s12, %s98_s20  }
  0x1a   : > { %s12347_s6 = scalar_select %p128_p6, %s12173_s10, %s130_s27  }
  0x1b   : > { %14500 = sst [smem:[#allocation10_spill]] %s12344_s5  ;;  %p12351_p8 = por %p137_p7, %p106_p2 }
  0x1c   : > { %311 = sbr.rel (%p9191_p9) target bundleno = 67 (0x43), region = 36 }
  0x23   : > { %344 = sbr.rel (!%p12330_p3) target bundleno = 55 (0x37), region = 48  ;;  %s346_s7 = sand.u32 (%p12330_p3), 1, %s12181_s12  }
  0x24   : > { %s9193_s8 = sshll.u32 (%p12330_p3), %s12193_s15, 2  ;;  %s12360_s20 = sshll.u32 (%p12330_p3), %s346_s7, 7 }
  0x25   : > { %s11564_s21 = smul.u32 (%p12330_p3), 40, %s12197_s16  ;;  %s14502_s2 = sld [smem:[#allocation11_spill]] (%p12330_p3) }
  0x26   : > { %s348_s29 = scalar_lea.vmem (%p12330_p3), [#allocation5], %s12360_s20   ;;  %s12376_s18 = smov (%p12330_p3), 0  }
  0x27   : > { %s356_s24 = sadd.s32 (%p12330_p3), %s11564_s21, %s9193_s8  ;;  %s14503_s22 = smov (%p12330_p3), %s348_s29 }
  0x28   : > { %s9196_s25 = sshll.u32 (%p12330_p3), %s356_s24, 3  ;;  %s12378_s7 = smov (%p12330_p3), 0  }
  0x2b   : > { %s12366_s28 = scalar_lea.vmem %s14502_s2, %s9196_s25  }
  0x2c   : > { %s14504_s19 = smov %s12366_s28 }
  0x2d LB: >> { %v459_v0 = vld [vmem:[%s12209_s19] sm:$0xff]  ;;  %v461_v1 = vld [vmem:[%s12209_s19 + $0x8] sm:$0xff]  ;;  %v463_v2 = vld [vmem:[%s12209_s19 + $0x10] sm:$0xff]  ;;  %s491_s8 = sadd.s32 1, %s12213_s18  ;;  %s453_s7 = sadd.s32 1, %s12217_s7   ;;  %s12217_s7 = sphi %s12378_s7, %s453_s7   ;;  %s12213_s18 = sphi %s12376_s18, %s14505_s18   ;;  %s12209_s19 = sphi %s14504_s19, %s496_s19   ;;  %s12205_s22 = sphi %s14503_s22, %s497_s22  }
  0x2e   : >> { %460 = vst [vmem:[%s12205_s22] sm:$0xff] %v459_v0  ;;  %462 = vst [vmem:[%s12205_s22 + $0x8] sm:$0xff] %v461_v1  ;;  %v465_v3 = vld [vmem:[%s12209_s19 + $0x18] sm:$0xff]  ;;  %v467_v4 = vld [vmem:[%s12209_s19 + $0x50] sm:$0xff]  ;;  %p492_p10 = scmp.ge.s32.totalorder %s491_s8, 1  ;;  %p452_p11 = scmp.ge.s32.totalorder %s453_s7, 1 }
  0x2f   : >> { %464 = vst [vmem:[%s12205_s22 + $0x10] sm:$0xff] %v463_v2  ;;  %v469_v5 = vld [vmem:[%s12209_s19 + $0x58] sm:$0xff]  ;;  %466 = vst [vmem:[%s12205_s22 + $0x18] sm:$0xff] %v465_v3  ;;  %v471_v6 = vld [vmem:[%s12209_s19 + $0x60] sm:$0xff] }
  0x30   : >> { %468 = vst [vmem:[%s12205_s22 + $0x20] sm:$0xff] %v467_v4  ;;  %470 = vst [vmem:[%s12205_s22 + $0x28] sm:$0xff] %v469_v5  ;;  %v473_v7 = vld [vmem:[%s12209_s19 + $0x68] sm:$0xff]  ;;  %v475_v8 = vld [vmem:[%s12209_s19 + $0xa0] sm:$0xff]  ;;  %s14536_s8 = smov (%p492_p10, %s491_s8), 0  ;;  %455 = sbr.rel (!%p452_p11) target bundleno = 45 (0x2d), region = 243 }
  0x31   : >> { %472 = vst [vmem:[%s12205_s22 + $0x30] sm:$0xff] %v471_v6  ;;  %474 = vst [vmem:[%s12205_s22 + $0x38] sm:$0xff] %v473_v7  ;;  %v477_v9 = vld [vmem:[%s12209_s19 + $0xa8] sm:$0xff]  ;;  %v479_v10 = vld [vmem:[%s12209_s19 + $0xb0] sm:$0xff]  ;;  %s9199_s18 = sshll.u32 %s14536_s8, 5 }
  0x32   : >> { %476 = vst [vmem:[%s12205_s22 + $0x40] sm:$0xff] %v475_v8  ;;  %v481_v11 = vld [vmem:[%s12209_s19 + $0xb8] sm:$0xff]  ;;  %478 = vst [vmem:[%s12205_s22 + $0x48] sm:$0xff] %v477_v9  ;;  %v483_v12 = vld [vmem:[%s12209_s19 + $0xf0] sm:$0xff] }
  0x33   : >> { %480 = vst [vmem:[%s12205_s22 + $0x50] sm:$0xff] %v479_v10  ;;  %482 = vst [vmem:[%s12205_s22 + $0x58] sm:$0xff] %v481_v11  ;;  %v485_v13 = vld [vmem:[%s12209_s19 + $0xf8] sm:$0xff]  ;;  %v487_v14 = vld [vmem:[%s12209_s19 + $0x100] sm:$0xff] }
  0x34   : >> { %484 = vst [vmem:[%s12205_s22 + $0x60] sm:$0xff] %v483_v12  ;;  %486 = vst [vmem:[%s12205_s22 + $0x68] sm:$0xff] %v485_v13  ;;  %v489_v15 = vld [vmem:[%s12209_s19 + $0x108] sm:$0xff]  ;;  %s496_s19 = scalar_lea.vmem %s12366_s28, %s9199_s18  }
  0x35   : >> { %488 = vst [vmem:[%s12205_s22 + $0x70] sm:$0xff] %v487_v14  ;;  %490 = vst [vmem:[%s12205_s22 + $0x78] sm:$0xff] %v489_v15  ;;  %s497_s22 = scalar_lea.vmem %s348_s29, %s9199_s18 [#allocation5]   ;;  %s14505_s18 = smov %s14536_s8 }
  0x37 PF: > { %534 = sbr.rel (!%p12351_p8) target bundleno = 67 (0x43), region = 100  ;;  %s536_s21 = sand.u32 (%p12351_p8), 1, %s12173_s10  }
  0x38   : > { %s9208_s24 = sshll.u32 (%p12351_p8), %s12193_s15, 2  ;;  %s9207_s25 = sshll.u32 (%p12351_p8), %s536_s21, 6 }
  0x39   : > { %s9052_s26 = smul.u32 (%p12351_p8), 40, %s12197_s16  ;;  %s538_s19 = scalar_lea.vmem (%p12351_p8), [#allocation6], %s9207_s25 }
  0x3b   : > { %s9053_s27 = sadd.s32 (%p12351_p8), %s9208_s24, %s9052_s26 }
  0x3c   : > { %s9209_s2 = sshll.u32 (%p12351_p8), %s9053_s27, 3 }
  0x3d   : > { %s9055_s8 = scalar_lea.vmem (%p12351_p8), %s14478_s3, %s9209_s2 }
  0x3e   : > { %v9210_v16 = vld [vmem:[%s9055_s8 + $0x20] sm:$0xff]  ;;  %v9211_v17 = vld [vmem:[%s9055_s8 + $0x28] sm:$0xff]  ;;  %v9212_v18 = vld [vmem:[%s9055_s8 + $0x70] sm:$0xff] }
  0x3f   : > { %588 = vst [vmem:[%s538_s19] sm:$0xff] %v9210_v16  ;;  %590 = vst [vmem:[%s538_s19 + $0x8] sm:$0xff] %v9211_v17  ;;  %v9213_v19 = vld [vmem:[%s9055_s8 + $0x78] sm:$0xff]  ;;  %v9214_v20 = vld [vmem:[%s9055_s8 + $0xc0] sm:$0xff] }
  0x40   : > { %592 = vst [vmem:[%s538_s19 + $0x10] sm:$0xff] %v9212_v18  ;;  %v9215_v21 = vld [vmem:[%s9055_s8 + $0xc8] sm:$0xff]  ;;  %594 = vst [vmem:[%s538_s19 + $0x18] sm:$0xff] %v9213_v19  ;;  %v9216_v22 = vld [vmem:[%s9055_s8 + $0x110] sm:$0xff] }
  0x41   : > { %596 = vst [vmem:[%s538_s19 + $0x20] sm:$0xff] %v9214_v20  ;;  %598 = vst [vmem:[%s538_s19 + $0x28] sm:$0xff] %v9215_v21  ;;  %v9217_v23 = vld [vmem:[%s9055_s8 + $0x118] sm:$0xff] }
  0x42   : > { %600 = vst [vmem:[%s538_s19 + $0x30] sm:$0xff] %v9216_v22  ;;  %602 = vst [vmem:[%s538_s19 + $0x38] sm:$0xff] %v9217_v23 }
  0x43 PF: > { %p9218_p12 = scmp.ge.s32.totalorder %s12201_s17, 1  ;;  %p607_p13 = scmp.lt.s32.totalorder %s12201_s17, 5 }
  0x45   : > { %p608_p0 = pnand %p9218_p12, %p607_p13 }
  0x46   : > { %s12445_s2 = sshll.u32 (!%p608_p0), %s12185_s13, 2  ;;  %p686_p1 = scmp.lt.s32.totalorder (!%p608_p0), %s12189_s14, 1  ;;  %v11705_v24 = vld [vmem:[%s14479_s4 + $0xc0] sm:$0xff] (!%p608_p0)   ;;  %v11707_v26 = vld [vmem:[%s14479_s4 + $0xc8] sm:$0xff] (!%p608_p0)   ;;  %vm735_vm0 = vcmask (!%p608_p0), 523264   ;;  %vm737_vm1 = vcmask (!%p608_p0), 517120  }
  0x47   : > { %611 = sbr.rel (%p608_p0) target bundleno = 1482 (0x5ca), region = 138  ;;  %p688_p2 = scmp.lt.s32.totalorder (!%p608_p0), %s12445_s2, 11  ;;  %v11706_v25 = vld [vmem:[%s14479_s4 + $0x80] sm:$0xff] (!%p608_p0)   ;;  %10382 = vmatprep.subr.bf16.mxu1 (!%p608_p0), %v11705_v24  ;;  %v11708_v27 = vld [vmem:[%s14479_s4 + $0x88] sm:$0xff] (!%p608_p0)   ;;  %v11711_v38 = vld [vmem:[%s14479_s4 + $0xd0] sm:$0xff] (!%p608_p0)   ;;  %vm762_vm2 = vcmask (!%p608_p0), 1040384  }
  0x48   : > { %10383 = vmatpush3.bf16.msra.mxu1 (!%p608_p0), %v11706_v25  ;;  %p719_p3 = scmp.lt.s32.totalorder (!%p608_p0), %s12185_s13, 1  ;;  %s10347_s26 = sadd.s32 (!%p608_p0), 4, %s12445_s2  ;;  %v11709_v28 = vld [vmem:[%s14479_s4 + $0x40] sm:$0xff] (!%p608_p0)   ;;  %v11712_v39 = vld [vmem:[%s14479_s4 + $0x90] sm:$0xff] (!%p608_p0)   ;;  %v11713_v56 = vld [vmem:[%s14479_s4 + $0x48] sm:$0xff] (!%p608_p0)   ;;  %vm1738_vm5 = vcmask (!%p608_p0), 1043456  }
  0x49   : > { %10384 = vmatprep.subr.bf16.mxu1 (!%p608_p0), %v11707_v26  ;;  %p12473_p4 = scmp.lt.s32.totalorder (!%p608_p0), %s10347_s26, 11  ;;  %10348 = vmatprep.subr.bf16.mxu0 (!%p608_p0), %v11709_v28  ;;  %v11710_v37 = vld [vmem:[%s14479_s4] sm:$0xff] (!%p608_p0)   ;;  %v11714_v57 = vld [vmem:[%s14479_s4 + $0x8] sm:$0xff] (!%p608_p0)   ;;  %v11715_v61 = vld [vmem:[%s14479_s4 + $0xd8] sm:$0xff] (!%p608_p0)   ;;  %s621_s8 = sand.u32 (!%p608_p0), 1, %s12169_s30  }
  0x4a   : > { %10349 = vmatpush3.bf16.msra.mxu0 (!%p608_p0), %v11710_v37  ;;  %v11716_v62 = vld [vmem:[%s14479_s4 + $0x98] sm:$0xff] (!%p608_p0)   ;;  %v11717_v63 = vld [vmem:[%s14479_s4 + $0x50] sm:$0xff] (!%p608_p0)   ;;  %v11719_v3 = vld [vmem:[%s14479_s4 + $0xe0] sm:$0xff] (!%p608_p0)   ;;  %vm763_vm3 = vsmask.f32 (!%p608_p0), 256  ;;  %p9448_p5 = scmp.ne.s32.totalorder (!%p608_p0), %s12185_s13, 0 }
  0x4b   : > { %10350 = vmatprep.subr.bf16.mxu0 (!%p608_p0), %v11713_v56  ;;  %v11718_v2 = vld [vmem:[%s14479_s4 + $0x10] sm:$0xff] (!%p608_p0)   ;;  %v11720_v6 = vld [vmem:[%s14479_s4 + $0xa0] sm:$0xff] (!%p608_p0)   ;;  %v11721_v7 = vld [vmem:[%s14479_s4 + $0x58] sm:$0xff] (!%p608_p0)   ;;  %vm1739_vm6 = vsmask.f32 (!%p608_p0), 7938 }
  0x4c   : > { %10385 = vmatpush3.bf16.msra.mxu1 (!%p608_p0), %v11708_v27  ;;  %v11722_v8 = vld [vmem:[%s14479_s4 + $0x18] sm:$0xff] (!%p608_p0)   ;;  %v11723_v10 = vld [vmem:[%s14479_s4 + $0xe8] sm:$0xff] (!%p608_p0)   ;;  %v11725_v14 = vld [vmem:[%s14479_s4 + $0x60] sm:$0xff] (!%p608_p0)  }
  0x4d   : > { %10386 = vmatprep.subr.bf16.mxu1 (!%p608_p0), %v11711_v38  ;;  %v11724_v12 = vld [vmem:[%s14479_s4 + $0xa8] sm:$0xff] (!%p608_p0)   ;;  %v11726_v15 = vld [vmem:[%s14479_s4 + $0x20] sm:$0xff] (!%p608_p0)   ;;  %v11727_v17 = vld [vmem:[%s14479_s4 + $0xf0] sm:$0xff] (!%p608_p0)  }
  0x4e   : > { %s14538_s14 = smov (!%p686_p1, %s12189_s14), 1  ;;  %s14540_s26 = smov (!%p12473_p4, %s10347_s26), 11  ;;  %10351 = vmatpush3.bf16.msra.mxu0 %v11714_v57  ;;  %v11728_v20 = vld [vmem:[%s14479_s4 + $0xb0] sm:$0xff]   ;;  %v11729_v22 = vld [vmem:[%s14479_s4 + $0x68] sm:$0xff]   ;;  %v11731_v24 = vld [vmem:[%s14479_s4 + $0xf8] sm:$0xff]  }
  0x4f   : > { %s689_s22 = scalar_select %p688_p2, %s12445_s2, 11  ;;  %10352 = vmatprep.subr.bf16.mxu0 %v11717_v63  ;;  %v11730_v23 = vld [vmem:[%s14479_s4 + $0x28] sm:$0xff]   ;;  %v11732_v26 = vld [vmem:[%s14479_s4 + $0xb8] sm:$0xff]   ;;  %v11733_v28 = vld [vmem:[%s14479_s4 + $0x70] sm:$0xff]  }
  0x50   : > { %s11565_s7 = smul.u32 24, %s14538_s14  ;;  %s9228_s28 = sshll.u32 %s14538_s14, 4  ;;  %10387 = vmatpush3.bf16.msra.mxu1 %v11712_v39  ;;  %vm12957_vm4 = vmand %vm762_vm2, %vm763_vm3 }
  0x51   : > { %s9222_s24 = sshll.u32 %s689_s22, 1  ;;  %s9225_s18 = sshll.u32 %s14540_s26, 1  ;;  %10388 = vmatprep.subr.bf16.mxu1 %v11715_v61  ;;  %vm13040_vm7 = vmand %vm1738_vm5, %vm1739_vm6 }
  0x52   : > { %s692_s25 = sadd.s32 %s11565_s7, %s9222_s24  ;;  %s704_s27 = sadd.s32 %s11565_s7, %s9225_s18  ;;  %10353 = vmatpush3.bf16.msra.mxu0 %v11718_v2 }
  0x53   : > { %s9223_s19 = sshll.u32 %s692_s25, 3  ;;  %s12219_s7 = smov 64   ;;  %10354 = vmatprep.subr.bf16.mxu0 %v11721_v7 }
  0x54   : > { %s694_s20 = scalar_lea.vmem %s14475_s0, %s9223_s19  ;;  %10389 = vmatpush3.bf16.msra.mxu1 %v11716_v62  ;;  %s9220_s19 = sshll.u32 %s621_s8, 6 }
  0x55   : > { %s720_s2 = scalar_select %p719_p3, %s12185_s13, 1  ;;  %v729_v29 = vld [vmem:[%s694_s20 + $0x10] sm:$0xff]  ;;  %v730_v30 = vld [vmem:[%s694_s20 + $0x18] sm:$0x3]  ;;  %v727_v31 = vld [vmem:[%s694_s20] sm:$0xff]  ;;  %10390 = vmatprep.subr.bf16.mxu1 %v11719_v3 }
  0x56   : > { %739 = vst.msk [vmem:[#allocation3 + $0x10] sm:$0xff] %vm735_vm0, %v729_v29  ;;  %v728_v32 = vld [vmem:[%s694_s20 + $0x8] sm:$0x3]  ;;  %736 = vst.msk [vmem:[#allocation3] sm:$0xff] %vm735_vm0, %v727_v31  ;;  %v731_v33 = vld [vmem:[%s694_s20 + $0x20] sm:$0xff]  ;;  %10355 = vmatpush3.bf16.msra.mxu0 %v11722_v8  ;;  %s12724_s30 = scalar_lea.vmem [#allocation6], %s9220_s19 }
  0x57   : > { %740 = vst.msk [vmem:[#allocation3 + $0x18] sm:$0x3] %vm737_vm1, %v730_v30  ;;  %v732_v34 = vld [vmem:[%s694_s20 + $0x28] sm:$0x3]  ;;  %s9227_s29 = sshll.u32 %s720_s2, 3  ;;  %v733_v35 = vld [vmem:[%s694_s20 + $0x30] sm:$0xff]  ;;  %10356 = vmatprep.subr.bf16.mxu0 %v11725_v14 }
  0x58   : > { %738 = vst.msk [vmem:[#allocation3 + $0x8] sm:$0x3] %vm737_vm1, %v728_v32  ;;  %742 = vst.msk [vmem:[#allocation3 + $0x28] sm:$0x3] %vm737_vm1, %v732_v34  ;;  %v734_v36 = vld [vmem:[%s694_s20 + $0x38] sm:$0x3]  ;;  %s723_s22 = sadd.s32 %s9228_s28, %s9227_s29  ;;  %10391 = vmatpush3.bf16.msra.mxu1 %v11720_v6 }
  0x59   : > { %741 = vst.msk [vmem:[#allocation3 + $0x20] sm:$0xff] %vm735_vm0, %v731_v33  ;;  %743 = vst.msk [vmem:[#allocation3 + $0x30] sm:$0xff] %vm735_vm0, %v733_v35  ;;  %s9229_s25 = sshll.u32 %s723_s22, 3  ;;  %s9226_s20 = sshll.u32 %s704_s27, 3  ;;  %10392 = vmatprep.subr.bf16.mxu1 %v11723_v10  ;;  %v11734_v29 = vld [vmem:[%s14479_s4 + $0x30] sm:$0xff]   ;;  %v11735_v30 = vld [vmem:[%s14479_s4 + $0x78] sm:$0xff]  }
  0x5a   : > { %744 = vst.msk [vmem:[#allocation3 + $0x38] sm:$0x3] %vm737_vm1, %v734_v36  ;;  %s12503_s23 = scalar_lea.vmem %s14484_s9, %s9229_s25  ;;  %s706_s14 = scalar_lea.vmem %s14476_s1, %s9226_s20  ;;  %10357 = vmatpush3.bf16.msra.mxu0 %v11726_v15  ;;  %v11736_v31 = vld [vmem:[%s14479_s4 + $0x38] sm:$0xff]   ;;  %v11737_v32 = vld [vmem:[%s14479_s4 + $0x1c0] sm:$0xff]  }
  0x5b   : > { %v745_v40 = vld [vmem:[%s706_s14] sm:$0xff]  ;;  %v746_v41 = vld [vmem:[%s706_s14 + $0x8] sm:$0x3]  ;;  %v747_v50 = vld [vmem:[%s706_s14 + $0x10] sm:$0xff]  ;;  %10358 = vmatprep.subr.bf16.mxu0 %v11729_v22  ;;  %s614_s25 = sand.u32 1, %s12177_s11   ;;  %s14509_s18 = sld [smem:[#allocation13_spill]] }
  0x5c   : > { %v749_v42 = vld [vmem:[%s706_s14 + $0x20] sm:$0xff]  ;;  %754 = vst.msk [vmem:[#allocation3 + $0x40] sm:$0xff] %vm735_vm0, %v745_v40  ;;  %v750_v44 = vld [vmem:[%s706_s14 + $0x28] sm:$0x3]  ;;  %v748_v53 = vld [vmem:[%s706_s14 + $0x18] sm:$0x3]  ;;  %10393 = vmatpush3.bf16.msra.mxu1 %v11724_v12 }
  0x5d   : > { %755 = vst.msk [vmem:[#allocation3 + $0x48] sm:$0x3] %vm737_vm1, %v746_v41  ;;  %759 = vst.msk [vmem:[#allocation3 + $0x68] sm:$0x3] %vm737_vm1, %v750_v44  ;;  %v751_v54 = vld [vmem:[%s706_s14 + $0x30] sm:$0xff]  ;;  %10394 = vmatprep.subr.bf16.mxu1 %v11727_v17  ;;  %v11747_v36 = vld [vmem:[%s14479_s4 + $0x140] sm:$0xff]  }
  0x5e   : > { %v1291_v43 = vld [vmem:[#allocation3 + $0x12] sm:$0xff]  ;;  %758 = vst.msk [vmem:[#allocation3 + $0x60] sm:$0xff] %vm735_vm0, %v749_v42  ;;  %756 = vst.msk [vmem:[#allocation3 + $0x50] sm:$0xff] %vm735_vm0, %v747_v50  ;;  %10359 = vmatpush3.bf16.msra.mxu0 %v11730_v23  ;;  %s9219_s27 = sshll.u32 %s614_s25, 7 }
  0x5f   : > { %v12514_v45 = vpack.c.bf16 %v1291_v43, %v1291_v43  ;;  %v1267_v46 = vld [vmem:[#allocation3 + $0x2] sm:$0xff]  ;;  %v877_v49 = vld [vmem:[#allocation3 + $0x11] sm:$0xff]  ;;  %757 = vst.msk [vmem:[#allocation3 + $0x58] sm:$0x3] %vm737_vm1, %v748_v53  ;;  %10360 = vmatprep.subr.bf16.mxu0 %v11733_v28  ;;  %s12712_s11 = scalar_lea.vmem [#allocation5], %s9219_s27 }
  0x60   : > { %v1292_v47 = vld [vmem:[#allocation3 + $0x22] sm:$0xff]  ;;  %v1273_v48 = vpack.c.bf16 %v1267_v46, %v1267_v46  ;;  %v752_v55 = vld [vmem:[%s706_s14 + $0x38] sm:$0x3]  ;;  %760 = vst.msk [vmem:[#allocation3 + $0x70] sm:$0xff] %vm735_vm0, %v751_v54  ;;  %v12534_v58 = vpack.c.bf16 %v877_v49, %v877_v49  ;;  %10395 = vmatpush3.bf16.msra.mxu1 %v11728_v20  ;;  %v9310_v46 = vld [vmem:[%s12712_s11 + $0x30] sm:$0xff] }
  0x61   : > { %1327 = vrot.lane.b32.xlu0 %v12514_v45, %s12219_s7  ;;  %v12519_v51 = vpack.c.bf16 %v1292_v47, %v1292_v47  ;;  %v878_v52 = vld [vmem:[#allocation3 + $0x21] sm:$0xff]  ;;  %761 = vst.msk [vmem:[#allocation3 + $0x78] sm:$0x3] %vm737_vm1, %v752_v55  ;;  %v1270_v1 = vld [vmem:[#allocation3 + $0x32] sm:$0xff]  ;;  %10396 = vmatprep.subr.bf16.mxu1 %v11731_v24 }
  0x62   : > { %1309 = vrot.lane.b32.xlu1 %v1273_v48, %s12219_s7  ;;  %v12538_v59 = vpack.c.bf16 %v878_v52, %v878_v52  ;;  %v852_v60 = vld [vmem:[#allocation3 + $0x1] sm:$0xff]  ;;  %v12563_v4 = vpack.c.bf16 %v1270_v1, %v1270_v1  ;;  %v879_v16 = vld [vmem:[#allocation3 + $0x31] sm:$0xff]  ;;  %10361 = vmatpush3.bf16.msra.mxu0 %v11734_v29  ;;  %v1620_v48 = vpack.c.bf16 %v9310_v46, %v9310_v46 }
  0x63   : > { %v12551_v0 = vpack.c.bf16 %v852_v60, %v852_v60  ;;  %v12617_v25 = vpack.c.bf16 %v879_v16, %v879_v16  ;;  %10362 = vmatprep.subr.bf16.mxu0 %v11735_v30  ;;  %v9308_v42 = vld [vmem:[%s12712_s11 + $0x20] sm:$0xff]  ;;  %v9309_v43 = vld [vmem:[%s12712_s11 + $0x28] sm:$0xff]  ;;  %v9311_v47 = vld [vmem:[%s12712_s11 + $0x38] sm:$0xff] }
  0x64   : > { %v1294_v5 = vld [vmem:[#allocation3 + $0x42] sm:$0xff]  ;;  %10397 = vmatpush3.bf16.msra.mxu1 %v11732_v26  ;;  %v1618_v44 = vpack.c.bf16 %v9308_v42, %v9308_v42  ;;  %v1621_v49 = vpack.c.bf16 %v9311_v47, %v9311_v47  ;;  %v9312_v50 = vld [vmem:[%s12724_s30 + $0x10] sm:$0xff]  ;;  %v9439_v61 = vld [vmem:[%s12712_s11 + $0x78] sm:$0xff] }
  0x65   : > { %1329 = vrot.lane.b32.xlu0 %v12519_v51, %s12219_s7  ;;  %v1296_v11 = vld [vmem:[#allocation3 + $0x62] sm:$0xff]  ;;  %v12586_v13 = vpack.c.bf16 %v1294_v5, %v1294_v5  ;;  %10450 = vmatprep.subr.bf16.mxu1 %v11737_v32  ;;  %v1622_v52 = vpack.c.bf16 %v9312_v50, %v9312_v50  ;;  %v9438_v60 = vld [vmem:[%s12712_s11 + $0x70] sm:$0xff]  ;;  %v2561_v63 = vpack.c.bf16 %v9439_v61, %v9439_v61  ;;  %v9441_v2 = vld [vmem:[%s12724_s30 + $0x38] sm:$0xff] }
  0x66   : > { %1311 = vrot.lane.b32.xlu1 %v12514_v45, %s12219_s7  ;;  %v1295_v9 = vld [vmem:[#allocation3 + $0x52] sm:$0xff]  ;;  %v880_v19 = vld [vmem:[#allocation3 + $0x41] sm:$0xff]  ;;  %v1302_v21 = vpack.c.bf16 %v1296_v11, %v1296_v11  ;;  %10363 = vmatpush3.bf16.msra.mxu0 %v11736_v31  ;;  %v2560_v62 = vpack.c.bf16 %v9438_v60, %v9438_v60 }
  0x67   : > { %v12599_v18 = vpack.c.bf16 %v1295_v9, %v1295_v9  ;;  %v12623_v27 = vpack.c.bf16 %v880_v19, %v880_v19  ;;  %v881_v33 = vld [vmem:[#allocation3 + $0x51] sm:$0xff]  ;;  %v882_v34 = vld [vmem:[#allocation3 + $0x61] sm:$0xff]  ;;  %10416 = vmatprep.subr.bf16.mxu0 %v11747_v36 }
  0x68   : > { %v12654_v35 = vpack.c.bf16 %v881_v33, %v881_v33  ;;  %v12661_v37 = vpack.c.bf16 %v882_v34, %v882_v34  ;;  %v2236_v38 = vld [vmem:[#allocation3 + $0x72] sm:$0xff]  ;;  %v9436_v54 = vld [vmem:[%s12712_s11 + $0x60] sm:$0xff]  ;;  %v9437_v55 = vld [vmem:[%s12712_s11 + $0x68] sm:$0xff] }
  0x69   : > { %913 = vrot.lane.b32.xlu0 %v12534_v58, %s12219_s7  ;;  %v2242_v39 = vpack.c.bf16 %v2236_v38, %v2236_v38  ;;  %v1819_v40 = vld [vmem:[#allocation3 + $0x71] sm:$0xff]  ;;  %v2558_v56 = vpack.c.bf16 %v9436_v54, %v9436_v54  ;;  %v2559_v57 = vpack.c.bf16 %v9437_v55, %v9437_v55  ;;  %v1195_v5 = vld [vmem:[%s12712_s11] sm:$0xff]  ;;  %v1196_v7 = vld [vmem:[%s12712_s11 + $0x8] sm:$0xff] }
  0x6a   : > { %915 = vrot.lane.b32.xlu1 %v12538_v59, %s12219_s7  ;;  %v12705_v41 = vpack.c.bf16 %v1819_v40, %v1819_v40  ;;  %v9440_v1 = vld [vmem:[%s12724_s30 + $0x30] sm:$0xff]  ;;  %v866_v10 = vld [vmem:[#allocation3 + $0x20] sm:$0xff]  ;;  %v1201_v11 = vpack.c.bf16 %v1195_v5, %v1195_v5  ;;  %v1202_v12 = vpack.c.bf16 %v1196_v7, %v1196_v7  ;;  %v1198_v15 = vld [vmem:[%s12712_s11 + $0x18] sm:$0xff] }
  0x6b   : > { %v2562_v3 = vpack.c.bf16 %v9440_v1, %v9440_v1  ;;  %v865_v9 = vld [vmem:[#allocation3 + $0x10] sm:$0xff]  ;;  %v12754_v20 = vpack.c.bf16 %v866_v10, %v866_v10  ;;  %v840_v24 = vld [vmem:[#allocation3] sm:$0xff]  ;;  %v11739_v30 = vld [vmem:[%s14479_s4 + $0x1c8] sm:$0xff]  }
  0x6c   : > { %v12752_v19 = vpack.c.bf16 %v865_v9, %v865_v9  ;;  %v11738_v26 = vld [vmem:[%s14479_s4 + $0x180] sm:$0xff]   ;;  %v1200_v33 = vld [vmem:[%s12724_s30 + $0x8] sm:$0xff]  ;;  %v846_v38 = vpack.c.bf16 %v840_v24, %v840_v24  ;;  %v11743_v55 = vld [vmem:[%s14479_s4 + $0x1d8] sm:$0xff]  }
  0x6d   : > { %895 = vrot.lane.b32.xlu0 %v12551_v0, %s12219_s7  ;;  %v1199_v31 = vld [vmem:[%s12724_s30] sm:$0xff]  ;;  %v11740_v40 = vld [vmem:[%s14479_s4 + $0x188] sm:$0xff]   ;;  %v9378_v1 = vld [vmem:[%s12712_s11 + $0x58] sm:$0xff] }
  0x6e   : > { %897 = vrot.lane.b32.xlu1 %v12534_v58, %s12219_s7  ;;  %v1205_v42 = vpack.c.bf16 %v1199_v31, %v1199_v31  ;;  %v9376_v50 = vld [vmem:[%s12712_s11 + $0x48] sm:$0xff]  ;;  %v11756_v5 = vld [vmem:[%s14479_s4 + $0x150] sm:$0xff]   ;;  %v11759_v24 = vld [vmem:[%s14479_s4 + $0x158] sm:$0xff]  }
  0x6f   : > { %v2142_v61 = vpack.c.bf16 %v9376_v50, %v9376_v50 }
  0x71   : > { %1331 = vrot.lane.b32.xlu0 %v12563_v4, %s12219_s7 }
  0x72   : > { %1315 = vrot.lane.b32.xlu1 %v12563_v4, %s12219_s7 }
  0x75   : > { %1313 = vrot.lane.b32.xlu0 %v12519_v51, %s12219_s7 }
  0x76   : > { %1333 = vrot.lane.b32.xlu1 %v12586_v13, %s12219_s7 }
  0x79   : > { %1335 = vrot.lane.b32.xlu0 %v12599_v18, %s12219_s7 }
  0x7a   : > { %1337 = vrot.lane.b32.xlu1 %v1302_v21, %s12219_s7 }
  0x7d   : > { %917 = vrot.lane.b32.xlu0 %v12617_v25, %s12219_s7 }
  0x7e   : > { %919 = vrot.lane.b32.xlu1 %v12623_v27, %s12219_s7 }
  0x81   : > { %1317 = vrot.lane.b32.xlu0 %v12586_v13, %s12219_s7 }
  0x82   : > { %1319 = vrot.lane.b32.xlu1 %v12599_v18, %s12219_s7 }
  0x85   : > { %899 = vrot.lane.b32.xlu0 %v12538_v59, %s12219_s7 }
  0x86   : > { %901 = vrot.lane.b32.xlu1 %v12617_v25, %s12219_s7 }
  0x89   : > { %2267 = vrot.lane.b32.xlu0 %v12519_v51, %s12219_s7 }
  0x8a   : > { %2269 = vrot.lane.b32.xlu1 %v12563_v4, %s12219_s7 }
  0x8d   : > { %921 = vrot.lane.b32.xlu0 %v12654_v35, %s12219_s7 }
  0x8e   : > { %923 = vrot.lane.b32.xlu1 %v12661_v37, %s12219_s7 }
  0x91   : > { %2249 = vrot.lane.b32.xlu0 %v12514_v45, %s12219_s7  ;;  %v1619_v45 = vpack.c.bf16 %v9309_v43, %v9309_v43 }
  0x92   : > { %2251 = vrot.lane.b32.xlu1 %v12519_v51, %s12219_s7  ;;  %v9313_v51 = vld [vmem:[%s12724_s30 + $0x18] sm:$0xff] }
  0x93   : > { %v1623_v53 = vpack.c.bf16 %v9313_v51, %v9313_v51 }
  0x95   : > { %903 = vrot.lane.b32.xlu0 %v12623_v27, %s12219_s7 }
  0x96   : > { %905 = vrot.lane.b32.xlu1 %v12654_v35, %s12219_s7 }
  0x99   : > { %2271 = vrot.lane.b32.xlu0 %v12586_v13, %s12219_s7 }
  0x9a   : > { %2273 = vrot.lane.b32.xlu1 %v12599_v18, %s12219_s7 }
  0x9d   : > { %1850 = vrot.lane.b32.xlu0 %v12538_v59, %s12219_s7 }
  0x9e   : > { %1852 = vrot.lane.b32.xlu1 %v12617_v25, %s12219_s7 }
  0xa1   : > { %2253 = vrot.lane.b32.xlu0 %v12563_v4, %s12219_s7  ;;  %v2563_v4 = vpack.c.bf16 %v9441_v2, %v9441_v2  ;;  %v11744_v2 = vld [vmem:[%s14479_s4 + $0x198] sm:$0xff]  }
  0xa2   : > { %2255 = vrot.lane.b32.xlu1 %v12586_v13, %s12219_s7  ;;  %v1197_v13 = vld [vmem:[%s12712_s11 + $0x10] sm:$0xff] }
  0xa3   : > { %v1203_v28 = vpack.c.bf16 %v1197_v13, %v1197_v13 }
  0xa5   : > { %1832 = vrot.lane.b32.xlu0 %v12534_v58, %s12219_s7 }
  0xa6   : > { %1834 = vrot.lane.b32.xlu1 %v12538_v59, %s12219_s7 }
  0xa9   : > { %2275 = vrot.lane.b32.xlu0 %v1302_v21, %s12219_s7 }
  0xaa   : > { %2277 = vrot.lane.b32.xlu1 %v2242_v39, %s12219_s7 }
  0xad   : > { %1854 = vrot.lane.b32.xlu0 %v12623_v27, %s12219_s7 }
  0xae   : > { %1856 = vrot.lane.b32.xlu1 %v12654_v35, %s12219_s7 }
  0xb1   : > { %2257 = vrot.lane.b32.xlu0 %v12599_v18, %s12219_s7 }
  0xb2   : > { %2259 = vrot.lane.b32.xlu1 %v1302_v21, %s12219_s7 }
  0xb5   : > { %1836 = vrot.lane.b32.xlu0 %v12617_v25, %s12219_s7 }
  0xb6   : > { %1838 = vrot.lane.b32.xlu1 %v12623_v27, %s12219_s7 }
  0xb9   : > { %1858 = vrot.lane.b32.xlu0 %v12661_v37, %s12219_s7 }
  0xba   : > { %1860 = vrot.lane.b32.xlu1 %v12705_v41, %s12219_s7 }
  0xbd   : > { %1840 = vrot.lane.b32.xlu0 %v12654_v35, %s12219_s7 }
  0xbe   : > { %1842 = vrot.lane.b32.xlu1 %v12661_v37, %s12219_s7 }
  0xc1   : > { %1630 = vrot.lane.b32.xlu0 %v1618_v44, %s12219_s7  ;;  %v11741_v44 = vld [vmem:[%s14479_s4 + $0x1d0] sm:$0xff]  }
  0xc2   : > { %1632 = vrot.lane.b32.xlu1 %v1619_v45, %s12219_s7  ;;  %v1206_v45 = vpack.c.bf16 %v1200_v33, %v1200_v33 }
  0xc5   : > { %1634 = vrot.lane.b32.xlu0 %v1620_v48, %s12219_s7 }
  0xc6   : > { %1636 = vrot.lane.b32.xlu1 %v1621_v49, %s12219_s7  ;;  %v9375_v49 = vld [vmem:[%s12712_s11 + $0x40] sm:$0xff] }
  0xc7   : > { %v2141_v60 = vpack.c.bf16 %v9375_v49, %v9375_v49  ;;  %v11763_v49 = vld [vmem:[%s14479_s4 + $0x168] sm:$0xff]  }
  0xc9   : > { %1638 = vrot.lane.b32.xlu0 %v1622_v52, %s12219_s7  ;;  %v11742_v52 = vld [vmem:[%s14479_s4 + $0x190] sm:$0xff]  }
  0xca   : > { %1640 = vrot.lane.b32.xlu1 %v1623_v53, %s12219_s7  ;;  %v11749_v53 = vld [vmem:[%s14479_s4 + $0x100] sm:$0xff]  }
  0xcd   : > { %2570 = vrot.lane.b32.xlu0 %v2558_v56, %s12219_s7  ;;  %v11752_v56 = vld [vmem:[%s14479_s4 + $0x148] sm:$0xff]  }
  0xce   : > { %2572 = vrot.lane.b32.xlu1 %v2559_v57, %s12219_s7 }
  0xd1   : > { %2574 = vrot.lane.b32.xlu0 %v2560_v62, %s12219_s7 }
  0xd2   : > { %2576 = vrot.lane.b32.xlu1 %v2561_v63, %s12219_s7  ;;  %v9377_v63 = vld [vmem:[%s12712_s11 + $0x50] sm:$0xff] }
  0xd3   : > { %v1328_v6 = vpop.permute.xlu0 %1327  ;;  %v2143_v7 = vpack.c.bf16 %v9377_v63, %v9377_v63 }
  0xd4   : > { %v1310_v8 = vpop.permute.xlu1 %1309  ;;  %v1359_v17 = vsel %vm735_vm0, %v12534_v58, %v1328_v6 }
  0xd5   : > { %2578 = vrot.lane.b32.xlu0 %v2562_v3, %s12219_s7  ;;  %v1341_v21 = vsel %vm735_vm0, %v12551_v0, %v1310_v8  ;;  %v1204_v0 = vpack.c.bf16 %v1198_v15, %v1198_v15  ;;  %v11753_v3 = vld [vmem:[%s14479_s4 + $0x108] sm:$0xff]   ;;  %v2144_v8 = vpack.c.bf16 %v9378_v1, %v9378_v1 }
  0xd6   : > { %2580 = vrot.lane.b32.xlu1 %v2563_v4, %s12219_s7  ;;  %v11745_v4 = vld [vmem:[%s14479_s4 + $0x1e0] sm:$0xff]  }
  0xd7   : > { %v1330_v14 = vpop.permute.xlu0 %1329 }
  0xd8   : > { %v1312_v16 = vpop.permute.xlu1 %1311  ;;  %v1362_v18 = vsel %vm735_vm0, %v12538_v59, %v1330_v14 }
  0xd9   : > { %v1344_v22 = vsel %vm735_vm0, %v12534_v58, %v1312_v16  ;;  %v9287_v23 = vcombine.low %v1359_v17, %v1362_v18  ;;  %1213 = vrot.lane.b32.xlu0 %v1201_v11, %s12219_s7  ;;  %v867_v16 = vld [vmem:[#allocation3 + $0x30] sm:$0xff]  ;;  %v9380_v18 = vld [vmem:[%s12724_s30 + $0x28] sm:$0xff] }
  0xda   : > { %v9286_v29 = vcombine.low %v1341_v21, %v1344_v22  ;;  %1215 = vrot.lane.b32.xlu1 %v1202_v12, %s12219_s7  ;;  %v9379_v12 = vld [vmem:[%s12724_s30 + $0x20] sm:$0xff]  ;;  %v11757_v17 = vld [vmem:[%s14479_s4 + $0x110] sm:$0xff]   ;;  %v12843_v31 = vpack.c.bf16 %v867_v16, %v867_v16 }
  0xdb   : > { %1579 = vmatprep.mubr.bf16.mxu1 %v9287_v23  ;;  %v914_v32 = vpop.permute.xlu0 %913  ;;  %v868_v22 = vld [vmem:[#allocation3 + $0x40] sm:$0xff] }
  0xdc   : > { %v916_v34 = vpop.permute.xlu1 %915  ;;  %1580 = vmatmul.mubr.bf16.vlgmr.msra.gmra.mrb[0].mxu1 %v9286_v29  ;;  %v945_v36 = vsel %vm735_vm0, %v12752_v19, %v914_v32  ;;  %v11746_v23 = vld [vmem:[%s14479_s4 + $0x1a0] sm:$0xff]   ;;  %v2145_v29 = vpack.c.bf16 %v9379_v12, %v9379_v12  ;;  %v2146_v32 = vpack.c.bf16 %v9380_v18, %v9380_v18 }
  0xdd   : > { %v948_v39 = vsel %vm735_vm0, %v12754_v20, %v916_v34  ;;  %10451 = vmatpush3.bf16.msra.mxu1 %v11738_v26  ;;  %1217 = vrot.lane.b32.xlu0 %v1203_v28, %s12219_s7  ;;  %v11748_v28 = vld [vmem:[%s14479_s4 + $0x1e8] sm:$0xff]   ;;  %v12847_v34 = vpack.c.bf16 %v868_v22, %v868_v22 }
  0xde   : > { %v9232_v43 = vcombine.low %v945_v36, %v948_v39  ;;  %10452 = vmatprep.subr.bf16.mxu1 %v11739_v30  ;;  %1219 = vrot.lane.b32.xlu1 %v1204_v0, %s12219_s7  ;;  %v11760_v36 = vld [vmem:[%s14479_s4 + $0x118] sm:$0xff]   ;;  %v11750_v39 = vld [vmem:[%s14479_s4 + $0x1a8] sm:$0xff]  }
  0xdf   : > { %v896_v46 = vpop.permute.xlu0 %895 }
  0xe0   : > { %1164 = vmatprep.mubr.bf16.mxu0 %v9232_v43  ;;  %v898_v47 = vpop.permute.xlu1 %897  ;;  %v927_v48 = vsel %vm735_vm0, %v846_v38, %v896_v46  ;;  %v11762_v46 = vld [vmem:[%s14479_s4 + $0x120] sm:$0xff]  }
  0xe1   : > { %v930_v51 = vsel %vm735_vm0, %v12752_v19, %v898_v47  ;;  %10453 = vmatpush3.bf16.msra.mxu1 %v11740_v40  ;;  %1221 = vrot.lane.b32.xlu0 %v1205_v42, %s12219_s7  ;;  %v11761_v40 = vld [vmem:[%s14479_s4 + $0x160] sm:$0xff]   ;;  %v11751_v42 = vld [vmem:[%s14479_s4 + $0x1f0] sm:$0xff]  }
  0xe2   : > { %v9231_v54 = vcombine.low %v927_v48, %v930_v51  ;;  %10454 = vmatprep.subr.bf16.mxu1 %v11741_v44  ;;  %1223 = vrot.lane.b32.xlu1 %v1206_v45, %s12219_s7  ;;  %v11754_v48 = vld [vmem:[%s14479_s4 + $0x1b0] sm:$0xff]   ;;  %v11755_v51 = vld [vmem:[%s14479_s4 + $0x1f8] sm:$0xff]  }
  0xe3   : > { %v1332_v57 = vpop.permute.xlu0 %1331 }
  0xe4   : > { %v1316_v62 = vpop.permute.xlu1 %1315  ;;  %1165 = vmatmul.mubr.bf16.vlgmr.msra.gmra.mrb[0].mxu0 %v9231_v54  ;;  %v1365_v13 = vsel %vm735_vm0, %v12617_v25, %v1332_v57  ;;  %v11758_v57 = vld [vmem:[%s14479_s4 + $0x1b8] sm:$0xff]  }
  0xe5   : > { %10455 = vmatpush3.bf16.msra.mxu1 %v11742_v52  ;;  %10417 = vmatpush3.bf16.msra.mxu0 %v11749_v53  ;;  %v1350_v9 = vsel %vm735_vm0, %v12617_v25, %v1316_v62 }
  0xe6   : > { %10456 = vmatprep.subr.bf16.mxu1 %v11743_v55  ;;  %10418 = vmatprep.subr.bf16.mxu0 %v11752_v56  ;;  %v11764_v55 = vld [vmem:[%s14479_s4 + $0x128] sm:$0xff]  }
  0xe7   : > { %v1314_v6 = vpop.permute.xlu0 %1313  ;;  %2153 = vrot.lane.b32.xlu0 %v2141_v60, %s12219_s7  ;;  %2155 = vrot.lane.b32.xlu1 %v2142_v61, %s12219_s7  ;;  %v11765_v60 = vld [vmem:[%s14479_s4 + $0x170] sm:$0xff]  }
  0xe8   : > { %v1334_v10 = vpop.permute.xlu1 %1333  ;;  %v1347_v11 = vsel %vm735_vm0, %v12538_v59, %v1314_v6  ;;  %v11767_v6 = vld [vmem:[%s14479_s4 + $0x178] sm:$0xff]  }
  0xe9   : > { %v1368_v14 = vsel %vm735_vm0, %v12623_v27, %v1334_v10  ;;  %v9288_v15 = vcombine.low %v1347_v11, %v1350_v9  ;;  %10457 = vmatpush3.bf16.msra.mxu1 %v11744_v2  ;;  %10419 = vmatpush3.bf16.msra.mxu0 %v11753_v3  ;;  %v869_v2 = vld [vmem:[#allocation3 + $0x50] sm:$0xff] }
  0xea   : > { %v9289_v21 = vcombine.low %v1365_v13, %v1368_v14  ;;  %10458 = vmatprep.subr.bf16.mxu1 %v11745_v4  ;;  %10420 = vmatprep.subr.bf16.mxu0 %v11756_v5  ;;  %v11766_v3 = vld [vmem:[%s14479_s4 + $0x130] sm:$0xff]   ;;  %v870_v5 = vld [vmem:[#allocation3 + $0x60] sm:$0xff]  ;;  %v12904_v10 = vpack.c.bf16 %v869_v2, %v869_v2  ;;  %v11768_v13 = vld [vmem:[%s14479_s4 + $0x138] sm:$0xff]  }
  0xeb   : > { %v1336_v26 = vpop.permute.xlu0 %1335  ;;  %2157 = vrot.lane.b32.xlu0 %v2143_v7, %s12219_s7  ;;  %2159 = vrot.lane.b32.xlu1 %v2144_v8, %s12219_s7  ;;  %v12908_v12 = vpack.c.bf16 %v870_v5, %v870_v5 }
  0xec   : > { %v1338_v30 = vpop.permute.xlu1 %1337  ;;  %1587 = vmatprep.mubr.bf16.mxu1 %v9289_v21  ;;  %v1371_v0 = vsel %vm735_vm0, %v12654_v35, %v1336_v26 }
  0xed   : > { %v1374_v33 = vsel %vm735_vm0, %v12661_v37, %v1338_v30  ;;  %1588 = vmatmul.mubr.bf16.gmra.mrb[4].mxu1 %v9288_v15  ;;  %10421 = vmatpush3.bf16.msra.mxu0 %v11757_v17 }
  0xee   : > { %v9291_v38 = vcombine.low %v1371_v0, %v1374_v33  ;;  %10459 = vmatpush3.bf16.msra.mxu1 %v11746_v23  ;;  %10422 = vmatprep.subr.bf16.mxu0 %v11759_v24 }
  0xef   : > { %v918_v37 = vpop.permute.xlu0 %917  ;;  %10460 = vmatprep.subr.bf16.mxu1 %v11748_v28  ;;  %2161 = vrot.lane.b32.xlu0 %v2145_v29, %s12219_s7 }
  0xf0   : > { %v920_v43 = vpop.permute.xlu1 %919  ;;  %1595 = vmatprep.mubr.bf16.mxu1 %v9291_v38  ;;  %v951_v44 = vsel %vm735_vm0, %v12843_v31, %v918_v37  ;;  %2163 = vrot.lane.b32.xlu1 %v2146_v32, %s12219_s7  ;;  %v2197_v38 = vld [vmem:[#allocation3 + $0x31] sm:$0xff] }
  0xf1   : > { %v954_v45 = vsel %vm735_vm0, %v12847_v34, %v920_v43  ;;  %10423 = vmatpush3.bf16.msra.mxu0 %v11760_v36 }
  0xf2   : > { %v9234_v47 = vcombine.low %v951_v44, %v954_v45  ;;  %10461 = vmatpush3.bf16.msra.mxu1 %v11750_v39  ;;  %10424 = vmatprep.subr.bf16.mxu0 %v11761_v40  ;;  %v2198_v40 = vld [vmem:[#allocation3 + $0x41] sm:$0xff]  ;;  %v2203_v44 = vpack.c.bf16 %v2197_v38, %v2197_v38  ;;  %v771_v38 = vld [vmem:[#allocation2 + $0x14] sm:$0x1] }
  0xf3   : > { %v1318_v50 = vpop.permute.xlu0 %1317  ;;  %10462 = vmatprep.subr.bf16.mxu1 %v11751_v42 }
  0xf4   : > { %v1320_v52 = vpop.permute.xlu1 %1319  ;;  %v1353_v53 = vsel %vm735_vm0, %v12623_v27, %v1318_v50  ;;  %1172 = vmatprep.mubr.bf16.mxu0 %v9234_v47  ;;  %v2223_v50 = vld [vmem:[#allocation3 + $0x61] sm:$0xff] }
  0xf5   : > { %v1356_v54 = vsel %vm735_vm0, %v12654_v35, %v1320_v52  ;;  %10425 = vmatpush3.bf16.msra.mxu0 %v11762_v46  ;;  %v2204_v46 = vpack.c.bf16 %v2198_v40, %v2198_v40  ;;  %v777_v40 = vld [vmem:[#allocation2 + $0x24] sm:$0x1] }
  0xf6   : > { %v9290_v56 = vcombine.low %v1353_v53, %v1356_v54  ;;  %10463 = vmatpush3.bf16.msra.mxu1 %v11754_v48  ;;  %10426 = vmatprep.subr.bf16.mxu0 %v11763_v49 }
  0xf7   : > { %v900_v61 = vpop.permute.xlu0 %899  ;;  %10464 = vmatprep.subr.bf16.mxu1 %v11755_v51 }
  0xf8   : > { %v902_v62 = vpop.permute.xlu1 %901  ;;  %1596 = vmatmul.mubr.bf16.gmra.mrb[8].mxu1 %v9290_v56  ;;  %v933_v63 = vsel %vm735_vm0, %v12754_v20, %v900_v61 }
  0xf9   : > { %v936_v1 = vsel %vm735_vm0, %v12843_v31, %v902_v62  ;;  %10427 = vmatpush3.bf16.msra.mxu0 %v11764_v55  ;;  %v2229_v55 = vpack.c.bf16 %v2223_v50, %v2223_v50 }
  0xfa   : > { %v9233_v4 = vcombine.low %v933_v63, %v936_v1  ;;  %10465 = vmatpush3.bf16.msra.mxu1 %v11758_v57  ;;  %10428 = vmatprep.subr.bf16.mxu0 %v11765_v60  ;;  %v2199_v1 = vld [vmem:[#allocation3 + $0x51] sm:$0xff] }
  0xfb   : > { %v2268_v7 = vpop.permute.xlu0 %2267  ;;  %v2205_v5 = vpack.c.bf16 %v2199_v1, %v2199_v1 }
  0xfc   : > { %v2270_v8 = vpop.permute.xlu1 %2269  ;;  %v2299_v9 = vsel %vm735_vm0, %v12538_v59, %v2268_v7  ;;  %1173 = vmatmul.mubr.bf16.gmra.mrb[4].mxu0 %v9233_v4 }
  0xfd   : > { %v2302_v11 = vsel %vm735_vm0, %v12617_v25, %v2270_v8  ;;  %10429 = vmatpush3.bf16.msra.mxu0 %v11766_v3 }
  0xfe   : > { %v9415_v14 = vcombine.low %v2299_v9, %v2302_v11  ;;  %10430 = vmatprep.subr.bf16.mxu0 %v11767_v6 }
  0xff   : > { %v922_v15 = vpop.permute.xlu0 %921 }
 0x100   : > { %v924_v16 = vpop.permute.xlu1 %923  ;;  %2519 = vmatprep.mubr.bf16.mxu1 %v9415_v14  ;;  %v957_v17 = vsel %vm735_vm0, %v12904_v10, %v922_v15 }
 0x101   : > { %v960_v18 = vsel %vm735_vm0, %v12908_v12, %v924_v16  ;;  %10431 = vmatpush3.bf16.msra.mxu0 %v11768_v13  ;;  %v1807_v13 = vld [vmem:[#allocation3 + $0x70] sm:$0xff] }
 0x102   : > { %v9236_v25 = vcombine.low %v957_v17, %v960_v18  ;;  %v1813_v18 = vpack.c.bf16 %v1807_v13, %v1807_v13  ;;  %v837_v13 = vld [vmem:[#allocation2 + $0xb8] sm:$0x1] }
 0x103   : > { %v2250_v21 = vpop.permute.xlu0 %2249 }
 0x104   : > { %v2252_v22 = vpop.permute.xlu1 %2251  ;;  %v2281_v23 = vsel %vm735_vm0, %v12534_v58, %v2250_v21  ;;  %1180 = vmatprep.mubr.bf16.mxu0 %v9236_v25 }
 0x105   : > { %v2284_v24 = vsel %vm735_vm0, %v12538_v59, %v2252_v22 }
 0x106   : > { %v9414_v26 = vcombine.low %v2281_v23, %v2284_v24 }
 0x107   : > { %v904_v28 = vpop.permute.xlu0 %903 }
 0x108   : > { %v906_v29 = vpop.permute.xlu1 %905  ;;  %2520 = vmatmul.mubr.bf16.vlgmr.msra.gmra.mrb[12].mxu1 %v9414_v26  ;;  %v939_v30 = vsel %vm735_vm0, %v12847_v34, %v904_v28 }
 0x109   : > { %v942_v0 = vsel %vm735_vm0, %v12904_v10, %v906_v29  ;;  %v784_v29 = vld [vmem:[#allocation2 + $0x30] sm:$0x1] }
 0x10a   : > { %v9235_v32 = vcombine.low %v939_v30, %v942_v0 }
 0x10b   : > { %v2272_v33 = vpop.permute.xlu0 %2271 }
 0x10c   : > { %v2274_v36 = vpop.permute.xlu1 %2273  ;;  %v2305_v58 = vsel %vm735_vm0, %v12623_v27, %v2272_v33  ;;  %1181 = vmatmul.mubr.bf16.gmra.mrb[8].mxu0 %v9235_v32  ;;  %v785_v32 = vsel %vm12957_vm4, 0, %v784_v29 }
 0x10d   : > { %v2308_v59 = vsel %vm735_vm0, %v12654_v35, %v2274_v36  ;;  %786 = vst [vmem:[#allocation2 + $0x30] sm:$0x1] %v785_v32  ;;  %v787_v36 = vld [vmem:[#allocation2 + $0x38] sm:$0x1] }
 0x10e   : > { %v9417_v39 = vcombine.low %v2305_v58, %v2308_v59  ;;  %v788_v58 = vsel %vm12957_vm4, 0, %v787_v36  ;;  %v768_v59 = vld [vmem:[#allocation2 + $0xc] sm:$0x1] }
 0x10f   : > { %v1851_v37 = vpop.permute.xlu0 %1850  ;;  %789 = vst [vmem:[#allocation2 + $0x38] sm:$0x1] %v788_v58 }
 0x110   : > { %v1853_v42 = vpop.permute.xlu1 %1852  ;;  %2527 = vmatprep.mubr.bf16.mxu1 %v9417_v39  ;;  %v1882_v43 = vsel %vm735_vm0, %v12754_v20, %v1851_v37  ;;  %v774_v39 = vld [vmem:[#allocation2 + $0x1c] sm:$0x1]  ;;  %v780_v37 = vld [vmem:[#allocation2 + $0x2c] sm:$0x1] }
 0x111   : > { %v1885_v45 = vsel %vm735_vm0, %v12843_v31, %v1853_v42  ;;  %v803_v42 = vld [vmem:[#allocation2 + $0x64] sm:$0x1]  ;;  %v781_v50 = vsel %vm12957_vm4, 0, %v780_v37 }
 0x112   : > { %v9354_v47 = vcombine.low %v1882_v43, %v1885_v45  ;;  %v806_v43 = vld [vmem:[#allocation2 + $0x6c] sm:$0x1]  ;;  %v815_v45 = vld [vmem:[#allocation2 + $0x84] sm:$0x1]  ;;  %782 = vst [vmem:[#allocation2 + $0x2c] sm:$0x1] %v781_v50 }
 0x113   : > { %v2254_v27 = vpop.permute.xlu0 %2253 }
 0x114   : > { %v2256_v48 = vpop.permute.xlu1 %2255  ;;  %v2287_v49 = vsel %vm735_vm0, %v2203_v44, %v2254_v27  ;;  %2102 = vmatprep.mubr.bf16.mxu0 %v9354_v47  ;;  %v812_v44 = vld [vmem:[#allocation2 + $0x7c] sm:$0x1]  ;;  %v769_v27 = vsel %vm12957_vm4, 0, %v768_v59 }
 0x115   : > { %v2290_v35 = vsel %vm735_vm0, %v2204_v46, %v2256_v48  ;;  %v818_v46 = vld [vmem:[#allocation2 + $0x8c] sm:$0x1]  ;;  %v772_v48 = vsel %vm12957_vm4, 0, %v771_v38  ;;  %770 = vst [vmem:[#allocation2 + $0xc] sm:$0x1] %v769_v27 }
 0x116   : > { %v9416_v51 = vcombine.low %v2287_v49, %v2290_v35  ;;  %v775_v49 = vsel %vm12957_vm4, 0, %v774_v39  ;;  %v778_v35 = vsel %vm12957_vm4, 0, %v777_v40  ;;  %773 = vst [vmem:[#allocation2 + $0x14] sm:$0x1] %v772_v48 }
 0x117   : > { %v1833_v52 = vpop.permute.xlu0 %1832  ;;  %776 = vst [vmem:[#allocation2 + $0x1c] sm:$0x1] %v775_v49  ;;  %779 = vst [vmem:[#allocation2 + $0x24] sm:$0x1] %v778_v35 }
 0x118   : > { %v1835_v53 = vpop.permute.xlu1 %1834  ;;  %2528 = vmatmul.mubr.bf16.gmra.mrb[16].mxu1 %v9416_v51  ;;  %v1864_v54 = vsel %vm735_vm0, %v12752_v19, %v1833_v52  ;;  %v804_v51 = vsel %vm12957_vm4, 0, %v803_v42  ;;  %v807_v52 = vsel %vm12957_vm4, 0, %v806_v43 }
 0x119   : > { %v1867_v56 = vsel %vm735_vm0, %v12754_v20, %v1835_v53  ;;  %805 = vst [vmem:[#allocation2 + $0x64] sm:$0x1] %v804_v51  ;;  %808 = vst [vmem:[#allocation2 + $0x6c] sm:$0x1] %v807_v52  ;;  %v1741_v52 = vld [vmem:[#allocation2 + $0x30] sm:$0xf] }
 0x11a   : > { %v9353_v57 = vcombine.low %v1864_v54, %v1867_v56  ;;  %v813_v54 = vsel %vm12957_vm4, 0, %v812_v44  ;;  %v819_v56 = vsel %vm12957_vm4, 0, %v818_v46 }
 0x11b   : > { %v2276_v60 = vpop.permute.xlu0 %2275  ;;  %814 = vst [vmem:[#allocation2 + $0x7c] sm:$0x1] %v813_v54  ;;  %820 = vst [vmem:[#allocation2 + $0x8c] sm:$0x1] %v819_v56 }
 0x11c   : > { %v2278_v61 = vpop.permute.xlu1 %2277  ;;  %v2311_v62 = vsel %vm735_vm0, %v2229_v55, %v2276_v60  ;;  %2103 = vmatmul.mubr.bf16.vlgmr.msra.gmra.mrb[12].mxu0 %v9353_v57  ;;  %v790_v57 = vld [vmem:[#allocation2 + $0x40] sm:$0x1] }
 0x11d   : > { %v2314_v63 = vsel %vm735_vm0, %v12705_v41, %v2278_v61  ;;  %v791_v60 = vsel %vm12957_vm4, 0, %v790_v57  ;;  %v793_v61 = vld [vmem:[#allocation2 + $0x48] sm:$0x1] }
 0x11e   : > { %v9419_v2 = vcombine.low %v2311_v62, %v2314_v63  ;;  %792 = vst [vmem:[#allocation2 + $0x40] sm:$0x1] %v791_v60  ;;  %v794_v62 = vsel %vm12957_vm4, 0, %v793_v61  ;;  %v796_v63 = vld [vmem:[#allocation2 + $0x50] sm:$0x1] }
 0x11f   : > { %v1855_v3 = vpop.permute.xlu0 %1854  ;;  %795 = vst [vmem:[#allocation2 + $0x48] sm:$0x1] %v794_v62  ;;  %v797_v1 = vsel %vm12957_vm4, 0, %v796_v63  ;;  %v1747_v62 = vld [vmem:[#allocation2 + $0x38] sm:$0xf] }
 0x120   : > { %v1857_v4 = vpop.permute.xlu1 %1856  ;;  %2535 = vmatprep.mubr.bf16.mxu1 %v9419_v2  ;;  %v1888_v19 = vsel %vm735_vm0, %v12847_v34, %v1855_v3  ;;  %798 = vst [vmem:[#allocation2 + $0x50] sm:$0x1] %v797_v1  ;;  %v799_v2 = vld [vmem:[#allocation2 + $0x58] sm:$0x1]  ;;  %v1750_v63 = vld [vmem:[#allocation2 + $0x3c] sm:$0x1] }
 0x121   : > { %v1891_v20 = vsel %vm735_vm0, %v12904_v10, %v1857_v4  ;;  %v800_v3 = vsel %vm12957_vm4, 0, %v799_v2  ;;  %v822_v4 = vld [vmem:[#allocation2 + $0x90] sm:$0x1] }
 0x122   : > { %v9356_v6 = vcombine.low %v1888_v19, %v1891_v20  ;;  %801 = vst [vmem:[#allocation2 + $0x58] sm:$0x1] %v800_v3  ;;  %v823_v19 = vsel %vm12957_vm4, 0, %v822_v4 }
 0x123   : > { %v2258_v7 = vpop.permute.xlu0 %2257  ;;  %824 = vst [vmem:[#allocation2 + $0x90] sm:$0x1] %v823_v19 }
 0x124   : > { %v2260_v8 = vpop.permute.xlu1 %2259  ;;  %v2293_v9 = vsel %vm735_vm0, %v2205_v5, %v2258_v7  ;;  %2110 = vmatprep.mubr.bf16.mxu0 %v9356_v6  ;;  %v825_v5 = vld [vmem:[#allocation2 + $0x98] sm:$0x1]  ;;  %v828_v6 = vld [vmem:[#allocation2 + $0xa0] sm:$0x1] }
 0x125   : > { %v2296_v41 = vsel %vm735_vm0, %v2229_v55, %v2260_v8  ;;  %v816_v55 = vsel %vm12957_vm4, 0, %v815_v45  ;;  %v826_v20 = vsel %vm12957_vm4, 0, %v825_v5  ;;  %v829_v7 = vsel %vm12957_vm4, 0, %v828_v6  ;;  %v831_v8 = vld [vmem:[#allocation2 + $0xa8] sm:$0x1] }
 0x126   : > { %v9418_v11 = vcombine.low %v2293_v9, %v2296_v41  ;;  %817 = vst [vmem:[#allocation2 + $0x84] sm:$0x1] %v816_v55  ;;  %827 = vst [vmem:[#allocation2 + $0x98] sm:$0x1] %v826_v20  ;;  %v832_v9 = vsel %vm12957_vm4, 0, %v831_v8 }
 0x127   : > { %v1837_v14 = vpop.permute.xlu0 %1836  ;;  %830 = vst [vmem:[#allocation2 + $0xa0] sm:$0x1] %v829_v7  ;;  %833 = vst [vmem:[#allocation2 + $0xa8] sm:$0x1] %v832_v9  ;;  %v834_v41 = vld [vmem:[#allocation2 + $0xb0] sm:$0x1] }
 0x128   : > { %v1839_v15 = vpop.permute.xlu1 %1838  ;;  %2536 = vmatmul.mubr.bf16.gmra.mrb[20].mxu1 %v9418_v11  ;;  %v1870_v16 = vsel %vm735_vm0, %v12843_v31, %v1837_v14  ;;  %v835_v11 = vsel %vm12957_vm4, 0, %v834_v41  ;;  %v838_v14 = vsel %vm12957_vm4, 0, %v837_v13 }
 0x129   : > { %v1873_v17 = vsel %vm735_vm0, %v12847_v34, %v1839_v15  ;;  %836 = vst [vmem:[#allocation2 + $0xb0] sm:$0x1] %v835_v11  ;;  %839 = vst [vmem:[#allocation2 + $0xb8] sm:$0x1] %v838_v14 }
 0x12a   : > { %v9355_v25 = vcombine.low %v1870_v16, %v1873_v17 }
 0x12b   : > { %v1859_v21 = vpop.permute.xlu0 %1858 }
 0x12c   : > { %v1861_v22 = vpop.permute.xlu1 %1860  ;;  %v1894_v23 = vsel %vm735_vm0, %v12908_v12, %v1859_v21  ;;  %2111 = vmatmul.mubr.bf16.gmra.mrb[16].mxu0 %v9355_v25 }
 0x12d   : > { %v1897_v24 = vsel %vm735_vm0, %v1813_v18, %v1861_v22 }
 0x12e   : > { %v9358_v26 = vcombine.low %v1894_v23, %v1897_v24 }
 0x12f   : > { %v1841_v28 = vpop.permute.xlu0 %1840 }
 0x130   : > { %v1843_v30 = vpop.permute.xlu1 %1842  ;;  %v1876_v31 = vsel %vm735_vm0, %v12904_v10, %v1841_v28  ;;  %2118 = vmatprep.mubr.bf16.mxu0 %v9358_v26  ;;  %v765_v10 = vld [vmem:[#allocation2 + $0x4] sm:$0x1]  ;;  %v13026_v26 = vld [vmem:[%s14509_s18] ss:$0 sm:$0xff] }
 0x131   : > { %v1879_v0 = vsel %vm735_vm0, %v12908_v12, %v1843_v30  ;;  %v809_v12 = vld [vmem:[#allocation2 + $0x74] sm:$0x1]  ;;  %v766_v47 = vsel %vm12957_vm4, 0, %v765_v10 }
 0x132   : > { %v9357_v33 = vcombine.low %v1876_v31, %v1879_v0  ;;  %767 = vst [vmem:[#allocation2 + $0x4] sm:$0x1] %v766_v47  ;;  %v810_v53 = vsel %vm12957_vm4, 0, %v809_v12 }
 0x133   : > { %811 = vst [vmem:[#allocation2 + $0x74] sm:$0x1] %v810_v53  ;;  %v1631_v15 = vpop.permute.xlu0 %1630  ;;  %v1744_v53 = vld [vmem:[#allocation2 + $0x34] sm:$0x1] }
 0x134   : > { %2119 = vmatmul.mubr.bf16.gmra.mrb[20].mxu0 %v9357_v33  ;;  %v1633_v16 = vpop.permute.xlu1 %1632 }
 0x137   : > { %v13011_v17 = vpop.permute.xlu0 %1634 }
 0x138   : > { %v13013_v18 = vpop.permute.xlu1 %1636 }
 0x13b   : > { %v13015_v25 = vpop.permute.xlu0 %1638 }
 0x13c   : > { %v13017_v21 = vpop.permute.xlu1 %1640 }
 0x13f   : > { %v13019_v22 = vpop.permute.xlu0 %2570 }
 0x140   : > { %v13021_v23 = vpop.permute.xlu1 %2572 }
 0x143   : > { %v13028_v29 = vpop.permute.xlu0 %2574 }
 0x144   : > { %v13030_v32 = vpop.permute.xlu1 %2576 }
 0x147   : > { %v13034_v59 = vpop.permute.xlu0 %2578 }
 0x148   : > { %v13037_v43 = vpop.permute.xlu1 %2580 }
 0x14b   : > { %v1214_v50 = vpop.permute.xlu0 %1213 }
 0x14c   : > { %v1216_v61 = vpop.permute.xlu1 %1215 }
 0x1af   : > { %v10398_v24 = vpop.f32.mrb[0].mxu1 }
 0x1b0   : > { %v10399_v28 = vpop.f32.mrb[1].mxu1 }
 0x1b1   : > { %v10400_v30 = vadd.f32 %v10399_v28, %v10398_v24  ;;  %v10401_v31 = vpop.f32.mrb[2].mxu1 }
 0x1b2   : > { %v10402_v0 = vpop.f32.mrb[3].mxu1 }
 0x1b3   : > { %v1582_v33 = vadd.f32 %v10400_v30, %v13026_v26  ;;  %v10403_v36 = vadd.f32 %v10402_v0, %v10401_v31 }
 0x1b5   : > { %v1604_v58 = vpack.c.bf16 %v1582_v33, %v1582_v33  ;;  %v1585_v10 = vadd.f32 %v10403_v36, %v13026_v26 }
 0x1b7   : > { %v1644_v38 = vsel %vm735_vm0, %v1604_v58, %v1631_v15  ;;  %v1605_v39 = vpack.c.bf16 %v1585_v10, %v1585_v10  ;;  %v10364_v40 = vpop.f32.mrb[0].mxu0 }
 0x1b8   : > { %v9314_v37 = vcombine.low %v1644_v38, %v1644_v38  ;;  %v10365_v42 = vpop.f32.mrb[1].mxu0 }
 0x1b9   : > { %v1647_v12 = vsel %vm735_vm0, %v1605_v39, %v1633_v16  ;;  %v10367_v44 = vpop.f32.mrb[2].mxu0  ;;  %v1753_v42 = vld [vmem:[#allocation2 + $0x40] sm:$0xf] }
 0x1ba   : > { %v1679_v45 = vshrl.u32 %v9314_v37, 16  ;;  %v9315_v46 = vcombine.low %v1647_v12, %v1647_v12  ;;  %v10368_v47 = vpop.f32.mrb[3].mxu0  ;;  %v1682_v49 = vshll.u32 %v9314_v37, 16  ;;  %v1756_v12 = vld [vmem:[#allocation2 + $0x44] sm:$0x1] }
 0x1bb   : > { %v10369_v27 = vadd.f32 %v10368_v47, %v10367_v44 }
 0x1bc   : > { %v1681_v48 = vrot.slane %v1679_v45, 7  ;;  %v1687_v35 = vshrl.u32 %v9315_v46, 16  ;;  %v1690_v60 = vshll.u32 %v9315_v46, 16 }
 0x1bd   : > { %v1170_v54 = vadd.f32 %v10369_v27, %v13026_v26 }
 0x1be   : > { %v1684_v55 = vor.u32 %v1682_v49, %v1681_v48  ;;  %v1685_v56 = vrot.slane %v1681_v48, 4  ;;  %v1689_v57 = vrot.slane %v1687_v35, 7  ;;  %v1762_v49 = vld [vmem:[#allocation2 + $0x4c] sm:$0x1] }
 0x1bf   : > { %v1190_v1 = vpack.c.bf16 %v1170_v54, %v1170_v54 }
 0x1c0   : > { %v1742_v2 = vsel %vm13040_vm7, %v1684_v55, %v1741_v52  ;;  %v1745_v3 = vsel %vm12957_vm4, %v1685_v56, %v1744_v53  ;;  %v1692_v4 = vor.u32 %v1690_v60, %v1689_v57  ;;  %v1693_v19 = vrot.slane %v1689_v57, 4  ;;  %v10404_v5 = vpop.f32.mrb[4].mxu1 }
 0x1c1   : > { %1743 = vst [vmem:[#allocation2 + $0x30] sm:$0xf] %v1742_v2  ;;  %1746 = vst [vmem:[#allocation2 + $0x34] sm:$0x1] %v1745_v3  ;;  %v1231_v20 = vsel %vm735_vm0, %v1190_v1, %v1216_v61  ;;  %v10405_v6 = vpop.f32.mrb[5].mxu1 }
 0x1c2   : > { %v1748_v7 = vsel %vm13040_vm7, %v1692_v4, %v1747_v62  ;;  %v1751_v8 = vsel %vm12957_vm4, %v1693_v19, %v1750_v63  ;;  %1250 = vst [vmem:[#allocation2 + $0x8] sm:$0xf] %v1231_v20  ;;  %v10406_v9 = vadd.f32 %v10405_v6, %v10404_v5  ;;  %v10407_v41 = vpop.f32.mrb[6].mxu1  ;;  %v1218_v6 = vpop.permute.xlu0 %1217 }
 0x1c3   : > { %1749 = vst [vmem:[#allocation2 + $0x38] sm:$0xf] %v1748_v7  ;;  %1752 = vst [vmem:[#allocation2 + $0x3c] sm:$0x1] %v1751_v8  ;;  %v10408_v11 = vpop.f32.mrb[7].mxu1 }
 0x1c4   : > { %v1590_v13 = vadd.f32 %v10406_v9, %v13026_v26  ;;  %v10409_v14 = vadd.f32 %v10408_v11, %v10407_v41  ;;  %v1220_v9 = vpop.permute.xlu1 %1219 }
 0x1c6   : > { %v1606_v15 = vpack.c.bf16 %v1590_v13, %v1590_v13  ;;  %v1593_v16 = vadd.f32 %v10409_v14, %v13026_v26 }
 0x1c8   : > { %v1650_v24 = vsel %vm735_vm0, %v1606_v15, %v13011_v17  ;;  %v1607_v28 = vpack.c.bf16 %v1593_v16, %v1593_v16 }
 0x1c9   : > { %v9316_v30 = vcombine.low %v1650_v24, %v1650_v24 }
 0x1ca   : > { %v1653_v31 = vsel %vm735_vm0, %v1607_v28, %v13013_v18  ;;  %v1759_v18 = vld [vmem:[#allocation2 + $0x48] sm:$0xf]  ;;  %v1765_v28 = vld [vmem:[#allocation2 + $0x50] sm:$0xf] }
 0x1cb   : > { %v1695_v0 = vshrl.u32 %v9316_v30, 16  ;;  %v9317_v33 = vcombine.low %v1653_v31, %v1653_v31  ;;  %v10410_v36 = vpop.f32.mrb[8].mxu1  ;;  %v1698_v38 = vshll.u32 %v9316_v30, 16  ;;  %v1768_v30 = vld [vmem:[#allocation2 + $0x54] sm:$0x1] }
 0x1cc   : > { %v10411_v58 = vpop.f32.mrb[9].mxu1 }
 0x1cd   : > { %v1697_v10 = vrot.slane %v1695_v0, 7  ;;  %v1703_v39 = vshrl.u32 %v9317_v33, 16  ;;  %v10412_v40 = vadd.f32 %v10411_v58, %v10410_v36  ;;  %v10413_v37 = vpop.f32.mrb[10].mxu1  ;;  %v1706_v44 = vshll.u32 %v9317_v33, 16  ;;  %v1771_v58 = vld [vmem:[#allocation2 + $0x58] sm:$0xf] }
 0x1ce   : > { %v10414_v45 = vpop.f32.mrb[11].mxu1 }
 0x1cf   : > { %v1700_v46 = vor.u32 %v1698_v38, %v1697_v10  ;;  %v1701_v17 = vrot.slane %v1697_v10, 4  ;;  %v1705_v47 = vrot.slane %v1703_v39, 7  ;;  %v1598_v27 = vadd.f32 %v10412_v40, %v13026_v26  ;;  %v10370_v48 = vpop.f32.mrb[4].mxu0  ;;  %v1774_v10 = vld [vmem:[#allocation2 + $0x5c] sm:$0x1] }
 0x1d0   : > { %v10415_v35 = vadd.f32 %v10414_v45, %v10413_v37  ;;  %v10371_v50 = vpop.f32.mrb[5].mxu0 }
 0x1d1   : > { %v1754_v52 = vsel %vm13040_vm7, %v1700_v46, %v1753_v42  ;;  %v1757_v53 = vsel %vm12957_vm4, %v1701_v17, %v1756_v12  ;;  %v1708_v54 = vor.u32 %v1706_v44, %v1705_v47  ;;  %v1709_v55 = vrot.slane %v1705_v47, 4  ;;  %v10373_v56 = vpop.f32.mrb[6].mxu0 }
 0x1d2   : > { %1755 = vst [vmem:[#allocation2 + $0x40] sm:$0xf] %v1754_v52  ;;  %1758 = vst [vmem:[#allocation2 + $0x44] sm:$0x1] %v1757_v53  ;;  %v1608_v57 = vpack.c.bf16 %v1598_v27, %v1598_v27  ;;  %v1601_v60 = vadd.f32 %v10415_v35, %v13026_v26  ;;  %v10372_v61 = vadd.f32 %v10371_v50, %v10370_v48  ;;  %v10374_v62 = vpop.f32.mrb[7].mxu0 }
 0x1d3   : > { %v1760_v63 = vsel %vm13040_vm7, %v1708_v54, %v1759_v18  ;;  %v1763_v1 = vsel %vm12957_vm4, %v1709_v55, %v1762_v49  ;;  %v10375_v2 = vadd.f32 %v10374_v62, %v10373_v56 }
 0x1d4   : > { %1761 = vst [vmem:[#allocation2 + $0x48] sm:$0xf] %v1760_v63  ;;  %1764 = vst [vmem:[#allocation2 + $0x4c] sm:$0x1] %v1763_v1  ;;  %v1656_v3 = vsel %vm735_vm0, %v1608_v57, %v13015_v25  ;;  %v1609_v4 = vpack.c.bf16 %v1601_v60, %v1601_v60  ;;  %v1175_v19 = vadd.f32 %v10372_v61, %v13026_v26  ;;  %v1222_v60 = vpop.permute.xlu0 %1221 }
 0x1d5   : > { %v9318_v5 = vcombine.low %v1656_v3, %v1656_v3  ;;  %v1178_v20 = vadd.f32 %v10375_v2, %v13026_v26  ;;  %v1224_v3 = vpop.permute.xlu1 %1223 }
 0x1d6   : > { %v1659_v7 = vsel %vm735_vm0, %v1609_v4, %v13017_v21  ;;  %v1191_v8 = vpack.c.bf16 %v1175_v19, %v1175_v19 }
 0x1d7   : > { %v1711_v41 = vshrl.u32 %v9318_v5, 16  ;;  %v9319_v11 = vcombine.low %v1659_v7, %v1659_v7  ;;  %v1192_v13 = vpack.c.bf16 %v1178_v20, %v1178_v20  ;;  %v1714_v16 = vshll.u32 %v9318_v5, 16 }
 0x1d8   : > { %v1235_v14 = vsel %vm735_vm0, %v1191_v8, %v1218_v6  ;;  %v2678_v8 = vld [vmem:[#allocation2 + $0x90] sm:$0xf] }
 0x1d9   : > { %v1713_v15 = vrot.slane %v1711_v41, 7  ;;  %v1719_v25 = vshrl.u32 %v9319_v11, 16  ;;  %1251 = vst [vmem:[#allocation2 + $0x10] sm:$0xf] %v1235_v14  ;;  %v1239_v24 = vsel %vm735_vm0, %v1192_v13, %v1220_v9  ;;  %v1722_v21 = vshll.u32 %v9319_v11, 16 }
 0x1da   : > { %1252 = vst [vmem:[#allocation2 + $0x18] sm:$0xf] %v1239_v24  ;;  %v2681_v9 = vld [vmem:[#allocation2 + $0x94] sm:$0x1]  ;;  %v2684_v14 = vld [vmem:[#allocation2 + $0x98] sm:$0xf] }
 0x1db   : > { %v1716_v31 = vor.u32 %v1714_v16, %v1713_v15  ;;  %v1717_v0 = vrot.slane %v1713_v15, 4  ;;  %v1721_v33 = vrot.slane %v1719_v25, 7  ;;  %v10466_v36 = vpop.f32.mrb[12].mxu1  ;;  %v2687_v15 = vld [vmem:[#allocation2 + $0x9c] sm:$0x1] }
 0x1dc   : > { %v10467_v38 = vpop.f32.mrb[13].mxu1 }
 0x1dd   : > { %v1766_v39 = vsel %vm13040_vm7, %v1716_v31, %v1765_v28  ;;  %v1769_v40 = vsel %vm12957_vm4, %v1717_v0, %v1768_v30  ;;  %v1724_v37 = vor.u32 %v1722_v21, %v1721_v33  ;;  %v1725_v42 = vrot.slane %v1721_v33, 4  ;;  %v10469_v12 = vpop.f32.mrb[14].mxu1 }
 0x1de   : > { %1767 = vst [vmem:[#allocation2 + $0x50] sm:$0xf] %v1766_v39  ;;  %1770 = vst [vmem:[#allocation2 + $0x54] sm:$0x1] %v1769_v40  ;;  %v10468_v44 = vadd.f32 %v10467_v38, %v10466_v36  ;;  %v10470_v45 = vpop.f32.mrb[15].mxu1 }
 0x1df   : > { %v1772_v46 = vsel %vm13040_vm7, %v1724_v37, %v1771_v58  ;;  %v1775_v17 = vsel %vm12957_vm4, %v1725_v42, %v1774_v10  ;;  %v10471_v47 = vadd.f32 %v10470_v45, %v10469_v12  ;;  %v10376_v27 = vpop.f32.mrb[8].mxu0 }
 0x1e0   : > { %1773 = vst [vmem:[#allocation2 + $0x58] sm:$0xf] %v1772_v46  ;;  %1776 = vst [vmem:[#allocation2 + $0x5c] sm:$0x1] %v1775_v17  ;;  %v2522_v48 = vadd.f32 %v10468_v44, %v13026_v26  ;;  %v10377_v18 = vpop.f32.mrb[9].mxu0 }
 0x1e1   : > { %v2525_v49 = vadd.f32 %v10471_v47, %v13026_v26  ;;  %v10378_v35 = vadd.f32 %v10377_v18, %v10376_v27  ;;  %v10379_v50 = vpop.f32.mrb[10].mxu0  ;;  %v2154_v18 = vpop.permute.xlu0 %2153 }
 0x1e2   : > { %v2544_v52 = vpack.c.bf16 %v2522_v48, %v2522_v48  ;;  %v10380_v53 = vpop.f32.mrb[11].mxu0 }
 0x1e3   : > { %v2545_v54 = vpack.c.bf16 %v2525_v49, %v2525_v49  ;;  %v1183_v55 = vadd.f32 %v10378_v35, %v13026_v26  ;;  %v10381_v56 = vadd.f32 %v10380_v53, %v10379_v50 }
 0x1e4   : > { %v2584_v57 = vsel %vm735_vm0, %v2544_v52, %v13019_v22 }
 0x1e5   : > { %v9442_v61 = vcombine.low %v2584_v57, %v2584_v57  ;;  %v2587_v62 = vsel %vm735_vm0, %v2545_v54, %v13021_v23  ;;  %v1193_v63 = vpack.c.bf16 %v1183_v55, %v1183_v55  ;;  %v1186_v1 = vadd.f32 %v10381_v56, %v13026_v26  ;;  %v2156_v54 = vpop.permute.xlu1 %2155 }
 0x1e6   : > { %v9443_v2 = vcombine.low %v2587_v62, %v2587_v62  ;;  %v2693_v62 = vld [vmem:[#allocation2 + $0xa4] sm:$0x1] }
 0x1e7   : > { %v2619_v4 = vshrl.u32 %v9442_v61, 16  ;;  %v1194_v19 = vpack.c.bf16 %v1186_v1, %v1186_v1  ;;  %v1243_v5 = vsel %vm735_vm0, %v1193_v63, %v1222_v60  ;;  %v2622_v7 = vshll.u32 %v9442_v61, 16  ;;  %v2690_v61 = vld [vmem:[#allocation2 + $0xa0] sm:$0xf] }
 0x1e8   : > { %v2627_v20 = vshrl.u32 %v9443_v2, 16  ;;  %1253 = vst [vmem:[#allocation2 + $0x20] sm:$0xf] %v1243_v5  ;;  %v2630_v11 = vshll.u32 %v9443_v2, 16 }
 0x1e9   : > { %v2621_v6 = vrot.slane %v2619_v4, 7  ;;  %v1247_v22 = vsel %vm735_vm0, %v1194_v19, %v1224_v3  ;;  %v2696_v4 = vld [vmem:[#allocation2 + $0xa8] sm:$0xf]  ;;  %v2699_v19 = vld [vmem:[#allocation2 + $0xac] sm:$0x1] }
 0x1ea   : > { %v2629_v41 = vrot.slane %v2627_v20, 7  ;;  %1254 = vst [vmem:[#allocation2 + $0x28] sm:$0xf] %v1247_v22 }
 0x1eb   : > { %v2624_v23 = vor.u32 %v2622_v7, %v2621_v6  ;;  %v2625_v13 = vrot.slane %v2621_v6, 4  ;;  %v10472_v16 = vpop.f32.mrb[16].mxu1 }
 0x1ec   : > { %v2632_v25 = vor.u32 %v2630_v11, %v2629_v41  ;;  %v2633_v24 = vrot.slane %v2629_v41, 4  ;;  %v10473_v28 = vpop.f32.mrb[17].mxu1 }
 0x1ed   : > { %v2679_v30 = vsel %vm13040_vm7, %v2624_v23, %v2678_v8  ;;  %v2682_v31 = vsel %vm12957_vm4, %v2625_v13, %v2681_v9  ;;  %v10474_v0 = vadd.f32 %v10473_v28, %v10472_v16  ;;  %v10475_v33 = vpop.f32.mrb[18].mxu1 }
 0x1ee   : > { %2680 = vst [vmem:[#allocation2 + $0x90] sm:$0xf] %v2679_v30  ;;  %2683 = vst [vmem:[#allocation2 + $0x94] sm:$0x1] %v2682_v31  ;;  %v2685_v21 = vsel %vm13040_vm7, %v2632_v25, %v2684_v14  ;;  %v2688_v36 = vsel %vm12957_vm4, %v2633_v24, %v2687_v15  ;;  %v10476_v58 = vpop.f32.mrb[19].mxu1 }
 0x1ef   : > { %2686 = vst [vmem:[#allocation2 + $0x98] sm:$0xf] %v2685_v21  ;;  %2689 = vst [vmem:[#allocation2 + $0x9c] sm:$0x1] %v2688_v36  ;;  %v2530_v10 = vadd.f32 %v10474_v0, %v13026_v26  ;;  %v10477_v38 = vadd.f32 %v10476_v58, %v10475_v33  ;;  %v10432_v39 = vpop.f32.mrb[12].mxu0 }
 0x1f0   : > { %v10433_v40 = vpop.f32.mrb[13].mxu0 }
 0x1f1   : > { %v2546_v37 = vpack.c.bf16 %v2530_v10, %v2530_v10  ;;  %v2533_v42 = vadd.f32 %v10477_v38, %v13026_v26  ;;  %v10434_v12 = vadd.f32 %v10433_v40, %v10432_v39  ;;  %v10435_v44 = vpop.f32.mrb[14].mxu0  ;;  %v2158_v38 = vpop.permute.xlu0 %2157 }
 0x1f2   : > { %v10436_v45 = vpop.f32.mrb[15].mxu0 }
 0x1f3   : > { %v2590_v46 = vsel %vm735_vm0, %v2546_v37, %v13028_v29  ;;  %v2547_v17 = vpack.c.bf16 %v2533_v42, %v2533_v42  ;;  %v2105_v47 = vadd.f32 %v10434_v12, %v13026_v26  ;;  %v10437_v27 = vadd.f32 %v10436_v45, %v10435_v44  ;;  %v2160_v44 = vpop.permute.xlu1 %2159 }
 0x1f4   : > { %v9444_v48 = vcombine.low %v2590_v46, %v2590_v46 }
 0x1f5   : > { %v2593_v49 = vsel %vm735_vm0, %v2547_v17, %v13030_v32  ;;  %v2127_v35 = vpack.c.bf16 %v2105_v47, %v2105_v47  ;;  %v2108_v50 = vadd.f32 %v10437_v27, %v13026_v26 }
 0x1f6   : > { %v2635_v52 = vshrl.u32 %v9444_v48, 16  ;;  %v9445_v53 = vcombine.low %v2593_v49, %v2593_v49  ;;  %v2638_v29 = vshll.u32 %v9444_v48, 16  ;;  %v2705_v49 = vld [vmem:[#allocation2 + $0xb4] sm:$0x1] }
 0x1f7   : > { %v2128_v55 = vpack.c.bf16 %v2108_v50, %v2108_v50  ;;  %v2167_v56 = vsel %vm735_vm0, %v2127_v35, %v2154_v18  ;;  %v2702_v18 = vld [vmem:[#allocation2 + $0xb0] sm:$0xf] }
 0x1f8   : > { %v2637_v57 = vrot.slane %v2635_v52, 7  ;;  %v2643_v60 = vshrl.u32 %v9445_v53, 16  ;;  %2189 = vst [vmem:[#allocation2 + $0x60] sm:$0xf] %v2167_v56  ;;  %v2646_v3 = vshll.u32 %v9445_v53, 16 }
 0x1f9   : > { %v2171_v63 = vsel %vm735_vm0, %v2128_v55, %v2156_v54 }
 0x1fa   : > { %v2640_v1 = vor.u32 %v2638_v29, %v2637_v57  ;;  %v2641_v2 = vrot.slane %v2637_v57, 4  ;;  %v2645_v32 = vrot.slane %v2643_v60, 7  ;;  %2190 = vst [vmem:[#allocation2 + $0x68] sm:$0xf] %v2171_v63  ;;  %v2708_v57 = vld [vmem:[#allocation2 + $0xb8] sm:$0xf] }
 0x1fb   : > { %v10478_v5 = vpop.f32.mrb[20].mxu1  ;;  %v2711_v29 = vld [vmem:[#allocation2 + $0xbc] sm:$0x1] }
 0x1fc   : > { %v2691_v20 = vsel %vm13040_vm7, %v2640_v1, %v2690_v61  ;;  %v2694_v6 = vsel %vm12957_vm4, %v2641_v2, %v2693_v62  ;;  %v2648_v7 = vor.u32 %v2646_v3, %v2645_v32  ;;  %v2649_v22 = vrot.slane %v2645_v32, 4  ;;  %v10479_v8 = vpop.f32.mrb[21].mxu1  ;;  %v2162_v2 = vpop.permute.xlu0 %2161 }
 0x1fd   : > { %2692 = vst [vmem:[#allocation2 + $0xa0] sm:$0xf] %v2691_v20  ;;  %2695 = vst [vmem:[#allocation2 + $0xa4] sm:$0x1] %v2694_v6  ;;  %v10480_v9 = vadd.f32 %v10479_v8, %v10478_v5  ;;  %v10481_v41 = vpop.f32.mrb[22].mxu1  ;;  %v12220_v6 = vmov (!%p9448_p5), 0  }
 0x1fe   : > { %v2697_v11 = vsel %vm13040_vm7, %v2648_v7, %v2696_v4  ;;  %v2700_v23 = vsel %vm12957_vm4, %v2649_v22, %v2699_v19  ;;  %v10482_v13 = vpop.f32.mrb[23].mxu1  ;;  %v2164_v19 = vpop.permute.xlu1 %2163  ;;  %v2719_v5 = vld [vmem:[#allocation2 + $0x64] sm:$0x1] (!%p9448_p5)  ;;  %v2723_v20 = vld [vmem:[#allocation2 + $0x94] sm:$0x1] (!%p9448_p5) }
 0x1ff   : > { %2698 = vst [vmem:[#allocation2 + $0xa8] sm:$0xf] %v2697_v11  ;;  %2701 = vst [vmem:[#allocation2 + $0xac] sm:$0x1] %v2700_v23  ;;  %v2538_v14 = vadd.f32 %v10480_v9, %v13026_v26  ;;  %v10483_v15 = vadd.f32 %v10482_v13, %v10481_v41  ;;  %v10438_v16 = vpop.f32.mrb[16].mxu0  ;;  %v2720_v51 = vsel (!%p9448_p5), %vm12957_vm4, 0, %v2719_v5 }
 0x200   : > { %v10439_v25 = vpop.f32.mrb[17].mxu0  ;;  %2718 = vst [vmem:[#allocation2 + $0x60] sm:$0xf] (!%p9448_p5), %v12220_v6  ;;  %2722 = vst [vmem:[#allocation2 + $0x90] sm:$0xf] (!%p9448_p5), %v12220_v6  ;;  %v2724_v7 = vsel (!%p9448_p5), %vm12957_vm4, 0, %v2723_v20 }
 0x201   : > { %v2548_v24 = vpack.c.bf16 %v2538_v14, %v2538_v14  ;;  %v2541_v28 = vadd.f32 %v10483_v15, %v13026_v26  ;;  %v10440_v30 = vadd.f32 %v10439_v25, %v10438_v16  ;;  %v10441_v31 = vpop.f32.mrb[18].mxu0  ;;  %2721 = vst [vmem:[#allocation2 + $0x64] sm:$0x1] (!%p9448_p5), %v2720_v51  ;;  %2725 = vst [vmem:[#allocation2 + $0x94] sm:$0x1] (!%p9448_p5), %v2724_v7 }
 0x202   : > { %v10442_v0 = vpop.f32.mrb[19].mxu0 }
 0x203   : > { %v2596_v33 = vsel %vm735_vm0, %v2548_v24, %v13034_v59  ;;  %v2549_v21 = vpack.c.bf16 %v2541_v28, %v2541_v28  ;;  %v2113_v36 = vadd.f32 %v10440_v30, %v13026_v26  ;;  %v10443_v58 = vadd.f32 %v10442_v0, %v10441_v31 }
 0x204   : > { %v9446_v10 = vcombine.low %v2596_v33, %v2596_v33 }
 0x205   : > { %v2599_v39 = vsel %vm735_vm0, %v2549_v21, %v13037_v43  ;;  %v2129_v40 = vpack.c.bf16 %v2113_v36, %v2113_v36  ;;  %v2116_v37 = vadd.f32 %v10443_v58, %v13026_v26 }
 0x206   : > { %v2651_v42 = vshrl.u32 %v9446_v10, 16  ;;  %v9447_v12 = vcombine.low %v2599_v39, %v2599_v39  ;;  %v2654_v47 = vshll.u32 %v9446_v10, 16 }
 0x207   : > { %v2130_v45 = vpack.c.bf16 %v2116_v37, %v2116_v37  ;;  %v2175_v46 = vsel %vm735_vm0, %v2129_v40, %v2158_v38  ;;  %v10444_v17 = vpop.f32.mrb[20].mxu0 }
 0x208   : > { %v2653_v59 = vrot.slane %v2651_v42, 7  ;;  %v2659_v27 = vshrl.u32 %v9447_v12, 16  ;;  %2191 = vst [vmem:[#allocation2 + $0x70] sm:$0xf] %v2175_v46  ;;  %v10445_v48 = vpop.f32.mrb[21].mxu0  ;;  %v2662_v55 = vshll.u32 %v9447_v12, 16 }
 0x209   : > { %v10446_v35 = vadd.f32 %v10445_v48, %v10444_v17  ;;  %v2179_v43 = vsel %vm735_vm0, %v2130_v45, %v2160_v44  ;;  %v10447_v50 = vpop.f32.mrb[22].mxu0 }
 0x20a   : > { %v2656_v52 = vor.u32 %v2654_v47, %v2653_v59  ;;  %v2657_v53 = vrot.slane %v2653_v59, 4  ;;  %v2661_v54 = vrot.slane %v2659_v27, 7  ;;  %2192 = vst [vmem:[#allocation2 + $0x78] sm:$0xf] %v2179_v43  ;;  %v10448_v56 = vpop.f32.mrb[23].mxu0  ;;  %2717 = sbr.rel (%p9448_p5) target bundleno = 529 (0x211), region = 150 }
 0x20b   : > { %v2121_v60 = vadd.f32 %v10446_v35, %v13026_v26 }
 0x20c   : > { %v2703_v61 = vsel %vm13040_vm7, %v2656_v52, %v2702_v18  ;;  %v2706_v62 = vsel %vm12957_vm4, %v2657_v53, %v2705_v49  ;;  %v2664_v63 = vor.u32 %v2662_v55, %v2661_v54  ;;  %v2665_v1 = vrot.slane %v2661_v54, 4 }
 0x20d   : > { %2704 = vst [vmem:[#allocation2 + $0xb0] sm:$0xf] %v2703_v61  ;;  %2707 = vst [vmem:[#allocation2 + $0xb4] sm:$0x1] %v2706_v62  ;;  %v2131_v32 = vpack.c.bf16 %v2121_v60, %v2121_v60 }
 0x20e   : > { %v2709_v3 = vsel %vm13040_vm7, %v2664_v63, %v2708_v57  ;;  %v2712_v4 = vsel %vm12957_vm4, %v2665_v1, %v2711_v29 }
 0x20f   : > { %2710 = vst [vmem:[#allocation2 + $0xb8] sm:$0xf] %v2709_v3  ;;  %2713 = vst [vmem:[#allocation2 + $0xbc] sm:$0x1] %v2712_v4  ;;  %v2183_v26 = vsel %vm735_vm0, %v2131_v32, %v2162_v2 }
 0x210   : > { %2193 = vst [vmem:[#allocation2 + $0x80] sm:$0xf] %v2183_v26 }
 0x211 PF: > { %p9449_p6 = scmp.ne.s32.totalorder %s12185_s13, 1 }
 0x212   : > { %v2732_v22 = vld [vmem:[#allocation2 + $0x2c] sm:$0x1] (!%p9449_p6)  ;;  %v2737_v8 = vld [vmem:[#allocation2 + $0x5c] sm:$0x1] (!%p9449_p6)  ;;  %v12221_v9 = vmov (!%p9449_p6), 0  }
 0x213   : > { %2729 = sbr.rel (%p9449_p6) target bundleno = 538 (0x21a), region = 154  ;;  %2731 = vst [vmem:[#allocation2 + $0x28] sm:$0xf] (!%p9449_p6), %v12221_v9  ;;  %2736 = vst [vmem:[#allocation2 + $0x58] sm:$0xf] (!%p9449_p6), %v12221_v9  ;;  %v2733_v41 = vsel (!%p9449_p6), %vm12957_vm4, 0, %v2732_v22 }
 0x214   : > { %v2738_v11 = vsel (!%p9449_p6), %vm12957_vm4, 0, %v2737_v8  ;;  %2734 = vst [vmem:[#allocation2 + $0x2c] sm:$0x1] (!%p9449_p6), %v2733_v41 }
 0x215   : > { %2739 = vst [vmem:[#allocation2 + $0x5c] sm:$0x1] (!%p9449_p6), %v2738_v11 }
 0x21a PF: > { %s14512_s25 = sld [smem:[#allocation12_spill]]  ;;  %v11783_v31 = vld [vmem:[#allocation2 + $0x90] ss:$8 sps:$4 sm:$0xff]   ;;  %v11789_v36 = vld [vmem:[#allocation2 + $0x60] ss:$8 sps:$4 sm:$0xff]   ;;  %s14515_s14 = sld [smem:[#allocation14_spill]] }
 0x21b   : > { %10860 = vmatprep.mubr.bf16.mxu0 %v11783_v31  ;;  %10880 = vmatprep.mubr.bf16.mxu1 %v11789_v36  ;;  %v11785_v40 = vld [vmem:[#allocation2 + $0xa0] ss:$8 sps:$4 sm:$0xff]   ;;  %v11791_v12 = vld [vmem:[#allocation2 + $0x70] ss:$8 sps:$4 sm:$0xff]   ;;  %v3016_v46 = vld [vmem:[#allocation2 + $0x94] sm:$0x1] }
 0x21c   : > { %v3015_v45 = vld [vmem:[#allocation2 + $0x90] sm:$0xf]  ;;  %v3017_v17 = vld [vmem:[#allocation2 + $0x98] sm:$0xf]  ;;  %v3018_v47 = vld [vmem:[#allocation2 + $0x9c] sm:$0x1] }
 0x21d   : > { %v3027_v27 = vshrl.u32 %v3015_v45, 16  ;;  %v3030_v48 = vshll.u32 %v3015_v45, 16  ;;  %v3036_v18 = vshll.u32 %v3016_v46, 16  ;;  %v3041_v49 = vshrl.u32 %v3017_v17, 16  ;;  %v3019_v56 = vld [vmem:[#allocation2 + $0xa0] sm:$0xf] }
 0x21e   : > { %vm3023_vm8 = vsmask.f32 3328  ;;  %v3044_v35 = vshll.u32 %v3017_v17, 16  ;;  %v3050_v43 = vshll.u32 %v3018_v47, 16  ;;  %vm3024_vm9 = vsmask.f32 7440 }
 0x21f   : > { %v3029_v52 = vrot.slane %v3027_v27, 4  ;;  %v3032_v53 = vrot.slane %v3030_v48, 5  ;;  %v3043_v54 = vrot.slane %v3041_v49, 4  ;;  %v3038_v60 = vrot.slane %v3036_v18, 5  ;;  %v3021_v61 = vld [vmem:[#allocation2 + $0xa8] sm:$0xf]  ;;  %vm13222_vm10 = vmor %vm3023_vm8, %vm3024_vm9 }
 0x220   : > { %v11769_v23 = vld [vmem:[%s14512_s25] sm:$0xff]   ;;  %v11770_v13 = vld [vmem:[%s14512_s25 + $0x8] sm:$0xff]   ;;  %v11772_v34 = vld [vmem:[%s14512_s25 + $0x10] sm:$0xff]   ;;  %v3046_v55 = vrot.slane %v3044_v35, 5  ;;  %v3052_v1 = vrot.slane %v3050_v43, 5  ;;  %v3055_v3 = vshrl.u32 %v3019_v56, 16  ;;  %s14516_s22 = smov %s14515_s14 }
 0x221   : > { %10844 = vmatprep.subr.bf16.mxu0 %v11769_v23  ;;  %v11771_v14 = vld [vmem:[%s14512_s25 + $0x40] sm:$0xff]   ;;  %v11773_v15 = vld [vmem:[%s14512_s25 + $0x48] sm:$0xff]   ;;  %v11775_v16 = vld [vmem:[%s14512_s25 + $0x50] sm:$0xff]   ;;  %v3033_v29 = vor.u32 %v3032_v53, %v3029_v52  ;;  %v3058_v4 = vshll.u32 %v3019_v56, 16  ;;  %v3069_v5 = vshrl.u32 %v3021_v61, 16  ;;  %v3072_v20 = vshll.u32 %v3021_v61, 16 }
 0x222   : > { %10845 = vmatpush3.bf16.msra.mxu0 %v11769_v23  ;;  %10864 = vmatprep.subr.bf16.mxu1 %v11771_v14  ;;  %v11774_v25 = vld [vmem:[%s14512_s25 + $0x18] sm:$0xff]   ;;  %v11776_v28 = vld [vmem:[%s14512_s25 + $0x20] sm:$0xff]   ;;  %v11778_v0 = vld [vmem:[%s14512_s25 + $0x28] sm:$0xff]   ;;  %v3047_v63 = vor.u32 %v3046_v55, %v3043_v54  ;;  %v3057_v11 = vrot.slane %v3055_v3, 4  ;;  %s14517_s12 = sld [smem:[#allocation15_spill]]  ;;  %vm5861_vm11 = vcmask 1048064  }
 0x223   : > { %10846 = vmatprep.subr.bf16.mxu0 %v11770_v13  ;;  %10865 = vmatpush3.bf16.msra.mxu1 %v11771_v14  ;;  %v11777_v24 = vld [vmem:[%s14512_s25 + $0x58] sm:$0xff]   ;;  %v11779_v30 = vld [vmem:[%s14512_s25 + $0x60] sm:$0xff]   ;;  %v11781_v33 = vld [vmem:[%s14512_s25 + $0x68] sm:$0xff]   ;;  %v3034_v32 = vrot.slane %v3033_v29, 4  ;;  %v3060_v23 = vrot.slane %v3058_v4, 5  ;;  %v3074_v14 = vrot.slane %v3072_v20, 5 }
 0x224   : > { %10866 = vmatprep.subr.bf16.mxu1 %v11773_v15  ;;  %v11780_v21 = vld [vmem:[%s14512_s25 + $0x30] sm:$0xff]   ;;  %v11782_v10 = vld [vmem:[%s14512_s25 + $0x38] sm:$0xff]   ;;  %v11786_v39 = vld [vmem:[%s14512_s25 + $0x80] sm:$0xff]   ;;  %v3048_v26 = vrot.slane %v3047_v63, 4 }
 0x225   : > { %v11784_v58 = vld [vmem:[%s14512_s25 + $0x70] sm:$0xff]   ;;  %v11787_v38 = vld [vmem:[%s14512_s25 + $0x78] sm:$0xff]   ;;  %v11790_v37 = vld [vmem:[%s14512_s25 + $0xc0] sm:$0xff]   ;;  %v3039_v51 = vsel %vm13222_vm10, %v3034_v32, %v3038_v60 }
 0x226   : > { %10847 = vmatpush3.bf16.msra.mxu0 %v11770_v13  ;;  %v11788_v42 = vld [vmem:[%s14512_s25 + $0x88] sm:$0xff]   ;;  %v11792_v59 = vld [vmem:[%s14512_s25 + $0x90] sm:$0xff]   ;;  %v11794_v57 = vld [vmem:[%s14512_s25 + $0x98] sm:$0xff]   ;;  %v3053_v7 = vsel %vm13222_vm10, %v3048_v26, %v3052_v1  ;;  %v3071_v13 = vrot.slane %v3069_v5, 4 }
 0x227   : > { %10848 = vmatprep.subr.bf16.mxu0 %v11772_v34  ;;  %10867 = vmatpush3.bf16.msra.mxu1 %v11773_v15  ;;  %v11793_v44 = vld [vmem:[%s14512_s25 + $0xc8] sm:$0xff]   ;;  %v11795_v50 = vld [vmem:[%s14512_s25 + $0xd0] sm:$0xff]   ;;  %v11797_v2 = vld [vmem:[%s14512_s25 + $0xd8] sm:$0xff]   ;;  %v9502_v41 = vcombine.low %v3039_v51, %v3053_v7 }
 0x228   : > { %10868 = vmatprep.subr.bf16.mxu1 %v11775_v16  ;;  %v11796_v19 = vld [vmem:[%s14512_s25 + $0xa0] sm:$0xff]   ;;  %v3022_v8 = vld [vmem:[#allocation2 + $0xac] sm:$0x1]  ;;  %v11803_v31 = vld [vmem:[%s14512_s25 + $0xf0] sm:$0xff]   ;;  %s14518_s20 = smov %s14517_s12 }
 0x229   : > { %v11799_v6 = vld [vmem:[%s14512_s25 + $0xe0] sm:$0xff]   ;;  %v11801_v15 = vld [vmem:[%s14512_s25 + $0xe8] sm:$0xff]   ;;  %v3502_v17 = vld [vmem:[#allocation2 + $0x38] sm:$0xf] }
 0x22a   : > { %10849 = vmatpush3.bf16.msra.mxu0 %v11772_v34  ;;  %v3020_v22 = vld [vmem:[#allocation2 + $0xa4] sm:$0x1]  ;;  %v11807_v9 = vld [vmem:[#allocation2 + $0x38] ss:$8 sps:$4 sm:$0xff]   ;;  %v11798_v34 = vld [vmem:[%s14512_s25 + $0xa8] sm:$0xff]   ;;  %v3511_v48 = vshrl.u32 %v3502_v17, 16 }
 0x22b   : > { %10850 = vmatprep.subr.bf16.mxu0 %v11774_v25  ;;  %10869 = vmatpush3.bf16.msra.mxu1 %v11775_v16  ;;  %v3064_v16 = vshll.u32 %v3020_v22, 16  ;;  %v11821_v45 = vld [vmem:[#allocation2 + $0x8] ss:$8 sps:$4 sm:$0xff]   ;;  %v3504_v47 = vld [vmem:[#allocation2 + $0x40] sm:$0xf]  ;;  %v3514_v18 = vshll.u32 %v3502_v17, 16 }
 0x22c   : > { %10870 = vmatprep.subr.bf16.mxu1 %v11777_v24  ;;  %v11811_v46 = vld [vmem:[%s14512_s25 + $0x148] sm:$0xff]   ;;  %v3505_v27 = vld [vmem:[#allocation2 + $0x44] sm:$0x1]  ;;  %v3525_v35 = vshrl.u32 %v3504_v47, 16  ;;  %v3528_v43 = vshll.u32 %v3504_v47, 16  ;;  %v11810_v52 = vld [vmem:[%s14512_s25 + $0x110] sm:$0xff]  }
 0x22d   : > { %v3513_v53 = vrot.slane %v3511_v48, 4  ;;  %v3516_v54 = vrot.slane %v3514_v18, 5  ;;  %v11812_v1 = vld [vmem:[%s14512_s25 + $0x118] sm:$0xff]   ;;  %v3506_v4 = vld [vmem:[#allocation2 + $0x48] sm:$0xf]  ;;  %v11828_v47 = vld [vmem:[%s14512_s25 + $0x190] sm:$0xff]  }
 0x22e   : > { %10851 = vmatpush3.bf16.msra.mxu0 %v11774_v25  ;;  %v3078_v25 = vshll.u32 %v3022_v8, 16  ;;  %v3527_v55 = vrot.slane %v3525_v35, 4  ;;  %v3530_v56 = vrot.slane %v3528_v43, 5  ;;  %v11815_v32 = vld [vmem:[%s14512_s25 + $0x158] sm:$0xff]   ;;  %v3508_v5 = vld [vmem:[#allocation2 + $0x50] sm:$0xf] }
 0x22f   : > { %10852 = vmatprep.subr.bf16.mxu0 %v11776_v28  ;;  %10871 = vmatpush3.bf16.msra.mxu1 %v11777_v24  ;;  %v3061_v24 = vor.u32 %v3060_v23, %v3057_v11  ;;  %v3517_v29 = vor.u32 %v3516_v54, %v3513_v53  ;;  %v3539_v51 = vshrl.u32 %v3506_v4, 16  ;;  %v3542_v7 = vshll.u32 %v3506_v4, 16  ;;  %v3507_v11 = vld [vmem:[#allocation2 + $0x4c] sm:$0x1]  ;;  %v3509_v23 = vld [vmem:[#allocation2 + $0x54] sm:$0x1] }
 0x230   : > { %10872 = vmatprep.subr.bf16.mxu1 %v11779_v30  ;;  %v3531_v61 = vor.u32 %v3530_v56, %v3527_v55  ;;  %v3553_v22 = vshrl.u32 %v3508_v5, 16  ;;  %v3556_v8 = vshll.u32 %v3508_v5, 16  ;;  %v11845_v17 = vld [vmem:[#allocation2 + $0x68] ss:$8 sps:$4 sm:$0xff]   ;;  %v11830_v48 = vld [vmem:[%s14512_s25 + $0x198] sm:$0xff]   ;;  %v11832_v43 = vld [vmem:[%s14512_s25 + $0x1a0] sm:$0xff]  }
 0x231   : > { %v3986_v18 = vld [vmem:[#allocation2 + $0x98] sm:$0xf]  ;;  %v11834_v55 = vld [vmem:[%s14512_s25 + $0x1a8] sm:$0xff]   ;;  %v11835_v56 = vld [vmem:[%s14512_s25 + $0x1e0] sm:$0xff]  }
 0x232   : > { %10853 = vmatpush3.bf16.msra.mxu0 %v11776_v28  ;;  %v3075_v28 = vor.u32 %v3074_v14, %v3071_v13  ;;  %v3532_v3 = vrot.slane %v3531_v61, 4  ;;  %v3541_v13 = vrot.slane %v3539_v51, 4  ;;  %v3544_v14 = vrot.slane %v3542_v7, 5  ;;  %v11833_v35 = vld [vmem:[%s14512_s25 + $0x1d8] sm:$0xff]   ;;  %v11836_v4 = vld [vmem:[%s14512_s25 + $0x1b0] sm:$0xff]  }
 0x233   : > { %10854 = vmatprep.subr.bf16.mxu0 %v11778_v0  ;;  %10873 = vmatpush3.bf16.msra.mxu1 %v11779_v30  ;;  %v11800_v30 = vld [vmem:[%s14512_s25 + $0xb0] sm:$0xff]   ;;  %v11838_v5 = vld [vmem:[%s14512_s25 + $0x1b8] sm:$0xff]  }
 0x234   : > { %10874 = vmatprep.subr.bf16.mxu1 %v11781_v33  ;;  %v3076_v36 = vrot.slane %v3075_v28, 4  ;;  %v3562_v28 = vshll.u32 %v3509_v23, 16  ;;  %v11841_v23 = vld [vmem:[#allocation2 + $0xa8] ss:$8 sps:$4 sm:$0xff]  }
 0x236   : > { %10855 = vmatpush3.bf16.msra.mxu0 %v11778_v0  ;;  %v3066_v0 = vrot.slane %v3064_v16, 5  ;;  %v11819_v16 = vld [vmem:[%s14512_s25 + $0x168] sm:$0xff]  }
 0x237   : > { %10856 = vmatprep.subr.bf16.mxu0 %v11780_v21  ;;  %10875 = vmatpush3.bf16.msra.mxu1 %v11781_v33  ;;  %v3080_v33 = vrot.slane %v3078_v25, 5  ;;  %v11818_v25 = vld [vmem:[%s14512_s25 + $0x130] sm:$0xff]  }
 0x238   : > { %10876 = vmatprep.subr.bf16.mxu1 %v11784_v58 }
 0x23a   : > { %10857 = vmatpush3.bf16.msra.mxu0 %v11780_v21  ;;  %v3062_v21 = vrot.slane %v3061_v24, 4  ;;  %v3548_v24 = vshll.u32 %v3507_v11, 16 }
 0x23b   : > { %10858 = vmatprep.subr.bf16.mxu0 %v11782_v10  ;;  %10877 = vmatpush3.bf16.msra.mxu1 %v11784_v58  ;;  %v11802_v58 = vld [vmem:[%s14512_s25 + $0xb8] sm:$0xff]  }
 0x23c   : > { %10878 = vmatprep.subr.bf16.mxu1 %v11787_v38 }
 0x23e   : > { %10859 = vmatpush3.bf16.msra.mxu0 %v11782_v10  ;;  %v11805_v10 = vld [vmem:[%s14512_s25 + $0xf8] sm:$0xff]  }
 0x23f   : > { %10884 = vmatprep.subr.bf16.mxu0 %v11786_v39  ;;  %10879 = vmatpush3.bf16.msra.mxu1 %v11787_v38  ;;  %v3067_v38 = vsel %vm13222_vm10, %v3062_v21, %v3066_v0  ;;  %v11822_v0 = vld [vmem:[%s14512_s25 + $0x170] sm:$0xff]   ;;  %v3550_v21 = vrot.slane %v3548_v24, 5 }
 0x240   : > { %10904 = vmatprep.subr.bf16.mxu1 %v11790_v37  ;;  %v11848_v24 = vld [vmem:[%s14512_s25 + $0x210] sm:$0xff]  }
 0x241   : > { %10861 = vmatmul.mubr.bf16.vlgmr.msra.gmra.mrb[24].mxu0 %v11785_v40  ;;  %v11804_v40 = vld [vmem:[%s14512_s25 + $0x100] sm:$0xff]  }
 0x242   : > { %10885 = vmatpush3.bf16.msra.mxu0 %v11786_v39  ;;  %10881 = vmatmul.mubr.bf16.vlgmr.msra.gmra.mrb[24].mxu1 %v11791_v12  ;;  %v3081_v39 = vsel %vm13222_vm10, %v3076_v36, %v3080_v33  ;;  %v11806_v12 = vld [vmem:[%s14512_s25 + $0x108] sm:$0xff]   ;;  %v11820_v33 = vld [vmem:[%s14512_s25 + $0x138] sm:$0xff]   ;;  %v3564_v36 = vrot.slane %v3562_v28, 5 }
 0x243   : > { %10886 = vmatprep.subr.bf16.mxu0 %v11788_v42  ;;  %10905 = vmatpush3.bf16.msra.mxu1 %v11790_v37  ;;  %v11808_v37 = vld [vmem:[%s14512_s25 + $0x140] sm:$0xff]   ;;  %v3990_v28 = vld [vmem:[#allocation2 + $0xa8] sm:$0xf] }
 0x244   : > { %10906 = vmatprep.subr.bf16.mxu1 %v11793_v44  ;;  %10920 = vmatprep.mubr.bf16.mxu1 %v11807_v9  ;;  %v11816_v9 = vld [vmem:[%s14512_s25 + $0x128] sm:$0xff]  }
 0x245   : > { %10900 = vmatprep.mubr.bf16.mxu0 %v9502_v41  ;;  %v11817_v41 = vld [vmem:[%s14512_s25 + $0x160] sm:$0xff]  }
 0x246   : > { %10887 = vmatpush3.bf16.msra.mxu0 %v11788_v42  ;;  %v9503_v42 = vcombine.low %v3067_v38, %v3081_v39  ;;  %v11825_v38 = vld [vmem:[%s14512_s25 + $0x178] sm:$0xff]   ;;  %v11824_v39 = vld [vmem:[%s14512_s25 + $0x180] sm:$0xff]  }
 0x247   : > { %10888 = vmatprep.subr.bf16.mxu0 %v11792_v59  ;;  %10907 = vmatpush3.bf16.msra.mxu1 %v11793_v44  ;;  %v11809_v44 = vld [vmem:[#allocation2 + $0x48] ss:$8 sps:$4 sm:$0xff]  }
 0x248   : > { %10908 = vmatprep.subr.bf16.mxu1 %v11795_v50 }
 0x24a   : > { %10889 = vmatpush3.bf16.msra.mxu0 %v11792_v59  ;;  %v3503_v59 = vld [vmem:[#allocation2 + $0x3c] sm:$0x1] }
 0x24b   : > { %10890 = vmatprep.subr.bf16.mxu0 %v11794_v57  ;;  %10909 = vmatpush3.bf16.msra.mxu1 %v11795_v50  ;;  %v3520_v49 = vshll.u32 %v3503_v59, 16  ;;  %v3534_v50 = vshll.u32 %v3505_v27, 16  ;;  %v11829_v59 = vld [vmem:[%s14512_s25 + $0x1c8] sm:$0xff]   ;;  %v11831_v27 = vld [vmem:[%s14512_s25 + $0x1d0] sm:$0xff]  }
 0x24c   : > { %10910 = vmatprep.subr.bf16.mxu1 %v11797_v2 }
 0x24d   : > { %v3522_v60 = vrot.slane %v3520_v49, 5  ;;  %v3536_v63 = vrot.slane %v3534_v50, 5  ;;  %v3988_v49 = vld [vmem:[#allocation2 + $0xa0] sm:$0xf]  ;;  %v3995_v50 = vshrl.u32 %v3986_v18, 16 }
 0x24e   : > { %10891 = vmatpush3.bf16.msra.mxu0 %v11794_v57  ;;  %v11813_v57 = vld [vmem:[%s14512_s25 + $0x150] sm:$0xff]   ;;  %v4009_v53 = vshrl.u32 %v3988_v49, 16  ;;  %v4012_v54 = vshll.u32 %v3988_v49, 16 }
 0x24f   : > { %10892 = vmatprep.subr.bf16.mxu0 %v11796_v19  ;;  %10911 = vmatpush3.bf16.msra.mxu1 %v11797_v2  ;;  %v3518_v2 = vrot.slane %v3517_v29, 4  ;;  %v3537_v20 = vsel %vm13222_vm10, %v3532_v3, %v3536_v63  ;;  %v3989_v29 = vld [vmem:[#allocation2 + $0xa4] sm:$0x1] }
 0x250   : > { %10912 = vmatprep.subr.bf16.mxu1 %v11799_v6  ;;  %v4011_v63 = vrot.slane %v4009_v53, 4  ;;  %v4018_v3 = vshll.u32 %v3989_v29, 16  ;;  %v4352_v29 = vld [vmem:[#allocation2 + $0x94] sm:$0x1] }
 0x251   : > { %v3523_v26 = vsel %vm13222_vm10, %v3518_v2, %v3522_v60  ;;  %v3997_v60 = vrot.slane %v3995_v50, 4  ;;  %v11837_v2 = vld [vmem:[%s14512_s25 + $0x1e8] sm:$0xff]  }
 0x252   : > { %10893 = vmatpush3.bf16.msra.mxu0 %v11796_v19  ;;  %v11814_v19 = vld [vmem:[%s14512_s25 + $0x120] sm:$0xff]   ;;  %v4020_v51 = vrot.slane %v4018_v3, 5 }
 0x253   : > { %10894 = vmatprep.subr.bf16.mxu0 %v11798_v34  ;;  %10913 = vmatpush3.bf16.msra.mxu1 %v11799_v6  ;;  %v9580_v6 = vcombine.low %v3523_v26, %v3537_v20  ;;  %v11840_v20 = vld [vmem:[%s14512_s25 + $0x1f0] sm:$0xff]  }
 0x254   : > { %10914 = vmatprep.subr.bf16.mxu1 %v11801_v15 }
 0x256   : > { %10895 = vmatpush3.bf16.msra.mxu0 %v11798_v34  ;;  %v3555_v34 = vrot.slane %v3553_v22, 4 }
 0x257   : > { %10896 = vmatprep.subr.bf16.mxu0 %v11800_v30  ;;  %10915 = vmatpush3.bf16.msra.mxu1 %v11801_v15  ;;  %v3558_v15 = vrot.slane %v3556_v8, 5  ;;  %v11843_v8 = vld [vmem:[%s14512_s25 + $0x1f8] sm:$0xff]  }
 0x258   : > { %10916 = vmatprep.subr.bf16.mxu1 %v11803_v31 }
 0x25a   : > { %10897 = vmatpush3.bf16.msra.mxu0 %v11800_v30  ;;  %v3545_v30 = vor.u32 %v3544_v14, %v3541_v13  ;;  %v11846_v13 = vld [vmem:[%s14512_s25] sm:$0xff]  }
 0x25b   : > { %10898 = vmatprep.subr.bf16.mxu0 %v11802_v58  ;;  %10917 = vmatpush3.bf16.msra.mxu1 %v11803_v31  ;;  %v3559_v31 = vor.u32 %v3558_v15, %v3555_v34  ;;  %v11844_v34 = vld [vmem:[%s14512_s25 + $0x208] sm:$0xff]   ;;  %v11847_v15 = vld [vmem:[#allocation2 + $0x78] ss:$8 sps:$4 sm:$0xff]  }
 0x25c   : > { %10918 = vmatprep.subr.bf16.mxu1 %v11805_v10 }
 0x25e   : > { %10899 = vmatpush3.bf16.msra.mxu0 %v11802_v58  ;;  %v3546_v58 = vrot.slane %v3545_v30, 4  ;;  %v3992_v30 = vld [vmem:[#allocation2 + $0xb0] sm:$0xf] }
 0x25f   : > { %10924 = vmatprep.subr.bf16.mxu0 %v11804_v40  ;;  %10919 = vmatpush3.bf16.msra.mxu1 %v11805_v10  ;;  %v3560_v10 = vrot.slane %v3559_v31, 4  ;;  %v11851_v31 = vld [vmem:[%s14512_s25 + $0x10] sm:$0xff]  }
 0x260   : > { %10944 = vmatprep.subr.bf16.mxu1 %v11808_v37 }
 0x261   : > { %10901 = vmatmul.mubr.bf16.vlgmr.msra.gmra.mrb[28].mxu0 %v9503_v42  ;;  %v3565_v42 = vsel %vm13222_vm10, %v3560_v10, %v3564_v36  ;;  %v4023_v36 = vshrl.u32 %v3990_v28, 16  ;;  %v4037_v10 = vshrl.u32 %v3992_v30, 16 }
 0x262   : > { %10925 = vmatpush3.bf16.msra.mxu0 %v11804_v40  ;;  %10940 = vmatprep.mubr.bf16.mxu0 %v11821_v45  ;;  %v11823_v40 = vld [vmem:[#allocation2 + $0x18] ss:$8 sps:$4 sm:$0xff]   ;;  %v11826_v45 = vld [vmem:[%s14512_s25 + $0x188] sm:$0xff]  }
 0x263   : > { %10926 = vmatprep.subr.bf16.mxu0 %v11806_v12  ;;  %10921 = vmatmul.mubr.bf16.vlgmr.msra.gmra.mrb[28].mxu1 %v11809_v44  ;;  %v11839_v44 = vld [vmem:[#allocation2 + $0x98] ss:$8 sps:$4 sm:$0xff]   ;;  %v4039_v49 = vrot.slane %v4037_v10, 4 }
 0x264   : > { %10945 = vmatpush3.bf16.msra.mxu1 %v11808_v37  ;;  %10960 = vmatprep.mubr.bf16.mxu1 %v9580_v6  ;;  %v3551_v37 = vsel %vm13222_vm10, %v3546_v58, %v3550_v21  ;;  %v3993_v21 = vld [vmem:[#allocation2 + $0xb4] sm:$0x1]  ;;  %v4026_v58 = vshll.u32 %v3990_v28, 16 }
 0x265   : > { %10946 = vmatprep.subr.bf16.mxu1 %v11811_v46 }
 0x266   : > { %10927 = vmatpush3.bf16.msra.mxu0 %v11806_v12  ;;  %v11827_v12 = vld [vmem:[%s14512_s25 + $0x1c0] sm:$0xff]  }
 0x267   : > { %10928 = vmatprep.subr.bf16.mxu0 %v11810_v52 }
 0x268   : > { %10947 = vmatpush3.bf16.msra.mxu1 %v11811_v46  ;;  %v9581_v46 = vcombine.low %v3551_v37, %v3565_v42  ;;  %v11852_v37 = vld [vmem:[%s14512_s25 + $0x220] sm:$0xff]   ;;  %v11853_v42 = vld [vmem:[%s14512_s25 + $0x18] sm:$0xff]  }
 0x269   : > { %10948 = vmatprep.subr.bf16.mxu1 %v11813_v57 }
 0x26a   : > { %10929 = vmatpush3.bf16.msra.mxu0 %v11810_v52  ;;  %v3998_v52 = vshll.u32 %v3986_v18, 16  ;;  %v4028_v18 = vrot.slane %v4026_v58, 5 }
 0x26b   : > { %10930 = vmatprep.subr.bf16.mxu0 %v11812_v1 }
 0x26c   : > { %10949 = vmatpush3.bf16.msra.mxu1 %v11813_v57  ;;  %v3987_v57 = vld [vmem:[#allocation2 + $0x9c] sm:$0x1]  ;;  %v4000_v61 = vrot.slane %v3998_v52, 5 }
 0x26d   : > { %10950 = vmatprep.subr.bf16.mxu1 %v11815_v32 }
 0x26e   : > { %10931 = vmatpush3.bf16.msra.mxu0 %v11812_v1  ;;  %v4014_v1 = vrot.slane %v4012_v54, 5 }
 0x26f   : > { %10932 = vmatprep.subr.bf16.mxu0 %v11814_v19 }
 0x270   : > { %10951 = vmatpush3.bf16.msra.mxu1 %v11815_v32  ;;  %v4004_v32 = vshll.u32 %v3987_v57, 16  ;;  %v4015_v26 = vor.u32 %v4014_v1, %v4011_v63 }
 0x271   : > { %10952 = vmatprep.subr.bf16.mxu1 %v11817_v41 }
 0x272   : > { %10933 = vmatpush3.bf16.msra.mxu0 %v11814_v19  ;;  %v4001_v19 = vor.u32 %v4000_v61, %v3997_v60  ;;  %v4006_v6 = vrot.slane %v4004_v32, 5  ;;  %v4016_v22 = vrot.slane %v4015_v26, 4  ;;  %v11857_v60 = vld [vmem:[%s14512_s25 + $0x28] sm:$0xff]   ;;  %v4354_v61 = vld [vmem:[#allocation2 + $0x9c] sm:$0x1] }
 0x273   : > { %10934 = vmatprep.subr.bf16.mxu0 %v11816_v9  ;;  %v4551_v26 = vld [vmem:[#allocation2 + $0x6c] sm:$0x1] }
 0x274   : > { %10953 = vmatpush3.bf16.msra.mxu1 %v11817_v41  ;;  %v4002_v7 = vrot.slane %v4001_v19, 4  ;;  %v4021_v11 = vsel %vm13222_vm10, %v4016_v22, %v4020_v51  ;;  %v4549_v19 = vld [vmem:[#allocation2 + $0x64] sm:$0x1]  ;;  %v4369_v22 = vshll.u32 %v4352_v29, 16  ;;  %v11871_v29 = vld [vmem:[%s14512_s25 + $0x98] sm:$0xff]  }
 0x275   : > { %10954 = vmatprep.subr.bf16.mxu1 %v11819_v16 }
 0x276   : > { %10935 = vmatpush3.bf16.msra.mxu0 %v11816_v9  ;;  %v11842_v9 = vld [vmem:[%s14512_s25 + $0x200] sm:$0xff]   ;;  %v4007_v41 = vsel %vm13222_vm10, %v4002_v7, %v4006_v6 }
 0x277   : > { %10936 = vmatprep.subr.bf16.mxu0 %v11818_v25  ;;  %v9658_v14 = vcombine.low %v4007_v41, %v4021_v11 }
 0x278   : > { %10955 = vmatpush3.bf16.msra.mxu1 %v11819_v16  ;;  %v11863_v16 = vld [vmem:[#allocation2 + $0x60] ss:$8 sps:$4 sm:$0xff]  }
 0x279   : > { %10956 = vmatprep.subr.bf16.mxu1 %v11822_v0 }
 0x27a   : > { %10937 = vmatpush3.bf16.msra.mxu0 %v11818_v25  ;;  %v11849_v25 = vld [vmem:[%s14512_s25 + $0x8] sm:$0xff]  }
 0x27b   : > { %10938 = vmatprep.subr.bf16.mxu0 %v11820_v33 }
 0x27c   : > { %10957 = vmatpush3.bf16.msra.mxu1 %v11822_v0  ;;  %v11850_v0 = vld [vmem:[%s14512_s25 + $0x218] sm:$0xff]  }
 0x27d   : > { %10958 = vmatprep.subr.bf16.mxu1 %v11825_v38 }
 0x27e   : > { %10939 = vmatpush3.bf16.msra.mxu0 %v11820_v33  ;;  %v3991_v33 = vld [vmem:[#allocation2 + $0xac] sm:$0x1] }
 0x27f   : > { %10964 = vmatprep.subr.bf16.mxu0 %v11824_v39 }
 0x280   : > { %10959 = vmatpush3.bf16.msra.mxu1 %v11825_v38  ;;  %v4040_v38 = vshll.u32 %v3992_v30, 16  ;;  %v11861_v30 = vld [vmem:[%s14512_s25 + $0x38] sm:$0xff]  }
 0x281   : > { %10941 = vmatmul.mubr.bf16.vlgmr.msra.gmra.mrb[32].mxu0 %v11823_v40  ;;  %10984 = vmatprep.subr.bf16.mxu1 %v11827_v12  ;;  %v4353_v40 = vld [vmem:[#allocation2 + $0x98] sm:$0xf] }
 0x282   : > { %10965 = vmatpush3.bf16.msra.mxu0 %v11824_v39  ;;  %10980 = vmatprep.mubr.bf16.mxu0 %v11839_v44  ;;  %v4351_v39 = vld [vmem:[#allocation2 + $0x90] sm:$0xf]  ;;  %v4046_v44 = vshll.u32 %v3993_v21, 16 }
 0x283   : > { %10966 = vmatprep.subr.bf16.mxu0 %v11826_v45  ;;  %10961 = vmatmul.mubr.bf16.vlgmr.msra.gmra.mrb[32].mxu1 %v9581_v46  ;;  %v4550_v46 = vld [vmem:[#allocation2 + $0x68] sm:$0xf] }
 0x284   : > { %10985 = vmatpush3.bf16.msra.mxu1 %v11827_v12  ;;  %11000 = vmatprep.mubr.bf16.mxu1 %v11845_v17  ;;  %v4032_v12 = vshll.u32 %v3991_v33, 16  ;;  %v4360_v17 = vshrl.u32 %v4351_v39, 16  ;;  %v4571_v53 = vshrl.u32 %v4550_v46, 16  ;;  %v4574_v54 = vshll.u32 %v4550_v46, 16  ;;  %v11862_v46 = vld [vmem:[%s14512_s25 + $0x48] sm:$0xff]  }
 0x285   : > { %10986 = vmatprep.subr.bf16.mxu1 %v11829_v59  ;;  %v4048_v57 = vrot.slane %v4046_v44, 5 }
 0x286   : > { %10967 = vmatpush3.bf16.msra.mxu0 %v11826_v45  ;;  %v4548_v45 = vld [vmem:[#allocation2 + $0x60] sm:$0xf]  ;;  %v4362_v63 = vrot.slane %v4360_v17, 4  ;;  %v4573_v51 = vrot.slane %v4571_v53, 4  ;;  %v4576_v7 = vrot.slane %v4574_v54, 5 }
 0x287   : > { %10968 = vmatprep.subr.bf16.mxu0 %v11828_v47  ;;  %v4557_v50 = vshrl.u32 %v4548_v45, 16  ;;  %v4560_v52 = vshll.u32 %v4548_v45, 16 }
 0x288   : > { %10987 = vmatpush3.bf16.msra.mxu1 %v11829_v59  ;;  %v4363_v59 = vshll.u32 %v4351_v39, 16  ;;  %v11860_v39 = vld [vmem:[%s14512_s25 + $0x40] sm:$0xff]  }
 0x289   : > { %10988 = vmatprep.subr.bf16.mxu1 %v11831_v27  ;;  %v4562_v6 = vrot.slane %v4560_v52, 5 }
 0x28a   : > { %10969 = vmatpush3.bf16.msra.mxu0 %v11828_v47  ;;  %v4374_v47 = vshrl.u32 %v4353_v40, 16  ;;  %v4365_v1 = vrot.slane %v4363_v59, 5  ;;  %v11865_v59 = vld [vmem:[#allocation2 + $0x70] ss:$8 sps:$4 sm:$0xff]  }
 0x28b   : > { %10970 = vmatprep.subr.bf16.mxu0 %v11830_v48 }
 0x28c   : > { %10989 = vmatpush3.bf16.msra.mxu1 %v11831_v27  ;;  %v4377_v27 = vshll.u32 %v4353_v40, 16  ;;  %v4366_v41 = vor.u32 %v4365_v1, %v4362_v63  ;;  %v4554_v63 = vld [vmem:[#allocation2 + $0x78] sm:$0xf] }
 0x28d   : > { %10990 = vmatprep.subr.bf16.mxu1 %v11833_v35 }
 0x28e   : > { %10971 = vmatpush3.bf16.msra.mxu0 %v11830_v48  ;;  %v4025_v48 = vrot.slane %v4023_v36, 4  ;;  %v4379_v32 = vrot.slane %v4377_v27, 5 }
 0x28f   : > { %10972 = vmatprep.subr.bf16.mxu0 %v11832_v43 }
 0x290   : > { %10991 = vmatpush3.bf16.msra.mxu1 %v11833_v35  ;;  %v4042_v35 = vrot.slane %v4040_v38, 5  ;;  %v4029_v3 = vor.u32 %v4028_v18, %v4025_v48  ;;  %v4355_v48 = vld [vmem:[#allocation2 + $0xa0] sm:$0xf]  ;;  %v4357_v18 = vld [vmem:[#allocation2 + $0xa8] sm:$0xf] }
 0x291   : > { %10992 = vmatprep.subr.bf16.mxu1 %v11835_v56  ;;  %v4391_v52 = vshll.u32 %v4355_v48, 16  ;;  %v4402_v53 = vshrl.u32 %v4357_v18, 16  ;;  %v4405_v54 = vshll.u32 %v4357_v18, 16 }
 0x292   : > { %10973 = vmatpush3.bf16.msra.mxu0 %v11832_v43  ;;  %v11855_v43 = vld [vmem:[%s14512_s25 + $0x20] sm:$0xff]  }
 0x293   : > { %10974 = vmatprep.subr.bf16.mxu0 %v11834_v55 }
 0x294   : > { %10993 = vmatpush3.bf16.msra.mxu1 %v11835_v56  ;;  %v4034_v56 = vrot.slane %v4032_v12, 5  ;;  %v11864_v12 = vld [vmem:[%s14512_s25 + $0x80] sm:$0xff]  }
 0x295   : > { %10994 = vmatprep.subr.bf16.mxu1 %v11837_v2 }
 0x296   : > { %10975 = vmatpush3.bf16.msra.mxu0 %v11834_v55  ;;  %v11854_v55 = vld [vmem:[%s14512_s25 + $0x228] sm:$0xff]  }
 0x297   : > { %10976 = vmatprep.subr.bf16.mxu0 %v11836_v4 }
 0x298   : > { %10995 = vmatpush3.bf16.msra.mxu1 %v11837_v2  ;;  %v4376_v2 = vrot.slane %v4374_v47, 4  ;;  %v11867_v47 = vld [vmem:[%s14512_s25 + $0x88] sm:$0xff]  }
 0x299   : > { %10996 = vmatprep.subr.bf16.mxu1 %v11840_v20 }
 0x29a   : > { %10977 = vmatpush3.bf16.msra.mxu0 %v11836_v4  ;;  %v4043_v4 = vor.u32 %v4042_v35, %v4039_v49  ;;  %v4380_v11 = vor.u32 %v4379_v32, %v4376_v2  ;;  %v11866_v49 = vld [vmem:[%s14512_s25 + $0x50] sm:$0xff]   ;;  %v13444_v35 = vld [vmem:[#allocation2 + $0xa4] sm:$0x1]  ;;  %v4393_v2 = vrot.slane %v4391_v52, 5  ;;  %v4404_v32 = vrot.slane %v4402_v53, 4 }
 0x29b   : > { %10978 = vmatprep.subr.bf16.mxu0 %v11838_v5 }
 0x29c   : > { %10997 = vmatpush3.bf16.msra.mxu1 %v11840_v20  ;;  %v4559_v20 = vrot.slane %v4557_v50, 4  ;;  %v4388_v50 = vshrl.u32 %v4355_v48, 16 }
 0x29d   : > { %10998 = vmatprep.subr.bf16.mxu1 %v11843_v8 }
 0x29e   : > { %10979 = vmatpush3.bf16.msra.mxu0 %v11838_v5  ;;  %v11856_v5 = vld [vmem:[%s14512_s25 + $0x230] sm:$0xff]   ;;  %v4390_v1 = vrot.slane %v4388_v50, 4 }
 0x29f   : > { %11004 = vmatprep.subr.bf16.mxu0 %v11842_v9 }
 0x2a0   : > { %10999 = vmatpush3.bf16.msra.mxu1 %v11843_v8  ;;  %v4383_v8 = vshll.u32 %v4354_v61, 16 }
 0x2a1   : > { %10981 = vmatmul.mubr.bf16.vlgmr.msra.gmra.mrb[36].mxu0 %v11841_v23  ;;  %11024 = vmatprep.subr.bf16.mxu1 %v11846_v13  ;;  %v4566_v23 = vshll.u32 %v4549_v19, 16 }
 0x2a2   : > { %11005 = vmatpush3.bf16.msra.mxu0 %v11842_v9  ;;  %11020 = vmatprep.mubr.bf16.mxu0 %v9658_v14  ;;  %v11859_v9 = vld [vmem:[%s14512_s25 + $0x30] sm:$0xff]   ;;  %v11858_v14 = vld [vmem:[%s14512_s25 + $0x238] sm:$0xff]   ;;  %v4385_v28 = vrot.slane %v4383_v8, 5 }
 0x2a3   : > { %11006 = vmatprep.subr.bf16.mxu0 %v11844_v34  ;;  %11001 = vmatmul.mubr.bf16.vlgmr.msra.gmra.mrb[36].mxu1 %v11847_v15  ;;  %v4044_v15 = vrot.slane %v4043_v4, 4  ;;  %v4568_v33 = vrot.slane %v4566_v23, 5  ;;  %v11870_v4 = vld [vmem:[%s14512_s25 + $0x60] sm:$0xff]  }
 0x2a4   : > { %11025 = vmatpush3.bf16.msra.mxu1 %v11846_v13  ;;  %11040 = vmatprep.mubr.bf16.mxu1 %v11863_v16  ;;  %v4580_v13 = vshll.u32 %v4551_v26, 16  ;;  %v4563_v16 = vor.u32 %v4562_v6, %v4559_v20  ;;  %v4599_v20 = vshrl.u32 %v4554_v63, 16  ;;  %v4602_v6 = vshll.u32 %v4554_v63, 16 }
 0x2a5   : > { %11026 = vmatprep.subr.bf16.mxu1 %v11849_v25  ;;  %v4049_v38 = vsel %vm13222_vm10, %v4044_v15, %v4048_v57  ;;  %v11868_v57 = vld [vmem:[%s14512_s25 + $0x58] sm:$0xff]  }
 0x2a6   : > { %11007 = vmatpush3.bf16.msra.mxu0 %v11844_v34  ;;  %v4030_v34 = vrot.slane %v4029_v3, 4  ;;  %v4582_v21 = vrot.slane %v4580_v13, 5  ;;  %v4564_v36 = vrot.slane %v4563_v16, 4  ;;  %v4407_v3 = vrot.slane %v4405_v54, 5  ;;  %v4555_v15 = vld [vmem:[#allocation2 + $0x7c] sm:$0x1] }
 0x2a7   : > { %11008 = vmatprep.subr.bf16.mxu0 %v11848_v24  ;;  %v4601_v16 = vrot.slane %v4599_v20, 4  ;;  %v4890_v20 = vld [vmem:[#allocation2 + $0x48] sm:$0xf] }
 0x2a8   : > { %11027 = vmatpush3.bf16.msra.mxu1 %v11849_v25  ;;  %v4577_v25 = vor.u32 %v4576_v7, %v4573_v51  ;;  %v4035_v10 = vsel %vm13222_vm10, %v4030_v34, %v4034_v56  ;;  %v4569_v44 = vsel %vm13222_vm10, %v4564_v36, %v4568_v33  ;;  %v4552_v56 = vld [vmem:[#allocation2 + $0x70] sm:$0xf]  ;;  %v4888_v51 = vld [vmem:[#allocation2 + $0x40] sm:$0xf]  ;;  %v4553_v34 = vld [vmem:[#allocation2 + $0x74] sm:$0x1]  ;;  %v4408_v36 = vor.u32 %v4407_v3, %v4404_v32 }
 0x2a9   : > { %11028 = vmatprep.subr.bf16.mxu1 %v11851_v31  ;;  %v4585_v19 = vshrl.u32 %v4552_v56, 16  ;;  %v4588_v26 = vshll.u32 %v4552_v56, 16  ;;  %v11873_v7 = vld [vmem:[%s14512_s25 + $0xa0] sm:$0xff]   ;;  %v11880_v3 = vld [vmem:[%s14512_s25 + $0xc8] sm:$0xff]  }
 0x2aa   : > { %11009 = vmatpush3.bf16.msra.mxu0 %v11848_v24  ;;  %v4371_v24 = vrot.slane %v4369_v22, 5  ;;  %v4578_v58 = vrot.slane %v4577_v25, 4  ;;  %v4604_v25 = vrot.slane %v4602_v6, 5  ;;  %v11885_v6 = vld [vmem:[%s14512_s25 + $0x110] sm:$0xff]  }
 0x2ab   : > { %11010 = vmatprep.subr.bf16.mxu0 %v11850_v0  ;;  %v4587_v23 = vrot.slane %v4585_v19, 4  ;;  %v4590_v13 = vrot.slane %v4588_v26, 5  ;;  %v11882_v26 = vld [vmem:[%s14512_s25 + $0xd0] sm:$0xff]  }
 0x2ac   : > { %11029 = vmatpush3.bf16.msra.mxu1 %v11851_v31  ;;  %v4367_v31 = vrot.slane %v4366_v41, 4  ;;  %v4583_v45 = vsel %vm13222_vm10, %v4578_v58, %v4582_v21  ;;  %v4909_v41 = vshrl.u32 %v4888_v51, 16  ;;  %v4394_v21 = vor.u32 %v4393_v2, %v4390_v1  ;;  %v4889_v58 = vld [vmem:[#allocation2 + $0x44] sm:$0x1]  ;;  %v11893_v1 = vld [vmem:[#allocation2 + $0x8] ss:$8 sps:$4 sm:$0xff]  }
 0x2ad   : > { %11030 = vmatprep.subr.bf16.mxu1 %v11853_v42  ;;  %v9722_v27 = vcombine.low %v4569_v44, %v4583_v45 }
 0x2ae   : > { %11011 = vmatpush3.bf16.msra.mxu0 %v11850_v0  ;;  %v4381_v0 = vrot.slane %v4380_v11, 4  ;;  %v4372_v40 = vsel %vm13222_vm10, %v4367_v31, %v4371_v24  ;;  %v4912_v11 = vshll.u32 %v4888_v51, 16  ;;  %v4887_v24 = vld [vmem:[#allocation2 + $0x3c] sm:$0x1]  ;;  %v11874_v31 = vld [vmem:[%s14512_s25 + $0x70] sm:$0xff]  }
 0x2af   : > { %11012 = vmatprep.subr.bf16.mxu0 %v11852_v37  ;;  %v4904_v45 = vshll.u32 %v4887_v24, 16  ;;  %v11884_v51 = vld [vmem:[%s14512_s25 + $0xd8] sm:$0xff]   ;;  %v11889_v24 = vld [vmem:[%s14512_s25 + $0x120] sm:$0xff]  }
 0x2b0   : > { %11031 = vmatpush3.bf16.msra.mxu1 %v11853_v42  ;;  %v9659_v42 = vcombine.low %v4035_v10, %v4049_v38  ;;  %v4914_v33 = vrot.slane %v4912_v11, 5  ;;  %v5085_v11 = vld [vmem:[#allocation2 + $0x10] sm:$0xf] }
 0x2b1   : > { %11032 = vmatprep.subr.bf16.mxu1 %v11855_v43  ;;  %v4906_v52 = vrot.slane %v4904_v45, 5 }
 0x2b2   : > { %11013 = vmatpush3.bf16.msra.mxu0 %v11852_v37  ;;  %v4386_v37 = vsel %vm13222_vm10, %v4381_v0, %v4385_v28  ;;  %v4911_v0 = vrot.slane %v4909_v41, 4  ;;  %v5083_v41 = vld [vmem:[#allocation2 + $0x8] sm:$0xf] }
 0x2b3   : > { %11014 = vmatprep.subr.bf16.mxu0 %v11854_v55  ;;  %v9696_v17 = vcombine.low %v4372_v40, %v4386_v37  ;;  %v4594_v40 = vshll.u32 %v4553_v34, 16  ;;  %v4605_v37 = vor.u32 %v4604_v25, %v4601_v16  ;;  %v5092_v34 = vshrl.u32 %v5083_v41, 16 }
 0x2b4   : > { %11033 = vmatpush3.bf16.msra.mxu1 %v11855_v43  ;;  %v13446_v43 = vld [vmem:[#allocation2 + $0xac] sm:$0x1]  ;;  %v5106_v16 = vshrl.u32 %v5085_v11, 16  ;;  %v5109_v25 = vshll.u32 %v5085_v11, 16 }
 0x2b5   : > { %11034 = vmatprep.subr.bf16.mxu1 %v11857_v60  ;;  %v4411_v61 = vshll.u32 %v13446_v43, 16  ;;  %v4596_v18 = vrot.slane %v4594_v40, 5  ;;  %v11879_v43 = vld [vmem:[%s14512_s25 + $0xb8] sm:$0xff]  }
 0x2b6   : > { %11015 = vmatpush3.bf16.msra.mxu0 %v11854_v55  ;;  %v11869_v55 = vld [vmem:[%s14512_s25 + $0x90] sm:$0xff]  }
 0x2b7   : > { %11016 = vmatprep.subr.bf16.mxu0 %v11856_v5  ;;  %v4413_v38 = vrot.slane %v4411_v61, 5 }
 0x2b8   : > { %11035 = vmatpush3.bf16.msra.mxu1 %v11857_v60  ;;  %v4397_v60 = vshll.u32 %v13444_v35, 16 }
 0x2b9   : > { %11036 = vmatprep.subr.bf16.mxu1 %v11859_v9 }
 0x2ba   : > { %11017 = vmatpush3.bf16.msra.mxu0 %v11856_v5  ;;  %v4886_v5 = vld [vmem:[#allocation2 + $0x38] sm:$0xf]  ;;  %v4399_v10 = vrot.slane %v4397_v60, 5 }
 0x2bb   : > { %11018 = vmatprep.subr.bf16.mxu0 %v11858_v14  ;;  %v4895_v22 = vshrl.u32 %v4886_v5, 16  ;;  %v4898_v8 = vshll.u32 %v4886_v5, 16  ;;  %v11883_v5 = vld [vmem:[%s14512_s25 + $0x108] sm:$0xff]  }
 0x2bc   : > { %11037 = vmatpush3.bf16.msra.mxu1 %v11859_v9  ;;  %v11872_v9 = vld [vmem:[%s14512_s25 + $0x68] sm:$0xff]  }
 0x2bd   : > { %11038 = vmatprep.subr.bf16.mxu1 %v11861_v30  ;;  %v4897_v28 = vrot.slane %v4895_v22, 4  ;;  %v4923_v22 = vshrl.u32 %v4890_v20, 16 }
 0x2be   : > { %11019 = vmatpush3.bf16.msra.mxu0 %v11858_v14  ;;  %v11875_v14 = vld [vmem:[%s14512_s25 + $0xa8] sm:$0xff]  }
 0x2bf   : > { %11044 = vmatprep.subr.bf16.mxu0 %v11860_v39 }
 0x2c0   : > { %11039 = vmatpush3.bf16.msra.mxu1 %v11861_v30  ;;  %v4900_v30 = vrot.slane %v4898_v8, 5  ;;  %v4926_v8 = vshll.u32 %v4890_v20, 16 }
 0x2c1   : > { %11021 = vmatmul.mubr.bf16.vlgmr.msra.gmra.mrb[40].mxu0 %v9659_v42  ;;  %11064 = vmatprep.subr.bf16.mxu1 %v11864_v12  ;;  %v4608_v42 = vshll.u32 %v4555_v15, 16  ;;  %v5095_v15 = vshll.u32 %v5083_v41, 16 }
 0x2c2   : > { %11045 = vmatpush3.bf16.msra.mxu0 %v11860_v39  ;;  %11060 = vmatprep.mubr.bf16.mxu0 %v9696_v17  ;;  %v4591_v39 = vor.u32 %v4590_v13, %v4587_v23  ;;  %v4901_v44 = vor.u32 %v4900_v30, %v4897_v28  ;;  %v4918_v17 = vshll.u32 %v4889_v58, 16  ;;  %v11886_v23 = vld [vmem:[%s14512_s25 + $0xe0] sm:$0xff]   ;;  %v4891_v28 = vld [vmem:[#allocation2 + $0x4c] sm:$0x1]  ;;  %v4893_v30 = vld [vmem:[#allocation2 + $0x54] sm:$0x1] }
 0x2c3   : > { %11046 = vmatprep.subr.bf16.mxu0 %v11862_v46  ;;  %11041 = vmatmul.mubr.bf16.vlgmr.msra.gmra.mrb[40].mxu1 %v11865_v59  ;;  %v4395_v59 = vrot.slane %v4394_v21, 4  ;;  %v4610_v35 = vrot.slane %v4608_v42, 5  ;;  %v5094_v58 = vrot.slane %v5092_v34, 4  ;;  %v4932_v40 = vshll.u32 %v4891_v28, 16  ;;  %v5084_v42 = vld [vmem:[#allocation2 + $0xc] sm:$0x1] }
 0x2c4   : > { %11065 = vmatpush3.bf16.msra.mxu1 %v11864_v12  ;;  %11080 = vmatprep.mubr.bf16.mxu1 %v9722_v27  ;;  %v11877_v12 = vld [vmem:[%s14512_s25 + $0xb0] sm:$0xff]   ;;  %v11876_v27 = vld [vmem:[%s14512_s25 + $0x78] sm:$0xff]   ;;  %v4592_v48 = vrot.slane %v4591_v39, 4  ;;  %v4902_v50 = vrot.slane %v4901_v44, 4  ;;  %v4920_v54 = vrot.slane %v4918_v17, 5  ;;  %v5111_v39 = vrot.slane %v5109_v25, 5 }
 0x2c5   : > { %11066 = vmatprep.subr.bf16.mxu1 %v11867_v47  ;;  %v11891_v44 = vld [vmem:[%s14512_s25 + $0x128] sm:$0xff]   ;;  %v11890_v17 = vld [vmem:[%s14512_s25 + $0xf0] sm:$0xff]  }
 0x2c6   : > { %11047 = vmatpush3.bf16.msra.mxu0 %v11862_v46  ;;  %v4915_v46 = vor.u32 %v4914_v33, %v4911_v0  ;;  %v4597_v60 = vsel %vm13222_vm10, %v4592_v48, %v4596_v18  ;;  %v4907_v2 = vsel %vm13222_vm10, %v4902_v50, %v4906_v52  ;;  %v4928_v0 = vrot.slane %v4926_v8, 5  ;;  %v11894_v18 = vld [vmem:[%s14512_s25 + $0x130] sm:$0xff]   ;;  %v5087_v52 = vld [vmem:[#allocation2 + $0x18] sm:$0xf]  ;;  %v11901_v34 = vld [vmem:[%s14512_s25 + $0x188] sm:$0xff]  }
 0x2c7   : > { %11048 = vmatprep.subr.bf16.mxu0 %v11866_v49  ;;  %v11915_v25 = vld [vmem:[#allocation2 + $0x68] ss:$8 sps:$4 sm:$0xff]  }
 0x2c8   : > { %11067 = vmatpush3.bf16.msra.mxu1 %v11867_v47  ;;  %v4409_v47 = vrot.slane %v4408_v36, 4  ;;  %v4916_v53 = vrot.slane %v4915_v46, 4  ;;  %v11888_v36 = vld [vmem:[%s14512_s25 + $0xe8] sm:$0xff]   ;;  %v11900_v28 = vld [vmem:[%s14512_s25 + $0x150] sm:$0xff]  }
 0x2c9   : > { %11068 = vmatprep.subr.bf16.mxu1 %v11869_v55 }
 0x2ca   : > { %11049 = vmatpush3.bf16.msra.mxu0 %v11866_v49  ;;  %v4606_v49 = vrot.slane %v4605_v37, 4  ;;  %v4414_v56 = vsel %vm13222_vm10, %v4409_v47, %v4413_v38  ;;  %v4921_v32 = vsel %vm13222_vm10, %v4916_v53, %v4920_v54  ;;  %v5108_v38 = vrot.slane %v5106_v16, 4  ;;  %v5089_v53 = vld [vmem:[#allocation2 + $0x20] sm:$0xf]  ;;  %v11892_v54 = vld [vmem:[%s14512_s25 + $0xf8] sm:$0xff]  }
 0x2cb   : > { %11050 = vmatprep.subr.bf16.mxu0 %v11868_v57  ;;  %v9774_v19 = vcombine.low %v4907_v2, %v4921_v32  ;;  %v4946_v37 = vshll.u32 %v4893_v30, 16  ;;  %v5101_v47 = vshll.u32 %v5084_v42, 16  ;;  %v5123_v2 = vshll.u32 %v5087_v52, 16 }
 0x2cc   : > { %11069 = vmatpush3.bf16.msra.mxu1 %v11869_v55  ;;  %v4400_v55 = vsel %vm13222_vm10, %v4395_v59, %v4399_v10  ;;  %v4611_v61 = vsel %vm13222_vm10, %v4606_v49, %v4610_v35  ;;  %v5097_v10 = vrot.slane %v5095_v15, 5  ;;  %v4934_v49 = vrot.slane %v4932_v40, 5 }
 0x2cd   : > { %11070 = vmatprep.subr.bf16.mxu1 %v11871_v29  ;;  %v9697_v63 = vcombine.low %v4400_v55, %v4414_v56  ;;  %v4948_v35 = vrot.slane %v4946_v37, 5  ;;  %v11897_v55 = vld [vmem:[%s14512_s25 + $0x138] sm:$0xff]   ;;  %v5134_v32 = vshrl.u32 %v5089_v53, 16 }
 0x2ce   : > { %11051 = vmatpush3.bf16.msra.mxu0 %v11868_v57  ;;  %v11878_v57 = vld [vmem:[%s14512_s25 + $0xc0] sm:$0xff]   ;;  %v5098_v59 = vor.u32 %v5097_v10, %v5094_v58 }
 0x2cf   : > { %11052 = vmatprep.subr.bf16.mxu0 %v11870_v4  ;;  %v5136_v41 = vrot.slane %v5134_v32, 4 }
 0x2d0   : > { %11071 = vmatpush3.bf16.msra.mxu1 %v11871_v29  ;;  %v11881_v29 = vld [vmem:[%s14512_s25 + $0x100] sm:$0xff]   ;;  %v5099_v56 = vrot.slane %v5098_v59, 4 }
 0x2d1   : > { %11072 = vmatprep.subr.bf16.mxu1 %v11873_v7  ;;  %v11904_v59 = vld [vmem:[%s14512_s25 + $0x160] sm:$0xff]  }
 0x2d2   : > { %11053 = vmatpush3.bf16.msra.mxu0 %v11870_v4  ;;  %v9723_v4 = vcombine.low %v4597_v60, %v4611_v61  ;;  %v5088_v61 = vld [vmem:[#allocation2 + $0x1c] sm:$0x1] }
 0x2d3   : > { %11054 = vmatprep.subr.bf16.mxu0 %v11872_v9 }
 0x2d4   : > { %11073 = vmatpush3.bf16.msra.mxu1 %v11873_v7  ;;  %v4892_v7 = vld [vmem:[#allocation2 + $0x50] sm:$0xf] }
 0x2d5   : > { %11074 = vmatprep.subr.bf16.mxu1 %v11875_v14  ;;  %v4937_v13 = vshrl.u32 %v4892_v7, 16 }
 0x2d6   : > { %11055 = vmatpush3.bf16.msra.mxu0 %v11872_v9  ;;  %v11887_v9 = vld [vmem:[%s14512_s25 + $0x118] sm:$0xff]  }
 0x2d7   : > { %11056 = vmatprep.subr.bf16.mxu0 %v11874_v31  ;;  %v4939_v33 = vrot.slane %v4937_v13, 4 }
 0x2d8   : > { %11075 = vmatpush3.bf16.msra.mxu1 %v11875_v14  ;;  %v4940_v14 = vshll.u32 %v4892_v7, 16 }
 0x2d9   : > { %11076 = vmatprep.subr.bf16.mxu1 %v11877_v12 }
 0x2da   : > { %11057 = vmatpush3.bf16.msra.mxu0 %v11874_v31  ;;  %v4925_v31 = vrot.slane %v4923_v22, 4  ;;  %v4942_v21 = vrot.slane %v4940_v14, 5 }
 0x2db   : > { %11058 = vmatprep.subr.bf16.mxu0 %v11876_v27 }
 0x2dc   : > { %11077 = vmatpush3.bf16.msra.mxu1 %v11877_v12  ;;  %v5086_v12 = vld [vmem:[#allocation2 + $0x14] sm:$0x1]  ;;  %v4929_v45 = vor.u32 %v4928_v0, %v4925_v31  ;;  %v4943_v46 = vor.u32 %v4942_v21, %v4939_v33  ;;  %v5422_v0 = vld [vmem:[#allocation2 + $0x9c] sm:$0x1]  ;;  %v5423_v33 = vld [vmem:[#allocation2 + $0xa0] sm:$0xf] }
 0x2dd   : > { %11078 = vmatprep.subr.bf16.mxu1 %v11879_v43  ;;  %v5115_v48 = vshll.u32 %v5086_v12, 16  ;;  %v11903_v21 = vld [vmem:[%s14512_s25 + $0x190] sm:$0xff]   ;;  %v5439_v37 = vshll.u32 %v5422_v0, 16  ;;  %v5444_v42 = vshrl.u32 %v5423_v33, 16  ;;  %v11905_v12 = vld [vmem:[%s14512_s25 + $0x198] sm:$0xff]  }
 0x2de   : > { %11059 = vmatpush3.bf16.msra.mxu0 %v11876_v27  ;;  %v5112_v27 = vor.u32 %v5111_v39, %v5108_v38  ;;  %v4944_v50 = vrot.slane %v4943_v46, 4  ;;  %v11902_v38 = vld [vmem:[%s14512_s25 + $0x158] sm:$0xff]  }
 0x2df   : > { %11084 = vmatprep.subr.bf16.mxu0 %v11878_v57  ;;  %v5117_v60 = vrot.slane %v5115_v48, 5  ;;  %v11907_v48 = vld [vmem:[%s14512_s25 + $0x1a0] sm:$0xff]  }
 0x2e0   : > { %11079 = vmatpush3.bf16.msra.mxu1 %v11879_v43  ;;  %v4930_v43 = vrot.slane %v4929_v45, 4  ;;  %v4949_v22 = vsel %vm13222_vm10, %v4944_v50, %v4948_v35  ;;  %v11906_v50 = vld [vmem:[%s14512_s25 + $0x168] sm:$0xff]  }
 0x2e1   : > { %11061 = vmatmul.mubr.bf16.vlgmr.msra.gmra.mrb[44].mxu0 %v9697_v63  ;;  %11104 = vmatprep.subr.bf16.mxu1 %v11881_v29  ;;  %v5090_v63 = vld [vmem:[#allocation2 + $0x24] sm:$0x1] }
 0x2e2   : > { %11085 = vmatpush3.bf16.msra.mxu0 %v11878_v57  ;;  %11100 = vmatprep.mubr.bf16.mxu0 %v11893_v1  ;;  %v5103_v57 = vrot.slane %v5101_v47, 5  ;;  %v5120_v1 = vshrl.u32 %v5087_v52, 16  ;;  %v5143_v20 = vshll.u32 %v5090_v63, 16  ;;  %v4935_v7 = vsel %vm13222_vm10, %v4930_v43, %v4934_v49  ;;  %v5618_v47 = vld [vmem:[#allocation2 + $0x68] sm:$0xf] }
 0x2e3   : > { %11086 = vmatprep.subr.bf16.mxu0 %v11880_v3  ;;  %11081 = vmatmul.mubr.bf16.vlgmr.msra.gmra.mrb[44].mxu1 %v9723_v4  ;;  %v11896_v4 = vld [vmem:[%s14512_s25 + $0x140] sm:$0xff]   ;;  %v9775_v14 = vcombine.low %v4935_v7, %v4949_v22  ;;  %v5627_v35 = vshrl.u32 %v5618_v47, 16  ;;  %v5630_v43 = vshll.u32 %v5618_v47, 16  ;;  %v11910_v7 = vld [vmem:[%s14512_s25 + $0x178] sm:$0xff]   ;;  %v5425_v47 = vld [vmem:[#allocation2 + $0xa8] sm:$0xf] }
 0x2e4   : > { %11105 = vmatpush3.bf16.msra.mxu1 %v11881_v29  ;;  %11120 = vmatprep.mubr.bf16.mxu1 %v9774_v19  ;;  %v5113_v29 = vrot.slane %v5112_v27, 4  ;;  %v5104_v19 = vsel %vm13222_vm10, %v5099_v56, %v5103_v57  ;;  %v5122_v8 = vrot.slane %v5120_v1, 4  ;;  %v13565_v16 = vrot.slane %v5143_v20, 5  ;;  %v5620_v27 = vld [vmem:[#allocation2 + $0x70] sm:$0xf] }
 0x2e5   : > { %11106 = vmatprep.subr.bf16.mxu1 %v11883_v5  ;;  %v5641_v52 = vshrl.u32 %v5620_v27, 16  ;;  %v5621_v56 = vld [vmem:[#allocation2 + $0x74] sm:$0x1] }
 0x2e6   : > { %11087 = vmatpush3.bf16.msra.mxu0 %v11880_v3  ;;  %v5137_v3 = vshll.u32 %v5089_v53, 16  ;;  %v5644_v53 = vshll.u32 %v5620_v27, 16 }
 0x2e7   : > { %11088 = vmatprep.subr.bf16.mxu0 %v11882_v26  ;;  %v5643_v1 = vrot.slane %v5641_v52, 4  ;;  %v11921_v52 = vld [vmem:[%s14512_s25 + $0x210] sm:$0xff]  }
 0x2e8   : > { %11107 = vmatpush3.bf16.msra.mxu1 %v11883_v5  ;;  %v5129_v5 = vshll.u32 %v5088_v61, 16  ;;  %v5139_v11 = vrot.slane %v5137_v3, 5  ;;  %v11908_v61 = vld [vmem:[%s14512_s25 + $0x170] sm:$0xff]   ;;  %v5650_v3 = vshll.u32 %v5621_v56, 16  ;;  %v5622_v56 = vld [vmem:[#allocation2 + $0x78] sm:$0xf] }
 0x2e9   : > { %11108 = vmatprep.subr.bf16.mxu1 %v11885_v6 }
 0x2ea   : > { %11089 = vmatpush3.bf16.msra.mxu0 %v11882_v26  ;;  %v5118_v26 = vsel %vm13222_vm10, %v5113_v29, %v5117_v60  ;;  %v13563_v15 = vrot.slane %v5129_v5, 5  ;;  %v5140_v31 = vor.u32 %v5139_v11, %v5136_v41  ;;  %v5629_v29 = vrot.slane %v5627_v35, 4 }
 0x2eb   : > { %11090 = vmatprep.subr.bf16.mxu0 %v11884_v51  ;;  %v9800_v13 = vcombine.low %v5104_v19, %v5118_v26  ;;  %v5632_v60 = vrot.slane %v5630_v43, 5  ;;  %v5441_v19 = vrot.slane %v5439_v37, 5  ;;  %v5458_v35 = vshrl.u32 %v5425_v47, 16  ;;  %v5426_v43 = vld [vmem:[#allocation2 + $0xac] sm:$0x1] }
 0x2ec   : > { %11109 = vmatpush3.bf16.msra.mxu1 %v11885_v6  ;;  %v11895_v6 = vld [vmem:[#allocation2 + $0x18] ss:$8 sps:$4 sm:$0xff]   ;;  %v13578_v40 = vrot.slane %v5140_v31, 4 }
 0x2ed   : > { %11110 = vmatprep.subr.bf16.mxu1 %v11887_v9 }
 0x2ee   : > { %11091 = vmatpush3.bf16.msra.mxu0 %v11884_v51  ;;  %v11899_v51 = vld [vmem:[%s14512_s25 + $0x180] sm:$0xff]   ;;  %v5146_v0 = vsel %vm13222_vm10, %v13578_v40, %v13565_v16 }
 0x2ef   : > { %11092 = vmatprep.subr.bf16.mxu0 %v11886_v23 }
 0x2f0   : > { %11111 = vmatpush3.bf16.msra.mxu1 %v11887_v9  ;;  %v5125_v9 = vrot.slane %v5123_v2, 5  ;;  %v5646_v2 = vrot.slane %v5644_v53, 5  ;;  %v11920_v53 = vld [vmem:[%s14512_s25 + $0x1d8] sm:$0xff]  }
 0x2f1   : > { %11112 = vmatprep.subr.bf16.mxu1 %v11889_v24 }
 0x2f2   : > { %11093 = vmatpush3.bf16.msra.mxu0 %v11886_v23  ;;  %v11898_v23 = vld [vmem:[%s14512_s25 + $0x148] sm:$0xff]   ;;  %v5126_v30 = vor.u32 %v5125_v9, %v5122_v8  ;;  %v5647_v8 = vor.u32 %v5646_v2, %v5643_v1  ;;  %v5623_v1 = vld [vmem:[#allocation2 + $0x7c] sm:$0x1]  ;;  %v5624_v2 = vld [vmem:[#allocation2 + $0x80] sm:$0xf] }
 0x2f3   : > { %11094 = vmatprep.subr.bf16.mxu0 %v11888_v36 }
 0x2f4   : > { %11113 = vmatpush3.bf16.msra.mxu1 %v11889_v24  ;;  %v5421_v24 = vld [vmem:[#allocation2 + $0x98] sm:$0xf]  ;;  %v13576_v39 = vrot.slane %v5126_v30, 4  ;;  %v5648_v30 = vrot.slane %v5647_v8, 4  ;;  %v11924_v8 = vld [vmem:[%s14512_s25 + $0x1e8] sm:$0xff]  }
 0x2f5   : > { %11114 = vmatprep.subr.bf16.mxu1 %v11891_v44  ;;  %v5430_v58 = vshrl.u32 %v5421_v24, 16  ;;  %v5433_v10 = vshll.u32 %v5421_v24, 16 }
 0x2f6   : > { %11095 = vmatpush3.bf16.msra.mxu0 %v11888_v36  ;;  %v5424_v36 = vld [vmem:[#allocation2 + $0xa4] sm:$0x1]  ;;  %v5132_v31 = vsel %vm13222_vm10, %v13576_v39, %v13563_v15 }
 0x2f7   : > { %11096 = vmatprep.subr.bf16.mxu0 %v11890_v17  ;;  %v5453_v45 = vshll.u32 %v5424_v36, 16  ;;  %v5432_v46 = vrot.slane %v5430_v58, 4  ;;  %v11916_v15 = vld [vmem:[%s14512_s25 + $0x200] sm:$0xff]   ;;  %v9801_v16 = vcombine.low %v5132_v31, %v5146_v0  ;;  %v11929_v0 = vld [vmem:[%s14512_s25 + $0x230] sm:$0xff]  }
 0x2f8   : > { %11115 = vmatpush3.bf16.msra.mxu1 %v11891_v44  ;;  %v5447_v44 = vshll.u32 %v5423_v33, 16  ;;  %v11912_v33 = vld [vmem:[%s14512_s25 + $0x1c0] sm:$0xff]  }
 0x2f9   : > { %11116 = vmatprep.subr.bf16.mxu1 %v11894_v18  ;;  %v5455_v26 = vrot.slane %v5453_v45, 5 }
 0x2fa   : > { %11097 = vmatpush3.bf16.msra.mxu0 %v11890_v17  ;;  %v5435_v17 = vrot.slane %v5433_v10, 5  ;;  %v5449_v49 = vrot.slane %v5447_v44, 5 }
 0x2fb   : > { %11098 = vmatprep.subr.bf16.mxu0 %v11892_v54 }
 0x2fc   : > { %11117 = vmatpush3.bf16.msra.mxu1 %v11894_v18  ;;  %v5446_v18 = vrot.slane %v5444_v42, 4  ;;  %v5436_v57 = vor.u32 %v5435_v17, %v5432_v46  ;;  %v11914_v46 = vld [vmem:[%s14512_s25 + $0x1c8] sm:$0xff]   ;;  %v11917_v17 = vld [vmem:[#allocation2 + $0x78] ss:$8 sps:$4 sm:$0xff]  }
 0x2fd   : > { %11118 = vmatprep.subr.bf16.mxu1 %v11897_v55 }
 0x2fe   : > { %11099 = vmatpush3.bf16.msra.mxu0 %v11892_v54  ;;  %v5619_v54 = vld [vmem:[#allocation2 + $0x6c] sm:$0x1]  ;;  %v5450_v63 = vor.u32 %v5449_v49, %v5446_v18  ;;  %v5437_v20 = vrot.slane %v5436_v57, 4  ;;  %v11918_v18 = vld [vmem:[%s14512_s25 + $0x1d0] sm:$0xff]   ;;  %v11923_v57 = vld [vmem:[%s14512_s25 + $0x218] sm:$0xff]  }
 0x2ff   : > { %11124 = vmatprep.subr.bf16.mxu0 %v11896_v4  ;;  %v5636_v32 = vshll.u32 %v5619_v54, 16  ;;  %v5427_v49 = vld [vmem:[#allocation2 + $0xb0] sm:$0xf]  ;;  %v5461_v54 = vshll.u32 %v5425_v47, 16 }
 0x300   : > { %11119 = vmatpush3.bf16.msra.mxu1 %v11897_v55  ;;  %v11909_v55 = vld [vmem:[%s14512_s25 + $0x1a8] sm:$0xff]   ;;  %v5451_v22 = vrot.slane %v5450_v63, 4 }
 0x301   : > { %11101 = vmatmul.mubr.bf16.vlgmr.msra.gmra.mrb[48].mxu0 %v11895_v6  ;;  %11144 = vmatprep.subr.bf16.mxu1 %v11899_v51  ;;  %v5633_v6 = vor.u32 %v5632_v60, %v5629_v29  ;;  %v5638_v11 = vrot.slane %v5636_v32, 5  ;;  %v5460_v29 = vrot.slane %v5458_v35, 4  ;;  %v5467_v60 = vshll.u32 %v5426_v43, 16  ;;  %v11922_v32 = vld [vmem:[%s14512_s25 + $0x1e0] sm:$0xff]   ;;  %v11931_v43 = vld [vmem:[%s14512_s25 + $0x238] sm:$0xff]  }
 0x302   : > { %11125 = vmatpush3.bf16.msra.mxu0 %v11896_v4  ;;  %11140 = vmatprep.mubr.bf16.mxu0 %v9800_v13  ;;  %v11911_v4 = vld [vmem:[%s14512_s25 + $0x1b0] sm:$0xff]   ;;  %v5456_v36 = vsel %vm13222_vm10, %v5451_v22, %v5455_v26  ;;  %v5625_v22 = vld [vmem:[#allocation2 + $0x84] sm:$0x1] }
 0x303   : > { %11126 = vmatprep.subr.bf16.mxu0 %v11898_v23  ;;  %11121 = vmatmul.mubr.bf16.vlgmr.msra.gmra.mrb[48].mxu1 %v9775_v14  ;;  %v5634_v24 = vrot.slane %v5633_v6, 4  ;;  %v5664_v6 = vshll.u32 %v5623_v1, 16  ;;  %v11932_v1 = vld [vmem:[%s14512_s25 + $0x8] sm:$0xff]  }
 0x304   : > { %11145 = vmatpush3.bf16.msra.mxu1 %v11899_v51  ;;  %11160 = vmatprep.mubr.bf16.mxu1 %v11915_v25 }
 0x305   : > { %11146 = vmatprep.subr.bf16.mxu1 %v11901_v34  ;;  %v5639_v39 = vsel %vm13222_vm10, %v5634_v24, %v5638_v11  ;;  %v5469_v24 = vrot.slane %v5467_v60, 5  ;;  %v11945_v60 = vld [vmem:[#allocation2 + $0x38] ss:$8 sps:$4 sm:$0xff]  }
 0x306   : > { %11127 = vmatpush3.bf16.msra.mxu0 %v11898_v23  ;;  %v5652_v23 = vrot.slane %v5650_v3, 5  ;;  %v5655_v3 = vshrl.u32 %v5622_v56, 16 }
 0x307   : > { %11128 = vmatprep.subr.bf16.mxu0 %v11900_v28 }
 0x308   : > { %11147 = vmatpush3.bf16.msra.mxu1 %v11901_v34  ;;  %v11913_v34 = vld [vmem:[%s14512_s25 + $0x1b8] sm:$0xff]   ;;  %v5653_v40 = vsel %vm13222_vm10, %v5648_v30, %v5652_v23  ;;  %v11927_v23 = vld [vmem:[%s14512_s25 + $0x228] sm:$0xff]  }
 0x309   : > { %11148 = vmatprep.subr.bf16.mxu1 %v11903_v21  ;;  %v9878_v27 = vcombine.low %v5639_v39, %v5653_v40 }
 0x30a   : > { %11129 = vmatpush3.bf16.msra.mxu0 %v11900_v28 }
 0x30b   : > { %11130 = vmatprep.subr.bf16.mxu0 %v11902_v38 }
 0x30c   : > { %11149 = vmatpush3.bf16.msra.mxu1 %v11903_v21  ;;  %v5442_v21 = vsel %vm13222_vm10, %v5437_v20, %v5441_v19  ;;  %v5463_v19 = vrot.slane %v5461_v54, 5 }
 0x30d   : > { %11150 = vmatprep.subr.bf16.mxu1 %v11905_v12 }
 0x30e   : > { %11131 = vmatpush3.bf16.msra.mxu0 %v11902_v38  ;;  %v5464_v11 = vor.u32 %v5463_v19, %v5460_v29 }
 0x30f   : > { %11132 = vmatprep.subr.bf16.mxu0 %v11904_v59 }
 0x310   : > { %11151 = vmatpush3.bf16.msra.mxu1 %v11905_v12  ;;  %v9852_v12 = vcombine.low %v5442_v21, %v5456_v36  ;;  %v5465_v30 = vrot.slane %v5464_v11, 4  ;;  %v5666_v36 = vrot.slane %v5664_v6, 5  ;;  %v11934_v6 = vld [vmem:[%s14512_s25 + $0x10] sm:$0xff]  }
 0x311   : > { %11152 = vmatprep.subr.bf16.mxu1 %v11907_v48 }
 0x312   : > { %11133 = vmatpush3.bf16.msra.mxu0 %v11904_v59 }
 0x313   : > { %11134 = vmatprep.subr.bf16.mxu0 %v11906_v50 }
 0x314   : > { %v10862_v5 = vpop.f32.mrb[24].mxu0  ;;  %11153 = vmatpush3.bf16.msra.mxu1 %v11907_v48  ;;  %v11919_v48 = vld [vmem:[%s14512_s25 + $0x208] sm:$0xff]  }
 0x315   : > { %2871 = vst.msk [vmem:[#allocation4 + $0x10] sm:$0xff] %vm735_vm0, %v10862_v5  ;;  %v2854_v51 = vpop.f32.mrb[25].mxu0  ;;  %11154 = vmatprep.subr.bf16.mxu1 %v11909_v55  ;;  %v10882_v41 = vpop.f32.mrb[24].mxu1  ;;  %v11925_v5 = vld [vmem:[%s14512_s25 + $0x220] sm:$0xff]  }
 0x316   : > { %2869 = vst.msk [vmem:[#allocation4] sm:$0xff] %vm735_vm0, %v2854_v51  ;;  %v10863_v9 = vpop.f32.mrb[26].mxu0  ;;  %11135 = vmatpush3.bf16.msra.mxu0 %v11906_v50  ;;  %v2988_v14 = vpop.f32.mrb[25].mxu1  ;;  %v5428_v50 = vld [vmem:[#allocation2 + $0xb4] sm:$0x1]  ;;  %v5669_v51 = vshrl.u32 %v5624_v2, 16 }
 0x317   : > { %2872 = vst.msk [vmem:[#allocation4 + $0x18] sm:$0xff] %vm735_vm0, %v10863_v9  ;;  %v2857_v13 = vpop.f32.mrb[27].mxu0  ;;  %11136 = vmatprep.subr.bf16.mxu0 %v11908_v61  ;;  %v10883_v25 = vpop.f32.mrb[26].mxu1  ;;  %v5481_v63 = vshll.u32 %v5428_v50, 16  ;;  %v5657_v9 = vrot.slane %v5655_v3, 4  ;;  %v5470_v50 = vsel %vm13222_vm10, %v5465_v30, %v5469_v24 }
 0x318   : > { %2870 = vst.msk [vmem:[#allocation4 + $0x8] sm:$0xff] %vm735_vm0, %v2857_v13  ;;  %11155 = vmatpush3.bf16.msra.mxu1 %v11909_v55  ;;  %v2991_v28 = vpop.f32.mrb[27].mxu1  ;;  %v5472_v55 = vshrl.u32 %v5427_v49, 16 }
 0x319   : > { %11156 = vmatprep.subr.bf16.mxu1 %v11911_v4  ;;  %v5483_v31 = vrot.slane %v5481_v63, 5 }
 0x31a   : > { %11137 = vmatpush3.bf16.msra.mxu0 %v11908_v61  ;;  %v5475_v61 = vshll.u32 %v5427_v49, 16  ;;  %v5474_v26 = vrot.slane %v5472_v55, 4 }
 0x31b   : > { %11138 = vmatprep.subr.bf16.mxu0 %v11910_v7 }
 0x31c   : > { %v3005_v58 = vld [vmem:[#allocation4 + $0x10] sm:$0xff]  ;;  %11157 = vmatpush3.bf16.msra.mxu1 %v11911_v4  ;;  %v5658_v4 = vshll.u32 %v5622_v56, 16  ;;  %v5477_v20 = vrot.slane %v5475_v61, 5 }
 0x31d   : > { %v3009_v10 = vadd.f32 %v10882_v41, %v3005_v58  ;;  %v3003_v38 = vld [vmem:[#allocation4] sm:$0xff]  ;;  %11158 = vmatprep.subr.bf16.mxu1 %v11913_v34 }
 0x31e   : > { %v3007_v37 = vadd.f32 %v3003_v38, %v2988_v14  ;;  %v3006_v42 = vld [vmem:[#allocation4 + $0x18] sm:$0xff]  ;;  %11139 = vmatpush3.bf16.msra.mxu0 %v11910_v7  ;;  %v5672_v7 = vshll.u32 %v5624_v2, 16  ;;  %v5660_v41 = vrot.slane %v5658_v4, 5  ;;  %v5478_v13 = vor.u32 %v5477_v20, %v5474_v26  ;;  %v11951_v4 = vld [vmem:[#allocation2 + $0x8] ss:$8 sps:$4 sm:$0xff]  }
 0x31f   : > { %3013 = vst.msk [vmem:[#allocation4 + $0x10] sm:$0xff] %vm735_vm0, %v3009_v10  ;;  %v3010_v44 = vadd.f32 %v10883_v25, %v3006_v42  ;;  %v3004_v45 = vld [vmem:[#allocation4 + $0x8] sm:$0xff]  ;;  %11164 = vmatprep.subr.bf16.mxu0 %v11912_v33  ;;  %v5671_v14 = vrot.slane %v5669_v51, 4  ;;  %v11926_v25 = vld [vmem:[%s14512_s25 + $0x1f0] sm:$0xff]   ;;  %v6140_v51 = vld [vmem:[#allocation2 + $0x38] sm:$0xf] }
 0x320   : > { %3011 = vst.msk [vmem:[#allocation4] sm:$0xff] %vm735_vm0, %v3007_v37  ;;  %v3008_v59 = vadd.f32 %v3004_v45, %v2991_v28  ;;  %11159 = vmatpush3.bf16.msra.mxu1 %v11913_v34  ;;  %v5674_v34 = vrot.slane %v5672_v7, 5  ;;  %v5678_v28 = vshll.u32 %v5625_v22, 16  ;;  %v5661_v21 = vor.u32 %v5660_v41, %v5657_v9  ;;  %v11928_v37 = vld [vmem:[%s14512_s25 + $0x1f8] sm:$0xff]   ;;  %v6142_v7 = vld [vmem:[#allocation2 + $0x40] sm:$0xf] }
 0x321   : > { %3014 = vst.msk [vmem:[#allocation4 + $0x18] sm:$0xff] %vm735_vm0, %v3010_v44  ;;  %11141 = vmatmul.mubr.bf16.vlgmr.msra.gmra.mrb[52].mxu0 %v9801_v16  ;;  %11184 = vmatprep.subr.bf16.mxu1 %v11916_v15  ;;  %v11937_v22 = vld [vmem:[%s14512_s25 + $0x50] sm:$0xff]   ;;  %v6149_v9 = vshrl.u32 %v6140_v51, 16  ;;  %v6152_v41 = vshll.u32 %v6140_v51, 16  ;;  %v6163_v11 = vshrl.u32 %v6142_v7, 16  ;;  %v11955_v51 = vld [vmem:[%s14512_s25 + $0xc8] sm:$0xff]  }
 0x322   : > { %3012 = vst.msk [vmem:[#allocation4 + $0x8] sm:$0xff] %vm735_vm0, %v3008_v59  ;;  %11165 = vmatpush3.bf16.msra.mxu0 %v11912_v33  ;;  %11180 = vmatprep.mubr.bf16.mxu0 %v9852_v12  ;;  %v5479_v33 = vrot.slane %v5478_v13, 4  ;;  %v5675_v10 = vor.u32 %v5674_v34, %v5671_v14  ;;  %v5680_v42 = vrot.slane %v5678_v28, 5  ;;  %v11938_v13 = vld [vmem:[%s14512_s25 + $0x20] sm:$0xff]   ;;  %v11939_v14 = vld [vmem:[%s14512_s25 + $0x58] sm:$0xff]  }
 0x323   : > { %11166 = vmatprep.subr.bf16.mxu0 %v11914_v46  ;;  %11161 = vmatmul.mubr.bf16.vlgmr.msra.gmra.mrb[52].mxu1 %v11917_v17  ;;  %v6141_v34 = vld [vmem:[#allocation2 + $0x3c] sm:$0x1]  ;;  %v6151_v24 = vrot.slane %v6149_v9, 4  ;;  %v6154_v28 = vrot.slane %v6152_v41, 5  ;;  %v6165_v30 = vrot.slane %v6163_v11, 4 }
 0x324   : > { %11185 = vmatpush3.bf16.msra.mxu1 %v11916_v15  ;;  %11200 = vmatprep.mubr.bf16.mxu1 %v9878_v27  ;;  %v5662_v27 = vrot.slane %v5661_v21, 4  ;;  %v5676_v49 = vrot.slane %v5675_v10, 4  ;;  %v11942_v10 = vld [vmem:[%s14512_s25 + $0x30] sm:$0xff]   ;;  %v6144_v9 = vld [vmem:[#allocation2 + $0x48] sm:$0xf]  ;;  %v11956_v11 = vld [vmem:[%s14512_s25 + $0x98] sm:$0xff]  }
 0x325   : > { %11186 = vmatprep.subr.bf16.mxu1 %v11919_v48  ;;  %v6146_v41 = vld [vmem:[#allocation2 + $0x50] sm:$0xf] }
 0x326   : > { %11167 = vmatpush3.bf16.msra.mxu0 %v11914_v46  ;;  %v3206_v15 = vld [vmem:[#allocation4 + $0x10] sm:$0xff]  ;;  %v5667_v54 = vsel %vm13222_vm10, %v5662_v27, %v5666_v36  ;;  %v5681_v55 = vsel %vm13222_vm10, %v5676_v49, %v5680_v42  ;;  %v11940_v36 = vld [vmem:[%s14512_s25 + $0x28] sm:$0xff]  }
 0x327   : > { %11168 = vmatprep.subr.bf16.mxu0 %v11918_v18  ;;  %v3204_v39 = vld [vmem:[#allocation4] sm:$0xff]  ;;  %v9879_v2 = vcombine.low %v5667_v54, %v5681_v55  ;;  %v11949_v55 = vld [vmem:[%s14512_s25 + $0x78] sm:$0xff]  }
 0x328   : > { %11187 = vmatpush3.bf16.msra.mxu1 %v11919_v48  ;;  %v3207_v40 = vld [vmem:[#allocation4 + $0x18] sm:$0xff] }
 0x329   : > { %11188 = vmatprep.subr.bf16.mxu1 %v11921_v52  ;;  %v3205_v59 = vld [vmem:[#allocation4 + $0x8] sm:$0xff] }
 0x32a   : > { %11169 = vmatpush3.bf16.msra.mxu0 %v11918_v18 }
 0x32b   : > { %11170 = vmatprep.subr.bf16.mxu0 %v11920_v53 }
 0x32c   : > { %11189 = vmatpush3.bf16.msra.mxu1 %v11921_v52  ;;  %v5484_v52 = vsel %vm13222_vm10, %v5479_v33, %v5483_v31  ;;  %v6158_v33 = vshll.u32 %v6141_v34, 16  ;;  %v6191_v34 = vshrl.u32 %v6146_v41, 16 }
 0x32d   : > { %11190 = vmatprep.subr.bf16.mxu1 %v11923_v57  ;;  %v9853_v56 = vcombine.low %v5470_v50, %v5484_v52 }
 0x32e   : > { %11171 = vmatpush3.bf16.msra.mxu0 %v11920_v53  ;;  %v11930_v53 = vld [vmem:[%s14512_s25] sm:$0xff]  }
 0x32f   : > { %11172 = vmatprep.subr.bf16.mxu0 %v11922_v32 }
 0x330   : > { %11191 = vmatpush3.bf16.msra.mxu1 %v11923_v57  ;;  %v11933_v57 = vld [vmem:[%s14512_s25 + $0x40] sm:$0xff]  }
 0x331   : > { %11192 = vmatprep.subr.bf16.mxu1 %v11925_v5 }
 0x332   : > { %11173 = vmatpush3.bf16.msra.mxu0 %v11922_v32 }
 0x333   : > { %11174 = vmatprep.subr.bf16.mxu0 %v11924_v8 }
 0x334   : > { %v10902_v58 = vpop.f32.mrb[28].mxu0  ;;  %11193 = vmatpush3.bf16.msra.mxu1 %v11925_v5  ;;  %v11935_v5 = vld [vmem:[%s14512_s25 + $0x48] sm:$0xff]  }
 0x335   : > { %v3210_v38 = vadd.f32 %v10902_v58, %v3206_v15  ;;  %v3189_v16 = vpop.f32.mrb[29].mxu0  ;;  %11194 = vmatprep.subr.bf16.mxu1 %v11927_v23  ;;  %v6155_v58 = vor.u32 %v6154_v28, %v6151_v24  ;;  %v6619_v24 = vld [vmem:[#allocation2 + $0x98] sm:$0xf]  ;;  %v11958_v28 = vld [vmem:[%s14512_s25 + $0xa0] sm:$0xff]  }
 0x336   : > { %v3208_v12 = vadd.f32 %v3204_v39, %v3189_v16  ;;  %v10903_v44 = vpop.f32.mrb[30].mxu0  ;;  %11175 = vmatpush3.bf16.msra.mxu0 %v11924_v8  ;;  %v10922_v45 = vpop.f32.mrb[28].mxu1  ;;  %v11936_v8 = vld [vmem:[%s14512_s25 + $0x18] sm:$0xff]   ;;  %v6160_v16 = vrot.slane %v6158_v33, 5  ;;  %v6147_v33 = vld [vmem:[#allocation2 + $0x54] sm:$0x1] }
 0x337   : > { %3214 = vst.msk [vmem:[#allocation4 + $0x10] sm:$0xff] %vm735_vm0, %v3210_v38  ;;  %v3211_v46 = vadd.f32 %v10903_v44, %v3207_v40  ;;  %v3192_v17 = vpop.f32.mrb[31].mxu0  ;;  %11176 = vmatprep.subr.bf16.mxu0 %v11926_v25  ;;  %v3332_v47 = vpop.f32.mrb[29].mxu1  ;;  %v11943_v38 = vld [vmem:[%s14512_s25 + $0x68] sm:$0xff]   ;;  %v11946_v40 = vld [vmem:[%s14512_s25 + $0x70] sm:$0xff]  }
 0x338   : > { %3212 = vst.msk [vmem:[#allocation4] sm:$0xff] %vm735_vm0, %v3208_v12  ;;  %v3209_v48 = vadd.f32 %v3205_v59, %v3192_v17  ;;  %11195 = vmatpush3.bf16.msra.mxu1 %v11927_v23  ;;  %v10923_v18 = vpop.f32.mrb[30].mxu1  ;;  %v6166_v23 = vshll.u32 %v6142_v7, 16  ;;  %v11944_v59 = vld [vmem:[%s14512_s25 + $0x38] sm:$0xff]  }
 0x339   : > { %3215 = vst.msk [vmem:[#allocation4 + $0x18] sm:$0xff] %vm735_vm0, %v3211_v46  ;;  %v3335_v35 = vpop.f32.mrb[31].mxu1  ;;  %11196 = vmatprep.subr.bf16.mxu1 %v11929_v0 }
 0x33a   : > { %3213 = vst.msk [vmem:[#allocation4 + $0x8] sm:$0xff] %vm735_vm0, %v3209_v48  ;;  %11177 = vmatpush3.bf16.msra.mxu0 %v11926_v25  ;;  %v6143_v25 = vld [vmem:[#allocation2 + $0x44] sm:$0x1]  ;;  %v6168_v31 = vrot.slane %v6166_v23, 5  ;;  %v6177_v23 = vshrl.u32 %v6144_v9, 16 }
 0x33b   : > { %11178 = vmatprep.subr.bf16.mxu0 %v11928_v37  ;;  %v6172_v21 = vshll.u32 %v6143_v25, 16  ;;  %v6194_v25 = vshll.u32 %v6146_v41, 16 }
 0x33c   : > { %11197 = vmatpush3.bf16.msra.mxu1 %v11929_v0  ;;  %v11941_v0 = vld [vmem:[%s14512_s25 + $0x60] sm:$0xff]   ;;  %v6169_v15 = vor.u32 %v6168_v31, %v6165_v30 }
 0x33d   : > { %11198 = vmatprep.subr.bf16.mxu1 %v11931_v43  ;;  %v6174_v39 = vrot.slane %v6172_v21, 5  ;;  %v6621_v30 = vld [vmem:[#allocation2 + $0xa0] sm:$0xf]  ;;  %v6179_v21 = vrot.slane %v6177_v23, 4 }
 0x33e   : > { %v3349_v29 = vld [vmem:[#allocation4 + $0x10] sm:$0xff]  ;;  %11179 = vmatpush3.bf16.msra.mxu0 %v11928_v37  ;;  %v6156_v37 = vrot.slane %v6155_v58, 4  ;;  %v6170_v42 = vrot.slane %v6169_v15, 4  ;;  %v11961_v31 = vld [vmem:[%s14512_s25 + $0xe0] sm:$0xff]   ;;  %v6628_v58 = vshrl.u32 %v6619_v24, 16  ;;  %v6631_v15 = vshll.u32 %v6619_v24, 16 }
 0x33f   : > { %v3353_v61 = vadd.f32 %v10922_v45, %v3349_v29  ;;  %v3347_v63 = vld [vmem:[#allocation4] sm:$0xff]  ;;  %11204 = vmatprep.subr.bf16.mxu0 %v11930_v53 }
 0x340   : > { %v3351_v32 = vadd.f32 %v3347_v63, %v3332_v47  ;;  %v3350_v3 = vld [vmem:[#allocation4 + $0x18] sm:$0xff]  ;;  %11199 = vmatpush3.bf16.msra.mxu1 %v11931_v43  ;;  %v6175_v29 = vsel %vm13222_vm10, %v6170_v42, %v6174_v39  ;;  %v11952_v63 = vld [vmem:[%s14512_s25 + $0xc0] sm:$0xff]   ;;  %v6645_v39 = vshll.u32 %v6621_v30, 16  ;;  %v11960_v42 = vld [vmem:[%s14512_s25 + $0xa8] sm:$0xff]  }
 0x341   : > { %3357 = vst.msk [vmem:[#allocation4 + $0x10] sm:$0xff] %vm735_vm0, %v3353_v61  ;;  %v3354_v19 = vadd.f32 %v10923_v18, %v3350_v3  ;;  %v3348_v26 = vld [vmem:[#allocation4 + $0x8] sm:$0xff]  ;;  %11181 = vmatmul.mubr.bf16.vlgmr.msra.gmra.mrb[56].mxu0 %v9853_v56  ;;  %11224 = vmatprep.subr.bf16.mxu1 %v11933_v57  ;;  %v11948_v56 = vld [vmem:[%s14512_s25 + $0x80] sm:$0xff]  }
 0x342   : > { %3355 = vst.msk [vmem:[#allocation4] sm:$0xff] %vm735_vm0, %v3351_v32  ;;  %v3352_v20 = vadd.f32 %v3348_v26, %v3335_v35  ;;  %11205 = vmatpush3.bf16.msra.mxu0 %v11930_v53  ;;  %11220 = vmatprep.mubr.bf16.mxu0 %v11945_v60  ;;  %v11947_v60 = vld [vmem:[#allocation2 + $0x48] ss:$8 sps:$4 sm:$0xff]   ;;  %v11970_v24 = vld [vmem:[%s14512_s25 + $0x140] sm:$0xff]  }
 0x343   : > { %3358 = vst.msk [vmem:[#allocation4 + $0x18] sm:$0xff] %vm735_vm0, %v3354_v19  ;;  %11206 = vmatprep.subr.bf16.mxu0 %v11932_v1  ;;  %11201 = vmatmul.mubr.bf16.vlgmr.msra.gmra.mrb[56].mxu1 %v9879_v2  ;;  %v11950_v61 = vld [vmem:[%s14512_s25 + $0x88] sm:$0xff]   ;;  %v11953_v2 = vld [vmem:[#allocation2 + $0x18] ss:$8 sps:$4 sm:$0xff]  }
 0x344   : > { %3356 = vst.msk [vmem:[#allocation4 + $0x8] sm:$0xff] %vm735_vm0, %v3352_v20  ;;  %11225 = vmatpush3.bf16.msra.mxu1 %v11933_v57  ;;  %11240 = vmatprep.mubr.bf16.mxu1 %v11951_v4  ;;  %v6161_v57 = vsel %vm13222_vm10, %v6156_v37, %v6160_v16  ;;  %v6642_v16 = vshrl.u32 %v6621_v30, 16  ;;  %v6200_v37 = vshll.u32 %v6147_v33, 16 }
 0x345   : > { %11226 = vmatprep.subr.bf16.mxu1 %v11935_v5  ;;  %v9942_v32 = vcombine.low %v6161_v57, %v6175_v29 }
 0x346   : > { %11207 = vmatpush3.bf16.msra.mxu0 %v11932_v1 }
 0x347   : > { %11208 = vmatprep.subr.bf16.mxu0 %v11934_v6 }
 0x348   : > { %11227 = vmatpush3.bf16.msra.mxu1 %v11935_v5  ;;  %v3492_v44 = vld [vmem:[#allocation4 + $0x10] sm:$0xff]  ;;  %v11969_v5 = vld [vmem:[#allocation2 + $0x98] ss:$8 sps:$4 sm:$0xff]  }
 0x349   : > { %11228 = vmatprep.subr.bf16.mxu1 %v11937_v22  ;;  %v3490_v17 = vld [vmem:[#allocation4] sm:$0xff] }
 0x34a   : > { %11209 = vmatpush3.bf16.msra.mxu0 %v11934_v6  ;;  %v3493_v48 = vld [vmem:[#allocation4 + $0x18] sm:$0xff] }
 0x34b   : > { %11210 = vmatprep.subr.bf16.mxu0 %v11936_v8  ;;  %v3491_v18 = vld [vmem:[#allocation4 + $0x8] sm:$0xff] }
 0x34c   : > { %11229 = vmatpush3.bf16.msra.mxu1 %v11937_v22  ;;  %v11954_v22 = vld [vmem:[%s14512_s25 + $0x90] sm:$0xff]  }
 0x34d   : > { %11230 = vmatprep.subr.bf16.mxu1 %v11939_v14 }
 0x34e   : > { %11211 = vmatpush3.bf16.msra.mxu0 %v11936_v8  ;;  %v11957_v8 = vld [vmem:[%s14512_s25 + $0xd0] sm:$0xff]  }
 0x34f   : > { %11212 = vmatprep.subr.bf16.mxu0 %v11938_v13 }
 0x350   : > { %11231 = vmatpush3.bf16.msra.mxu1 %v11939_v14  ;;  %v11959_v14 = vld [vmem:[%s14512_s25 + $0xd8] sm:$0xff]  }
 0x351   : > { %11232 = vmatprep.subr.bf16.mxu1 %v11941_v0 }
 0x352   : > { %11213 = vmatpush3.bf16.msra.mxu0 %v11938_v13  ;;  %v6180_v13 = vshll.u32 %v6144_v9, 16 }
 0x353   : > { %11214 = vmatprep.subr.bf16.mxu0 %v11940_v36 }
 0x354   : > { %v10942_v12 = vpop.f32.mrb[32].mxu0  ;;  %11233 = vmatpush3.bf16.msra.mxu1 %v11941_v0  ;;  %v6145_v0 = vld [vmem:[#allocation2 + $0x4c] sm:$0x1] }
 0x355   : > { %v3496_v45 = vadd.f32 %v10942_v12, %v3492_v44  ;;  %v3475_v46 = vpop.f32.mrb[33].mxu0  ;;  %11234 = vmatprep.subr.bf16.mxu1 %v11943_v38  ;;  %v6620_v12 = vld [vmem:[#allocation2 + $0x9c] sm:$0x1]  ;;  %v6622_v44 = vld [vmem:[#allocation2 + $0xa4] sm:$0x1] }
 0x356   : > { %v3494_v47 = vadd.f32 %v3490_v17, %v3475_v46  ;;  %v10943_v27 = vpop.f32.mrb[34].mxu0  ;;  %11215 = vmatpush3.bf16.msra.mxu0 %v11940_v36  ;;  %v10962_v49 = vpop.f32.mrb[32].mxu1  ;;  %v6182_v36 = vrot.slane %v6180_v13, 5  ;;  %v6633_v46 = vrot.slane %v6631_v15, 5  ;;  %v11963_v17 = vld [vmem:[%s14512_s25 + $0xe8] sm:$0xff]  }
 0x357   : > { %3500 = vst.msk [vmem:[#allocation4 + $0x10] sm:$0xff] %vm735_vm0, %v3496_v45  ;;  %v3497_v35 = vadd.f32 %v10943_v27, %v3493_v48  ;;  %v3478_v43 = vpop.f32.mrb[35].mxu0  ;;  %11216 = vmatprep.subr.bf16.mxu0 %v11942_v10  ;;  %v3673_v50 = vpop.f32.mrb[33].mxu1  ;;  %v6630_v45 = vrot.slane %v6628_v58, 4  ;;  %v6644_v27 = vrot.slane %v6642_v16, 4  ;;  %v6647_v48 = vrot.slane %v6645_v39, 5 }
 0x358   : > { %3498 = vst.msk [vmem:[#allocation4] sm:$0xff] %vm735_vm0, %v3494_v47  ;;  %v3495_v52 = vadd.f32 %v3491_v18, %v3478_v43  ;;  %11235 = vmatpush3.bf16.msra.mxu1 %v11943_v38  ;;  %v10963_v53 = vpop.f32.mrb[34].mxu1  ;;  %v6196_v38 = vrot.slane %v6194_v25, 5  ;;  %v11962_v18 = vld [vmem:[%s14512_s25 + $0xb0] sm:$0xff]   ;;  %v11968_v25 = vld [vmem:[%s14512_s25 + $0x108] sm:$0xff]  }
 0x359   : > { %3501 = vst.msk [vmem:[#allocation4 + $0x18] sm:$0xff] %vm735_vm0, %v3497_v35  ;;  %v3676_v54 = vpop.f32.mrb[35].mxu1  ;;  %11236 = vmatprep.subr.bf16.mxu1 %v11946_v40  ;;  %v6202_v35 = vrot.slane %v6200_v37, 5  ;;  %v11965_v43 = vld [vmem:[%s14512_s25 + $0xf0] sm:$0xff]   ;;  %v11973_v39 = vld [vmem:[%s14512_s25 + $0x148] sm:$0xff]  }
 0x35a   : > { %3499 = vst.msk [vmem:[#allocation4 + $0x8] sm:$0xff] %vm735_vm0, %v3495_v52  ;;  %11217 = vmatpush3.bf16.msra.mxu0 %v11942_v10  ;;  %v6193_v10 = vrot.slane %v6191_v34, 4  ;;  %v6651_v52 = vshll.u32 %v6622_v44, 16  ;;  %v11972_v37 = vld [vmem:[%s14512_s25 + $0x110] sm:$0xff]   ;;  %v11977_v44 = vld [vmem:[%s14512_s25 + $0x158] sm:$0xff]  }
 0x35b   : > { %11218 = vmatprep.subr.bf16.mxu0 %v11944_v59 }
 0x35c   : > { %11237 = vmatpush3.bf16.msra.mxu1 %v11946_v40  ;;  %v6186_v40 = vshll.u32 %v6145_v0, 16  ;;  %v6197_v47 = vor.u32 %v6196_v38, %v6193_v10  ;;  %v6653_v9 = vrot.slane %v6651_v52, 5  ;;  %v11983_v0 = vld [vmem:[#allocation2 + $0x68] ss:$8 sps:$4 sm:$0xff]  }
 0x35d   : > { %11238 = vmatprep.subr.bf16.mxu1 %v11949_v55 }
 0x35e   : > { %v3690_v1 = vld [vmem:[#allocation4 + $0x10] sm:$0xff]  ;;  %11219 = vmatpush3.bf16.msra.mxu0 %v11944_v59  ;;  %v6183_v59 = vor.u32 %v6182_v36, %v6179_v21 }
 0x35f   : > { %v3694_v3 = vadd.f32 %v10962_v49, %v3690_v1  ;;  %v3688_v4 = vld [vmem:[#allocation4] sm:$0xff]  ;;  %11244 = vmatprep.subr.bf16.mxu0 %v11948_v56  ;;  %v6188_v49 = vrot.slane %v6186_v40, 5  ;;  %v6648_v1 = vor.u32 %v6647_v48, %v6644_v27  ;;  %v11971_v36 = vld [vmem:[#allocation2 + $0xa8] ss:$8 sps:$4 sm:$0xff]  }
 0x360   : > { %v3692_v19 = vadd.f32 %v3688_v4, %v3673_v50  ;;  %v3691_v26 = vld [vmem:[#allocation4 + $0x18] sm:$0xff]  ;;  %11239 = vmatpush3.bf16.msra.mxu1 %v11949_v55  ;;  %v6637_v50 = vshll.u32 %v6620_v12, 16  ;;  %v6634_v55 = vor.u32 %v6633_v46, %v6630_v45  ;;  %v6623_v45 = vld [vmem:[#allocation2 + $0xa8] sm:$0xf]  ;;  %v6625_v46 = vld [vmem:[#allocation2 + $0xb0] sm:$0xf] }
 0x361   : > { %3698 = vst.msk [vmem:[#allocation4 + $0x10] sm:$0xff] %vm735_vm0, %v3694_v3  ;;  %v3695_v20 = vadd.f32 %v10963_v53, %v3691_v26  ;;  %v3689_v6 = vld [vmem:[#allocation4 + $0x8] sm:$0xff]  ;;  %11221 = vmatmul.mubr.bf16.vlgmr.msra.gmra.mrb[60].mxu0 %v11947_v60  ;;  %11264 = vmatprep.subr.bf16.mxu1 %v11952_v63  ;;  %v11964_v60 = vld [vmem:[%s14512_s25 + $0xb8] sm:$0xff]   ;;  %v6649_v23 = vrot.slane %v6648_v1, 4  ;;  %v6670_v27 = vshrl.u32 %v6625_v46, 16  ;;  %v6673_v48 = vshll.u32 %v6625_v46, 16 }
 0x362   : > { %3696 = vst.msk [vmem:[#allocation4] sm:$0xff] %vm735_vm0, %v3692_v19  ;;  %v3693_v7 = vadd.f32 %v3689_v6, %v3676_v54  ;;  %11245 = vmatpush3.bf16.msra.mxu0 %v11948_v56  ;;  %11260 = vmatprep.mubr.bf16.mxu0 %v9942_v32  ;;  %v11967_v6 = vld [vmem:[%s14512_s25 + $0xf8] sm:$0xff]  }
 0x363   : > { %3699 = vst.msk [vmem:[#allocation4 + $0x18] sm:$0xff] %vm735_vm0, %v3695_v20  ;;  %11246 = vmatprep.subr.bf16.mxu0 %v11950_v61  ;;  %11241 = vmatmul.mubr.bf16.vlgmr.msra.gmra.mrb[60].mxu1 %v11953_v2  ;;  %v6654_v30 = vsel %vm13222_vm10, %v6649_v23, %v6653_v9  ;;  %v11974_v12 = vld [vmem:[%s14512_s25 + $0x118] sm:$0xff]   ;;  %v6672_v52 = vrot.slane %v6670_v27, 4  ;;  %v11994_v27 = vld [vmem:[%s14512_s25 + $0x1a0] sm:$0xff]  }
 0x364   : > { %3697 = vst.msk [vmem:[#allocation4 + $0x8] sm:$0xff] %vm735_vm0, %v3693_v7  ;;  %11265 = vmatpush3.bf16.msra.mxu1 %v11952_v63  ;;  %11280 = vmatprep.mubr.bf16.mxu1 %v11969_v5  ;;  %v6198_v63 = vrot.slane %v6197_v47, 4  ;;  %v6659_v47 = vshll.u32 %v6623_v45, 16 }
 0x365   : > { %11266 = vmatprep.subr.bf16.mxu1 %v11955_v51 }
 0x366   : > { %11247 = vmatpush3.bf16.msra.mxu0 %v11950_v61  ;;  %v6184_v61 = vrot.slane %v6183_v59, 4  ;;  %v6656_v59 = vshrl.u32 %v6623_v45, 16 }
 0x367   : > { %11248 = vmatprep.subr.bf16.mxu0 %v11954_v22 }
 0x368   : > { %11267 = vmatpush3.bf16.msra.mxu1 %v11955_v51  ;;  %v3833_v54 = vld [vmem:[#allocation4 + $0x10] sm:$0xff]  ;;  %v6189_v13 = vsel %vm13222_vm10, %v6184_v61, %v6188_v49  ;;  %v11978_v49 = vld [vmem:[%s14512_s25 + $0x128] sm:$0xff]  }
 0x369   : > { %11268 = vmatprep.subr.bf16.mxu1 %v11957_v8  ;;  %v3831_v29 = vld [vmem:[#allocation4] sm:$0xff] }
 0x36a   : > { %11249 = vmatpush3.bf16.msra.mxu0 %v11954_v22  ;;  %v3834_v3 = vld [vmem:[#allocation4 + $0x18] sm:$0xff]  ;;  %v6635_v22 = vrot.slane %v6634_v55, 4  ;;  %v6626_v55 = vld [vmem:[#allocation2 + $0xb4] sm:$0x1] }
 0x36b   : > { %11250 = vmatprep.subr.bf16.mxu0 %v11956_v11  ;;  %v3832_v4 = vld [vmem:[#allocation4 + $0x8] sm:$0xff]  ;;  %v6679_v1 = vshll.u32 %v6626_v55, 16 }
 0x36c   : > { %11269 = vmatpush3.bf16.msra.mxu1 %v11957_v8  ;;  %v6639_v8 = vrot.slane %v6637_v50, 5  ;;  %v6661_v50 = vrot.slane %v6659_v47, 5  ;;  %v11995_v47 = vld [vmem:[%s14512_s25 + $0x1d8] sm:$0xff]  }
 0x36d   : > { %11270 = vmatprep.subr.bf16.mxu1 %v11959_v14 }
 0x36e   : > { %11251 = vmatpush3.bf16.msra.mxu0 %v11956_v11  ;;  %v11966_v11 = vld [vmem:[%s14512_s25 + $0x100] sm:$0xff]  }
 0x36f   : > { %11252 = vmatprep.subr.bf16.mxu0 %v11958_v28 }
 0x370   : > { %11271 = vmatpush3.bf16.msra.mxu1 %v11959_v14  ;;  %v6203_v14 = vsel %vm13222_vm10, %v6198_v63, %v6202_v35  ;;  %v6624_v35 = vld [vmem:[#allocation2 + $0xac] sm:$0x1] }
 0x371   : > { %11272 = vmatprep.subr.bf16.mxu1 %v11961_v31  ;;  %v9943_v34 = vcombine.low %v6189_v13, %v6203_v14  ;;  %v6681_v14 = vrot.slane %v6679_v1, 5 }
 0x372   : > { %11253 = vmatpush3.bf16.msra.mxu0 %v11958_v28  ;;  %v6640_v28 = vsel %vm13222_vm10, %v6635_v22, %v6639_v8  ;;  %v11982_v8 = vld [vmem:[%s14512_s25 + $0x138] sm:$0xff]  }
 0x373   : > { %11254 = vmatprep.subr.bf16.mxu0 %v11960_v42  ;;  %v10020_v10 = vcombine.low %v6640_v28, %v6654_v30  ;;  %v11986_v28 = vld [vmem:[%s14512_s25 + $0x180] sm:$0xff]  }
 0x374   : > { %v10982_v53 = vpop.f32.mrb[36].mxu0  ;;  %11273 = vmatpush3.bf16.msra.mxu1 %v11961_v31  ;;  %v11989_v30 = vld [vmem:[%s14512_s25 + $0x1c0] sm:$0xff]  }
 0x375   : > { %v3837_v56 = vadd.f32 %v10982_v53, %v3833_v54  ;;  %v3816_v57 = vpop.f32.mrb[37].mxu0  ;;  %11274 = vmatprep.subr.bf16.mxu1 %v11963_v17  ;;  %v6675_v53 = vrot.slane %v6673_v48, 5  ;;  %v11981_v54 = vld [vmem:[%s14512_s25 + $0x168] sm:$0xff]  }
 0x376   : > { %v3835_v2 = vadd.f32 %v3831_v29, %v3816_v57  ;;  %v10983_v32 = vpop.f32.mrb[38].mxu0  ;;  %11255 = vmatpush3.bf16.msra.mxu0 %v11960_v42  ;;  %v11002_v19 = vpop.f32.mrb[36].mxu1  ;;  %v11975_v42 = vld [vmem:[%s14512_s25 + $0x150] sm:$0xff]   ;;  %v6665_v57 = vshll.u32 %v6624_v35, 16 }
 0x377   : > { %3841 = vst.msk [vmem:[#allocation4 + $0x10] sm:$0xff] %vm735_vm0, %v3837_v56  ;;  %v3838_v26 = vadd.f32 %v10983_v32, %v3834_v3  ;;  %v3819_v5 = vpop.f32.mrb[39].mxu0  ;;  %11256 = vmatprep.subr.bf16.mxu0 %v11962_v18  ;;  %v3959_v20 = vpop.f32.mrb[37].mxu1  ;;  %v11980_v56 = vld [vmem:[%s14512_s25 + $0x130] sm:$0xff]   ;;  %v6676_v63 = vor.u32 %v6675_v53, %v6672_v52  ;;  %v7103_v52 = vld [vmem:[#allocation2 + $0x4c] sm:$0x1] }
 0x378   : > { %3839 = vst.msk [vmem:[#allocation4] sm:$0xff] %vm735_vm0, %v3835_v2  ;;  %v3836_v51 = vadd.f32 %v3832_v4, %v3819_v5  ;;  %11275 = vmatpush3.bf16.msra.mxu1 %v11963_v17  ;;  %v11003_v7 = vpop.f32.mrb[38].mxu1  ;;  %v11976_v17 = vld [vmem:[%s14512_s25 + $0x120] sm:$0xff]   ;;  %v11984_v4 = vld [vmem:[%s14512_s25 + $0x170] sm:$0xff]   ;;  %v6667_v9 = vrot.slane %v6665_v57, 5  ;;  %v11996_v53 = vld [vmem:[%s14512_s25 + $0x1a8] sm:$0xff]  }
 0x379   : > { %3842 = vst.msk [vmem:[#allocation4 + $0x18] sm:$0xff] %vm735_vm0, %v3838_v26  ;;  %v3962_v41 = vpop.f32.mrb[39].mxu1  ;;  %11276 = vmatprep.subr.bf16.mxu1 %v11965_v43  ;;  %v6677_v13 = vrot.slane %v6676_v63, 4  ;;  %v7132_v57 = vshll.u32 %v7103_v52, 16  ;;  %v12002_v63 = vld [vmem:[%s14512_s25 + $0x1f0] sm:$0xff]   ;;  %v12011_v52 = vld [vmem:[%s14512_s25 + $0x8] sm:$0xff]  }
 0x37a   : > { %3840 = vst.msk [vmem:[#allocation4 + $0x8] sm:$0xff] %vm735_vm0, %v3836_v51  ;;  %11257 = vmatpush3.bf16.msra.mxu0 %v11962_v18  ;;  %v11979_v18 = vld [vmem:[%s14512_s25 + $0x160] sm:$0xff]  }
 0x37b   : > { %11258 = vmatprep.subr.bf16.mxu0 %v11964_v60 }
 0x37c   : > { %11277 = vmatpush3.bf16.msra.mxu1 %v11965_v43  ;;  %v6658_v43 = vrot.slane %v6656_v59, 4 }
 0x37d   : > { %11278 = vmatprep.subr.bf16.mxu1 %v11967_v6 }
 0x37e   : > { %v3976_v31 = vld [vmem:[#allocation4 + $0x10] sm:$0xff]  ;;  %11259 = vmatpush3.bf16.msra.mxu0 %v11964_v60  ;;  %v6662_v61 = vor.u32 %v6661_v50, %v6658_v43  ;;  %v11997_v43 = vld [vmem:[%s14512_s25 + $0x1e0] sm:$0xff]  }
 0x37f   : > { %v3980_v33 = vadd.f32 %v11002_v19, %v3976_v31  ;;  %v3974_v21 = vld [vmem:[#allocation4] sm:$0xff]  ;;  %11284 = vmatprep.subr.bf16.mxu0 %v11966_v11 }
 0x380   : > { %v3978_v58 = vadd.f32 %v3974_v21, %v3959_v20  ;;  %v3977_v15 = vld [vmem:[#allocation4 + $0x18] sm:$0xff]  ;;  %11279 = vmatpush3.bf16.msra.mxu1 %v11967_v6  ;;  %v6663_v23 = vrot.slane %v6662_v61, 4  ;;  %v7101_v50 = vld [vmem:[#allocation2 + $0x44] sm:$0x1]  ;;  %v11998_v61 = vld [vmem:[%s14512_s25 + $0x1b0] sm:$0xff]  }
 0x381   : > { %3984 = vst.msk [vmem:[#allocation4 + $0x10] sm:$0xff] %vm735_vm0, %v3980_v33  ;;  %v3981_v38 = vadd.f32 %v11003_v7, %v3977_v15  ;;  %v3975_v16 = vld [vmem:[#allocation4 + $0x8] sm:$0xff]  ;;  %11261 = vmatmul.mubr.bf16.vlgmr.msra.gmra.mrb[64].mxu0 %v9943_v34  ;;  %11304 = vmatprep.subr.bf16.mxu1 %v11970_v24  ;;  %v7118_v55 = vshll.u32 %v7101_v50, 16 }
 0x382   : > { %3982 = vst.msk [vmem:[#allocation4] sm:$0xff] %vm735_vm0, %v3978_v58  ;;  %v3979_v40 = vadd.f32 %v3975_v16, %v3962_v41  ;;  %11285 = vmatpush3.bf16.msra.mxu0 %v11966_v11  ;;  %11300 = vmatprep.mubr.bf16.mxu0 %v11983_v0  ;;  %v6668_v31 = vsel %vm13222_vm10, %v6663_v23, %v6667_v9  ;;  %v11988_v33 = vld [vmem:[%s14512_s25 + $0x188] sm:$0xff]  }
 0x383   : > { %3985 = vst.msk [vmem:[#allocation4 + $0x18] sm:$0xff] %vm735_vm0, %v3981_v38  ;;  %11286 = vmatprep.subr.bf16.mxu0 %v11968_v25  ;;  %11281 = vmatmul.mubr.bf16.vlgmr.msra.gmra.mrb[64].mxu1 %v11971_v36  ;;  %v6682_v0 = vsel %vm13222_vm10, %v6677_v13, %v6681_v14  ;;  %v12001_v36 = vld [vmem:[#allocation2 + $0x40] ss:$8 sps:$4 sm:$0xff]   ;;  %v12007_v38 = vld [vmem:[#allocation2 + $0x10] ss:$8 sps:$4 sm:$0xff]  }
 0x384   : > { %3983 = vst.msk [vmem:[#allocation4 + $0x8] sm:$0xff] %vm735_vm0, %v3979_v40  ;;  %11305 = vmatpush3.bf16.msra.mxu1 %v11970_v24  ;;  %11320 = vmatprep.mubr.bf16.mxu1 %v10020_v10  ;;  %v11985_v24 = vld [vmem:[#allocation2 + $0x78] ss:$8 sps:$4 sm:$0xff]   ;;  %v10021_v15 = vcombine.low %v6668_v31, %v6682_v0  ;;  %v11990_v40 = vld [vmem:[%s14512_s25 + $0x190] sm:$0xff]  }
 0x385   : > { %11306 = vmatprep.subr.bf16.mxu1 %v11973_v39  ;;  %v12005_v31 = vld [vmem:[%s14512_s25 + $0x1f8] sm:$0xff]  }
 0x386   : > { %11287 = vmatpush3.bf16.msra.mxu0 %v11968_v25  ;;  %v11987_v25 = vld [vmem:[%s14512_s25 + $0x178] sm:$0xff]  }
 0x387   : > { %11288 = vmatprep.subr.bf16.mxu0 %v11972_v37  ;;  %v7106_v0 = vld [vmem:[#allocation2 + $0x58] sm:$0xf] }
 0x388   : > { %11307 = vmatpush3.bf16.msra.mxu1 %v11973_v39  ;;  %v4174_v60 = vld [vmem:[#allocation4 + $0x10] sm:$0xff]  ;;  %v11991_v39 = vld [vmem:[%s14512_s25 + $0x1c8] sm:$0xff]  }
 0x389   : > { %11308 = vmatprep.subr.bf16.mxu1 %v11975_v42  ;;  %v4172_v3 = vld [vmem:[#allocation4] sm:$0xff] }
 0x38a   : > { %11289 = vmatpush3.bf16.msra.mxu0 %v11972_v37  ;;  %v4175_v5 = vld [vmem:[#allocation4 + $0x18] sm:$0xff]  ;;  %v11993_v37 = vld [vmem:[%s14512_s25 + $0x1d0] sm:$0xff]  }
 0x38b   : > { %11290 = vmatprep.subr.bf16.mxu0 %v11974_v12  ;;  %v4173_v7 = vld [vmem:[#allocation4 + $0x8] sm:$0xff] }
 0x38c   : > { %11309 = vmatpush3.bf16.msra.mxu1 %v11975_v42  ;;  %v7100_v42 = vld [vmem:[#allocation2 + $0x40] sm:$0xf] }
 0x38d   : > { %11310 = vmatprep.subr.bf16.mxu1 %v11977_v44  ;;  %v7109_v45 = vshrl.u32 %v7100_v42, 16  ;;  %v7112_v46 = vshll.u32 %v7100_v42, 16 }
 0x38e   : > { %11291 = vmatpush3.bf16.msra.mxu0 %v11974_v12  ;;  %v7102_v12 = vld [vmem:[#allocation2 + $0x48] sm:$0xf] }
 0x38f   : > { %11292 = vmatprep.subr.bf16.mxu0 %v11976_v17  ;;  %v7126_v59 = vshll.u32 %v7102_v12, 16  ;;  %v7111_v48 = vrot.slane %v7109_v45, 4  ;;  %v7151_v45 = vshrl.u32 %v7106_v0, 16 }
 0x390   : > { %11311 = vmatpush3.bf16.msra.mxu1 %v11977_v44  ;;  %v11992_v44 = vld [vmem:[%s14512_s25 + $0x198] sm:$0xff]  }
 0x391   : > { %11312 = vmatprep.subr.bf16.mxu1 %v11979_v18  ;;  %v7128_v35 = vrot.slane %v7126_v59, 5  ;;  %v12009_v59 = vld [vmem:[#allocation2 + $0x20] ss:$8 sps:$4 sm:$0xff]  }
 0x392   : > { %11293 = vmatpush3.bf16.msra.mxu0 %v11976_v17  ;;  %v7123_v17 = vshrl.u32 %v7102_v12, 16 }
 0x393   : > { %11294 = vmatprep.subr.bf16.mxu0 %v11978_v49 }
 0x394   : > { %v11022_v29 = vpop.f32.mrb[40].mxu0  ;;  %11313 = vmatpush3.bf16.msra.mxu1 %v11979_v18  ;;  %v7114_v18 = vrot.slane %v7112_v46, 5 }
 0x395   : > { %v4178_v2 = vadd.f32 %v11022_v29, %v4174_v60  ;;  %v4157_v32 = vpop.f32.mrb[41].mxu0  ;;  %11314 = vmatprep.subr.bf16.mxu1 %v11981_v54  ;;  %v11999_v29 = vld [vmem:[%s14512_s25 + $0x1e8] sm:$0xff]   ;;  %v9668_v60 = vld [vmem:[%s14515_s14] ss:$0 sm:$0xff] }
 0x396   : > { %v4176_v19 = vadd.f32 %v4172_v3, %v4157_v32  ;;  %v11023_v26 = vpop.f32.mrb[42].mxu0  ;;  %11295 = vmatpush3.bf16.msra.mxu0 %v11978_v49  ;;  %v11042_v20 = vpop.f32.mrb[40].mxu1  ;;  %v7125_v49 = vrot.slane %v7123_v17, 4  ;;  %v7120_v3 = vrot.slane %v7118_v55, 5  ;;  %v12006_v17 = vld [vmem:[%s14512_s25 + $0x208] sm:$0xff]  }
 0x397   : > { %4182 = vst.msk [vmem:[#allocation4 + $0x10] sm:$0xff] %vm735_vm0, %v4178_v2  ;;  %v4179_v6 = vadd.f32 %v11023_v26, %v4175_v5  ;;  %v4160_v51 = vpop.f32.mrb[43].mxu0  ;;  %11296 = vmatprep.subr.bf16.mxu0 %v11980_v56  ;;  %v4332_v22 = vpop.f32.mrb[41].mxu1 }
 0x398   : > { %4180 = vst.msk [vmem:[#allocation4] sm:$0xff] %vm735_vm0, %v4176_v19  ;;  %v4177_v41 = vadd.f32 %v4173_v7, %v4160_v51  ;;  %11315 = vmatpush3.bf16.msra.mxu1 %v11981_v54  ;;  %v11043_v11 = vpop.f32.mrb[42].mxu1  ;;  %v7115_v54 = vor.u32 %v7114_v18, %v7111_v48  ;;  %v7134_v19 = vrot.slane %v7132_v57, 5 }
 0x399   : > { %4183 = vst.msk [vmem:[#allocation4 + $0x18] sm:$0xff] %vm735_vm0, %v4179_v6  ;;  %v4335_v34 = vpop.f32.mrb[43].mxu1  ;;  %11316 = vmatprep.subr.bf16.mxu1 %v11984_v4 }
 0x39a   : > { %4181 = vst.msk [vmem:[#allocation4 + $0x8] sm:$0xff] %vm735_vm0, %v4177_v41  ;;  %11297 = vmatpush3.bf16.msra.mxu0 %v11980_v56  ;;  %v7129_v56 = vor.u32 %v7128_v35, %v7125_v49  ;;  %v7116_v32 = vrot.slane %v7115_v54, 4  ;;  %v7465_v49 = vld [vmem:[#allocation2 + $0x38] sm:$0xf]  ;;  %v7107_v54 = vld [vmem:[#allocation2 + $0x5c] sm:$0x1] }
 0x39b   : > { %11298 = vmatprep.subr.bf16.mxu0 %v11982_v8 }
 0x39c   : > { %11317 = vmatpush3.bf16.msra.mxu1 %v11984_v4  ;;  %v7130_v4 = vrot.slane %v7129_v56, 4 }
 0x39d   : > { %11318 = vmatprep.subr.bf16.mxu1 %v11987_v25 }
 0x39e   : > { %v13884_v21 = vld [vmem:[#allocation4 + $0x10] sm:$0xff]  ;;  %11299 = vmatpush3.bf16.msra.mxu0 %v11982_v8  ;;  %v7135_v42 = vsel %vm13222_vm10, %v7130_v4, %v7134_v19  ;;  %v7467_v4 = vld [vmem:[#allocation2 + $0x40] sm:$0xf]  ;;  %v7474_v19 = vshrl.u32 %v7465_v49, 16 }
 0x39f   : > { %4349 = vst.msk [vmem:[#allocation4 + $0x10] sm:$0xff] %vm735_vm0, %v11042_v20  ;;  %v13887_v58 = vld [vmem:[#allocation4] sm:$0xff]  ;;  %11324 = vmatprep.subr.bf16.mxu0 %v11986_v28  ;;  %v4197_v26 = vmul.f32 %v9668_v60, %v13884_v21  ;;  %v13938_v8 = vld [vmem:[#allocation2 + $0x50] sm:$0xf] }
 0x3a0   : > { %4347 = vst.msk [vmem:[#allocation4] sm:$0xff] %vm735_vm0, %v4332_v22  ;;  %v13890_v10 = vld [vmem:[#allocation4 + $0x18] sm:$0xff]  ;;  %11319 = vmatpush3.bf16.msra.mxu1 %v11987_v25  ;;  %v4195_v5 = vmul.f32 %v9668_v60, %v13887_v58  ;;  %v7137_v58 = vshrl.u32 %v13938_v8, 16  ;;  %v7140_v12 = vshll.u32 %v13938_v8, 16 }
 0x3a1   : > { %4350 = vst.msk [vmem:[#allocation4 + $0x18] sm:$0xff] %vm735_vm0, %v11043_v11  ;;  %v13893_v16 = vld [vmem:[#allocation4 + $0x8] sm:$0xff]  ;;  %11301 = vmatmul.mubr.bf16.vlgmr.msra.gmra.mrb[68].mxu0 %v11985_v24  ;;  %11344 = vmatprep.subr.bf16.mxu1 %v11989_v30  ;;  %v4198_v20 = vmul.f32 %v9668_v60, %v13890_v10  ;;  %v12000_v22 = vld [vmem:[%s14512_s25 + $0x1b8] sm:$0xff]  }
 0x3a2   : > { %4348 = vst.msk [vmem:[#allocation4 + $0x8] sm:$0xff] %vm735_vm0, %v4335_v34  ;;  %11325 = vmatpush3.bf16.msra.mxu0 %v11986_v28  ;;  %11340 = vmatprep.mubr.bf16.mxu0 %v12001_v36  ;;  %v4196_v9 = vmul.f32 %v9668_v60, %v13893_v16  ;;  %v12004_v36 = vld [vmem:[%s14512_s25 + $0x200] sm:$0xff]   ;;  %v7139_v57 = vrot.slane %v7137_v58, 4 }
 0x3a3   : > { %11326 = vmatprep.subr.bf16.mxu0 %v11988_v33  ;;  %11321 = vmatmul.mubr.bf16.vlgmr.msra.gmra.mrb[68].mxu1 %v10021_v15 }
 0x3a4   : > { %11345 = vmatpush3.bf16.msra.mxu1 %v11989_v30  ;;  %11360 = vmatprep.mubr.bf16.mxu1 %v12007_v38 }
 0x3a5   : > { %11346 = vmatprep.subr.bf16.mxu1 %v11991_v39 }
 0x3a6   : > { %11327 = vmatpush3.bf16.msra.mxu0 %v11988_v33  ;;  %v4538_v2 = vld [vmem:[#allocation4 + $0x10] sm:$0xff]  ;;  %v9889_v33 = vld [vmem:[%s14517_s12] ss:$0 sm:$0xff] }
 0x3a7   : > { %11328 = vmatprep.subr.bf16.mxu0 %v11990_v40  ;;  %v4536_v7 = vld [vmem:[#allocation4] sm:$0xff]  ;;  %v4208_v15 = vadd.f32 %v9889_v33, %v4197_v26  ;;  %v4206_v10 = vadd.f32 %v9889_v33, %v4195_v5  ;;  %v4209_v38 = vadd.f32 %v9889_v33, %v4198_v20  ;;  %v4207_v16 = vadd.f32 %v9889_v33, %v4196_v9  ;;  %v12010_v5 = vld [vmem:[%s14512_s25 + $0x210] sm:$0xff]  }
 0x3a8   : > { %11347 = vmatpush3.bf16.msra.mxu1 %v11991_v39  ;;  %v4539_v23 = vld [vmem:[#allocation4 + $0x18] sm:$0xff]  ;;  %v7477_v26 = vshll.u32 %v7465_v49, 16  ;;  %v7468_v20 = vld [vmem:[#allocation2 + $0x44] sm:$0x1] }
 0x3a9   : > { %11348 = vmatprep.subr.bf16.mxu1 %v11993_v37  ;;  %v4537_v13 = vld [vmem:[#allocation4 + $0x8] sm:$0xff]  ;;  %v12003_v39 = vld [vmem:[#allocation2 + $0x50] ss:$8 sps:$4 sm:$0xff]   ;;  %v4210_v46 = vmax.f32 %v4206_v10, 0.0  ;;  %v4211_v35 = vmax.f32 %v4207_v16, 0.0 }
 0x3aa   : > { %11329 = vmatpush3.bf16.msra.mxu0 %v11990_v40  ;;  %v12008_v40 = vld [vmem:[%s14512_s25] sm:$0xff]   ;;  %v7664_v16 = vld [vmem:[#allocation2 + $0x10] sm:$0xf] }
 0x3ab   : > { %11330 = vmatprep.subr.bf16.mxu0 %v11992_v44  ;;  %4214 = vst.msk [vmem:[%s12503_s23] sm:$0xff] %vm735_vm0, %v4210_v46  ;;  %4215 = vst.msk [vmem:[%s12503_s23 + $0x8] sm:$0xff] %vm735_vm0, %v4211_v35 }
 0x3ac   : > { %11349 = vmatpush3.bf16.msra.mxu1 %v11993_v37  ;;  %v7121_v37 = vsel %vm13222_vm10, %v7116_v32, %v7120_v3  ;;  %v7466_v3 = vld [vmem:[#allocation2 + $0x3c] sm:$0x1] }
 0x3ad   : > { %11350 = vmatprep.subr.bf16.mxu1 %v11995_v47  ;;  %v10098_v18 = vcombine.low %v7121_v37, %v7135_v42  ;;  %v7483_v9 = vshll.u32 %v7466_v3, 16  ;;  %v12016_v42 = vld [vmem:[%s14512_s25 + $0x228] sm:$0xff]  }
 0x3ae   : > { %11331 = vmatpush3.bf16.msra.mxu0 %v11992_v44  ;;  %v4212_v44 = vmax.f32 %v4208_v15, 0.0 }
 0x3af   : > { %11332 = vmatprep.subr.bf16.mxu0 %v11994_v27 }
 0x3b0   : > { %11351 = vmatpush3.bf16.msra.mxu1 %v11995_v47  ;;  %v7154_v47 = vshll.u32 %v7106_v0, 16  ;;  %4216 = vst.msk [vmem:[%s12503_s23 + $0x10] sm:$0xff] %vm735_vm0, %v4212_v44  ;;  %v7688_v44 = vshll.u32 %v7664_v16, 16 }
 0x3b1   : > { %11352 = vmatprep.subr.bf16.mxu1 %v11997_v43 }
 0x3b2   : > { %11333 = vmatpush3.bf16.msra.mxu0 %v11994_v27  ;;  %v4213_v27 = vmax.f32 %v4209_v38, 0.0  ;;  %v7663_v38 = vld [vmem:[#allocation2 + $0xc] sm:$0x1]  ;;  %v7690_v35 = vrot.slane %v7688_v44, 5  ;;  %v12030_v44 = vld [vmem:[%s14512_s25 + $0x58] sm:$0xff]  }
 0x3b3   : > { %11334 = vmatprep.subr.bf16.mxu0 %v11996_v53 }
 0x3b4   : > { %v11062_v1 = vpop.f32.mrb[44].mxu0  ;;  %11353 = vmatpush3.bf16.msra.mxu1 %v11997_v43  ;;  %4217 = vst.msk [vmem:[%s12503_s23 + $0x18] sm:$0xff] %vm735_vm0, %v4213_v27 }
 0x3b5   : > { %v4542_v6 = vadd.f32 %v11062_v1, %v4538_v2  ;;  %v4521_v51 = vpop.f32.mrb[45].mxu0  ;;  %11354 = vmatprep.subr.bf16.mxu1 %v11999_v29  ;;  %v7153_v1 = vrot.slane %v7151_v45, 4  ;;  %v7156_v2 = vrot.slane %v7154_v47, 5  ;;  %v12019_v47 = vld [vmem:[%s14512_s25 + $0x28] sm:$0xff]  }
 0x3b6   : > { %v4540_v41 = vadd.f32 %v4536_v7, %v4521_v51  ;;  %v11063_v11 = vpop.f32.mrb[46].mxu0  ;;  %11335 = vmatpush3.bf16.msra.mxu0 %v11996_v53  ;;  %v11082_v14 = vpop.f32.mrb[44].mxu1  ;;  %v7105_v53 = vld [vmem:[#allocation2 + $0x54] sm:$0x1]  ;;  %v7160_v51 = vshll.u32 %v7107_v54, 16 }
 0x3b7   : > { %4546 = vst.msk [vmem:[#allocation4 + $0x10] sm:$0xff] %vm735_vm0, %v4542_v6  ;;  %v4543_v34 = vadd.f32 %v11063_v11, %v4539_v23  ;;  %v4524_v25 = vpop.f32.mrb[47].mxu0  ;;  %11336 = vmatprep.subr.bf16.mxu0 %v11998_v61  ;;  %v4718_v24 = vpop.f32.mrb[45].mxu1  ;;  %v7146_v6 = vshll.u32 %v7105_v53, 16  ;;  %v12013_v7 = vld [vmem:[%s14512_s25 + $0x10] sm:$0xff]   ;;  %v7157_v8 = vor.u32 %v7156_v2, %v7153_v1  ;;  %v7476_v11 = vrot.slane %v7474_v19, 4 }
 0x3b8   : > { %4544 = vst.msk [vmem:[#allocation4] sm:$0xff] %vm735_vm0, %v4540_v41  ;;  %v4541_v28 = vadd.f32 %v4537_v13, %v4524_v25  ;;  %11355 = vmatpush3.bf16.msra.mxu1 %v11999_v29  ;;  %v11083_v30 = vpop.f32.mrb[46].mxu1  ;;  %v12025_v29 = vld [vmem:[#allocation2 + $0x8] ss:$8 sps:$4 sm:$0xff]   ;;  %v7488_v41 = vshrl.u32 %v7467_v4, 16  ;;  %v7479_v23 = vrot.slane %v7477_v26, 5 }
 0x3b9   : > { %4547 = vst.msk [vmem:[#allocation4 + $0x18] sm:$0xff] %vm735_vm0, %v4543_v34  ;;  %v4721_v21 = vpop.f32.mrb[47].mxu1  ;;  %11356 = vmatprep.subr.bf16.mxu1 %v12002_v63  ;;  %v7491_v13 = vshll.u32 %v7467_v4, 16  ;;  %v12012_v34 = vld [vmem:[%s14512_s25 + $0x218] sm:$0xff]   ;;  %v13990_v25 = vrot.slane %v7146_v6, 5  ;;  %v14002_v33 = vrot.slane %v7157_v8, 4 }
 0x3ba   : > { %4545 = vst.msk [vmem:[#allocation4 + $0x8] sm:$0xff] %vm735_vm0, %v4541_v28  ;;  %11337 = vmatpush3.bf16.msra.mxu0 %v11998_v61  ;;  %v7662_v28 = vld [vmem:[#allocation2 + $0x8] sm:$0xf]  ;;  %v7480_v58 = vor.u32 %v7479_v23, %v7476_v11  ;;  %v12021_v53 = vld [vmem:[%s14512_s25 + $0x30] sm:$0xff]   ;;  %v12022_v23 = vld [vmem:[%s14512_s25 + $0x40] sm:$0xff]  }
 0x3bb   : > { %11338 = vmatprep.subr.bf16.mxu0 %v12000_v22  ;;  %v7493_v15 = vrot.slane %v7491_v13, 5  ;;  %v7674_v37 = vshll.u32 %v7662_v28, 16 }
 0x3bc   : > { %11357 = vmatpush3.bf16.msra.mxu1 %v12002_v63  ;;  %v7142_v63 = vrot.slane %v7140_v12, 5  ;;  %v7685_v12 = vshrl.u32 %v7664_v16, 16  ;;  %v14014_v45 = vrot.slane %v7480_v58, 4 }
 0x3bd   : > { %11358 = vmatprep.subr.bf16.mxu1 %v12005_v31 }
 0x3be   : > { %v4735_v48 = vld [vmem:[#allocation4 + $0x10] sm:$0xff]  ;;  %11339 = vmatpush3.bf16.msra.mxu0 %v12000_v22  ;;  %v7143_v22 = vor.u32 %v7142_v63, %v7139_v57  ;;  %v7687_v49 = vrot.slane %v7685_v12, 4  ;;  %v12020_v63 = vld [vmem:[%s14512_s25 + $0x238] sm:$0xff]   ;;  %v7469_v12 = vld [vmem:[#allocation2 + $0x48] sm:$0xf] }
 0x3bf   : > { %v4739_v43 = vadd.f32 %v11082_v14, %v4735_v48  ;;  %v4733_v50 = vld [vmem:[#allocation4] sm:$0xff]  ;;  %11364 = vmatprep.subr.bf16.mxu0 %v12004_v36  ;;  %v7497_v14 = vshll.u32 %v7468_v20, 16  ;;  %v7676_v48 = vrot.slane %v7674_v37, 5  ;;  %v12023_v20 = vld [vmem:[%s14512_s25 + $0x38] sm:$0xff]   ;;  %v12028_v37 = vld [vmem:[%s14512_s25 + $0x50] sm:$0xff]  }
 0x3c0   : > { %v4737_v55 = vadd.f32 %v4733_v50, %v4718_v24  ;;  %v4736_v56 = vld [vmem:[#allocation4 + $0x18] sm:$0xff]  ;;  %11359 = vmatpush3.bf16.msra.mxu1 %v12005_v31  ;;  %v13992_v24 = vrot.slane %v7160_v51, 5  ;;  %v14000_v0 = vrot.slane %v7143_v22, 4  ;;  %v7691_v1 = vor.u32 %v7690_v35, %v7687_v49  ;;  %v8002_v35 = vld [vmem:[#allocation2 + $0xa0] sm:$0xf] }
 0x3c1   : > { %4743 = vst.msk [vmem:[#allocation4 + $0x10] sm:$0xff] %vm735_vm0, %v4739_v43  ;;  %v4740_v60 = vadd.f32 %v11083_v30, %v4736_v56  ;;  %v4734_v61 = vld [vmem:[#allocation4 + $0x8] sm:$0xff]  ;;  %11341 = vmatmul.mubr.bf16.vlgmr.msra.gmra.mrb[72].mxu0 %v12003_v39  ;;  %11384 = vmatprep.subr.bf16.mxu1 %v12008_v40  ;;  %v12014_v30 = vld [vmem:[%s14512_s25 + $0x220] sm:$0xff]   ;;  %v12015_v31 = vld [vmem:[%s14512_s25 + $0x18] sm:$0xff]   ;;  %v14006_v10 = vrot.slane %v7497_v14, 5 }
 0x3c2   : > { %4741 = vst.msk [vmem:[#allocation4] sm:$0xff] %vm735_vm0, %v4737_v55  ;;  %v4738_v32 = vadd.f32 %v4734_v61, %v4721_v21  ;;  %11365 = vmatpush3.bf16.msra.mxu0 %v12004_v36  ;;  %11380 = vmatprep.mubr.bf16.mxu0 %v10098_v18  ;;  %v14004_v21 = vrot.slane %v7483_v9, 5  ;;  %v7490_v36 = vrot.slane %v7488_v41, 4  ;;  %v12017_v39 = vld [vmem:[%s14512_s25 + $0x20] sm:$0xff]   ;;  %v12018_v18 = vld [vmem:[%s14512_s25 + $0x230] sm:$0xff]   ;;  %v7692_v9 = vrot.slane %v7691_v1, 4 }
 0x3c3   : > { %4744 = vst.msk [vmem:[#allocation4 + $0x18] sm:$0xff] %vm735_vm0, %v4740_v60  ;;  %11366 = vmatprep.subr.bf16.mxu0 %v12006_v17  ;;  %11361 = vmatmul.mubr.bf16.vlgmr.msra.gmra.mrb[72].mxu1 %v12009_v59  ;;  %v7680_v59 = vshll.u32 %v7663_v38, 16  ;;  %v7149_v41 = vsel %vm13222_vm10, %v14000_v0, %v13990_v25  ;;  %v7163_v11 = vsel %vm13222_vm10, %v14002_v33, %v13992_v24  ;;  %v12026_v25 = vld [vmem:[%s14512_s25 + $0x80] sm:$0xff]   ;;  %v8000_v49 = vld [vmem:[#allocation2 + $0x98] sm:$0xf] }
 0x3c4   : > { %4742 = vst.msk [vmem:[#allocation4 + $0x8] sm:$0xff] %vm735_vm0, %v4738_v32  ;;  %11385 = vmatpush3.bf16.msra.mxu1 %v12008_v40  ;;  %11400 = vmatprep.mubr.bf16.mxu1 %v12025_v29  ;;  %v7671_v40 = vshrl.u32 %v7662_v28, 16  ;;  %v7494_v46 = vor.u32 %v7493_v15, %v7490_v36  ;;  %v7486_v13 = vsel %vm13222_vm10, %v14014_v45, %v14004_v21  ;;  %v12024_v21 = vld [vmem:[%s14512_s25 + $0x48] sm:$0xff]   ;;  %v12027_v36 = vld [vmem:[#allocation2 + $0x18] ss:$8 sps:$4 sm:$0xff]  }
 0x3c5   : > { %11386 = vmatprep.subr.bf16.mxu1 %v12011_v52  ;;  %v7682_v54 = vrot.slane %v7680_v59, 5  ;;  %v7471_v45 = vld [vmem:[#allocation2 + $0x50] sm:$0xf]  ;;  %v7505_v59 = vshll.u32 %v7469_v12, 16 }
 0x3c6   : > { %11367 = vmatpush3.bf16.msra.mxu0 %v12006_v17  ;;  %v7665_v17 = vld [vmem:[#allocation2 + $0x14] sm:$0x1]  ;;  %v7673_v27 = vrot.slane %v7671_v40, 4  ;;  %v7495_v43 = vrot.slane %v7494_v46, 4  ;;  %v12033_v46 = vld [vmem:[%s14512_s25 + $0x98] sm:$0xff]  }
 0x3c7   : > { %11368 = vmatprep.subr.bf16.mxu0 %v12010_v5  ;;  %v7694_v50 = vshll.u32 %v7665_v17, 16  ;;  %v7502_v17 = vshrl.u32 %v7469_v12, 16 }
 0x3c8   : > { %11387 = vmatpush3.bf16.msra.mxu1 %v12011_v52  ;;  %v4876_v52 = vld [vmem:[#allocation4 + $0x10] sm:$0xff]  ;;  %v7677_v57 = vor.u32 %v7676_v48, %v7673_v27  ;;  %v7500_v14 = vsel %vm13222_vm10, %v7495_v43, %v14006_v10  ;;  %v7668_v27 = vld [vmem:[#allocation2 + $0x20] sm:$0xf]  ;;  %v7516_v48 = vshrl.u32 %v7471_v45, 16 }
 0x3c9   : > { %11388 = vmatprep.subr.bf16.mxu1 %v12013_v7  ;;  %v4874_v56 = vld [vmem:[#allocation4] sm:$0xff]  ;;  %v7696_v6 = vrot.slane %v7694_v50, 5  ;;  %v7470_v50 = vld [vmem:[#allocation2 + $0x4c] sm:$0x1]  ;;  %v7504_v1 = vrot.slane %v7502_v17, 4 }
 0x3ca   : > { %11369 = vmatpush3.bf16.msra.mxu0 %v12010_v5  ;;  %v4877_v61 = vld [vmem:[#allocation4 + $0x18] sm:$0xff]  ;;  %v7678_v22 = vrot.slane %v7677_v57, 4  ;;  %v12032_v43 = vld [vmem:[%s14512_s25 + $0x60] sm:$0xff]   ;;  %v8009_v57 = vshrl.u32 %v8000_v49, 16 }
 0x3cb   : > { %11370 = vmatprep.subr.bf16.mxu0 %v12012_v34  ;;  %v4875_v26 = vld [vmem:[#allocation4 + $0x8] sm:$0xff]  ;;  %v7697_v28 = vsel %vm13222_vm10, %v7692_v9, %v7696_v6 }
 0x3cc   : > { %11389 = vmatpush3.bf16.msra.mxu1 %v12013_v7  ;;  %v7683_v24 = vsel %vm13222_vm10, %v7678_v22, %v7682_v54  ;;  %v7713_v54 = vshrl.u32 %v7668_v27, 16  ;;  %v8011_v9 = vrot.slane %v8009_v57, 4 }
 0x3cd   : > { %11390 = vmatprep.subr.bf16.mxu1 %v12015_v31  ;;  %v10166_v10 = vcombine.low %v7683_v24, %v7697_v28  ;;  %v12036_v24 = vld [vmem:[%s14512_s25 + $0x70] sm:$0xff]  }
 0x3ce   : > { %11371 = vmatpush3.bf16.msra.mxu0 %v12012_v34  ;;  %v10099_v34 = vcombine.low %v7149_v41, %v7163_v11 }
 0x3cf   : > { %11372 = vmatprep.subr.bf16.mxu0 %v12014_v30 }
 0x3d0   : > { %11391 = vmatpush3.bf16.msra.mxu1 %v12015_v31  ;;  %v10140_v31 = vcombine.low %v7486_v13, %v7500_v14 }
 0x3d1   : > { %11392 = vmatprep.subr.bf16.mxu1 %v12017_v39 }
 0x3d2   : > { %11373 = vmatpush3.bf16.msra.mxu0 %v12014_v30 }
 0x3d3   : > { %11374 = vmatprep.subr.bf16.mxu0 %v12016_v42 }
 0x3d4   : > { %v11102_v55 = vpop.f32.mrb[48].mxu0  ;;  %11393 = vmatpush3.bf16.msra.mxu1 %v12017_v39  ;;  %v12029_v39 = vld [vmem:[%s14512_s25 + $0x88] sm:$0xff]  }
 0x3d5   : > { %v4880_v29 = vadd.f32 %v11102_v55, %v4876_v52  ;;  %v4859_v60 = vpop.f32.mrb[49].mxu0  ;;  %11394 = vmatprep.subr.bf16.mxu1 %v12019_v47  ;;  %v7716_v55 = vshll.u32 %v7668_v27, 16 }
 0x3d6   : > { %v4878_v2 = vadd.f32 %v4874_v56, %v4859_v60  ;;  %v11103_v32 = vpop.f32.mrb[50].mxu0  ;;  %11375 = vmatpush3.bf16.msra.mxu0 %v12016_v42  ;;  %v11122_v3 = vpop.f32.mrb[48].mxu1  ;;  %v12031_v42 = vld [vmem:[%s14512_s25 + $0x90] sm:$0xff]   ;;  %v12035_v56 = vld [vmem:[%s14512_s25 + $0xa0] sm:$0xff]   ;;  %v8023_v60 = vshrl.u32 %v8002_v35, 16 }
 0x3d7   : > { %4884 = vst.msk [vmem:[#allocation4 + $0x10] sm:$0xff] %vm735_vm0, %v4880_v29  ;;  %v4881_v4 = vadd.f32 %v11103_v32, %v4877_v61  ;;  %v4862_v19 = vpop.f32.mrb[51].mxu0  ;;  %11376 = vmatprep.subr.bf16.mxu0 %v12018_v18  ;;  %v5056_v5 = vpop.f32.mrb[49].mxu1  ;;  %v8012_v29 = vshll.u32 %v8000_v49, 16  ;;  %v8026_v61 = vshll.u32 %v8002_v35, 16  ;;  %v7518_v32 = vrot.slane %v7516_v48, 4 }
 0x3d8   : > { %4882 = vst.msk [vmem:[#allocation4] sm:$0xff] %vm735_vm0, %v4878_v2  ;;  %v4879_v51 = vadd.f32 %v4875_v26, %v4862_v19  ;;  %11395 = vmatpush3.bf16.msra.mxu1 %v12019_v47  ;;  %v11123_v7 = vpop.f32.mrb[50].mxu1  ;;  %v7666_v47 = vld [vmem:[#allocation2 + $0x18] sm:$0xf]  ;;  %v7507_v2 = vrot.slane %v7505_v59, 5  ;;  %v7511_v26 = vshll.u32 %v7470_v50, 16 }
 0x3d9   : > { %4885 = vst.msk [vmem:[#allocation4 + $0x18] sm:$0xff] %vm735_vm0, %v4881_v4  ;;  %v5059_v8 = vpop.f32.mrb[51].mxu1  ;;  %11396 = vmatprep.subr.bf16.mxu1 %v12021_v53  ;;  %v7699_v52 = vshrl.u32 %v7666_v47, 16  ;;  %v12037_v4 = vld [vmem:[%s14512_s25 + $0xa8] sm:$0xff]   ;;  %v7472_v19 = vld [vmem:[#allocation2 + $0x54] sm:$0x1] }
 0x3da   : > { %4883 = vst.msk [vmem:[#allocation4 + $0x8] sm:$0xff] %vm735_vm0, %v4879_v51  ;;  %11377 = vmatpush3.bf16.msra.mxu0 %v12018_v18  ;;  %v7519_v18 = vshll.u32 %v7471_v45, 16  ;;  %v7718_v22 = vrot.slane %v7716_v55, 5  ;;  %v8014_v41 = vrot.slane %v8012_v29, 5  ;;  %v8025_v11 = vrot.slane %v8023_v60, 4  ;;  %v12038_v49 = vld [vmem:[%s14512_s25 + $0x78] sm:$0xff]  }
 0x3db   : > { %11378 = vmatprep.subr.bf16.mxu0 %v12020_v63  ;;  %v7701_v6 = vrot.slane %v7699_v52, 4  ;;  %v7508_v13 = vor.u32 %v7507_v2, %v7504_v1  ;;  %v7513_v28 = vrot.slane %v7511_v26, 5  ;;  %v12040_v2 = vld [vmem:[%s14512_s25 + $0xc0] sm:$0xff]  }
 0x3dc   : > { %11397 = vmatpush3.bf16.msra.mxu1 %v12021_v53  ;;  %v7702_v53 = vshll.u32 %v7666_v47, 16 }
 0x3dd   : > { %11398 = vmatprep.subr.bf16.mxu1 %v12023_v20 }
 0x3de   : > { %v5073_v30 = vld [vmem:[#allocation4 + $0x10] sm:$0xff]  ;;  %11379 = vmatpush3.bf16.msra.mxu0 %v12020_v63  ;;  %v12034_v63 = vld [vmem:[%s14512_s25 + $0x68] sm:$0xff]   ;;  %v7704_v51 = vrot.slane %v7702_v53, 5 }
 0x3df   : > { %v5077_v0 = vadd.f32 %v11122_v3, %v5073_v30  ;;  %v5071_v33 = vld [vmem:[#allocation4] sm:$0xff]  ;;  %11404 = vmatprep.subr.bf16.mxu0 %v12022_v23  ;;  %v7521_v3 = vrot.slane %v7519_v18, 5 }
 0x3e0   : > { %v5075_v58 = vadd.f32 %v5071_v33, %v5056_v5  ;;  %v5074_v15 = vld [vmem:[#allocation4 + $0x18] sm:$0xff]  ;;  %11399 = vmatpush3.bf16.msra.mxu1 %v12023_v20  ;;  %v7669_v20 = vld [vmem:[#allocation2 + $0x24] sm:$0x1]  ;;  %v7705_v33 = vor.u32 %v7704_v51, %v7701_v6  ;;  %v12055_v6 = vld [vmem:[#allocation2 + $0x68] ss:$8 sps:$4 sm:$0xff]  }
 0x3e1   : > { %5081 = vst.msk [vmem:[#allocation4 + $0x10] sm:$0xff] %vm735_vm0, %v5077_v0  ;;  %v5078_v38 = vadd.f32 %v11123_v7, %v5074_v15  ;;  %v5072_v16 = vld [vmem:[#allocation4 + $0x8] sm:$0xff]  ;;  %11381 = vmatmul.mubr.bf16.vlgmr.msra.gmra.mrb[76].mxu0 %v10099_v34  ;;  %11424 = vmatprep.subr.bf16.mxu1 %v12026_v25  ;;  %v7667_v5 = vld [vmem:[#allocation2 + $0x1c] sm:$0x1]  ;;  %v7715_v7 = vrot.slane %v7713_v54, 4  ;;  %v7522_v14 = vor.u32 %v7521_v3, %v7518_v32  ;;  %v7525_v34 = vshll.u32 %v7472_v19, 16 }
 0x3e2   : > { %5079 = vst.msk [vmem:[#allocation4] sm:$0xff] %vm735_vm0, %v5075_v58  ;;  %v5076_v40 = vadd.f32 %v5072_v16, %v5059_v8  ;;  %11405 = vmatpush3.bf16.msra.mxu0 %v12022_v23  ;;  %11420 = vmatprep.mubr.bf16.mxu0 %v10140_v31  ;;  %v8001_v8 = vld [vmem:[#allocation2 + $0x9c] sm:$0x1]  ;;  %v8028_v23 = vrot.slane %v8026_v61, 5  ;;  %v7708_v30 = vshll.u32 %v7667_v5, 16  ;;  %v12039_v16 = vld [vmem:[%s14512_s25 + $0xb0] sm:$0xff]  }
 0x3e3   : > { %5082 = vst.msk [vmem:[#allocation4 + $0x18] sm:$0xff] %vm735_vm0, %v5078_v38  ;;  %11406 = vmatprep.subr.bf16.mxu0 %v12024_v21  ;;  %11401 = vmatmul.mubr.bf16.vlgmr.msra.gmra.mrb[76].mxu1 %v12027_v36  ;;  %v7722_v36 = vshll.u32 %v7669_v20, 16  ;;  %v8018_v58 = vshll.u32 %v8001_v8, 16  ;;  %v7523_v17 = vrot.slane %v7522_v14, 4  ;;  %v7527_v59 = vrot.slane %v7525_v34, 5  ;;  %v12043_v19 = vld [vmem:[%s14512_s25 + $0x100] sm:$0xff]  }
 0x3e4   : > { %5080 = vst.msk [vmem:[#allocation4 + $0x8] sm:$0xff] %vm735_vm0, %v5076_v40  ;;  %11425 = vmatpush3.bf16.msra.mxu1 %v12026_v25  ;;  %11440 = vmatprep.mubr.bf16.mxu1 %v10166_v10  ;;  %v8003_v25 = vld [vmem:[#allocation2 + $0xa4] sm:$0x1]  ;;  %v8029_v40 = vor.u32 %v8028_v23, %v8025_v11  ;;  %v7710_v35 = vrot.slane %v7708_v30, 5  ;;  %v7706_v52 = vrot.slane %v7705_v33, 4  ;;  %v12045_v14 = vld [vmem:[%s14512_s25 + $0x108] sm:$0xff]  }
 0x3e5   : > { %11426 = vmatprep.subr.bf16.mxu1 %v12029_v39  ;;  %v7724_v54 = vrot.slane %v7722_v36, 5  ;;  %v8020_v29 = vrot.slane %v8018_v58, 5  ;;  %v7528_v1 = vsel %vm13222_vm10, %v7523_v17, %v7527_v59  ;;  %v8197_v30 = vld [vmem:[#allocation2 + $0x68] sm:$0xf]  ;;  %v12048_v36 = vld [vmem:[%s14512_s25 + $0xe0] sm:$0xff]  }
 0x3e6   : > { %11407 = vmatpush3.bf16.msra.mxu0 %v12024_v21  ;;  %v7719_v21 = vor.u32 %v7718_v22, %v7715_v7  ;;  %v8030_v60 = vrot.slane %v8029_v40, 4  ;;  %v7711_v32 = vsel %vm13222_vm10, %v7706_v52, %v7710_v35  ;;  %v12042_v22 = vld [vmem:[%s14512_s25 + $0xc8] sm:$0xff]   ;;  %v8206_v58 = vshrl.u32 %v8197_v30, 16  ;;  %v8200_v35 = vld [vmem:[#allocation2 + $0x74] sm:$0x1] }
 0x3e7   : > { %11408 = vmatprep.subr.bf16.mxu0 %v12028_v37  ;;  %v8004_v33 = vld [vmem:[#allocation2 + $0xa8] sm:$0xf] }
 0x3e8   : > { %11427 = vmatpush3.bf16.msra.mxu1 %v12029_v39  ;;  %v5270_v0 = vld [vmem:[#allocation4 + $0x10] sm:$0xff]  ;;  %v8015_v39 = vor.u32 %v8014_v41, %v8011_v9  ;;  %v7720_v53 = vrot.slane %v7719_v21, 4 }
 0x3e9   : > { %11428 = vmatprep.subr.bf16.mxu1 %v12031_v42  ;;  %v5268_v38 = vld [vmem:[#allocation4] sm:$0xff]  ;;  %v8006_v21 = vld [vmem:[#allocation2 + $0xb0] sm:$0xf] }
 0x3ea   : > { %11409 = vmatpush3.bf16.msra.mxu0 %v12028_v37  ;;  %v8032_v37 = vshll.u32 %v8003_v25, 16  ;;  %v8016_v57 = vrot.slane %v8015_v39, 4  ;;  %v7725_v3 = vsel %vm13222_vm10, %v7720_v53, %v7724_v54  ;;  %v12044_v25 = vld [vmem:[%s14512_s25 + $0xd0] sm:$0xff]   ;;  %v8040_v39 = vshll.u32 %v8004_v33, 16 }
 0x3eb   : > { %11410 = vmatprep.subr.bf16.mxu0 %v12030_v44  ;;  %v5269_v48 = vld [vmem:[#allocation4 + $0x8] sm:$0xff]  ;;  %v10167_v8 = vcombine.low %v7711_v32, %v7725_v3  ;;  %v8051_v40 = vshrl.u32 %v8006_v21, 16  ;;  %v12052_v54 = vld [vmem:[%s14512_s25 + $0xf0] sm:$0xff]  }
 0x3ec   : > { %11429 = vmatpush3.bf16.msra.mxu1 %v12031_v42  ;;  %v8034_v61 = vrot.slane %v8032_v37, 5  ;;  %v8021_v26 = vsel %vm13222_vm10, %v8016_v57, %v8020_v29  ;;  %v8054_v37 = vshll.u32 %v8006_v21, 16  ;;  %v8229_v57 = vshll.u32 %v8200_v35, 16  ;;  %v14211_v35 = vld [vmem:[%s14516_s22] ss:$0 sm:$0xff] }
 0x3ed   : > { %11430 = vmatprep.subr.bf16.mxu1 %v12033_v46 }
 0x3ee   : > { %11411 = vmatpush3.bf16.msra.mxu0 %v12030_v44  ;;  %v5271_v44 = vld [vmem:[#allocation4 + $0x18] sm:$0xff]  ;;  %v8035_v5 = vsel %vm13222_vm10, %v8030_v60, %v8034_v61 }
 0x3ef   : > { %11412 = vmatprep.subr.bf16.mxu0 %v12032_v43  ;;  %v10218_v11 = vcombine.low %v8021_v26, %v8035_v5 }
 0x3f0   : > { %11431 = vmatpush3.bf16.msra.mxu1 %v12033_v46  ;;  %v7509_v46 = vrot.slane %v7508_v13, 4 }
 0x3f1   : > { %11432 = vmatprep.subr.bf16.mxu1 %v12035_v56 }
 0x3f2   : > { %11413 = vmatpush3.bf16.msra.mxu0 %v12032_v43 }
 0x3f3   : > { %11414 = vmatprep.subr.bf16.mxu0 %v12034_v63 }
 0x3f4   : > { %v11142_v31 = vpop.f32.mrb[52].mxu0  ;;  %11433 = vmatpush3.bf16.msra.mxu1 %v12035_v56  ;;  %v12041_v56 = vld [vmem:[%s14512_s25 + $0xb8] sm:$0xff]  }
 0x3f5   : > { %v5274_v15 = vadd.f32 %v11142_v31, %v5270_v0  ;;  %v5253_v10 = vpop.f32.mrb[53].mxu0  ;;  %11434 = vmatprep.subr.bf16.mxu1 %v12037_v4  ;;  %v8199_v31 = vld [vmem:[#allocation2 + $0x70] sm:$0xf]  ;;  %v12049_v0 = vld [vmem:[%s14512_s25 + $0x118] sm:$0xff]  }
 0x3f6   : > { %v5272_v42 = vadd.f32 %v5268_v38, %v5253_v10  ;;  %v11143_v12 = vpop.f32.mrb[54].mxu0  ;;  %11415 = vmatpush3.bf16.msra.mxu0 %v12034_v63  ;;  %v11162_v45 = vpop.f32.mrb[52].mxu1  ;;  %v7514_v63 = vsel %vm13222_vm10, %v7509_v46, %v7513_v28  ;;  %v12046_v28 = vld [vmem:[%s14512_s25 + $0xd8] sm:$0xff]   ;;  %v8220_v10 = vshrl.u32 %v8199_v31, 16  ;;  %v8223_v38 = vshll.u32 %v8199_v31, 16 }
 0x3f7   : > { %5278 = vst.msk [vmem:[#allocation4 + $0x10] sm:$0xff] %vm735_vm0, %v5274_v15  ;;  %v5275_v47 = vadd.f32 %v11143_v12, %v5271_v44  ;;  %v5256_v27 = vpop.f32.mrb[55].mxu0  ;;  %11416 = vmatprep.subr.bf16.mxu0 %v12036_v24  ;;  %v5394_v18 = vpop.f32.mrb[53].mxu1  ;;  %v8209_v15 = vshll.u32 %v8197_v30, 16  ;;  %v12050_v12 = vld [vmem:[%s14512_s25 + $0xe8] sm:$0xff]   ;;  %v8208_v46 = vrot.slane %v8206_v58, 4 }
 0x3f8   : > { %5276 = vst.msk [vmem:[#allocation4] sm:$0xff] %vm735_vm0, %v5272_v42  ;;  %v5273_v43 = vadd.f32 %v5269_v48, %v5256_v27  ;;  %11435 = vmatpush3.bf16.msra.mxu1 %v12037_v4  ;;  %v11163_v50 = vpop.f32.mrb[54].mxu1  ;;  %v10141_v4 = vcombine.low %v7514_v63, %v7528_v1  ;;  %v12051_v42 = vld [vmem:[%s14512_s25 + $0x120] sm:$0xff]   ;;  %v8005_v44 = vld [vmem:[#allocation2 + $0xac] sm:$0x1]  ;;  %v8222_v59 = vrot.slane %v8220_v10, 4 }
 0x3f9   : > { %5279 = vst.msk [vmem:[#allocation4 + $0x18] sm:$0xff] %vm735_vm0, %v5275_v47  ;;  %v5397_v55 = vpop.f32.mrb[55].mxu1  ;;  %11436 = vmatprep.subr.bf16.mxu1 %v12039_v16  ;;  %v8211_v17 = vrot.slane %v8209_v15, 5  ;;  %v8225_v47 = vrot.slane %v8223_v38, 5  ;;  %v8042_v48 = vrot.slane %v8040_v39, 5  ;;  %v8046_v52 = vshll.u32 %v8005_v44, 16 }
 0x3fa   : > { %5277 = vst.msk [vmem:[#allocation4 + $0x8] sm:$0xff] %vm735_vm0, %v5273_v43  ;;  %11417 = vmatpush3.bf16.msra.mxu0 %v12036_v24  ;;  %v12047_v24 = vld [vmem:[%s14512_s25 + $0x110] sm:$0xff]   ;;  %v12053_v43 = vld [vmem:[%s14512_s25 + $0x128] sm:$0xff]   ;;  %v12059_v31 = vld [vmem:[%s14512_s25 + $0x138] sm:$0xff]  }
 0x3fb   : > { %11418 = vmatprep.subr.bf16.mxu0 %v12038_v49  ;;  %v12057_v15 = vld [vmem:[#allocation2 + $0x78] ss:$8 sps:$4 sm:$0xff]  }
 0x3fc   : > { %11437 = vmatpush3.bf16.msra.mxu1 %v12039_v16  ;;  %v8037_v16 = vshrl.u32 %v8004_v33, 16  ;;  %v12061_v10 = vld [vmem:[%s14512_s25 + $0x180] sm:$0xff]  }
 0x3fd   : > { %11438 = vmatprep.subr.bf16.mxu1 %v12041_v56 }
 0x3fe   : > { %v5411_v20 = vld [vmem:[#allocation4 + $0x10] sm:$0xff]  ;;  %11419 = vmatpush3.bf16.msra.mxu0 %v12038_v49  ;;  %v8039_v27 = vrot.slane %v8037_v16, 4  ;;  %v8056_v49 = vrot.slane %v8054_v37, 5  ;;  %v12060_v37 = vld [vmem:[%s14512_s25 + $0x148] sm:$0xff]  }
 0x3ff   : > { %v5415_v51 = vadd.f32 %v11162_v45, %v5411_v20  ;;  %v5409_v7 = vld [vmem:[#allocation4] sm:$0xff]  ;;  %11444 = vmatprep.subr.bf16.mxu0 %v12040_v2  ;;  %v8198_v45 = vld [vmem:[#allocation2 + $0x6c] sm:$0x1] }
 0x400   : > { %v5413_v9 = vadd.f32 %v5409_v7, %v5394_v18  ;;  %v5412_v41 = vld [vmem:[#allocation4 + $0x18] sm:$0xff]  ;;  %11439 = vmatpush3.bf16.msra.mxu1 %v12041_v56  ;;  %v8053_v18 = vrot.slane %v8051_v40, 4  ;;  %v8215_v53 = vshll.u32 %v8198_v45, 16  ;;  %v8226_v56 = vor.u32 %v8225_v47, %v8222_v59  ;;  %v12063_v59 = vld [vmem:[%s14512_s25 + $0x188] sm:$0xff]  }
 0x401   : > { %5419 = vst.msk [vmem:[#allocation4 + $0x10] sm:$0xff] %vm735_vm0, %v5415_v51  ;;  %v5416_v23 = vadd.f32 %v11163_v50, %v5412_v41  ;;  %v5410_v13 = vld [vmem:[#allocation4 + $0x8] sm:$0xff]  ;;  %11421 = vmatmul.mubr.bf16.vlgmr.msra.gmra.mrb[80].mxu0 %v10141_v4  ;;  %11464 = vmatprep.subr.bf16.mxu1 %v12043_v19  ;;  %v8007_v50 = vld [vmem:[#allocation2 + $0xb4] sm:$0x1]  ;;  %v8043_v61 = vor.u32 %v8042_v48, %v8039_v27  ;;  %v8048_v51 = vrot.slane %v8046_v52, 5  ;;  %v12064_v52 = vld [vmem:[%s14512_s25 + $0x158] sm:$0xff]  }
 0x402   : > { %5417 = vst.msk [vmem:[#allocation4] sm:$0xff] %vm735_vm0, %v5413_v9  ;;  %v5414_v34 = vadd.f32 %v5410_v13, %v5397_v55  ;;  %11445 = vmatpush3.bf16.msra.mxu0 %v12040_v2  ;;  %11460 = vmatprep.mubr.bf16.mxu0 %v12055_v6  ;;  %v8212_v55 = vor.u32 %v8211_v17, %v8208_v46  ;;  %v8060_v1 = vshll.u32 %v8007_v50, 16  ;;  %v12056_v4 = vld [vmem:[%s14512_s25 + $0x130] sm:$0xff]   ;;  %v12054_v6 = vld [vmem:[%s14512_s25 + $0xf8] sm:$0xff]   ;;  %v8217_v7 = vrot.slane %v8215_v53, 5 }
 0x403   : > { %5420 = vst.msk [vmem:[#allocation4 + $0x18] sm:$0xff] %vm735_vm0, %v5416_v23  ;;  %11446 = vmatprep.subr.bf16.mxu0 %v12042_v22  ;;  %11441 = vmatmul.mubr.bf16.vlgmr.msra.gmra.mrb[80].mxu1 %v10167_v8  ;;  %v8057_v63 = vor.u32 %v8056_v49, %v8053_v18  ;;  %v8227_v23 = vrot.slane %v8226_v56, 4  ;;  %v8231_v13 = vrot.slane %v8229_v57, 5  ;;  %v12077_v45 = vld [vmem:[#allocation2 + $0x10] ss:$8 sps:$4 sm:$0xff]  }
 0x404   : > { %5418 = vst.msk [vmem:[#allocation4 + $0x8] sm:$0xff] %vm735_vm0, %v5414_v34  ;;  %11465 = vmatpush3.bf16.msra.mxu1 %v12043_v19  ;;  %11480 = vmatprep.mubr.bf16.mxu1 %v10218_v11  ;;  %v8213_v11 = vrot.slane %v8212_v55, 4  ;;  %v8201_v27 = vld [vmem:[#allocation2 + $0x78] sm:$0xf]  ;;  %v12062_v48 = vld [vmem:[%s14512_s25 + $0x150] sm:$0xff]  }
 0x405   : > { %11466 = vmatprep.subr.bf16.mxu1 %v12045_v14  ;;  %v8232_v21 = vsel %vm13222_vm10, %v8227_v23, %v8231_v13  ;;  %v12065_v18 = vld [vmem:[%s14512_s25 + $0x190] sm:$0xff]   ;;  %v8234_v49 = vshrl.u32 %v8201_v27, 16  ;;  %v8237_v50 = vshll.u32 %v8201_v27, 16  ;;  %v8535_v53 = vld [vmem:[#allocation2 + $0x40] sm:$0xf]  ;;  %v12067_v55 = vld [vmem:[%s14512_s25 + $0x198] sm:$0xff]  }
 0x406   : > { %11447 = vmatpush3.bf16.msra.mxu0 %v12042_v22  ;;  %v8218_v33 = vsel %vm13222_vm10, %v8213_v11, %v8217_v7  ;;  %v8537_v56 = vld [vmem:[#allocation2 + $0x48] sm:$0xf] }
 0x407   : > { %11448 = vmatprep.subr.bf16.mxu0 %v12044_v25  ;;  %v10244_v16 = vcombine.low %v8218_v33, %v8232_v21 }
 0x408   : > { %11467 = vmatpush3.bf16.msra.mxu1 %v12045_v14  ;;  %v5608_v60 = vld [vmem:[#allocation4 + $0x10] sm:$0xff] }
 0x409   : > { %11468 = vmatprep.subr.bf16.mxu1 %v12047_v24  ;;  %v5606_v3 = vld [vmem:[#allocation4] sm:$0xff] }
 0x40a   : > { %11449 = vmatpush3.bf16.msra.mxu0 %v12044_v25  ;;  %v5609_v5 = vld [vmem:[#allocation4 + $0x18] sm:$0xff]  ;;  %v8044_v25 = vrot.slane %v8043_v61, 4 }
 0x40b   : > { %11450 = vmatprep.subr.bf16.mxu0 %v12046_v28  ;;  %v5607_v9 = vld [vmem:[#allocation4 + $0x8] sm:$0xff] }
 0x40c   : > { %11469 = vmatpush3.bf16.msra.mxu1 %v12047_v24  ;;  %v8058_v24 = vrot.slane %v8057_v63, 4 }
 0x40d   : > { %11470 = vmatprep.subr.bf16.mxu1 %v12049_v0 }
 0x40e   : > { %11451 = vmatpush3.bf16.msra.mxu0 %v12046_v28  ;;  %v8062_v28 = vrot.slane %v8060_v1, 5  ;;  %v8732_v1 = vld [vmem:[#allocation2 + $0x10] sm:$0xf] }
 0x40f   : > { %11452 = vmatprep.subr.bf16.mxu0 %v12048_v36  ;;  %v8741_v11 = vshrl.u32 %v8732_v1, 16  ;;  %v8744_v23 = vshll.u32 %v8732_v1, 16 }
 0x410   : > { %11471 = vmatpush3.bf16.msra.mxu1 %v12049_v0  ;;  %v12058_v0 = vld [vmem:[%s14512_s25 + $0x140] sm:$0xff]   ;;  %v8063_v58 = vsel %vm13222_vm10, %v8058_v24, %v8062_v28 }
 0x411   : > { %11472 = vmatprep.subr.bf16.mxu1 %v12051_v42 }
 0x412   : > { %11453 = vmatpush3.bf16.msra.mxu0 %v12048_v36  ;;  %v8049_v36 = vsel %vm13222_vm10, %v8044_v25, %v8048_v51  ;;  %v8202_v25 = vld [vmem:[#allocation2 + $0x7c] sm:$0x1] }
 0x413   : > { %11454 = vmatprep.subr.bf16.mxu0 %v12050_v12 }
 0x414   : > { %v11182_v29 = vpop.f32.mrb[56].mxu0  ;;  %11473 = vmatpush3.bf16.msra.mxu1 %v12051_v42  ;;  %v10219_v42 = vcombine.low %v8049_v36, %v8063_v58  ;;  %v8204_v36 = vld [vmem:[#allocation2 + $0x84] sm:$0x1] }
 0x415   : > { %v5612_v2 = vadd.f32 %v11182_v29, %v5608_v60  ;;  %v5591_v32 = vpop.f32.mrb[57].mxu0  ;;  %11474 = vmatprep.subr.bf16.mxu1 %v12053_v43  ;;  %v14220_v60 = vrot.slane %v8234_v49, 4  ;;  %v8257_v27 = vshll.u32 %v8204_v36, 16  ;;  %v12070_v49 = vld [vmem:[%s14512_s25 + $0x170] sm:$0xff]  }
 0x416   : > { %v5610_v19 = vadd.f32 %v5606_v3, %v5591_v32  ;;  %v11183_v26 = vpop.f32.mrb[58].mxu0  ;;  %11455 = vmatpush3.bf16.msra.mxu0 %v12050_v12  ;;  %v11202_v20 = vpop.f32.mrb[56].mxu1  ;;  %v14223_v3 = vrot.slane %v8237_v50, 5 }
 0x417   : > { %5616 = vst.msk [vmem:[#allocation4 + $0x10] sm:$0xff] %vm735_vm0, %v5612_v2  ;;  %v5613_v22 = vadd.f32 %v11183_v26, %v5609_v5  ;;  %v5594_v8 = vpop.f32.mrb[59].mxu0  ;;  %11456 = vmatprep.subr.bf16.mxu0 %v12052_v54  ;;  %v5788_v41 = vpop.f32.mrb[57].mxu1  ;;  %v8734_v26 = vld [vmem:[#allocation2 + $0x18] sm:$0xf] }
 0x418   : > { %5614 = vst.msk [vmem:[#allocation4] sm:$0xff] %vm735_vm0, %v5610_v19  ;;  %v5611_v14 = vadd.f32 %v5607_v9, %v5594_v8  ;;  %11475 = vmatpush3.bf16.msra.mxu1 %v12053_v43  ;;  %v11203_v34 = vpop.f32.mrb[58].mxu1  ;;  %v8203_v43 = vld [vmem:[#allocation2 + $0x80] sm:$0xf]  ;;  %v8547_v19 = vshll.u32 %v8535_v53, 16  ;;  %v8561_v8 = vshll.u32 %v8537_v56, 16 }
 0x419   : > { %5617 = vst.msk [vmem:[#allocation4 + $0x18] sm:$0xff] %vm735_vm0, %v5613_v22  ;;  %v5791_v30 = vpop.f32.mrb[59].mxu1  ;;  %11476 = vmatprep.subr.bf16.mxu1 %v12056_v4  ;;  %v8248_v61 = vshrl.u32 %v8203_v43, 16  ;;  %v8251_v63 = vshll.u32 %v8203_v43, 16  ;;  %v12093_v5 = vld [vmem:[%s14518_s20] ss:$0 sm:$0xff] }
 0x41a   : > { %5615 = vst.msk [vmem:[#allocation4 + $0x8] sm:$0xff] %vm735_vm0, %v5611_v14  ;;  %11457 = vmatpush3.bf16.msra.mxu0 %v12052_v54  ;;  %v8558_v22 = vshrl.u32 %v8537_v56, 16  ;;  %v8755_v24 = vshrl.u32 %v8734_v26, 16  ;;  %v8758_v28 = vshll.u32 %v8734_v26, 16  ;;  %v12072_v56 = vld [vmem:[%s14512_s25 + $0x178] sm:$0xff]  }
 0x41b   : > { %11458 = vmatprep.subr.bf16.mxu0 %v12054_v6  ;;  %v8250_v33 = vrot.slane %v8248_v61, 4  ;;  %v8253_v21 = vrot.slane %v8251_v63, 5 }
 0x41c   : > { %11477 = vmatpush3.bf16.msra.mxu1 %v12056_v4  ;;  %v8544_v4 = vshrl.u32 %v8535_v53, 16 }
 0x41d   : > { %11478 = vmatprep.subr.bf16.mxu1 %v12059_v31 }
 0x41e   : > { %v5805_v38 = vld [vmem:[#allocation4 + $0x10] sm:$0xff]  ;;  %11459 = vmatpush3.bf16.msra.mxu0 %v12054_v6  ;;  %v12066_v6 = vld [vmem:[%s14512_s25 + $0x160] sm:$0xff]   ;;  %v8546_v58 = vrot.slane %v8544_v4, 4 }
 0x41f   : > { %v5809_v39 = vadd.f32 %v11202_v20, %v5805_v38  ;;  %v5803_v40 = vld [vmem:[#allocation4] sm:$0xff]  ;;  %11484 = vmatprep.subr.bf16.mxu0 %v12058_v0  ;;  %v8563_v38 = vrot.slane %v8561_v8, 5 }
 0x420   : > { %v5807_v12 = vadd.f32 %v5803_v40, %v5788_v41  ;;  %v5806_v44 = vld [vmem:[#allocation4 + $0x18] sm:$0xff]  ;;  %11479 = vmatpush3.bf16.msra.mxu1 %v12059_v31  ;;  %v8538_v40 = vld [vmem:[#allocation2 + $0x4c] sm:$0x1] }
 0x421   : > { %5813 = vst.msk [vmem:[#allocation4 + $0x10] sm:$0xff] %vm735_vm0, %v5809_v39  ;;  %v5810_v46 = vadd.f32 %v11203_v34, %v5806_v44  ;;  %v5804_v17 = vld [vmem:[#allocation4 + $0x8] sm:$0xff]  ;;  %11461 = vmatmul.mubr.bf16.vlgmr.msra.gmra.mrb[84].mxu0 %v12057_v15  ;;  %11504 = vmatprep.subr.bf16.mxu1 %v12061_v10  ;;  %v12069_v34 = vld [vmem:[%s14512_s25 + $0x1a0] sm:$0xff]   ;;  %v8549_v15 = vrot.slane %v8547_v19, 5  ;;  %v8746_v44 = vrot.slane %v8744_v23, 5  ;;  %v8567_v53 = vshll.u32 %v8538_v40, 16 }
 0x422   : > { %5811 = vst.msk [vmem:[#allocation4] sm:$0xff] %vm735_vm0, %v5807_v12  ;;  %v5808_v47 = vadd.f32 %v5804_v17, %v5791_v30  ;;  %11485 = vmatpush3.bf16.msra.mxu0 %v12058_v0  ;;  %11500 = vmatprep.mubr.bf16.mxu0 %v10244_v16  ;;  %v12068_v0 = vld [vmem:[%s14512_s25 + $0x168] sm:$0xff]   ;;  %v8243_v16 = vshll.u32 %v8202_v25, 16  ;;  %v8536_v39 = vld [vmem:[#allocation2 + $0x44] sm:$0x1]  ;;  %v8259_v19 = vrot.slane %v8257_v27, 5 }
 0x423   : > { %5814 = vst.msk [vmem:[#allocation4 + $0x18] sm:$0xff] %vm735_vm0, %v5810_v46  ;;  %11486 = vmatprep.subr.bf16.mxu0 %v12060_v37  ;;  %11481 = vmatmul.mubr.bf16.vlgmr.msra.gmra.mrb[84].mxu1 %v10219_v42  ;;  %v12071_v12 = vld [vmem:[%s14512_s25 + $0x1a8] sm:$0xff]   ;;  %v8760_v46 = vrot.slane %v8758_v28, 5  ;;  %v8550_v43 = vor.u32 %v8549_v15, %v8546_v58  ;;  %v8553_v50 = vshll.u32 %v8536_v39, 16  ;;  %v12074_v25 = vld [vmem:[%s14512_s25 + $0x1c0] sm:$0xff]   ;;  %v12085_v27 = vld [vmem:[%s14512_s25 + $0x218] sm:$0xff]  }
 0x424   : > { %5812 = vst.msk [vmem:[#allocation4 + $0x8] sm:$0xff] %vm735_vm0, %v5808_v47  ;;  %11505 = vmatpush3.bf16.msra.mxu1 %v12061_v10  ;;  %11520 = vmatprep.mubr.bf16.mxu1 %v12077_v45  ;;  %v8560_v10 = vrot.slane %v8558_v22, 4  ;;  %v8757_v45 = vrot.slane %v8755_v24, 4  ;;  %v8254_v47 = vor.u32 %v8253_v21, %v8250_v33  ;;  %v12078_v21 = vld [vmem:[%s14512_s25 + $0x200] sm:$0xff]   ;;  %v12076_v40 = vld [vmem:[%s14512_s25 + $0x1c8] sm:$0xff]  }
 0x425   : > { %11506 = vmatprep.subr.bf16.mxu1 %v12063_v59 }
 0x426   : > { %11487 = vmatpush3.bf16.msra.mxu0 %v12060_v37  ;;  %v8743_v37 = vrot.slane %v8741_v11, 4  ;;  %v8761_v61 = vor.u32 %v8760_v46, %v8757_v45  ;;  %v8255_v4 = vrot.slane %v8254_v47, 4  ;;  %v12080_v45 = vld [vmem:[%s14512_s25 + $0x1d0] sm:$0xff]   ;;  %v8541_v47 = vld [vmem:[#allocation2 + $0x58] sm:$0xf] }
 0x427   : > { %11488 = vmatprep.subr.bf16.mxu0 %v12062_v48  ;;  %v12083_v46 = vld [vmem:[%s14512_s25 + $0x210] sm:$0xff]  }
 0x428   : > { %11507 = vmatpush3.bf16.msra.mxu1 %v12063_v59  ;;  %v5817_v54 = vld [vmem:[#allocation4 + $0x10] sm:$0xff]  ;;  %v8240_v59 = vor.u32 %v14223_v3, %v14220_v60  ;;  %v8245_v3 = vrot.slane %v8243_v16, 5  ;;  %v8762_v23 = vrot.slane %v8761_v61, 4 }
 0x429   : > { %v5828_v57 = vmul.f32 %v14211_v35, %v5817_v54  ;;  %11508 = vmatprep.subr.bf16.mxu1 %v12065_v18  ;;  %v5815_v29 = vld [vmem:[#allocation4] sm:$0xff] }
 0x42a   : > { %11489 = vmatpush3.bf16.msra.mxu0 %v12062_v48  ;;  %v5826_v2 = vmul.f32 %v14211_v35, %v5815_v29  ;;  %v5818_v32 = vld [vmem:[#allocation4 + $0x18] sm:$0xff]  ;;  %v8733_v48 = vld [vmem:[#allocation2 + $0x14] sm:$0x1]  ;;  %v8747_v29 = vor.u32 %v8746_v44, %v8743_v37  ;;  %v12079_v37 = vld [vmem:[#allocation2 + $0x20] ss:$8 sps:$4 sm:$0xff]  }
 0x42b   : > { %11490 = vmatprep.subr.bf16.mxu0 %v12064_v52  ;;  %v5839_v20 = vadd.f32 %v12093_v5, %v5828_v57  ;;  %v5829_v51 = vmul.f32 %v14211_v35, %v5818_v32  ;;  %v5816_v7 = vld [vmem:[#allocation4 + $0x8] sm:$0xff]  ;;  %v12073_v57 = vld [vmem:[%s14512_s25 + $0x1b0] sm:$0xff]   ;;  %v8750_v60 = vshll.u32 %v8733_v48, 16  ;;  %v8241_v32 = vrot.slane %v8240_v59, 4  ;;  %v8736_v48 = vld [vmem:[#allocation2 + $0x20] sm:$0xf] }
 0x42c   : > { %v5837_v9 = vadd.f32 %v12093_v5, %v5826_v2  ;;  %11509 = vmatpush3.bf16.msra.mxu1 %v12065_v18  ;;  %v5827_v41 = vmul.f32 %v14211_v35, %v5816_v7  ;;  %v8735_v18 = vld [vmem:[#allocation2 + $0x1c] sm:$0x1]  ;;  %v8569_v7 = vrot.slane %v8567_v53, 5  ;;  %v12081_v44 = vld [vmem:[%s14512_s25 + $0x208] sm:$0xff]   ;;  %v8539_v59 = vld [vmem:[#allocation2 + $0x50] sm:$0xf] }
 0x42d   : > { %v5843_v13 = vmax.f32 %v5839_v20, 0.0  ;;  %v5840_v14 = vadd.f32 %v12093_v5, %v5829_v51  ;;  %11510 = vmatprep.subr.bf16.mxu1 %v12067_v55  ;;  %v8764_v63 = vshll.u32 %v8735_v18, 16  ;;  %v8551_v20 = vrot.slane %v8550_v43, 4  ;;  %v8738_v18 = vld [vmem:[#allocation2 + $0x28] sm:$0xf]  ;;  %v12084_v53 = vld [vmem:[%s14512_s25 + $0x1e0] sm:$0xff]  }
 0x42e   : > { %11491 = vmatpush3.bf16.msra.mxu0 %v12064_v52  ;;  %v5841_v30 = vmax.f32 %v5837_v9, 0.0  ;;  %v5838_v31 = vadd.f32 %v12093_v5, %v5827_v41  ;;  %v8564_v52 = vor.u32 %v8563_v38, %v8560_v10  ;;  %v12075_v9 = vld [vmem:[%s14512_s25 + $0x1b8] sm:$0xff]   ;;  %v8748_v41 = vrot.slane %v8747_v29, 4  ;;  %v12087_v29 = vld [vmem:[%s14512_s25 + $0x220] sm:$0xff]  }
 0x42f   : > { %5853 = vrot.lane.b32.xlu1 %v5843_v13, %s12219_s7  ;;  %11492 = vmatprep.subr.bf16.mxu0 %v12066_v6  ;;  %v5844_v42 = vmax.f32 %v5840_v14, 0.0  ;;  %v8752_v11 = vrot.slane %v8750_v60, 5  ;;  %v8766_v13 = vrot.slane %v8764_v63, 5  ;;  %v8246_v14 = vsel %vm13222_vm10, %v8241_v32, %v8245_v3  ;;  %v8540_v60 = vld [vmem:[#allocation2 + $0x54] sm:$0x1]  ;;  %v12086_v32 = vld [vmem:[%s14512_s25 + $0x1e8] sm:$0xff]  }
 0x430   : > { %5849 = vrot.lane.b32.xlu0 %v5841_v30, %s12219_s7  ;;  %11511 = vmatpush3.bf16.msra.mxu1 %v12067_v55  ;;  %v5842_v17 = vmax.f32 %v5838_v31, 0.0  ;;  %v8565_v51 = vrot.slane %v8564_v52, 4  ;;  %v8575_v43 = vshll.u32 %v8539_v59, 16  ;;  %v8589_v52 = vshll.u32 %v8541_v47, 16  ;;  %v8542_v3 = vld [vmem:[#allocation2 + $0x5c] sm:$0x1] }
 0x431   : > { %11512 = vmatprep.subr.bf16.mxu1 %v12069_v34  ;;  %v8753_v36 = vsel %vm13222_vm10, %v8748_v41, %v8752_v11  ;;  %v8767_v58 = vsel %vm13222_vm10, %v8762_v23, %v8766_v13  ;;  %v12088_v41 = vld [vmem:[%s14512_s25 + $0x1f0] sm:$0xff]  }
 0x432   : > { %11493 = vmatpush3.bf16.msra.mxu0 %v12066_v6  ;;  %v8555_v6 = vrot.slane %v8553_v50, 5  ;;  %v8570_v28 = vsel %vm13222_vm10, %v8565_v51, %v8569_v7  ;;  %v8586_v50 = vshrl.u32 %v8541_v47, 16  ;;  %v8577_v63 = vrot.slane %v8575_v43, 5  ;;  %v8739_v7 = vld [vmem:[#allocation2 + $0x2c] sm:$0x1] }
 0x433   : > { %5855 = vrot.lane.b32.xlu1 %v5844_v42, %s12219_s7  ;;  %11494 = vmatprep.subr.bf16.mxu0 %v12068_v0  ;;  %v8581_v51 = vshll.u32 %v8540_v60, 16 }
 0x434   : > { %v11222_v54 = vpop.f32.mrb[60].mxu0  ;;  %5851 = vrot.lane.b32.xlu0 %v5842_v17, %s12219_s7  ;;  %11513 = vmatpush3.bf16.msra.mxu1 %v12069_v34  ;;  %v8260_v34 = vsel %vm13222_vm10, %v8255_v4, %v8259_v19  ;;  %v8556_v24 = vsel %vm13222_vm10, %v8551_v20, %v8555_v6  ;;  %v12082_v17 = vld [vmem:[%s14512_s25 + $0x1d8] sm:$0xff]   ;;  %v8737_v4 = vld [vmem:[#allocation2 + $0x24] sm:$0x1]  ;;  %v12089_v6 = vld [vmem:[%s14512_s25 + $0x228] sm:$0xff]  }
 0x435   : > { %5997 = vst.msk [vmem:[#allocation4 + $0x10] sm:$0xff] %vm735_vm0, %v11222_v54  ;;  %v5980_v55 = vpop.f32.mrb[61].mxu0  ;;  %11514 = vmatprep.subr.bf16.mxu1 %v12071_v12  ;;  %v10245_v33 = vcombine.low %v8246_v14, %v8260_v34  ;;  %v10296_v38 = vcombine.low %v8556_v24, %v8570_v28  ;;  %v8769_v54 = vshrl.u32 %v8736_v48, 16  ;;  %v8778_v11 = vshll.u32 %v8737_v4, 16 }
 0x436   : > { %5995 = vst.msk [vmem:[#allocation4] sm:$0xff] %vm735_vm0, %v5980_v55  ;;  %v11223_v1 = vpop.f32.mrb[62].mxu0  ;;  %11495 = vmatpush3.bf16.msra.mxu0 %v12068_v0  ;;  %v11242_v2 = vpop.f32.mrb[60].mxu1  ;;  %v8772_v55 = vshll.u32 %v8736_v48, 16 }
 0x437   : > { %5998 = vst.msk [vmem:[#allocation4 + $0x18] sm:$0xff] %vm735_vm0, %v11223_v1  ;;  %v5983_v26 = vpop.f32.mrb[63].mxu0  ;;  %11496 = vmatprep.subr.bf16.mxu0 %v12070_v49  ;;  %v6113_v5 = vpop.f32.mrb[61].mxu1  ;;  %v8588_v1 = vrot.slane %v8586_v50, 4  ;;  %v8771_v19 = vrot.slane %v8769_v54, 4 }
 0x438   : > { %5996 = vst.msk [vmem:[#allocation4 + $0x8] sm:$0xff] %vm735_vm0, %v5983_v26  ;;  %11515 = vmatpush3.bf16.msra.mxu1 %v12071_v12  ;;  %v11243_v22 = vpop.f32.mrb[62].mxu1  ;;  %v10322_v12 = vcombine.low %v8753_v36, %v8767_v58  ;;  %v8774_v26 = vrot.slane %v8772_v55, 5 }
 0x439   : > { %v6116_v8 = vpop.f32.mrb[63].mxu1  ;;  %11516 = vmatprep.subr.bf16.mxu1 %v12073_v57 }
 0x43a   : > { %11497 = vmatpush3.bf16.msra.mxu0 %v12070_v49  ;;  %v8572_v49 = vshrl.u32 %v8539_v59, 16  ;;  %v8775_v14 = vor.u32 %v8774_v26, %v8771_v19 }
 0x43b   : > { %11498 = vmatprep.subr.bf16.mxu0 %v12072_v56 }
 0x43c   : > { %v6130_v30 = vld [vmem:[#allocation4 + $0x10] sm:$0xff]  ;;  %11517 = vmatpush3.bf16.msra.mxu1 %v12073_v57  ;;  %v8786_v57 = vshll.u32 %v8738_v18, 16  ;;  %v8574_v61 = vrot.slane %v8572_v49, 4 }
 0x43d   : > { %v6134_v31 = vadd.f32 %v11242_v2, %v6130_v30  ;;  %v6128_v0 = vld [vmem:[#allocation4] sm:$0xff]  ;;  %11518 = vmatprep.subr.bf16.mxu1 %v12075_v9  ;;  %v8591_v2 = vrot.slane %v8589_v52, 5 }
 0x43e   : > { %v6132_v15 = vadd.f32 %v6128_v0, %v6113_v5  ;;  %v6131_v10 = vld [vmem:[#allocation4 + $0x18] sm:$0xff]  ;;  %11499 = vmatpush3.bf16.msra.mxu0 %v12072_v56  ;;  %v8783_v56 = vshrl.u32 %v8738_v18, 16  ;;  %v8788_v20 = vrot.slane %v8786_v57, 5  ;;  %v8583_v0 = vrot.slane %v8581_v51, 5 }
 0x43f   : > { %6138 = vst.msk [vmem:[#allocation4 + $0x10] sm:$0xff] %vm735_vm0, %v6134_v31  ;;  %v6135_v16 = vadd.f32 %v11243_v22, %v6131_v10  ;;  %v6129_v39 = vld [vmem:[#allocation4 + $0x8] sm:$0xff]  ;;  %11524 = vmatprep.subr.bf16.mxu0 %v12074_v25  ;;  %v8578_v22 = vor.u32 %v8577_v63, %v8574_v61  ;;  %v12091_v31 = vld [vmem:[%s14512_s25 + $0x230] sm:$0xff]  }
 0x440   : > { %6136 = vst.msk [vmem:[#allocation4] sm:$0xff] %vm735_vm0, %v6132_v15  ;;  %v6133_v42 = vadd.f32 %v6129_v39, %v6116_v8  ;;  %11519 = vmatpush3.bf16.msra.mxu1 %v12075_v9  ;;  %v8785_v5 = vrot.slane %v8783_v56, 4  ;;  %v8592_v8 = vor.u32 %v8591_v2, %v8588_v1  ;;  %v8595_v9 = vshll.u32 %v8542_v3, 16 }
 0x441   : > { %6139 = vst.msk [vmem:[#allocation4 + $0x18] sm:$0xff] %vm735_vm0, %v6135_v16  ;;  %11501 = vmatmul.mubr.bf16.vlgmr.msra.gmra.mrb[88].mxu0 %v10245_v33  ;;  %11544 = vmatprep.subr.bf16.mxu1 %v12078_v21  ;;  %v8579_v15 = vrot.slane %v8578_v22, 4 }
 0x442   : > { %6137 = vst.msk [vmem:[#allocation4 + $0x8] sm:$0xff] %vm735_vm0, %v6133_v42  ;;  %11525 = vmatpush3.bf16.msra.mxu0 %v12074_v25  ;;  %11540 = vmatprep.mubr.bf16.mxu0 %v10296_v38  ;;  %v8789_v34 = vor.u32 %v8788_v20, %v8785_v5  ;;  %v8792_v25 = vshll.u32 %v8739_v7, 16  ;;  %v8593_v10 = vrot.slane %v8592_v8, 4  ;;  %v8597_v38 = vrot.slane %v8595_v9, 5  ;;  %v12090_v42 = vld [vmem:[%s14512_s25 + $0x1f8] sm:$0xff]  }
 0x443   : > { %11526 = vmatprep.subr.bf16.mxu0 %v12076_v40  ;;  %11521 = vmatmul.mubr.bf16.vlgmr.msra.gmra.mrb[88].mxu1 %v12079_v37  ;;  %v8584_v48 = vsel %vm13222_vm10, %v8579_v15, %v8583_v0 }
 0x444   : > { %11545 = vmatpush3.bf16.msra.mxu1 %v12078_v21  ;;  %11560 = vmatprep.mubr.bf16.mxu1 %v10322_v12  ;;  %v8780_v12 = vrot.slane %v8778_v11, 5  ;;  %v8794_v59 = vrot.slane %v8792_v25, 5  ;;  %v8598_v18 = vsel %vm13222_vm10, %v8593_v10, %v8597_v38 }
 0x445   : > { %11546 = vmatprep.subr.bf16.mxu1 %v12081_v44  ;;  %v10297_v50 = vcombine.low %v8584_v48, %v8598_v18 }
 0x446   : > { %11527 = vmatpush3.bf16.msra.mxu0 %v12076_v40  ;;  %v6327_v13 = vld [vmem:[#allocation4 + $0x10] sm:$0xff] }
 0x447   : > { %11528 = vmatprep.subr.bf16.mxu0 %v12080_v45  ;;  %v6325_v30 = vld [vmem:[#allocation4] sm:$0xff] }
 0x448   : > { %11547 = vmatpush3.bf16.msra.mxu1 %v12081_v44  ;;  %v6328_v36 = vld [vmem:[#allocation4 + $0x18] sm:$0xff] }
 0x449   : > { %11548 = vmatprep.subr.bf16.mxu1 %v12083_v46  ;;  %v6326_v40 = vld [vmem:[#allocation4 + $0x8] sm:$0xff] }
 0x44a   : > { %11529 = vmatpush3.bf16.msra.mxu0 %v12080_v45 }
 0x44b   : > { %11530 = vmatprep.subr.bf16.mxu0 %v12082_v17 }
 0x44c   : > { %11549 = vmatpush3.bf16.msra.mxu1 %v12083_v46  ;;  %v8776_v46 = vrot.slane %v8775_v14, 4 }
 0x44d   : > { %11550 = vmatprep.subr.bf16.mxu1 %v12085_v27 }
 0x44e   : > { %11531 = vmatpush3.bf16.msra.mxu0 %v12082_v17  ;;  %v8790_v17 = vrot.slane %v8789_v34, 4  ;;  %v8781_v49 = vsel %vm13222_vm10, %v8776_v46, %v8780_v12 }
 0x44f   : > { %11532 = vmatprep.subr.bf16.mxu0 %v12084_v53 }
 0x450   : > { %11551 = vmatpush3.bf16.msra.mxu1 %v12085_v27  ;;  %v12092_v27 = vld [vmem:[%s14512_s25 + $0x238] sm:$0xff]   ;;  %v8795_v43 = vsel %vm13222_vm10, %v8790_v17, %v8794_v59 }
 0x451   : > { %11552 = vmatprep.subr.bf16.mxu1 %v12087_v29  ;;  %v10323_v55 = vcombine.low %v8781_v49, %v8795_v43 }
 0x452   : > { %11533 = vmatpush3.bf16.msra.mxu0 %v12084_v53 }
 0x453   : > { %11534 = vmatprep.subr.bf16.mxu0 %v12086_v32 }
 0x454   : > { %v11262_v23 = vpop.f32.mrb[64].mxu0  ;;  %11553 = vmatpush3.bf16.msra.mxu1 %v12087_v29 }
 0x455   : > { %v6331_v24 = vadd.f32 %v11262_v23, %v6327_v13  ;;  %v6310_v28 = vpop.f32.mrb[65].mxu0  ;;  %11554 = vmatprep.subr.bf16.mxu1 %v12089_v6 }
 0x456   : > { %v6329_v33 = vadd.f32 %v6325_v30, %v6310_v28  ;;  %v11263_v21 = vpop.f32.mrb[66].mxu0  ;;  %11535 = vmatpush3.bf16.msra.mxu0 %v12086_v32  ;;  %v11282_v58 = vpop.f32.mrb[64].mxu1 }
 0x457   : > { %6335 = vst.msk [vmem:[#allocation4 + $0x10] sm:$0xff] %vm735_vm0, %v6331_v24  ;;  %v6332_v16 = vadd.f32 %v11263_v21, %v6328_v36  ;;  %v6313_v39 = vpop.f32.mrb[67].mxu0  ;;  %11536 = vmatprep.subr.bf16.mxu0 %v12088_v41  ;;  %v6451_v37 = vpop.f32.mrb[65].mxu1 }
 0x458   : > { %6333 = vst.msk [vmem:[#allocation4] sm:$0xff] %vm735_vm0, %v6329_v33  ;;  %v6330_v44 = vadd.f32 %v6326_v40, %v6313_v39  ;;  %11555 = vmatpush3.bf16.msra.mxu1 %v12089_v6  ;;  %v11283_v45 = vpop.f32.mrb[66].mxu1 }
 0x459   : > { %6336 = vst.msk [vmem:[#allocation4 + $0x18] sm:$0xff] %vm735_vm0, %v6332_v16  ;;  %v6454_v47 = vpop.f32.mrb[67].mxu1  ;;  %11556 = vmatprep.subr.bf16.mxu1 %v12091_v31 }
 0x45a   : > { %6334 = vst.msk [vmem:[#allocation4 + $0x8] sm:$0xff] %vm735_vm0, %v6330_v44  ;;  %11537 = vmatpush3.bf16.msra.mxu0 %v12088_v41 }
 0x45b   : > { %11538 = vmatprep.subr.bf16.mxu0 %v12090_v42 }
 0x45c   : > { %11557 = vmatpush3.bf16.msra.mxu1 %v12091_v31 }
 0x45d   : > { %11558 = vmatprep.subr.bf16.mxu1 %v12092_v27 }
 0x45e   : > { %v6468_v52 = vld [vmem:[#allocation4 + $0x10] sm:$0xff]  ;;  %11539 = vmatpush3.bf16.msra.mxu0 %v12090_v42 }
 0x45f   : > { %v6472_v53 = vadd.f32 %v11282_v58, %v6468_v52  ;;  %v6466_v54 = vld [vmem:[#allocation4] sm:$0xff] }
 0x460   : > { %v6470_v56 = vadd.f32 %v6466_v54, %v6451_v37  ;;  %v6469_v57 = vld [vmem:[#allocation4 + $0x18] sm:$0xff]  ;;  %11559 = vmatpush3.bf16.msra.mxu1 %v12092_v27 }
 0x461   : > { %6476 = vst.msk [vmem:[#allocation4 + $0x10] sm:$0xff] %vm735_vm0, %v6472_v53  ;;  %v6473_v29 = vadd.f32 %v11283_v45, %v6469_v57  ;;  %v6467_v60 = vld [vmem:[#allocation4 + $0x8] sm:$0xff]  ;;  %11541 = vmatmul.mubr.bf16.vlgmr.msra.gmra.mrb[92].mxu0 %v10297_v50 }
 0x462   : > { %6474 = vst.msk [vmem:[#allocation4] sm:$0xff] %vm735_vm0, %v6470_v56  ;;  %v6471_v61 = vadd.f32 %v6467_v60, %v6454_v47 }
 0x463   : > { %6477 = vst.msk [vmem:[#allocation4 + $0x18] sm:$0xff] %vm735_vm0, %v6473_v29  ;;  %11561 = vmatmul.mubr.bf16.vlgmr.msra.gmra.mrb[92].mxu1 %v10323_v55 }
 0x464   : > { %6475 = vst.msk [vmem:[#allocation4 + $0x8] sm:$0xff] %vm735_vm0, %v6471_v61 }
 0x468   : > { %v6609_v63 = vld [vmem:[#allocation4 + $0x10] sm:$0xff] }
 0x469   : > { %v6607_v32 = vld [vmem:[#allocation4] sm:$0xff] }
 0x46a   : > { %v6610_v19 = vld [vmem:[#allocation4 + $0x18] sm:$0xff] }
 0x46b   : > { %v6608_v6 = vld [vmem:[#allocation4 + $0x8] sm:$0xff] }
 0x474   : > { %v11302_v62 = vpop.f32.mrb[68].mxu0 }
 0x475   : > { %v6613_v1 = vadd.f32 %v11302_v62, %v6609_v63  ;;  %v6592_v2 = vpop.f32.mrb[69].mxu0 }
 0x476   : > { %v6611_v3 = vadd.f32 %v6607_v32, %v6592_v2  ;;  %v11303_v4 = vpop.f32.mrb[70].mxu0  ;;  %v11322_v26 = vpop.f32.mrb[68].mxu1 }
 0x477   : > { %6617 = vst.msk [vmem:[#allocation4 + $0x10] sm:$0xff] %vm735_vm0, %v6613_v1  ;;  %v6614_v5 = vadd.f32 %v11303_v4, %v6610_v19  ;;  %v6595_v20 = vpop.f32.mrb[71].mxu0  ;;  %v6789_v51 = vpop.f32.mrb[69].mxu1  ;;  %v14375_v4 = vld [vmem:[%s14518_s20] ss:$0 sm:$0xff] }
 0x478   : > { %6615 = vst.msk [vmem:[#allocation4] sm:$0xff] %vm735_vm0, %v6611_v3  ;;  %v6612_v7 = vadd.f32 %v6608_v6, %v6595_v20  ;;  %v11323_v22 = vpop.f32.mrb[70].mxu1 }
 0x479   : > { %6618 = vst.msk [vmem:[#allocation4 + $0x18] sm:$0xff] %vm735_vm0, %v6614_v5  ;;  %v6792_v8 = vpop.f32.mrb[71].mxu1 }
 0x47a   : > { %6616 = vst.msk [vmem:[#allocation4 + $0x8] sm:$0xff] %vm735_vm0, %v6612_v7 }
 0x47e   : > { %v6806_v9 = vld [vmem:[#allocation4 + $0x10] sm:$0xff] }
 0x47f   : > { %v6810_v41 = vadd.f32 %v11322_v26, %v6806_v9  ;;  %v6804_v11 = vld [vmem:[#allocation4] sm:$0xff] }
 0x480   : > { %v6808_v23 = vadd.f32 %v6804_v11, %v6789_v51  ;;  %v6807_v13 = vld [vmem:[#allocation4 + $0x18] sm:$0xff] }
 0x481   : > { %6814 = vst.msk [vmem:[#allocation4 + $0x10] sm:$0xff] %vm735_vm0, %v6810_v41  ;;  %v6811_v14 = vadd.f32 %v11323_v22, %v6807_v13  ;;  %v6805_v34 = vld [vmem:[#allocation4 + $0x8] sm:$0xff] }
 0x482   : > { %6812 = vst.msk [vmem:[#allocation4] sm:$0xff] %vm735_vm0, %v6808_v23  ;;  %v6809_v25 = vadd.f32 %v6805_v34, %v6792_v8 }
 0x483   : > { %6815 = vst.msk [vmem:[#allocation4 + $0x18] sm:$0xff] %vm735_vm0, %v6811_v14 }
 0x484   : > { %6813 = vst.msk [vmem:[#allocation4 + $0x8] sm:$0xff] %vm735_vm0, %v6809_v25 }
 0x488   : > { %v6948_v28 = vld [vmem:[#allocation4 + $0x10] sm:$0xff] }
 0x489   : > { %v6946_v0 = vld [vmem:[#allocation4] sm:$0xff] }
 0x48a   : > { %v6949_v36 = vld [vmem:[#allocation4 + $0x18] sm:$0xff] }
 0x48b   : > { %v6947_v38 = vld [vmem:[#allocation4 + $0x8] sm:$0xff] }
 0x494   : > { %v11342_v24 = vpop.f32.mrb[72].mxu0 }
 0x495   : > { %v6952_v30 = vadd.f32 %v11342_v24, %v6948_v28  ;;  %v6931_v31 = vpop.f32.mrb[73].mxu0 }
 0x496   : > { %v6950_v33 = vadd.f32 %v6946_v0, %v6931_v31  ;;  %v11343_v21 = vpop.f32.mrb[74].mxu0  ;;  %v11362_v58 = vpop.f32.mrb[72].mxu1 }
 0x497   : > { %6956 = vst.msk [vmem:[#allocation4 + $0x10] sm:$0xff] %vm735_vm0, %v6952_v30  ;;  %v6953_v15 = vadd.f32 %v11343_v21, %v6949_v36  ;;  %v6934_v10 = vpop.f32.mrb[75].mxu0  ;;  %v7073_v16 = vpop.f32.mrb[73].mxu1 }
 0x498   : > { %6954 = vst.msk [vmem:[#allocation4] sm:$0xff] %vm735_vm0, %v6950_v33  ;;  %v6951_v39 = vadd.f32 %v6947_v38, %v6934_v10  ;;  %v11363_v40 = vpop.f32.mrb[74].mxu1 }
 0x499   : > { %6957 = vst.msk [vmem:[#allocation4 + $0x18] sm:$0xff] %vm735_vm0, %v6953_v15  ;;  %v7076_v37 = vpop.f32.mrb[75].mxu1 }
 0x49a   : > { %6955 = vst.msk [vmem:[#allocation4 + $0x8] sm:$0xff] %vm735_vm0, %v6951_v39 }
 0x49e   : > { %v7090_v42 = vld [vmem:[#allocation4 + $0x10] sm:$0xff] }
 0x49f   : > { %v7094_v12 = vadd.f32 %v11362_v58, %v7090_v42  ;;  %v7088_v44 = vld [vmem:[#allocation4] sm:$0xff] }
 0x4a0   : > { %v7092_v45 = vadd.f32 %v7088_v44, %v7073_v16  ;;  %v7091_v46 = vld [vmem:[#allocation4 + $0x18] sm:$0xff] }
 0x4a1   : > { %7098 = vst.msk [vmem:[#allocation4 + $0x10] sm:$0xff] %vm735_vm0, %v7094_v12  ;;  %v7095_v17 = vadd.f32 %v11363_v40, %v7091_v46  ;;  %v7089_v59 = vld [vmem:[#allocation4 + $0x8] sm:$0xff]  ;;  %v5854_v47 = vpop.permute.xlu1 %5853 }
 0x4a2   : > { %7096 = vst.msk [vmem:[#allocation4] sm:$0xff] %vm735_vm0, %v7092_v45  ;;  %v7093_v27 = vadd.f32 %v7089_v59, %v7076_v37  ;;  %v5850_v48 = vpop.permute.xlu0 %5849 }
 0x4a3   : > { %5864 = vst.msk [vmem:[%s12503_s23 + $0x10] sm:$0xff] %vm5861_vm11, %v5854_v47  ;;  %5862 = vst.msk [vmem:[%s12503_s23] sm:$0xff] %vm5861_vm11, %v5850_v48 }
 0x4a4   : > { %7099 = vst.msk [vmem:[#allocation4 + $0x18] sm:$0xff] %vm735_vm0, %v7095_v17  ;;  %7097 = vst.msk [vmem:[#allocation4 + $0x8] sm:$0xff] %vm735_vm0, %v7093_v27 }
 0x4a5   : > { %v5856_v18 = vpop.permute.xlu1 %5855 }
 0x4a6   : > { %5865 = vst.msk [vmem:[%s12503_s23 + $0x18] sm:$0xff] %vm5861_vm11, %v5856_v18  ;;  %v5852_v49 = vpop.permute.xlu0 %5851 }
 0x4a7   : > { %5863 = vst.msk [vmem:[%s12503_s23 + $0x8] sm:$0xff] %vm5861_vm11, %v5852_v49 }
 0x4a8   : > { %v7287_v50 = vld [vmem:[#allocation4 + $0x10] sm:$0xff] }
 0x4a9   : > { %v7285_v54 = vld [vmem:[#allocation4] sm:$0xff] }
 0x4ab   : > { %v7288_v57 = vld [vmem:[#allocation4 + $0x18] sm:$0xff]  ;;  %v7286_v62 = vld [vmem:[#allocation4 + $0x8] sm:$0xff] }
 0x4b4   : > { %v11382_v43 = vpop.f32.mrb[76].mxu0 }
 0x4b5   : > { %v7291_v52 = vadd.f32 %v11382_v43, %v7287_v50  ;;  %v7270_v53 = vpop.f32.mrb[77].mxu0 }
 0x4b6   : > { %v7289_v55 = vadd.f32 %v7285_v54, %v7270_v53  ;;  %v11383_v56 = vpop.f32.mrb[78].mxu0  ;;  %v11402_v29 = vpop.f32.mrb[76].mxu1 }
 0x4b7   : > { %7295 = vst.msk [vmem:[#allocation4 + $0x10] sm:$0xff] %vm735_vm0, %v7291_v52  ;;  %v7292_v60 = vadd.f32 %v11383_v56, %v7288_v57  ;;  %v7273_v61 = vpop.f32.mrb[79].mxu0  ;;  %v7446_v63 = vpop.f32.mrb[77].mxu1 }
 0x4b8   : > { %7293 = vst.msk [vmem:[#allocation4] sm:$0xff] %vm735_vm0, %v7289_v55  ;;  %v7290_v1 = vadd.f32 %v7286_v62, %v7273_v61  ;;  %v11403_v2 = vpop.f32.mrb[78].mxu1 }
 0x4b9   : > { %7296 = vst.msk [vmem:[#allocation4 + $0x18] sm:$0xff] %vm735_vm0, %v7292_v60  ;;  %v7449_v32 = vpop.f32.mrb[79].mxu1 }
 0x4ba   : > { %7294 = vst.msk [vmem:[#allocation4 + $0x8] sm:$0xff] %vm735_vm0, %v7290_v1 }
 0x4be   : > { %v7299_v3 = vld [vmem:[#allocation4 + $0x10] sm:$0xff] }
 0x4bf   : > { %v7310_v19 = vmul.f32 %v14211_v35, %v7299_v3  ;;  %7463 = vst.msk [vmem:[#allocation4 + $0x10] sm:$0xff] %vm735_vm0, %v11402_v29  ;;  %v7297_v26 = vld [vmem:[#allocation4] sm:$0xff] }
 0x4c0   : > { %v7308_v5 = vmul.f32 %v14211_v35, %v7297_v26  ;;  %7461 = vst.msk [vmem:[#allocation4] sm:$0xff] %vm735_vm0, %v7446_v63  ;;  %v7300_v20 = vld [vmem:[#allocation4 + $0x18] sm:$0xff] }
 0x4c1   : > { %v7311_v6 = vmul.f32 %v14211_v35, %v7300_v20  ;;  %7464 = vst.msk [vmem:[#allocation4 + $0x18] sm:$0xff] %vm735_vm0, %v11403_v2  ;;  %v7298_v51 = vld [vmem:[#allocation4 + $0x8] sm:$0xff]  ;;  %v7321_v7 = vadd.f32 %v14375_v4, %v7310_v19 }
 0x4c2   : > { %v7309_v22 = vmul.f32 %v14211_v35, %v7298_v51  ;;  %7462 = vst.msk [vmem:[#allocation4 + $0x8] sm:$0xff] %vm735_vm0, %v7449_v32  ;;  %v7319_v8 = vadd.f32 %v14375_v4, %v7308_v5 }
 0x4c3   : > { %v7325_v9 = vmax.f32 %v7321_v7, 0.0  ;;  %v7322_v41 = vadd.f32 %v14375_v4, %v7311_v6 }
 0x4c4   : > { %v7323_v11 = vmax.f32 %v7319_v8, 0.0  ;;  %v7320_v23 = vadd.f32 %v14375_v4, %v7309_v22 }
 0x4c5   : > { %10112 = vst.msk [vmem:[%s12503_s23 + $0x30] sm:$0xff] %vm735_vm0, %v7325_v9  ;;  %v7326_v13 = vmax.f32 %v7322_v41, 0.0 }
 0x4c6   : > { %10110 = vst.msk [vmem:[%s12503_s23 + $0x20] sm:$0xff] %vm735_vm0, %v7323_v11  ;;  %v7324_v14 = vmax.f32 %v7320_v23, 0.0  ;;  %v7652_v34 = vld [vmem:[#allocation4 + $0x10] sm:$0xff] }
 0x4c7   : > { %10113 = vst.msk [vmem:[%s12503_s23 + $0x38] sm:$0xff] %vm735_vm0, %v7326_v13  ;;  %v7650_v28 = vld [vmem:[#allocation4] sm:$0xff] }
 0x4c8   : > { %10111 = vst.msk [vmem:[%s12503_s23 + $0x28] sm:$0xff] %vm735_vm0, %v7324_v14  ;;  %v7653_v0 = vld [vmem:[#allocation4 + $0x18] sm:$0xff] }
 0x4c9   : > { %v7651_v58 = vld [vmem:[#allocation4 + $0x8] sm:$0xff] }
 0x4d4   : > { %v11422_v35 = vpop.f32.mrb[80].mxu0 }
 0x4d5   : > { %v7656_v25 = vadd.f32 %v11422_v35, %v7652_v34  ;;  %v7635_v24 = vpop.f32.mrb[81].mxu0 }
 0x4d6   : > { %v7654_v30 = vadd.f32 %v7650_v28, %v7635_v24  ;;  %v11423_v31 = vpop.f32.mrb[82].mxu0  ;;  %v11442_v33 = vpop.f32.mrb[80].mxu1 }
 0x4d7   : > { %7660 = vst.msk [vmem:[#allocation4 + $0x10] sm:$0xff] %vm735_vm0, %v7656_v25  ;;  %v7657_v21 = vadd.f32 %v11423_v31, %v7653_v0  ;;  %v7638_v36 = vpop.f32.mrb[83].mxu0  ;;  %v7832_v15 = vpop.f32.mrb[81].mxu1 }
 0x4d8   : > { %7658 = vst.msk [vmem:[#allocation4] sm:$0xff] %vm735_vm0, %v7654_v30  ;;  %v7655_v10 = vadd.f32 %v7651_v58, %v7638_v36  ;;  %v11443_v38 = vpop.f32.mrb[82].mxu1 }
 0x4d9   : > { %7661 = vst.msk [vmem:[#allocation4 + $0x18] sm:$0xff] %vm735_vm0, %v7657_v21  ;;  %v7835_v16 = vpop.f32.mrb[83].mxu1 }
 0x4da   : > { %7659 = vst.msk [vmem:[#allocation4 + $0x8] sm:$0xff] %vm735_vm0, %v7655_v10 }
 0x4de   : > { %v7849_v39 = vld [vmem:[#allocation4 + $0x10] sm:$0xff] }
 0x4df   : > { %v7853_v40 = vadd.f32 %v11442_v33, %v7849_v39  ;;  %v7847_v37 = vld [vmem:[#allocation4] sm:$0xff] }
 0x4e0   : > { %v7851_v42 = vadd.f32 %v7847_v37, %v7832_v15  ;;  %v7850_v12 = vld [vmem:[#allocation4 + $0x18] sm:$0xff] }
 0x4e1   : > { %7857 = vst.msk [vmem:[#allocation4 + $0x10] sm:$0xff] %vm735_vm0, %v7853_v40  ;;  %v7854_v44 = vadd.f32 %v11443_v38, %v7850_v12  ;;  %v7848_v45 = vld [vmem:[#allocation4 + $0x8] sm:$0xff] }
 0x4e2   : > { %7855 = vst.msk [vmem:[#allocation4] sm:$0xff] %vm735_vm0, %v7851_v42  ;;  %v7852_v46 = vadd.f32 %v7848_v45, %v7835_v16 }
 0x4e3   : > { %7858 = vst.msk [vmem:[#allocation4 + $0x18] sm:$0xff] %vm735_vm0, %v7854_v44 }
 0x4e4   : > { %7856 = vst.msk [vmem:[#allocation4 + $0x8] sm:$0xff] %vm735_vm0, %v7852_v46 }
 0x4e8   : > { %v7990_v59 = vld [vmem:[#allocation4 + $0x10] sm:$0xff] }
 0x4e9   : > { %v7988_v48 = vld [vmem:[#allocation4] sm:$0xff] }
 0x4ea   : > { %v7991_v43 = vld [vmem:[#allocation4 + $0x18] sm:$0xff] }
 0x4eb   : > { %v7989_v54 = vld [vmem:[#allocation4 + $0x8] sm:$0xff] }
 0x4f4   : > { %v11462_v17 = vpop.f32.mrb[84].mxu0 }
 0x4f5   : > { %v7994_v47 = vadd.f32 %v11462_v17, %v7990_v59  ;;  %v7973_v27 = vpop.f32.mrb[85].mxu0 }
 0x4f6   : > { %v7992_v18 = vadd.f32 %v7988_v48, %v7973_v27  ;;  %v11463_v49 = vpop.f32.mrb[86].mxu0  ;;  %v11482_v50 = vpop.f32.mrb[84].mxu1 }
 0x4f7   : > { %7998 = vst.msk [vmem:[#allocation4 + $0x10] sm:$0xff] %vm735_vm0, %v7994_v47  ;;  %v7995_v52 = vadd.f32 %v11463_v49, %v7991_v43  ;;  %v7976_v53 = vpop.f32.mrb[87].mxu0  ;;  %v8170_v55 = vpop.f32.mrb[85].mxu1 }
 0x4f8   : > { %7996 = vst.msk [vmem:[#allocation4] sm:$0xff] %vm735_vm0, %v7992_v18  ;;  %v7993_v56 = vadd.f32 %v7989_v54, %v7976_v53  ;;  %v11483_v57 = vpop.f32.mrb[86].mxu1 }
 0x4f9   : > { %7999 = vst.msk [vmem:[#allocation4 + $0x18] sm:$0xff] %vm735_vm0, %v7995_v52  ;;  %v8173_v29 = vpop.f32.mrb[87].mxu1  ;;  %v10332_v52 = vld [vmem:[%s14516_s22] ss:$0 sm:$0xff] }
 0x4fa   : > { %7997 = vst.msk [vmem:[#allocation4 + $0x8] sm:$0xff] %vm735_vm0, %v7993_v56 }
 0x4fe   : > { %v8187_v60 = vld [vmem:[#allocation4 + $0x10] sm:$0xff] }
 0x4ff   : > { %v8191_v61 = vadd.f32 %v11482_v50, %v8187_v60  ;;  %v8185_v62 = vld [vmem:[#allocation4] sm:$0xff] }
 0x500   : > { %v8189_v63 = vadd.f32 %v8185_v62, %v8170_v55  ;;  %v8188_v1 = vld [vmem:[#allocation4 + $0x18] sm:$0xff] }
 0x501   : > { %8195 = vst.msk [vmem:[#allocation4 + $0x10] sm:$0xff] %vm735_vm0, %v8191_v61  ;;  %v8192_v2 = vadd.f32 %v11483_v57, %v8188_v1  ;;  %v8186_v32 = vld [vmem:[#allocation4 + $0x8] sm:$0xff] }
 0x502   : > { %8193 = vst.msk [vmem:[#allocation4] sm:$0xff] %vm735_vm0, %v8189_v63  ;;  %v8190_v3 = vadd.f32 %v8186_v32, %v8173_v29 }
 0x503   : > { %8196 = vst.msk [vmem:[#allocation4 + $0x18] sm:$0xff] %vm735_vm0, %v8192_v2 }
 0x504   : > { %8194 = vst.msk [vmem:[#allocation4 + $0x8] sm:$0xff] %vm735_vm0, %v8190_v3 }
 0x508   : > { %v8384_v26 = vld [vmem:[#allocation4 + $0x10] sm:$0xff] }
 0x509   : > { %v8382_v6 = vld [vmem:[#allocation4] sm:$0xff] }
 0x50a   : > { %v8385_v22 = vld [vmem:[#allocation4 + $0x18] sm:$0xff] }
 0x50b   : > { %v8383_v11 = vld [vmem:[#allocation4 + $0x8] sm:$0xff] }
 0x514   : > { %v11502_v19 = vpop.f32.mrb[88].mxu0 }
 0x515   : > { %v8388_v5 = vadd.f32 %v11502_v19, %v8384_v26  ;;  %v8367_v20 = vpop.f32.mrb[89].mxu0 }
 0x516   : > { %v8386_v51 = vadd.f32 %v8382_v6, %v8367_v20  ;;  %v11503_v7 = vpop.f32.mrb[90].mxu0  ;;  %v11522_v8 = vpop.f32.mrb[88].mxu1 }
 0x517   : > { %8392 = vst.msk [vmem:[#allocation4 + $0x10] sm:$0xff] %vm735_vm0, %v8388_v5  ;;  %v8389_v9 = vadd.f32 %v11503_v7, %v8385_v22  ;;  %v8370_v41 = vpop.f32.mrb[91].mxu0  ;;  %v8508_v23 = vpop.f32.mrb[89].mxu1 }
 0x518   : > { %8390 = vst.msk [vmem:[#allocation4] sm:$0xff] %vm735_vm0, %v8386_v51  ;;  %v8387_v13 = vadd.f32 %v8383_v11, %v8370_v41  ;;  %v11523_v14 = vpop.f32.mrb[90].mxu1 }
 0x519   : > { %8393 = vst.msk [vmem:[#allocation4 + $0x18] sm:$0xff] %vm735_vm0, %v8389_v9  ;;  %v8511_v35 = vpop.f32.mrb[91].mxu1 }
 0x51a   : > { %8391 = vst.msk [vmem:[#allocation4 + $0x8] sm:$0xff] %vm735_vm0, %v8387_v13 }
 0x51e   : > { %v8525_v34 = vld [vmem:[#allocation4 + $0x10] sm:$0xff] }
 0x51f   : > { %v8529_v25 = vadd.f32 %v11522_v8, %v8525_v34  ;;  %v8523_v24 = vld [vmem:[#allocation4] sm:$0xff] }
 0x520   : > { %v8527_v28 = vadd.f32 %v8523_v24, %v8508_v23  ;;  %v8526_v30 = vld [vmem:[#allocation4 + $0x18] sm:$0xff] }
 0x521   : > { %8533 = vst.msk [vmem:[#allocation4 + $0x10] sm:$0xff] %vm735_vm0, %v8529_v25  ;;  %v8530_v31 = vadd.f32 %v11523_v14, %v8526_v30  ;;  %v8524_v0 = vld [vmem:[#allocation4 + $0x8] sm:$0xff] }
 0x522   : > { %8531 = vst.msk [vmem:[#allocation4] sm:$0xff] %vm735_vm0, %v8527_v28  ;;  %v8528_v33 = vadd.f32 %v8524_v0, %v8511_v35 }
 0x523   : > { %8534 = vst.msk [vmem:[#allocation4 + $0x18] sm:$0xff] %vm735_vm0, %v8530_v31 }
 0x524   : > { %8532 = vst.msk [vmem:[#allocation4 + $0x8] sm:$0xff] %vm735_vm0, %v8528_v33 }
 0x528   : > { %v8722_v36 = vld [vmem:[#allocation4 + $0x10] sm:$0xff] }
 0x529   : > { %v8720_v10 = vld [vmem:[#allocation4] sm:$0xff] }
 0x52a   : > { %v8723_v39 = vld [vmem:[#allocation4 + $0x18] sm:$0xff] }
 0x52b   : > { %v8721_v12 = vld [vmem:[#allocation4 + $0x8] sm:$0xff] }
 0x534   : > { %v11542_v21 = vpop.f32.mrb[92].mxu0 }
 0x535   : > { %v8726_v58 = vadd.f32 %v11542_v21, %v8722_v36  ;;  %v8705_v15 = vpop.f32.mrb[93].mxu0 }
 0x536   : > { %v8724_v38 = vadd.f32 %v8720_v10, %v8705_v15  ;;  %v11543_v16 = vpop.f32.mrb[94].mxu0  ;;  %v11562_v40 = vpop.f32.mrb[92].mxu1 }
 0x537   : > { %8730 = vst.msk [vmem:[#allocation4 + $0x10] sm:$0xff] %vm735_vm0, %v8726_v58  ;;  %v8727_v37 = vadd.f32 %v11543_v16, %v8723_v39  ;;  %v8708_v42 = vpop.f32.mrb[95].mxu0  ;;  %v8902_v44 = vpop.f32.mrb[93].mxu1 }
 0x538   : > { %8728 = vst.msk [vmem:[#allocation4] sm:$0xff] %vm735_vm0, %v8724_v38  ;;  %v8725_v45 = vadd.f32 %v8721_v12, %v8708_v42  ;;  %v11563_v46 = vpop.f32.mrb[94].mxu1 }
 0x539   : > { %8731 = vst.msk [vmem:[#allocation4 + $0x18] sm:$0xff] %vm735_vm0, %v8727_v37  ;;  %v8905_v17 = vpop.f32.mrb[95].mxu1 }
 0x53a   : > { %8729 = vst.msk [vmem:[#allocation4 + $0x8] sm:$0xff] %vm735_vm0, %v8725_v45 }
 0x53e   : > { %v8919_v59 = vld [vmem:[#allocation4 + $0x10] sm:$0xff] }
 0x53f   : > { %v8923_v47 = vadd.f32 %v11562_v40, %v8919_v59  ;;  %v8917_v27 = vld [vmem:[#allocation4] sm:$0xff] }
 0x540   : > { %v8921_v48 = vadd.f32 %v8917_v27, %v8902_v44  ;;  %v8920_v18 = vld [vmem:[#allocation4 + $0x18] sm:$0xff] }
 0x541   : > { %8927 = vst.msk [vmem:[#allocation4 + $0x10] sm:$0xff] %vm735_vm0, %v8923_v47  ;;  %v8924_v49 = vadd.f32 %v11563_v46, %v8920_v18  ;;  %v8918_v43 = vld [vmem:[#allocation4 + $0x8] sm:$0xff] }
 0x542   : > { %8925 = vst.msk [vmem:[#allocation4] sm:$0xff] %vm735_vm0, %v8921_v48  ;;  %v8922_v50 = vadd.f32 %v8918_v43, %v8905_v17 }
 0x543   : > { %8928 = vst.msk [vmem:[#allocation4 + $0x18] sm:$0xff] %vm735_vm0, %v8924_v49 }
 0x544   : > { %8926 = vst.msk [vmem:[#allocation4 + $0x8] sm:$0xff] %vm735_vm0, %v8922_v50 }
 0x548   : > { %v8931_v53 = vld [vmem:[#allocation4 + $0x10] sm:$0xff] }
 0x549   : > { %v8929_v54 = vld [vmem:[#allocation4] sm:$0xff]  ;;  %v8942_v56 = vmul.f32 %v10332_v52, %v8931_v53 }
 0x54a   : > { %v8940_v55 = vmul.f32 %v10332_v52, %v8929_v54  ;;  %v8932_v57 = vld [vmem:[#allocation4 + $0x18] sm:$0xff] }
 0x54b   : > { %v8930_v29 = vld [vmem:[#allocation4 + $0x8] sm:$0xff]  ;;  %v8943_v62 = vmul.f32 %v10332_v52, %v8932_v57  ;;  %v8953_v2 = vadd.f32 %v14375_v4, %v8942_v56 }
 0x54c   : > { %v8951_v60 = vadd.f32 %v14375_v4, %v8940_v55  ;;  %v8941_v61 = vmul.f32 %v10332_v52, %v8930_v29 }
 0x54d   : > { %v8954_v3 = vadd.f32 %v14375_v4, %v8943_v62  ;;  %v8957_v19 = vmax.f32 %v8953_v2, 0.0 }
 0x54e   : > { %v8955_v63 = vmax.f32 %v8951_v60, 0.0  ;;  %v8952_v1 = vadd.f32 %v14375_v4, %v8941_v61 }
 0x54f   : > { %v8958_v26 = vmax.f32 %v8954_v3, 0.0 }
 0x550   : > { %8963 = vrot.lane.b32.xlu0 %v8955_v63, %s12219_s7  ;;  %v8956_v32 = vmax.f32 %v8952_v1, 0.0 }
 0x552   : > { %8965 = vrot.lane.b32.xlu1 %v8956_v32, %s12219_s7 }
 0x554   : > { %8967 = vrot.lane.b32.xlu0 %v8957_v19, %s12219_s7 }
 0x556   : > { %8969 = vrot.lane.b32.xlu1 %v8958_v26, %s12219_s7 }
 0x5c2   : > { %v8964_v5 = vpop.permute.xlu0 %8963 }
 0x5c3   : > { %10334 = vst.msk [vmem:[%s12503_s23 + $0x20] sm:$0xff] %vm5861_vm11, %v8964_v5 }
 0x5c4   : > { %v8966_v20 = vpop.permute.xlu1 %8965 }
 0x5c5   : > { %10335 = vst.msk [vmem:[%s12503_s23 + $0x28] sm:$0xff] %vm5861_vm11, %v8966_v20 }
 0x5c6   : > { %v8968_v6 = vpop.permute.xlu0 %8967 }
 0x5c7   : > { %10336 = vst.msk [vmem:[%s12503_s23 + $0x30] sm:$0xff] %vm5861_vm11, %v8968_v6 }
 0x5c8   : > { %v8970_v51 = vpop.permute.xlu1 %8969 }
 0x5c9   : > { %10337 = vst.msk [vmem:[%s12503_s23 + $0x38] sm:$0xff] %vm5861_vm11, %v8970_v51 }
 0x5ca PF: > { %s19_s17 = sadd.s32 1, %s12201_s17   ;;  %s14519_s11 = sld [smem:[#allocation7_spill]] }
 0x5cb   : > { %p16_p7 = scmp.ge.s32.totalorder %s19_s17, 6   ;;  %s14520_s12 = sld [smem:[#allocation10_spill]] }
 0x5cc   : > { %s14521_s7 = sld [smem:[#allocation8_spill]]  ;;  %s14522_s24 = sld [smem:[#allocation9_spill]] }
 0x5cd   : > { %s14523_s30 = smov %s12173_s10  ;;  %s14524_s10 = smov %s12347_s6 }
 0x5ce   : > { %s14525_s13 = smov %s12193_s15  ;;  %s14526_s14 = smov %s12197_s16 }
 0x5cf   :  { %18 = sbr.rel (!%p16_p7) target bundleno = 11 (0xb), region = 265 }
 0x5d2   : > { %s14527_s15 = smov %s14521_s7  ;;  %s14528_s16 = smov %s14522_s24 }

</bundles_post_ra>
